<compile_context>
chip_gen: v6e
topology: v6e:2x2x1
jax: 0.10.0
libtpu: 0.0.40
codegen_flags: <defaults>
</compile_context>

<pallas_src>
import functools
import math

import numpy as np
import jax
import jax.numpy as jnp
from jax import lax
from jax.experimental import pallas as pl


# ---------------------------------------------------------------------------
# host-side slab packer (records static row offsets shared with the kernel)
# ---------------------------------------------------------------------------
def _round_up(x, m):
    return ((x + m - 1) // m) * m


class _Packer:
    def __init__(self, width):
        self.width = width
        self.blocks = []
        self.offsets = {}
        self.rows = 0

    def add(self, name, arr):
        assert name not in self.offsets
        arr = np.atleast_2d(np.asarray(arr, np.float32))
        r, c = arr.shape
        assert c <= self.width
        pad = np.zeros((r, self.width), np.float32)
        pad[:, :c] = arr
        self.offsets[name] = self.rows
        self.blocks.append(pad)
        self.rows += r

    def finish(self, dtype, row_align):
        total = _round_up(self.rows, row_align)
        slab = np.zeros((total, self.width), np.float32)
        slab[: self.rows] = np.concatenate(self.blocks, axis=0)
        return jnp.asarray(slab, dtype)


# ---------------------------------------------------------------------------
# graph structure (one-hot gather / shift tables, positions)
# ---------------------------------------------------------------------------
def build_structure(B, L):
    N = B * L
    pair_ij = [(i, j) for i in range(L) for j in range(i + 1, L)]
    pg = len(pair_ij)
    P = B * pg
    PP = _round_up(P, 8)                      # pad pair rows to a sublane multiple
    m_rv = L - 1

    node_pos = np.zeros((N, 1), np.float32)   # irange(indices) / 64
    for g in range(B):
        for l in range(L):
            node_pos[g * L + l, 0] = l / 64.0

    dist_pos = np.zeros((PP, 2), np.float32)
    g_fw = np.zeros((2 * PP, N), np.float32)  # pair -> (node_i, node_j) gather
    pairs_of_node = [[] for _ in range(N)]
    for g in range(B):
        for ploc, (i, j) in enumerate(pair_ij):
            p = g * pg + ploc
            ni, nj = g * L + i, g * L + j
            # NOTE: reference divides the (already /64) node_pos by 64 again.
            dist_pos[p, 0] = node_pos[nj, 0] / 64.0
            dist_pos[p, 1] = node_pos[ni, 0] / 64.0
            g_fw[0 * PP + p, ni] = 1.0
            g_fw[1 * PP + p, nj] = 1.0
            pairs_of_node[ni].append(p)
            pairs_of_node[nj].append(p)

    g_rv = np.zeros((m_rv * N, PP), np.float32)   # node -> its L-1 pairs gather
    for n in range(N):
        for m, p in enumerate(pairs_of_node[n]):
            g_rv[m * N + n, p] = 1.0

    def shift(d, up):
        s = np.zeros((N, N), np.float32)
        for g in range(B):
            for l in range(L):
                src = l + d if up else l - d
                if 0 <= src < L:
                    s[g * L + l, g * L + src] = 1.0
        return s

    s1d, s1u = shift(1, False), shift(1, True)
    s2d, s2u = shift(2, False), shift(2, True)
    pos_m1 = s1d @ node_pos
    pos_p1 = s1u @ node_pos
    return dict(N=N, P=P, PP=PP, m_rv=m_rv, node_pos=node_pos, pos_m1=pos_m1,
                pos_p1=pos_p1, dist_pos=dist_pos, g_fw=g_fw, g_rv=g_rv,
                s1d=s1d, s1u=s1u, s2d=s2d, s2u=s2u)


# ---------------------------------------------------------------------------
# parameters (deterministic synthetic init, natural shapes)
# ---------------------------------------------------------------------------
def init_params(key, IN, HIDDEN, DIST, HA, MLPH, DEPTH):
    keys = iter(jax.random.split(key, 128))

    def w(shape, scale=0.1):
        return np.asarray(scale * jax.random.normal(next(keys), shape), np.float32)

    z = lambda s: np.zeros(s, np.float32)
    o = lambda s: np.ones(s, np.float32)

    def stream(src_w, q_w, width):
        return {
            "wk": w((src_w, HA)), "wv": w((src_w, HA)),
            "bk": z((HA,)), "bv": z((HA,)),
            "wq": w((q_w, HA)), "bq": z((HA,)),
            "wo": w((HA, width)), "bo": z((width,)),
            "ln1_g": o((width,)), "ln1_b": z((width,)),
            "ln2_g": o((width,)), "ln2_b": z((width,)),
            "w0": w((width, MLPH)), "b0": z((MLPH,)),
            "w1": w((MLPH, MLPH)), "b1": z((MLPH,)),
            "w2": w((MLPH, width)), "b2": z((width,)),
        }

    return {
        # LocalFeatures(in+1, hidden): tap-stacked conv weights [3*Cin, Cout];
        # channel IN of every tap is the position channel (folded at pack time).
        "wc1": w((3 * (IN + 1), HIDDEN)), "bc1": z((HIDDEN,)),
        "wc2": w((3 * HIDDEN, HIDDEN)), "bc2": z((HIDDEN,)),
        "pre_w": w((HIDDEN, HIDDEN)), "pre_b": z((HIDDEN,)),        # DistanceTransformer.preprocessor
        "fw": [stream(HIDDEN + 1, DIST, DIST) for _ in range(DEPTH)],
        "rv": [stream(DIST + 2, HIDDEN, HIDDEN) for _ in range(DEPTH)],
        "angle_w": w((HIDDEN, 6)), "angle_b": z((6,)),              # AngleProject (sin/cos -> atan2)
        "dist_w": w((DIST, 1)), "dist_b": z((1,)),                  # distance_lookup
    }


# ---------------------------------------------------------------------------
# pack params + structure into three VMEM slabs
# ---------------------------------------------------------------------------
def pack_inputs(params, struct, cfg):
    IN, HID, DIST = cfg["IN"], cfg["HIDDEN"], cfg["DIST"]
    HEADS, A, DEPTH = cfg["HEADS"], cfg["A"], cfg["DEPTH"]

    # bf16 [*,32]: all 32-wide learned weights
    p32 = _Packer(32)
    wc1 = params["wc1"]
    wc1_main = np.concatenate([wc1[k * (IN + 1):k * (IN + 1) + IN] for k in range(3)], axis=0)
    p32.add("wc1", wc1_main)
    p32.add("wc2", params["wc2"])
    p32.add("pre", params["pre_w"])
    p32.add("angle", params["angle_w"])
    p32.add("dist", params["dist_w"])
    for s in ("fw", "rv"):
        for d in range(DEPTH):
            sp = params[s][d]
            for bn in ("wq", "wo", "w0", "w1", "w2"):
                p32.add(s + str(d) + "_" + bn, sp[bn])
    w32 = p32.finish(jnp.bfloat16, row_align=16)

    # bf16 [*,64]: fused K|V weights + one-hot structural tables (exact in bf16)
    p64 = _Packer(64)
    for s, src_w in (("fw", HID), ("rv", DIST)):
        for d in range(DEPTH):
            sp = params[s][d]
            p64.add(s + str(d) + "_wkv",
                    np.concatenate([sp["wk"][:src_w], sp["wv"][:src_w]], axis=1))
    p64.add("g_fw", struct["g_fw"])
    p64.add("g_rv", struct["g_rv"])
    p64.add("bdiag", np.kron(np.eye(HEADS, dtype=np.float32),
                             np.ones((A, A), np.float32)))
    for nm in ("s1d", "s1u", "s2d", "s2u"):
        p64.add(nm, struct[nm])
    w64 = p64.finish(jnp.bfloat16, row_align=16)

    # f32 [*,64]: biases, LN params, folded position weights, position tables
    pf = _Packer(64)
    pf.add("posblk", np.concatenate([struct["node_pos"], struct["pos_m1"],
                                     struct["pos_p1"]], axis=1))
    pf.add("dist_pos", struct["dist_pos"])
    pf.add("wc1_pos", np.stack([wc1[k * (IN + 1) + IN] for k in range(3)], axis=0))
    pf.add("bc1", params["bc1"]); pf.add("bc2", params["bc2"])
    pf.add("pre_b", params["pre_b"])
    pf.add("angle_b", params["angle_b"]); pf.add("dist_b", params["dist_b"])
    for s, src_w in (("fw", HID), ("rv", DIST)):
        for d in range(DEPTH):
            sp = params[s][d]
            pre = s + str(d) + "_"
            pf.add(pre + "wkvpos",
                   np.concatenate([sp["wk"][src_w:], sp["wv"][src_w:]], axis=1))
            pf.add(pre + "bkv", np.concatenate([sp["bk"], sp["bv"]])[None, :])
            pf.add(pre + "bq", sp["bq"]); pf.add(pre + "bo", sp["bo"])
            pf.add(pre + "ln1g", sp["ln1_g"]); pf.add(pre + "ln1b", sp["ln1_b"])
            pf.add(pre + "ln2g", sp["ln2_g"]); pf.add(pre + "ln2b", sp["ln2_b"])
            pf.add(pre + "b0", sp["b0"]); pf.add(pre + "b1", sp["b1"])
            pf.add(pre + "b2", sp["b2"])
    fslab = pf.finish(jnp.float32, row_align=8)

    packed = dict(w32=w32, w64=w64, fslab=fslab)
    return packed, (p32.offsets, p64.offsets, pf.offsets)


# ---------------------------------------------------------------------------
# the single fused kernel
# ---------------------------------------------------------------------------
def _fused_kernel(cfg, o32, o64, of,
                  latent_ref, dist_ref, nd_ref, nf_ref,
                  w32_ref, w64_ref, f_ref, out_ref):
    B, L, N, PP = cfg["B"], cfg["L"], cfg["N"], cfg["PP"]
    M_RV, IN, HID, DIST = cfg["M_RV"], cfg["IN"], cfg["HIDDEN"], cfg["DIST"]
    A, HA, MLPH, DEPTH = cfg["A"], cfg["HA"], cfg["MLPH"], cfg["DEPTH"]
    scale = 1.0 / math.sqrt(A)

    # -------- static-offset slab accessors ----------------------------------
    def w32(name, rows, cols):
        r = o32[name]
        return w32_ref[r:r + rows, 0:cols]

    def w64(name, rows, cols):
        r = o64[name]
        return w64_ref[r:r + rows, 0:cols]

    def fro(name, rows, cols):
        r = of[name]
        return f_ref[r:r + rows, 0:cols]

    def mxu(x, w_bf):               # f32 activation -> bf16 MXU, f32 accumulate
        return jnp.dot(x.astype(jnp.bfloat16), w_bf, preferred_element_type=jnp.float32)

    def layernorm(x, g, b):
        mu = jnp.mean(x, axis=-1, keepdims=True)
        var = jnp.mean((x - mu) ** 2, axis=-1, keepdims=True)
        return (x - mu) * lax.rsqrt(var + 1e-5) * g + b

    def elu(x):
        return jnp.where(x > 0.0, x, jnp.exp(jnp.minimum(x, 0.0)) - 1.0)

    def softplus(x):                # torch F.softplus, threshold=20
        return jnp.where(x > 20.0, x, jnp.log(1.0 + jnp.exp(jnp.minimum(x, 20.0))))

    def instnorm(x):                # exact per-graph InstanceNorm1d (no affine)
        x3 = x.reshape(B, L, x.shape[1])
        mu = jnp.mean(x3, axis=1, keepdims=True)
        d = x3 - mu
        var = jnp.mean(d * d, axis=1, keepdims=True)
        return (d * lax.rsqrt(var + 1e-5)).reshape(x.shape)

    latent = latent_ref[...]                      # [N, IN]
    dist_out = dist_ref[...]                      # [PP, DIST] (rows >= P are padding)
    posblk = fro("posblk", N, 3)                  # node_pos | pos(l-1) | pos(l+1)
    pos0, pos_m1, pos_p1 = posblk[:, 0:1], posblk[:, 1:2], posblk[:, 2:3]
    dpos = fro("dist_pos", PP, 2)

    s1d = w64("s1d", N, N); s1u = w64("s1u", N, N)
    s2d = w64("s2d", N, N); s2u = w64("s2u", N, N)
    g_fw = w64("g_fw", 2 * PP, N)
    g_rv = w64("g_rv", M_RV * N, PP)
    bdiag = w64("bdiag", HA, HA)

    # ---- preproc = LocalFeatures(in+1, hidden, depth=1); position channel is
    #      folded into VPU broadcast-FMA bias terms (no K=33/99 lane concat) ----
    lat_bf = latent.astype(jnp.bfloat16)
    xcat = jnp.concatenate(
        [jnp.dot(s1d, lat_bf, preferred_element_type=jnp.float32),
         latent,
         jnp.dot(s1u, lat_bf, preferred_element_type=jnp.float32)], axis=1)
    wc1p = fro("wc1_pos", 3, HID)
    h = mxu(xcat, w32("wc1", 3 * IN, HID)) + fro("bc1", 1, HID)
    h = h + pos_m1 * wc1p[0:1, :] + pos0 * wc1p[1:2, :] + pos_p1 * wc1p[2:3, :]
    h = elu(h)

    hn = instnorm(h)
    hn_bf = hn.astype(jnp.bfloat16)
    hcat = jnp.concatenate(
        [jnp.dot(s2d, hn_bf, preferred_element_type=jnp.float32),
         hn,
         jnp.dot(s2u, hn_bf, preferred_element_type=jnp.float32)], axis=1)
    node_out = elu(mxu(hcat, w32("wc2", 3 * HID, HID)) + fro("bc2", 1, HID) + h)

    # ---- DistanceTransformer.preprocessor (Linear) ----------------------------
    feat = mxu(node_out, w32("pre", HID, HID)) + fro("pre_b", 1, HID)

    # ---- NeighbourDot attention + residual MLP block --------------------------
    # TODO(synk): torchsupport NeighbourDotMultiHeadAttention / MLP internals are
    # unavailable; standard multi-head dot-product attention over the scatter
    # neighbourhood and a 3-layer ReLU MLP are used (dropout = identity / eval).
    def attn_block(pre, d, src, src_w, pos_bias, stream, gmat, M, width):
        T = stream.shape[0]
        nm = lambda n: pre + str(d) + "_" + n
        normed = layernorm(stream, fro(nm("ln1g"), 1, width), fro(nm("ln1b"), 1, width))
        # fused K|V projection; static position columns folded into pos_bias
        kv = mxu(src, w64(nm("wkv"), src_w, 2 * HA)) + fro(nm("bkv"), 1, 2 * HA) + pos_bias
        q = mxu(normed, w32(nm("wq"), width, HA)) + fro(nm("bq"), 1, HA)
        # fused neighbour gather of K|V via one-hot (bf16, exact) matmul
        kvg = jnp.dot(gmat, kv.astype(jnp.bfloat16), preferred_element_type=jnp.float32)
        kg3 = kvg[:, 0:HA].reshape(M, T, HA)
        vg3 = kvg[:, HA:2 * HA].reshape(M, T, HA)
        qk = (kg3 * q.reshape(1, T, HA)).reshape(M * T, HA)      # broadcast, no tiled q
        # per-head logit replicated across head lanes via block-diag ones matmul
        logits = scale * jnp.dot(qk.astype(jnp.bfloat16), bdiag,
                                 preferred_element_type=jnp.float32)
        l3 = logits.reshape(M, T, HA)
        mx = jnp.max(l3, axis=0, keepdims=True)
        ex = jnp.exp(l3 - mx)
        att = jnp.sum(ex * vg3, axis=0) / jnp.sum(ex, axis=0)    # [T, HA]
        out = stream + mxu(att, w32(nm("wo"), HA, width)) + fro(nm("bo"), 1, width)
        normed2 = layernorm(out, fro(nm("ln2g"), 1, width), fro(nm("ln2b"), 1, width))
        hh = jnp.maximum(mxu(normed2, w32(nm("w0"), width, MLPH)) + fro(nm("b0"), 1, MLPH), 0.0)
        hh = jnp.maximum(mxu(hh, w32(nm("w1"), MLPH, MLPH)) + fro(nm("b1"), 1, MLPH), 0.0)
        hh = mxu(hh, w32(nm("w2"), MLPH, width)) + fro(nm("b2"), 1, width)
        return out + hh

    # ---- DEPTH encoder blocks (fw: pair stream, rv: node stream) --------------
    for d in range(DEPTH):
        noisy_dist = dist_out + nd_ref[d * PP:(d + 1) * PP, :]
        noisy_feat = feat + nf_ref[d * N:(d + 1) * N, :]
        fw_pos = pos0 * fro("fw" + str(d) + "_wkvpos", 1, 2 * HA)
        rvp = fro("rv" + str(d) + "_wkvpos", 2, 2 * HA)
        rv_pos = dpos[:, 0:1] * rvp[0:1, :] + dpos[:, 1:2] * rvp[1:2, :]
        new_dist = attn_block("fw", d, feat, HID, fw_pos, noisy_dist, g_fw, 2, DIST)
        new_feat = attn_block("rv", d, dist_out, DIST, rv_pos, noisy_feat, g_rv, M_RV, HID)
        feat, dist_out = new_feat, new_dist

    # ---- heads: lane-dense [PP,128] slab, direct sub-slice stores -------------
    y_ang = mxu(feat, w32("angle", HID, 32)) + fro("angle_b", 1, 32)          # cols 0:6 used
    y_dst = softplus((mxu(dist_out, w32("dist", DIST, 32)) + fro("dist_b", 1, 32))[:, 0:1])
    out_ref[...] = jnp.zeros_like(out_ref)
    out_ref[0:N, 0:6] = y_ang[:, 0:6]
    out_ref[:, 6:7] = y_dst


# ---------------------------------------------------------------------------
# forward builder: one grid-less pallas_call, everything VMEM-resident
# ---------------------------------------------------------------------------
def build_distance_generator(params, B, L, IN, HIDDEN, DIST, HEADS, A, MLPH, DEPTH):
    struct = build_structure(B, L)
    N, P, PP, M_RV = struct["N"], struct["P"], struct["PP"], struct["m_rv"]
    HA = HEADS * A
    cfg = dict(B=B, L=L, N=N, P=P, PP=PP, M_RV=M_RV, IN=IN, HIDDEN=HIDDEN,
               DIST=DIST, HEADS=HEADS, A=A, HA=HA, MLPH=MLPH, DEPTH=DEPTH)
    packed, offsets = pack_inputs(params, struct, cfg)
    kernel = functools.partial(_fused_kernel, cfg, *offsets)

    @jax.jit
    def forward(packed, latent, distances, key):
        kd, kf = jax.random.split(key)
        noise_d = 0.1 * jax.random.normal(kd, (DEPTH * PP, DIST), jnp.float32)
        noise_f = 0.1 * jax.random.normal(kf, (DEPTH * N, HIDDEN), jnp.float32)
        dist_in = jnp.zeros((PP, DIST), jnp.float32).at[:P].set(distances)
        slab = pl.pallas_call(
            kernel,
            out_shape=jax.ShapeDtypeStruct((PP, 128), jnp.float32),
        )(latent, dist_in, noise_d, noise_f,
          packed["w32"], packed["w64"], packed["fslab"])
        # TODO(synk): jnp.arctan2 (AngleProject head) has no reliable Mosaic
        # lowering; applied outside the kernel to the packed 6-wide sin/cos slab.
        angles = jnp.arctan2(slab[:N, 0:3], slab[:N, 3:6])
        dists = slab[:P, 6:7]
        return angles, dists

    return forward, packed, (N, P, PP)


# ---------------------------------------------------------------------------
if __name__ == "__main__":
    B, L = 2, 8                         # 2 graphs, 8 nodes each
    IN = HIDDEN = DIST = 32             # in_size == hidden_size == distance_size
    HEADS, HEAD_DIM = 4, 8              # attention size 32
    MLPH, DEPTH = 32, 3

    N = B * L
    P = B * (L * (L - 1) // 2)

    key = jax.random.PRNGKey(0)
    kp, kl, kd, kn = jax.random.split(key, 4)
    params = init_params(kp, IN, HIDDEN, DIST, HEADS * HEAD_DIM, MLPH, DEPTH)
    latent = jax.random.normal(kl, (N, IN), jnp.float32)
    distances = jax.random.normal(kd, (P, DIST), jnp.float32)

    forward, packed, _dims = build_distance_generator(
        params, B, L, IN, HIDDEN, DIST, HEADS, HEAD_DIM, MLPH, DEPTH)
    angles, dist_pred = forward(packed, latent, distances, kn)
    angles = jax.block_until_ready(angles)
    dist_pred = jax.block_until_ready(dist_pred)

    assert angles.shape == (N, 3)
    assert dist_pred.shape == (P, 1)
    assert bool(jnp.all(jnp.isfinite(angles)))
    assert bool(jnp.all(jnp.isfinite(dist_pred))) and bool(jnp.all(dist_pred >= 0.0))
    print("KERNEL_OK")
</pallas_src>

<mosaic_0001>
module attributes {stable_mosaic.version = 11 : i64} {
  func.func @_fused_kernel(%arg0: memref<16x32xf32, #tpu.memory_space<vmem>>, %arg1: memref<56x32xf32, #tpu.memory_space<vmem>>, %arg2: memref<168x32xf32, #tpu.memory_space<vmem>>, %arg3: memref<48x32xf32, #tpu.memory_space<vmem>>, %arg4: memref<1248x32xbf16, #tpu.memory_space<vmem>>, %arg5: memref<512x64xbf16, #tpu.memory_space<vmem>>, %arg6: memref<152x64xf32, #tpu.memory_space<vmem>>, %arg7: memref<56x128xf32, #tpu.memory_space<vmem>>) attributes {dimension_semantics = [], scalar_prefetch = 0 : i64, scratch_operands = 0 : i64, tpu.core_type = #tpu.core_type<tc>} {
    %c0 = arith.constant 0 : index
    %c0_0 = arith.constant 0 : index
    %0 = vector.load %arg0[%c0, %c0_0] : memref<16x32xf32, #tpu.memory_space<vmem>>, vector<16x32xf32>
    %c0_1 = arith.constant 0 : index
    %c0_2 = arith.constant 0 : index
    %1 = vector.load %arg1[%c0_1, %c0_2] : memref<56x32xf32, #tpu.memory_space<vmem>>, vector<56x32xf32>
    %c0_3 = arith.constant 0 : index
    %c0_4 = arith.constant 0 : index
    %2 = vector.load %arg6[%c0_3, %c0_4] : memref<152x64xf32, #tpu.memory_space<vmem>>, vector<16x3xf32>
    %3 = vector.extract_strided_slice %2 {offsets = [0, 0], sizes = [16, 1], strides = [1, 1]} : vector<16x3xf32> to vector<16x1xf32>
    %4 = vector.extract_strided_slice %2 {offsets = [0, 1], sizes = [16, 1], strides = [1, 1]} : vector<16x3xf32> to vector<16x1xf32>
    %5 = vector.extract_strided_slice %2 {offsets = [0, 2], sizes = [16, 1], strides = [1, 1]} : vector<16x3xf32> to vector<16x1xf32>
    %c16 = arith.constant 16 : index
    %c0_5 = arith.constant 0 : index
    %6 = vector.load %arg6[%c16, %c0_5] : memref<152x64xf32, #tpu.memory_space<vmem>>, vector<56x2xf32>
    %c448 = arith.constant 448 : index
    %c0_6 = arith.constant 0 : index
    %7 = vector.load %arg5[%c448, %c0_6] : memref<512x64xbf16, #tpu.memory_space<vmem>>, vector<16x16xbf16>
    %c464 = arith.constant 464 : index
    %c0_7 = arith.constant 0 : index
    %8 = vector.load %arg5[%c464, %c0_7] : memref<512x64xbf16, #tpu.memory_space<vmem>>, vector<16x16xbf16>
    %c480 = arith.constant 480 : index
    %c0_8 = arith.constant 0 : index
    %9 = vector.load %arg5[%c480, %c0_8] : memref<512x64xbf16, #tpu.memory_space<vmem>>, vector<16x16xbf16>
    %c496 = arith.constant 496 : index
    %c0_9 = arith.constant 0 : index
    %10 = vector.load %arg5[%c496, %c0_9] : memref<512x64xbf16, #tpu.memory_space<vmem>>, vector<16x16xbf16>
    %c192 = arith.constant 192 : index
    %c0_10 = arith.constant 0 : index
    %11 = vector.load %arg5[%c192, %c0_10] : memref<512x64xbf16, #tpu.memory_space<vmem>>, vector<112x16xbf16>
    %c304 = arith.constant 304 : index
    %c0_11 = arith.constant 0 : index
    %12 = vector.load %arg5[%c304, %c0_11] : memref<512x64xbf16, #tpu.memory_space<vmem>>, vector<112x56xbf16>
    %c416 = arith.constant 416 : index
    %c0_12 = arith.constant 0 : index
    %13 = vector.load %arg5[%c416, %c0_12] : memref<512x64xbf16, #tpu.memory_space<vmem>>, vector<32x32xbf16>
    %14 = arith.truncf %0 : vector<16x32xf32> to vector<16x32xbf16>
    %cst = arith.constant dense<0.000000e+00> : vector<16x32xf32>
    %15 = tpu.matmul %7, %14, %cst {dimension_numbers = #tpu.dot_dimension_numbers<[1], [0], [0], [1], [0, 0, 1, 1], [], []>} : vector<16x16xbf16>, vector<16x32xbf16>, vector<16x32xf32> -> vector<16x32xf32>
    %cst_13 = arith.constant dense<0.000000e+00> : vector<16x32xf32>
    %16 = tpu.matmul %8, %14, %cst_13 {dimension_numbers = #tpu.dot_dimension_numbers<[1], [0], [0], [1], [0, 0, 1, 1], [], []>} : vector<16x16xbf16>, vector<16x32xbf16>, vector<16x32xf32> -> vector<16x32xf32>
    %17 = tpu.concatenate %15, %0, %16 in 1 : vector<16x32xf32>, vector<16x32xf32>, vector<16x32xf32> -> vector<16x96xf32>
    %c72 = arith.constant 72 : index
    %c0_14 = arith.constant 0 : index
    %18 = vector.load %arg6[%c72, %c0_14] : memref<152x64xf32, #tpu.memory_space<vmem>>, vector<3x32xf32>
    %c0_15 = arith.constant 0 : index
    %c0_16 = arith.constant 0 : index
    %19 = vector.load %arg4[%c0_15, %c0_16] : memref<1248x32xbf16, #tpu.memory_space<vmem>>, vector<96x32xbf16>
    %20 = arith.truncf %17 : vector<16x96xf32> to vector<16x96xbf16>
    %cst_17 = arith.constant dense<0.000000e+00> : vector<16x32xf32>
    %21 = tpu.matmul %20, %19, %cst_17 {dimension_numbers = #tpu.dot_dimension_numbers<[1], [0], [0], [1], [0, 0, 1, 1], [], []>} : vector<16x96xbf16>, vector<96x32xbf16>, vector<16x32xf32> -> vector<16x32xf32>
    %c75 = arith.constant 75 : index
    %c0_18 = arith.constant 0 : index
    %22 = vector.load %arg6[%c75, %c0_18] : memref<152x64xf32, #tpu.memory_space<vmem>>, vector<1x32xf32>
    %23 = vector.broadcast %22 : vector<1x32xf32> to vector<16x32xf32>
    %24 = arith.addf %21, %23 : vector<16x32xf32>
    %25 = vector.extract_strided_slice %18 {offsets = [0, 0], sizes = [1, 32], strides = [1, 1]} : vector<3x32xf32> to vector<1x32xf32>
    %26 = vector.broadcast %4 : vector<16x1xf32> to vector<16x32xf32>
    %27 = vector.broadcast %25 : vector<1x32xf32> to vector<16x32xf32>
    %28 = arith.mulf %26, %27 : vector<16x32xf32>
    %29 = arith.addf %24, %28 : vector<16x32xf32>
    %30 = vector.extract_strided_slice %18 {offsets = [1, 0], sizes = [1, 32], strides = [1, 1]} : vector<3x32xf32> to vector<1x32xf32>
    %31 = vector.broadcast %3 : vector<16x1xf32> to vector<16x32xf32>
    %32 = vector.broadcast %30 : vector<1x32xf32> to vector<16x32xf32>
    %33 = arith.mulf %31, %32 : vector<16x32xf32>
    %34 = arith.addf %29, %33 : vector<16x32xf32>
    %35 = vector.extract_strided_slice %18 {offsets = [2, 0], sizes = [1, 32], strides = [1, 1]} : vector<3x32xf32> to vector<1x32xf32>
    %36 = vector.broadcast %5 : vector<16x1xf32> to vector<16x32xf32>
    %37 = vector.broadcast %35 : vector<1x32xf32> to vector<16x32xf32>
    %38 = arith.mulf %36, %37 : vector<16x32xf32>
    %39 = arith.addf %34, %38 : vector<16x32xf32>
    %cst_19 = arith.constant 0.000000e+00 : f32
    %40 = vector.broadcast %cst_19 : f32 to vector<16x32xf32>
    %41 = arith.cmpf ogt, %39, %40 : vector<16x32xf32>
    %cst_20 = arith.constant 0.000000e+00 : f32
    %42 = vector.broadcast %cst_20 : f32 to vector<16x32xf32>
    %43 = arith.minimumf %39, %42 : vector<16x32xf32>
    %44 = math.exp %43 : vector<16x32xf32>
    %cst_21 = arith.constant 1.000000e+00 : f32
    %45 = vector.broadcast %cst_21 : f32 to vector<16x32xf32>
    %46 = arith.subf %44, %45 : vector<16x32xf32>
    %47 = arith.select %41, %39, %46 : vector<16x32xi1>, vector<16x32xf32>
    %48 = vector.shape_cast %47 : vector<16x32xf32> to vector<2x8x32xf32>
    %cst_22 = arith.constant dense<0.000000e+00> : vector<2x32xf32>
    %49 = vector.multi_reduction <add>, %48, %cst_22 [1] : vector<2x8x32xf32> to vector<2x32xf32>
    %50 = vector.shape_cast %49 : vector<2x32xf32> to vector<2x1x32xf32>
    %cst_23 = arith.constant 8.000000e+00 : f32
    %51 = vector.broadcast %cst_23 : f32 to vector<2x1x32xf32>
    %52 = arith.divf %50, %51 : vector<2x1x32xf32>
    %53 = vector.broadcast %52 : vector<2x1x32xf32> to vector<2x8x32xf32>
    %54 = arith.subf %48, %53 : vector<2x8x32xf32>
    %55 = arith.mulf %54, %54 : vector<2x8x32xf32>
    %cst_24 = arith.constant dense<0.000000e+00> : vector<2x32xf32>
    %56 = vector.multi_reduction <add>, %55, %cst_24 [1] : vector<2x8x32xf32> to vector<2x32xf32>
    %57 = vector.shape_cast %56 : vector<2x32xf32> to vector<2x1x32xf32>
    %cst_25 = arith.constant 8.000000e+00 : f32
    %58 = vector.broadcast %cst_25 : f32 to vector<2x1x32xf32>
    %59 = arith.divf %57, %58 : vector<2x1x32xf32>
    %cst_26 = arith.constant 9.99999974E-6 : f32
    %60 = vector.broadcast %cst_26 : f32 to vector<2x1x32xf32>
    %61 = arith.addf %59, %60 : vector<2x1x32xf32>
    %62 = math.rsqrt %61 : vector<2x1x32xf32>
    %63 = vector.broadcast %62 : vector<2x1x32xf32> to vector<2x8x32xf32>
    %64 = arith.mulf %54, %63 : vector<2x8x32xf32>
    %65 = vector.shape_cast %64 : vector<2x8x32xf32> to vector<16x32xf32>
    %66 = arith.truncf %65 : vector<16x32xf32> to vector<16x32xbf16>
    %cst_27 = arith.constant dense<0.000000e+00> : vector<16x32xf32>
    %67 = tpu.matmul %9, %66, %cst_27 {dimension_numbers = #tpu.dot_dimension_numbers<[1], [0], [0], [1], [0, 0, 1, 1], [], []>} : vector<16x16xbf16>, vector<16x32xbf16>, vector<16x32xf32> -> vector<16x32xf32>
    %cst_28 = arith.constant dense<0.000000e+00> : vector<16x32xf32>
    %68 = tpu.matmul %10, %66, %cst_28 {dimension_numbers = #tpu.dot_dimension_numbers<[1], [0], [0], [1], [0, 0, 1, 1], [], []>} : vector<16x16xbf16>, vector<16x32xbf16>, vector<16x32xf32> -> vector<16x32xf32>
    %69 = tpu.concatenate %67, %65, %68 in 1 : vector<16x32xf32>, vector<16x32xf32>, vector<16x32xf32> -> vector<16x96xf32>
    %c96 = arith.constant 96 : index
    %c0_29 = arith.constant 0 : index
    %70 = vector.load %arg4[%c96, %c0_29] : memref<1248x32xbf16, #tpu.memory_space<vmem>>, vector<96x32xbf16>
    %71 = arith.truncf %69 : vector<16x96xf32> to vector<16x96xbf16>
    %cst_30 = arith.constant dense<0.000000e+00> : vector<16x32xf32>
    %72 = tpu.matmul %71, %70, %cst_30 {dimension_numbers = #tpu.dot_dimension_numbers<[1], [0], [0], [1], [0, 0, 1, 1], [], []>} : vector<16x96xbf16>, vector<96x32xbf16>, vector<16x32xf32> -> vector<16x32xf32>
    %c76 = arith.constant 76 : index
    %c0_31 = arith.constant 0 : index
    %73 = vector.load %arg6[%c76, %c0_31] : memref<152x64xf32, #tpu.memory_space<vmem>>, vector<1x32xf32>
    %74 = vector.broadcast %73 : vector<1x32xf32> to vector<16x32xf32>
    %75 = arith.addf %72, %74 : vector<16x32xf32>
    %76 = arith.addf %75, %47 : vector<16x32xf32>
    %cst_32 = arith.constant 0.000000e+00 : f32
    %77 = vector.broadcast %cst_32 : f32 to vector<16x32xf32>
    %78 = arith.cmpf ogt, %76, %77 : vector<16x32xf32>
    %cst_33 = arith.constant 0.000000e+00 : f32
    %79 = vector.broadcast %cst_33 : f32 to vector<16x32xf32>
    %80 = arith.minimumf %76, %79 : vector<16x32xf32>
    %81 = math.exp %80 : vector<16x32xf32>
    %cst_34 = arith.constant 1.000000e+00 : f32
    %82 = vector.broadcast %cst_34 : f32 to vector<16x32xf32>
    %83 = arith.subf %81, %82 : vector<16x32xf32>
    %84 = arith.select %78, %76, %83 : vector<16x32xi1>, vector<16x32xf32>
    %c192_35 = arith.constant 192 : index
    %c0_36 = arith.constant 0 : index
    %85 = vector.load %arg4[%c192_35, %c0_36] : memref<1248x32xbf16, #tpu.memory_space<vmem>>, vector<32x32xbf16>
    %86 = arith.truncf %84 : vector<16x32xf32> to vector<16x32xbf16>
    %cst_37 = arith.constant dense<0.000000e+00> : vector<16x32xf32>
    %87 = tpu.matmul %86, %85, %cst_37 {dimension_numbers = #tpu.dot_dimension_numbers<[1], [0], [0], [1], [0, 0, 1, 1], [], []>} : vector<16x32xbf16>, vector<32x32xbf16>, vector<16x32xf32> -> vector<16x32xf32>
    %c77 = arith.constant 77 : index
    %c0_38 = arith.constant 0 : index
    %88 = vector.load %arg6[%c77, %c0_38] : memref<152x64xf32, #tpu.memory_space<vmem>>, vector<1x32xf32>
    %89 = vector.broadcast %88 : vector<1x32xf32> to vector<16x32xf32>
    %90 = arith.addf %87, %89 : vector<16x32xf32>
    %c0_39 = arith.constant 0 : index
    %c0_40 = arith.constant 0 : index
    %91 = vector.load %arg2[%c0_39, %c0_40] : memref<168x32xf32, #tpu.memory_space<vmem>>, vector<56x32xf32>
    %92 = arith.addf %1, %91 : vector<56x32xf32>
    %c0_41 = arith.constant 0 : index
    %c0_42 = arith.constant 0 : index
    %93 = vector.load %arg3[%c0_41, %c0_42] : memref<48x32xf32, #tpu.memory_space<vmem>>, vector<16x32xf32>
    %94 = arith.addf %90, %93 : vector<16x32xf32>
    %c80 = arith.constant 80 : index
    %c0_43 = arith.constant 0 : index
    %95 = vector.load %arg6[%c80, %c0_43] : memref<152x64xf32, #tpu.memory_space<vmem>>, vector<1x64xf32>
    %96 = vector.broadcast %3 : vector<16x1xf32> to vector<16x64xf32>
    %97 = vector.broadcast %95 : vector<1x64xf32> to vector<16x64xf32>
    %98 = arith.mulf %96, %97 : vector<16x64xf32>
    %c113 = arith.constant 113 : index
    %c0_44 = arith.constant 0 : index
    %99 = vector.load %arg6[%c113, %c0_44] : memref<152x64xf32, #tpu.memory_space<vmem>>, vector<2x64xf32>
    %100 = vector.extract_strided_slice %6 {offsets = [0, 0], sizes = [56, 1], strides = [1, 1]} : vector<56x2xf32> to vector<56x1xf32>
    %101 = vector.extract_strided_slice %99 {offsets = [0, 0], sizes = [1, 64], strides = [1, 1]} : vector<2x64xf32> to vector<1x64xf32>
    %102 = vector.broadcast %100 : vector<56x1xf32> to vector<56x64xf32>
    %103 = vector.broadcast %101 : vector<1x64xf32> to vector<56x64xf32>
    %104 = arith.mulf %102, %103 : vector<56x64xf32>
    %105 = vector.extract_strided_slice %6 {offsets = [0, 1], sizes = [56, 1], strides = [1, 1]} : vector<56x2xf32> to vector<56x1xf32>
    %106 = vector.extract_strided_slice %99 {offsets = [1, 0], sizes = [1, 64], strides = [1, 1]} : vector<2x64xf32> to vector<1x64xf32>
    %107 = vector.broadcast %105 : vector<56x1xf32> to vector<56x64xf32>
    %108 = vector.broadcast %106 : vector<1x64xf32> to vector<56x64xf32>
    %109 = arith.mulf %107, %108 : vector<56x64xf32>
    %110 = arith.addf %104, %109 : vector<56x64xf32>
    %c84 = arith.constant 84 : index
    %c0_45 = arith.constant 0 : index
    %111 = vector.load %arg6[%c84, %c0_45] : memref<152x64xf32, #tpu.memory_space<vmem>>, vector<1x32xf32>
    %c85 = arith.constant 85 : index
    %c0_46 = arith.constant 0 : index
    %112 = vector.load %arg6[%c85, %c0_46] : memref<152x64xf32, #tpu.memory_space<vmem>>, vector<1x32xf32>
    %cst_47 = arith.constant dense<0.000000e+00> : vector<56xf32>
    %113 = vector.multi_reduction <add>, %92, %cst_47 [1] : vector<56x32xf32> to vector<56xf32>
    %114 = vector.shape_cast %113 : vector<56xf32> to vector<56x1xf32>
    %cst_48 = arith.constant 3.200000e+01 : f32
    %115 = vector.broadcast %cst_48 : f32 to vector<56x1xf32>
    %116 = arith.divf %114, %115 : vector<56x1xf32>
    %117 = vector.broadcast %116 : vector<56x1xf32> to vector<56x32xf32>
    %118 = arith.subf %92, %117 : vector<56x32xf32>
    %119 = arith.mulf %118, %118 : vector<56x32xf32>
    %cst_49 = arith.constant dense<0.000000e+00> : vector<56xf32>
    %120 = vector.multi_reduction <add>, %119, %cst_49 [1] : vector<56x32xf32> to vector<56xf32>
    %121 = vector.shape_cast %120 : vector<56xf32> to vector<56x1xf32>
    %cst_50 = arith.constant 3.200000e+01 : f32
    %122 = vector.broadcast %cst_50 : f32 to vector<56x1xf32>
    %123 = arith.divf %121, %122 : vector<56x1xf32>
    %124 = vector.broadcast %116 : vector<56x1xf32> to vector<56x32xf32>
    %125 = arith.subf %92, %124 : vector<56x32xf32>
    %cst_51 = arith.constant 9.99999974E-6 : f32
    %126 = vector.broadcast %cst_51 : f32 to vector<56x1xf32>
    %127 = arith.addf %123, %126 : vector<56x1xf32>
    %128 = math.rsqrt %127 : vector<56x1xf32>
    %129 = vector.broadcast %128 : vector<56x1xf32> to vector<56x32xf32>
    %130 = arith.mulf %125, %129 : vector<56x32xf32>
    %131 = vector.broadcast %111 : vector<1x32xf32> to vector<56x32xf32>
    %132 = arith.mulf %130, %131 : vector<56x32xf32>
    %133 = vector.broadcast %112 : vector<1x32xf32> to vector<56x32xf32>
    %134 = arith.addf %132, %133 : vector<56x32xf32>
    %c0_52 = arith.constant 0 : index
    %c0_53 = arith.constant 0 : index
    %135 = vector.load %arg5[%c0_52, %c0_53] : memref<512x64xbf16, #tpu.memory_space<vmem>>, vector<32x64xbf16>
    %136 = arith.truncf %90 : vector<16x32xf32> to vector<16x32xbf16>
    %cst_54 = arith.constant dense<0.000000e+00> : vector<16x64xf32>
    %137 = tpu.matmul %136, %135, %cst_54 {dimension_numbers = #tpu.dot_dimension_numbers<[1], [0], [0], [1], [0, 0, 1, 1], [], []>} : vector<16x32xbf16>, vector<32x64xbf16>, vector<16x64xf32> -> vector<16x64xf32>
    %c81 = arith.constant 81 : index
    %c0_55 = arith.constant 0 : index
    %138 = vector.load %arg6[%c81, %c0_55] : memref<152x64xf32, #tpu.memory_space<vmem>>, vector<1x64xf32>
    %139 = vector.broadcast %138 : vector<1x64xf32> to vector<16x64xf32>
    %140 = arith.addf %137, %139 : vector<16x64xf32>
    %141 = arith.addf %140, %98 : vector<16x64xf32>
    %c288 = arith.constant 288 : index
    %c0_56 = arith.constant 0 : index
    %142 = vector.load %arg4[%c288, %c0_56] : memref<1248x32xbf16, #tpu.memory_space<vmem>>, vector<32x32xbf16>
    %143 = arith.truncf %134 : vector<56x32xf32> to vector<56x32xbf16>
    %cst_57 = arith.constant dense<0.000000e+00> : vector<56x32xf32>
    %144 = tpu.matmul %143, %142, %cst_57 {dimension_numbers = #tpu.dot_dimension_numbers<[1], [0], [0], [1], [0, 0, 1, 1], [], []>} : vector<56x32xbf16>, vector<32x32xbf16>, vector<56x32xf32> -> vector<56x32xf32>
    %c82 = arith.constant 82 : index
    %c0_58 = arith.constant 0 : index
    %145 = vector.load %arg6[%c82, %c0_58] : memref<152x64xf32, #tpu.memory_space<vmem>>, vector<1x32xf32>
    %146 = vector.broadcast %145 : vector<1x32xf32> to vector<56x32xf32>
    %147 = arith.addf %144, %146 : vector<56x32xf32>
    %148 = arith.truncf %141 : vector<16x64xf32> to vector<16x64xbf16>
    %cst_59 = arith.constant dense<0.000000e+00> : vector<112x64xf32>
    %149 = tpu.matmul %11, %148, %cst_59 {dimension_numbers = #tpu.dot_dimension_numbers<[1], [0], [0], [1], [0, 0, 1, 1], [], []>} : vector<112x16xbf16>, vector<16x64xbf16>, vector<112x64xf32> -> vector<112x64xf32>
    %150 = vector.extract_strided_slice %149 {offsets = [0, 0], sizes = [112, 32], strides = [1, 1]} : vector<112x64xf32> to vector<112x32xf32>
    %151 = vector.shape_cast %150 : vector<112x32xf32> to vector<2x56x32xf32>
    %152 = vector.extract_strided_slice %149 {offsets = [0, 32], sizes = [112, 32], strides = [1, 1]} : vector<112x64xf32> to vector<112x32xf32>
    %153 = vector.shape_cast %152 : vector<112x32xf32> to vector<2x56x32xf32>
    %154 = vector.shape_cast %147 : vector<56x32xf32> to vector<1x56x32xf32>
    %155 = vector.broadcast %154 : vector<1x56x32xf32> to vector<2x56x32xf32>
    %156 = arith.mulf %151, %155 : vector<2x56x32xf32>
    %157 = vector.shape_cast %156 : vector<2x56x32xf32> to vector<112x32xf32>
    %158 = arith.truncf %157 : vector<112x32xf32> to vector<112x32xbf16>
    %cst_60 = arith.constant dense<0.000000e+00> : vector<112x32xf32>
    %159 = tpu.matmul %158, %13, %cst_60 {dimension_numbers = #tpu.dot_dimension_numbers<[1], [0], [0], [1], [0, 0, 1, 1], [], []>} : vector<112x32xbf16>, vector<32x32xbf16>, vector<112x32xf32> -> vector<112x32xf32>
    %cst_61 = arith.constant 0.353553385 : f32
    %160 = vector.broadcast %cst_61 : f32 to vector<112x32xf32>
    %161 = arith.mulf %160, %159 : vector<112x32xf32>
    %162 = vector.shape_cast %161 : vector<112x32xf32> to vector<2x56x32xf32>
    %cst_62 = arith.constant dense<0xFF800000> : vector<56x32xf32>
    %163 = vector.multi_reduction <maximumf>, %162, %cst_62 [0] : vector<2x56x32xf32> to vector<56x32xf32>
    %164 = vector.shape_cast %163 : vector<56x32xf32> to vector<1x56x32xf32>
    %165 = vector.broadcast %164 : vector<1x56x32xf32> to vector<2x56x32xf32>
    %166 = arith.subf %162, %165 : vector<2x56x32xf32>
    %167 = math.exp %166 : vector<2x56x32xf32>
    %168 = arith.mulf %167, %153 : vector<2x56x32xf32>
    %cst_63 = arith.constant dense<0.000000e+00> : vector<56x32xf32>
    %169 = vector.multi_reduction <add>, %168, %cst_63 [0] : vector<2x56x32xf32> to vector<56x32xf32>
    %cst_64 = arith.constant dense<0.000000e+00> : vector<56x32xf32>
    %170 = vector.multi_reduction <add>, %167, %cst_64 [0] : vector<2x56x32xf32> to vector<56x32xf32>
    %171 = arith.divf %169, %170 : vector<56x32xf32>
    %c320 = arith.constant 320 : index
    %c0_65 = arith.constant 0 : index
    %172 = vector.load %arg4[%c320, %c0_65] : memref<1248x32xbf16, #tpu.memory_space<vmem>>, vector<32x32xbf16>
    %173 = arith.truncf %171 : vector<56x32xf32> to vector<56x32xbf16>
    %cst_66 = arith.constant dense<0.000000e+00> : vector<56x32xf32>
    %174 = tpu.matmul %173, %172, %cst_66 {dimension_numbers = #tpu.dot_dimension_numbers<[1], [0], [0], [1], [0, 0, 1, 1], [], []>} : vector<56x32xbf16>, vector<32x32xbf16>, vector<56x32xf32> -> vector<56x32xf32>
    %175 = arith.addf %92, %174 : vector<56x32xf32>
    %c83 = arith.constant 83 : index
    %c0_67 = arith.constant 0 : index
    %176 = vector.load %arg6[%c83, %c0_67] : memref<152x64xf32, #tpu.memory_space<vmem>>, vector<1x32xf32>
    %177 = vector.broadcast %176 : vector<1x32xf32> to vector<56x32xf32>
    %178 = arith.addf %175, %177 : vector<56x32xf32>
    %c86 = arith.constant 86 : index
    %c0_68 = arith.constant 0 : index
    %179 = vector.load %arg6[%c86, %c0_68] : memref<152x64xf32, #tpu.memory_space<vmem>>, vector<1x32xf32>
    %c87 = arith.constant 87 : index
    %c0_69 = arith.constant 0 : index
    %180 = vector.load %arg6[%c87, %c0_69] : memref<152x64xf32, #tpu.memory_space<vmem>>, vector<1x32xf32>
    %cst_70 = arith.constant dense<0.000000e+00> : vector<56xf32>
    %181 = vector.multi_reduction <add>, %178, %cst_70 [1] : vector<56x32xf32> to vector<56xf32>
    %182 = vector.shape_cast %181 : vector<56xf32> to vector<56x1xf32>
    %cst_71 = arith.constant 3.200000e+01 : f32
    %183 = vector.broadcast %cst_71 : f32 to vector<56x1xf32>
    %184 = arith.divf %182, %183 : vector<56x1xf32>
    %185 = vector.broadcast %184 : vector<56x1xf32> to vector<56x32xf32>
    %186 = arith.subf %178, %185 : vector<56x32xf32>
    %187 = arith.mulf %186, %186 : vector<56x32xf32>
    %cst_72 = arith.constant dense<0.000000e+00> : vector<56xf32>
    %188 = vector.multi_reduction <add>, %187, %cst_72 [1] : vector<56x32xf32> to vector<56xf32>
    %189 = vector.shape_cast %188 : vector<56xf32> to vector<56x1xf32>
    %cst_73 = arith.constant 3.200000e+01 : f32
    %190 = vector.broadcast %cst_73 : f32 to vector<56x1xf32>
    %191 = arith.divf %189, %190 : vector<56x1xf32>
    %192 = vector.broadcast %184 : vector<56x1xf32> to vector<56x32xf32>
    %193 = arith.subf %178, %192 : vector<56x32xf32>
    %cst_74 = arith.constant 9.99999974E-6 : f32
    %194 = vector.broadcast %cst_74 : f32 to vector<56x1xf32>
    %195 = arith.addf %191, %194 : vector<56x1xf32>
    %196 = math.rsqrt %195 : vector<56x1xf32>
    %197 = vector.broadcast %196 : vector<56x1xf32> to vector<56x32xf32>
    %198 = arith.mulf %193, %197 : vector<56x32xf32>
    %199 = vector.broadcast %179 : vector<1x32xf32> to vector<56x32xf32>
    %200 = arith.mulf %198, %199 : vector<56x32xf32>
    %201 = vector.broadcast %180 : vector<1x32xf32> to vector<56x32xf32>
    %202 = arith.addf %200, %201 : vector<56x32xf32>
    %c352 = arith.constant 352 : index
    %c0_75 = arith.constant 0 : index
    %203 = vector.load %arg4[%c352, %c0_75] : memref<1248x32xbf16, #tpu.memory_space<vmem>>, vector<32x32xbf16>
    %204 = arith.truncf %202 : vector<56x32xf32> to vector<56x32xbf16>
    %cst_76 = arith.constant dense<0.000000e+00> : vector<56x32xf32>
    %205 = tpu.matmul %204, %203, %cst_76 {dimension_numbers = #tpu.dot_dimension_numbers<[1], [0], [0], [1], [0, 0, 1, 1], [], []>} : vector<56x32xbf16>, vector<32x32xbf16>, vector<56x32xf32> -> vector<56x32xf32>
    %c88 = arith.constant 88 : index
    %c0_77 = arith.constant 0 : index
    %206 = vector.load %arg6[%c88, %c0_77] : memref<152x64xf32, #tpu.memory_space<vmem>>, vector<1x32xf32>
    %207 = vector.broadcast %206 : vector<1x32xf32> to vector<56x32xf32>
    %208 = arith.addf %205, %207 : vector<56x32xf32>
    %cst_78 = arith.constant 0.000000e+00 : f32
    %209 = vector.broadcast %cst_78 : f32 to vector<56x32xf32>
    %210 = arith.maximumf %208, %209 : vector<56x32xf32>
    %c384 = arith.constant 384 : index
    %c0_79 = arith.constant 0 : index
    %211 = vector.load %arg4[%c384, %c0_79] : memref<1248x32xbf16, #tpu.memory_space<vmem>>, vector<32x32xbf16>
    %212 = arith.truncf %210 : vector<56x32xf32> to vector<56x32xbf16>
    %cst_80 = arith.constant dense<0.000000e+00> : vector<56x32xf32>
    %213 = tpu.matmul %212, %211, %cst_80 {dimension_numbers = #tpu.dot_dimension_numbers<[1], [0], [0], [1], [0, 0, 1, 1], [], []>} : vector<56x32xbf16>, vector<32x32xbf16>, vector<56x32xf32> -> vector<56x32xf32>
    %c89 = arith.constant 89 : index
    %c0_81 = arith.constant 0 : index
    %214 = vector.load %arg6[%c89, %c0_81] : memref<152x64xf32, #tpu.memory_space<vmem>>, vector<1x32xf32>
    %215 = vector.broadcast %214 : vector<1x32xf32> to vector<56x32xf32>
    %216 = arith.addf %213, %215 : vector<56x32xf32>
    %cst_82 = arith.constant 0.000000e+00 : f32
    %217 = vector.broadcast %cst_82 : f32 to vector<56x32xf32>
    %218 = arith.maximumf %216, %217 : vector<56x32xf32>
    %c416_83 = arith.constant 416 : index
    %c0_84 = arith.constant 0 : index
    %219 = vector.load %arg4[%c416_83, %c0_84] : memref<1248x32xbf16, #tpu.memory_space<vmem>>, vector<32x32xbf16>
    %220 = arith.truncf %218 : vector<56x32xf32> to vector<56x32xbf16>
    %cst_85 = arith.constant dense<0.000000e+00> : vector<56x32xf32>
    %221 = tpu.matmul %220, %219, %cst_85 {dimension_numbers = #tpu.dot_dimension_numbers<[1], [0], [0], [1], [0, 0, 1, 1], [], []>} : vector<56x32xbf16>, vector<32x32xbf16>, vector<56x32xf32> -> vector<56x32xf32>
    %c90 = arith.constant 90 : index
    %c0_86 = arith.constant 0 : index
    %222 = vector.load %arg6[%c90, %c0_86] : memref<152x64xf32, #tpu.memory_space<vmem>>, vector<1x32xf32>
    %223 = vector.broadcast %222 : vector<1x32xf32> to vector<56x32xf32>
    %224 = arith.addf %221, %223 : vector<56x32xf32>
    %225 = arith.addf %178, %224 : vector<56x32xf32>
    %c118 = arith.constant 118 : index
    %c0_87 = arith.constant 0 : index
    %226 = vector.load %arg6[%c118, %c0_87] : memref<152x64xf32, #tpu.memory_space<vmem>>, vector<1x32xf32>
    %c119 = arith.constant 119 : index
    %c0_88 = arith.constant 0 : index
    %227 = vector.load %arg6[%c119, %c0_88] : memref<152x64xf32, #tpu.memory_space<vmem>>, vector<1x32xf32>
    %cst_89 = arith.constant dense<0.000000e+00> : vector<16xf32>
    %228 = vector.multi_reduction <add>, %94, %cst_89 [1] : vector<16x32xf32> to vector<16xf32>
    %229 = vector.shape_cast %228 : vector<16xf32> to vector<16x1xf32>
    %cst_90 = arith.constant 3.200000e+01 : f32
    %230 = vector.broadcast %cst_90 : f32 to vector<16x1xf32>
    %231 = arith.divf %229, %230 : vector<16x1xf32>
    %232 = vector.broadcast %231 : vector<16x1xf32> to vector<16x32xf32>
    %233 = arith.subf %94, %232 : vector<16x32xf32>
    %234 = arith.mulf %233, %233 : vector<16x32xf32>
    %cst_91 = arith.constant dense<0.000000e+00> : vector<16xf32>
    %235 = vector.multi_reduction <add>, %234, %cst_91 [1] : vector<16x32xf32> to vector<16xf32>
    %236 = vector.shape_cast %235 : vector<16xf32> to vector<16x1xf32>
    %cst_92 = arith.constant 3.200000e+01 : f32
    %237 = vector.broadcast %cst_92 : f32 to vector<16x1xf32>
    %238 = arith.divf %236, %237 : vector<16x1xf32>
    %239 = vector.broadcast %231 : vector<16x1xf32> to vector<16x32xf32>
    %240 = arith.subf %94, %239 : vector<16x32xf32>
    %cst_93 = arith.constant 9.99999974E-6 : f32
    %241 = vector.broadcast %cst_93 : f32 to vector<16x1xf32>
    %242 = arith.addf %238, %241 : vector<16x1xf32>
    %243 = math.rsqrt %242 : vector<16x1xf32>
    %244 = vector.broadcast %243 : vector<16x1xf32> to vector<16x32xf32>
    %245 = arith.mulf %240, %244 : vector<16x32xf32>
    %246 = vector.broadcast %226 : vector<1x32xf32> to vector<16x32xf32>
    %247 = arith.mulf %245, %246 : vector<16x32xf32>
    %248 = vector.broadcast %227 : vector<1x32xf32> to vector<16x32xf32>
    %249 = arith.addf %247, %248 : vector<16x32xf32>
    %c96_94 = arith.constant 96 : index
    %c0_95 = arith.constant 0 : index
    %250 = vector.load %arg5[%c96_94, %c0_95] : memref<512x64xbf16, #tpu.memory_space<vmem>>, vector<32x64xbf16>
    %251 = arith.truncf %1 : vector<56x32xf32> to vector<56x32xbf16>
    %cst_96 = arith.constant dense<0.000000e+00> : vector<56x64xf32>
    %252 = tpu.matmul %251, %250, %cst_96 {dimension_numbers = #tpu.dot_dimension_numbers<[1], [0], [0], [1], [0, 0, 1, 1], [], []>} : vector<56x32xbf16>, vector<32x64xbf16>, vector<56x64xf32> -> vector<56x64xf32>
    %c115 = arith.constant 115 : index
    %c0_97 = arith.constant 0 : index
    %253 = vector.load %arg6[%c115, %c0_97] : memref<152x64xf32, #tpu.memory_space<vmem>>, vector<1x64xf32>
    %254 = vector.broadcast %253 : vector<1x64xf32> to vector<56x64xf32>
    %255 = arith.addf %252, %254 : vector<56x64xf32>
    %256 = arith.addf %255, %110 : vector<56x64xf32>
    %c768 = arith.constant 768 : index
    %c0_98 = arith.constant 0 : index
    %257 = vector.load %arg4[%c768, %c0_98] : memref<1248x32xbf16, #tpu.memory_space<vmem>>, vector<32x32xbf16>
    %258 = arith.truncf %249 : vector<16x32xf32> to vector<16x32xbf16>
    %cst_99 = arith.constant dense<0.000000e+00> : vector<16x32xf32>
    %259 = tpu.matmul %258, %257, %cst_99 {dimension_numbers = #tpu.dot_dimension_numbers<[1], [0], [0], [1], [0, 0, 1, 1], [], []>} : vector<16x32xbf16>, vector<32x32xbf16>, vector<16x32xf32> -> vector<16x32xf32>
    %c116 = arith.constant 116 : index
    %c0_100 = arith.constant 0 : index
    %260 = vector.load %arg6[%c116, %c0_100] : memref<152x64xf32, #tpu.memory_space<vmem>>, vector<1x32xf32>
    %261 = vector.broadcast %260 : vector<1x32xf32> to vector<16x32xf32>
    %262 = arith.addf %259, %261 : vector<16x32xf32>
    %263 = arith.truncf %256 : vector<56x64xf32> to vector<56x64xbf16>
    %cst_101 = arith.constant dense<0.000000e+00> : vector<112x64xf32>
    %264 = tpu.matmul %12, %263, %cst_101 {dimension_numbers = #tpu.dot_dimension_numbers<[1], [0], [0], [1], [0, 0, 1, 1], [], []>} : vector<112x56xbf16>, vector<56x64xbf16>, vector<112x64xf32> -> vector<112x64xf32>
    %265 = vector.extract_strided_slice %264 {offsets = [0, 0], sizes = [112, 32], strides = [1, 1]} : vector<112x64xf32> to vector<112x32xf32>
    %266 = vector.shape_cast %265 : vector<112x32xf32> to vector<7x16x32xf32>
    %267 = vector.extract_strided_slice %264 {offsets = [0, 32], sizes = [112, 32], strides = [1, 1]} : vector<112x64xf32> to vector<112x32xf32>
    %268 = vector.shape_cast %267 : vector<112x32xf32> to vector<7x16x32xf32>
    %269 = vector.shape_cast %262 : vector<16x32xf32> to vector<1x16x32xf32>
    %270 = vector.broadcast %269 : vector<1x16x32xf32> to vector<7x16x32xf32>
    %271 = arith.mulf %266, %270 : vector<7x16x32xf32>
    %272 = vector.shape_cast %271 : vector<7x16x32xf32> to vector<112x32xf32>
    %273 = arith.truncf %272 : vector<112x32xf32> to vector<112x32xbf16>
    %cst_102 = arith.constant dense<0.000000e+00> : vector<112x32xf32>
    %274 = tpu.matmul %273, %13, %cst_102 {dimension_numbers = #tpu.dot_dimension_numbers<[1], [0], [0], [1], [0, 0, 1, 1], [], []>} : vector<112x32xbf16>, vector<32x32xbf16>, vector<112x32xf32> -> vector<112x32xf32>
    %cst_103 = arith.constant 0.353553385 : f32
    %275 = vector.broadcast %cst_103 : f32 to vector<112x32xf32>
    %276 = arith.mulf %275, %274 : vector<112x32xf32>
    %277 = vector.shape_cast %276 : vector<112x32xf32> to vector<7x16x32xf32>
    %cst_104 = arith.constant dense<0xFF800000> : vector<16x32xf32>
    %278 = vector.multi_reduction <maximumf>, %277, %cst_104 [0] : vector<7x16x32xf32> to vector<16x32xf32>
    %279 = vector.shape_cast %278 : vector<16x32xf32> to vector<1x16x32xf32>
    %280 = vector.broadcast %279 : vector<1x16x32xf32> to vector<7x16x32xf32>
    %281 = arith.subf %277, %280 : vector<7x16x32xf32>
    %282 = math.exp %281 : vector<7x16x32xf32>
    %283 = arith.mulf %282, %268 : vector<7x16x32xf32>
    %cst_105 = arith.constant dense<0.000000e+00> : vector<16x32xf32>
    %284 = vector.multi_reduction <add>, %283, %cst_105 [0] : vector<7x16x32xf32> to vector<16x32xf32>
    %cst_106 = arith.constant dense<0.000000e+00> : vector<16x32xf32>
    %285 = vector.multi_reduction <add>, %282, %cst_106 [0] : vector<7x16x32xf32> to vector<16x32xf32>
    %286 = arith.divf %284, %285 : vector<16x32xf32>
    %c800 = arith.constant 800 : index
    %c0_107 = arith.constant 0 : index
    %287 = vector.load %arg4[%c800, %c0_107] : memref<1248x32xbf16, #tpu.memory_space<vmem>>, vector<32x32xbf16>
    %288 = arith.truncf %286 : vector<16x32xf32> to vector<16x32xbf16>
    %cst_108 = arith.constant dense<0.000000e+00> : vector<16x32xf32>
    %289 = tpu.matmul %288, %287, %cst_108 {dimension_numbers = #tpu.dot_dimension_numbers<[1], [0], [0], [1], [0, 0, 1, 1], [], []>} : vector<16x32xbf16>, vector<32x32xbf16>, vector<16x32xf32> -> vector<16x32xf32>
    %290 = arith.addf %94, %289 : vector<16x32xf32>
    %c117 = arith.constant 117 : index
    %c0_109 = arith.constant 0 : index
    %291 = vector.load %arg6[%c117, %c0_109] : memref<152x64xf32, #tpu.memory_space<vmem>>, vector<1x32xf32>
    %292 = vector.broadcast %291 : vector<1x32xf32> to vector<16x32xf32>
    %293 = arith.addf %290, %292 : vector<16x32xf32>
    %c120 = arith.constant 120 : index
    %c0_110 = arith.constant 0 : index
    %294 = vector.load %arg6[%c120, %c0_110] : memref<152x64xf32, #tpu.memory_space<vmem>>, vector<1x32xf32>
    %c121 = arith.constant 121 : index
    %c0_111 = arith.constant 0 : index
    %295 = vector.load %arg6[%c121, %c0_111] : memref<152x64xf32, #tpu.memory_space<vmem>>, vector<1x32xf32>
    %cst_112 = arith.constant dense<0.000000e+00> : vector<16xf32>
    %296 = vector.multi_reduction <add>, %293, %cst_112 [1] : vector<16x32xf32> to vector<16xf32>
    %297 = vector.shape_cast %296 : vector<16xf32> to vector<16x1xf32>
    %cst_113 = arith.constant 3.200000e+01 : f32
    %298 = vector.broadcast %cst_113 : f32 to vector<16x1xf32>
    %299 = arith.divf %297, %298 : vector<16x1xf32>
    %300 = vector.broadcast %299 : vector<16x1xf32> to vector<16x32xf32>
    %301 = arith.subf %293, %300 : vector<16x32xf32>
    %302 = arith.mulf %301, %301 : vector<16x32xf32>
    %cst_114 = arith.constant dense<0.000000e+00> : vector<16xf32>
    %303 = vector.multi_reduction <add>, %302, %cst_114 [1] : vector<16x32xf32> to vector<16xf32>
    %304 = vector.shape_cast %303 : vector<16xf32> to vector<16x1xf32>
    %cst_115 = arith.constant 3.200000e+01 : f32
    %305 = vector.broadcast %cst_115 : f32 to vector<16x1xf32>
    %306 = arith.divf %304, %305 : vector<16x1xf32>
    %307 = vector.broadcast %299 : vector<16x1xf32> to vector<16x32xf32>
    %308 = arith.subf %293, %307 : vector<16x32xf32>
    %cst_116 = arith.constant 9.99999974E-6 : f32
    %309 = vector.broadcast %cst_116 : f32 to vector<16x1xf32>
    %310 = arith.addf %306, %309 : vector<16x1xf32>
    %311 = math.rsqrt %310 : vector<16x1xf32>
    %312 = vector.broadcast %311 : vector<16x1xf32> to vector<16x32xf32>
    %313 = arith.mulf %308, %312 : vector<16x32xf32>
    %314 = vector.broadcast %294 : vector<1x32xf32> to vector<16x32xf32>
    %315 = arith.mulf %313, %314 : vector<16x32xf32>
    %316 = vector.broadcast %295 : vector<1x32xf32> to vector<16x32xf32>
    %317 = arith.addf %315, %316 : vector<16x32xf32>
    %c832 = arith.constant 832 : index
    %c0_117 = arith.constant 0 : index
    %318 = vector.load %arg4[%c832, %c0_117] : memref<1248x32xbf16, #tpu.memory_space<vmem>>, vector<32x32xbf16>
    %319 = arith.truncf %317 : vector<16x32xf32> to vector<16x32xbf16>
    %cst_118 = arith.constant dense<0.000000e+00> : vector<16x32xf32>
    %320 = tpu.matmul %319, %318, %cst_118 {dimension_numbers = #tpu.dot_dimension_numbers<[1], [0], [0], [1], [0, 0, 1, 1], [], []>} : vector<16x32xbf16>, vector<32x32xbf16>, vector<16x32xf32> -> vector<16x32xf32>
    %c122 = arith.constant 122 : index
    %c0_119 = arith.constant 0 : index
    %321 = vector.load %arg6[%c122, %c0_119] : memref<152x64xf32, #tpu.memory_space<vmem>>, vector<1x32xf32>
    %322 = vector.broadcast %321 : vector<1x32xf32> to vector<16x32xf32>
    %323 = arith.addf %320, %322 : vector<16x32xf32>
    %cst_120 = arith.constant 0.000000e+00 : f32
    %324 = vector.broadcast %cst_120 : f32 to vector<16x32xf32>
    %325 = arith.maximumf %323, %324 : vector<16x32xf32>
    %c864 = arith.constant 864 : index
    %c0_121 = arith.constant 0 : index
    %326 = vector.load %arg4[%c864, %c0_121] : memref<1248x32xbf16, #tpu.memory_space<vmem>>, vector<32x32xbf16>
    %327 = arith.truncf %325 : vector<16x32xf32> to vector<16x32xbf16>
    %cst_122 = arith.constant dense<0.000000e+00> : vector<16x32xf32>
    %328 = tpu.matmul %327, %326, %cst_122 {dimension_numbers = #tpu.dot_dimension_numbers<[1], [0], [0], [1], [0, 0, 1, 1], [], []>} : vector<16x32xbf16>, vector<32x32xbf16>, vector<16x32xf32> -> vector<16x32xf32>
    %c123 = arith.constant 123 : index
    %c0_123 = arith.constant 0 : index
    %329 = vector.load %arg6[%c123, %c0_123] : memref<152x64xf32, #tpu.memory_space<vmem>>, vector<1x32xf32>
    %330 = vector.broadcast %329 : vector<1x32xf32> to vector<16x32xf32>
    %331 = arith.addf %328, %330 : vector<16x32xf32>
    %cst_124 = arith.constant 0.000000e+00 : f32
    %332 = vector.broadcast %cst_124 : f32 to vector<16x32xf32>
    %333 = arith.maximumf %331, %332 : vector<16x32xf32>
    %c896 = arith.constant 896 : index
    %c0_125 = arith.constant 0 : index
    %334 = vector.load %arg4[%c896, %c0_125] : memref<1248x32xbf16, #tpu.memory_space<vmem>>, vector<32x32xbf16>
    %335 = arith.truncf %333 : vector<16x32xf32> to vector<16x32xbf16>
    %cst_126 = arith.constant dense<0.000000e+00> : vector<16x32xf32>
    %336 = tpu.matmul %335, %334, %cst_126 {dimension_numbers = #tpu.dot_dimension_numbers<[1], [0], [0], [1], [0, 0, 1, 1], [], []>} : vector<16x32xbf16>, vector<32x32xbf16>, vector<16x32xf32> -> vector<16x32xf32>
    %c124 = arith.constant 124 : index
    %c0_127 = arith.constant 0 : index
    %337 = vector.load %arg6[%c124, %c0_127] : memref<152x64xf32, #tpu.memory_space<vmem>>, vector<1x32xf32>
    %338 = vector.broadcast %337 : vector<1x32xf32> to vector<16x32xf32>
    %339 = arith.addf %336, %338 : vector<16x32xf32>
    %340 = arith.addf %293, %339 : vector<16x32xf32>
    %c56 = arith.constant 56 : index
    %c0_128 = arith.constant 0 : index
    %341 = vector.load %arg2[%c56, %c0_128] : memref<168x32xf32, #tpu.memory_space<vmem>>, vector<56x32xf32>
    %342 = arith.addf %225, %341 : vector<56x32xf32>
    %c16_129 = arith.constant 16 : index
    %c0_130 = arith.constant 0 : index
    %343 = vector.load %arg3[%c16_129, %c0_130] : memref<48x32xf32, #tpu.memory_space<vmem>>, vector<16x32xf32>
    %344 = arith.addf %340, %343 : vector<16x32xf32>
    %c91 = arith.constant 91 : index
    %c0_131 = arith.constant 0 : index
    %345 = vector.load %arg6[%c91, %c0_131] : memref<152x64xf32, #tpu.memory_space<vmem>>, vector<1x64xf32>
    %346 = vector.broadcast %3 : vector<16x1xf32> to vector<16x64xf32>
    %347 = vector.broadcast %345 : vector<1x64xf32> to vector<16x64xf32>
    %348 = arith.mulf %346, %347 : vector<16x64xf32>
    %c125 = arith.constant 125 : index
    %c0_132 = arith.constant 0 : index
    %349 = vector.load %arg6[%c125, %c0_132] : memref<152x64xf32, #tpu.memory_space<vmem>>, vector<2x64xf32>
    %350 = vector.extract_strided_slice %6 {offsets = [0, 0], sizes = [56, 1], strides = [1, 1]} : vector<56x2xf32> to vector<56x1xf32>
    %351 = vector.extract_strided_slice %349 {offsets = [0, 0], sizes = [1, 64], strides = [1, 1]} : vector<2x64xf32> to vector<1x64xf32>
    %352 = vector.broadcast %350 : vector<56x1xf32> to vector<56x64xf32>
    %353 = vector.broadcast %351 : vector<1x64xf32> to vector<56x64xf32>
    %354 = arith.mulf %352, %353 : vector<56x64xf32>
    %355 = vector.extract_strided_slice %6 {offsets = [0, 1], sizes = [56, 1], strides = [1, 1]} : vector<56x2xf32> to vector<56x1xf32>
    %356 = vector.extract_strided_slice %349 {offsets = [1, 0], sizes = [1, 64], strides = [1, 1]} : vector<2x64xf32> to vector<1x64xf32>
    %357 = vector.broadcast %355 : vector<56x1xf32> to vector<56x64xf32>
    %358 = vector.broadcast %356 : vector<1x64xf32> to vector<56x64xf32>
    %359 = arith.mulf %357, %358 : vector<56x64xf32>
    %360 = arith.addf %354, %359 : vector<56x64xf32>
    %c95 = arith.constant 95 : index
    %c0_133 = arith.constant 0 : index
    %361 = vector.load %arg6[%c95, %c0_133] : memref<152x64xf32, #tpu.memory_space<vmem>>, vector<1x32xf32>
    %c96_134 = arith.constant 96 : index
    %c0_135 = arith.constant 0 : index
    %362 = vector.load %arg6[%c96_134, %c0_135] : memref<152x64xf32, #tpu.memory_space<vmem>>, vector<1x32xf32>
    %cst_136 = arith.constant dense<0.000000e+00> : vector<56xf32>
    %363 = vector.multi_reduction <add>, %342, %cst_136 [1] : vector<56x32xf32> to vector<56xf32>
    %364 = vector.shape_cast %363 : vector<56xf32> to vector<56x1xf32>
    %cst_137 = arith.constant 3.200000e+01 : f32
    %365 = vector.broadcast %cst_137 : f32 to vector<56x1xf32>
    %366 = arith.divf %364, %365 : vector<56x1xf32>
    %367 = vector.broadcast %366 : vector<56x1xf32> to vector<56x32xf32>
    %368 = arith.subf %342, %367 : vector<56x32xf32>
    %369 = arith.mulf %368, %368 : vector<56x32xf32>
    %cst_138 = arith.constant dense<0.000000e+00> : vector<56xf32>
    %370 = vector.multi_reduction <add>, %369, %cst_138 [1] : vector<56x32xf32> to vector<56xf32>
    %371 = vector.shape_cast %370 : vector<56xf32> to vector<56x1xf32>
    %cst_139 = arith.constant 3.200000e+01 : f32
    %372 = vector.broadcast %cst_139 : f32 to vector<56x1xf32>
    %373 = arith.divf %371, %372 : vector<56x1xf32>
    %374 = vector.broadcast %366 : vector<56x1xf32> to vector<56x32xf32>
    %375 = arith.subf %342, %374 : vector<56x32xf32>
    %cst_140 = arith.constant 9.99999974E-6 : f32
    %376 = vector.broadcast %cst_140 : f32 to vector<56x1xf32>
    %377 = arith.addf %373, %376 : vector<56x1xf32>
    %378 = math.rsqrt %377 : vector<56x1xf32>
    %379 = vector.broadcast %378 : vector<56x1xf32> to vector<56x32xf32>
    %380 = arith.mulf %375, %379 : vector<56x32xf32>
    %381 = vector.broadcast %361 : vector<1x32xf32> to vector<56x32xf32>
    %382 = arith.mulf %380, %381 : vector<56x32xf32>
    %383 = vector.broadcast %362 : vector<1x32xf32> to vector<56x32xf32>
    %384 = arith.addf %382, %383 : vector<56x32xf32>
    %c32 = arith.constant 32 : index
    %c0_141 = arith.constant 0 : index
    %385 = vector.load %arg5[%c32, %c0_141] : memref<512x64xbf16, #tpu.memory_space<vmem>>, vector<32x64xbf16>
    %386 = arith.truncf %340 : vector<16x32xf32> to vector<16x32xbf16>
    %cst_142 = arith.constant dense<0.000000e+00> : vector<16x64xf32>
    %387 = tpu.matmul %386, %385, %cst_142 {dimension_numbers = #tpu.dot_dimension_numbers<[1], [0], [0], [1], [0, 0, 1, 1], [], []>} : vector<16x32xbf16>, vector<32x64xbf16>, vector<16x64xf32> -> vector<16x64xf32>
    %c92 = arith.constant 92 : index
    %c0_143 = arith.constant 0 : index
    %388 = vector.load %arg6[%c92, %c0_143] : memref<152x64xf32, #tpu.memory_space<vmem>>, vector<1x64xf32>
    %389 = vector.broadcast %388 : vector<1x64xf32> to vector<16x64xf32>
    %390 = arith.addf %387, %389 : vector<16x64xf32>
    %391 = arith.addf %390, %348 : vector<16x64xf32>
    %c448_144 = arith.constant 448 : index
    %c0_145 = arith.constant 0 : index
    %392 = vector.load %arg4[%c448_144, %c0_145] : memref<1248x32xbf16, #tpu.memory_space<vmem>>, vector<32x32xbf16>
    %393 = arith.truncf %384 : vector<56x32xf32> to vector<56x32xbf16>
    %cst_146 = arith.constant dense<0.000000e+00> : vector<56x32xf32>
    %394 = tpu.matmul %393, %392, %cst_146 {dimension_numbers = #tpu.dot_dimension_numbers<[1], [0], [0], [1], [0, 0, 1, 1], [], []>} : vector<56x32xbf16>, vector<32x32xbf16>, vector<56x32xf32> -> vector<56x32xf32>
    %c93 = arith.constant 93 : index
    %c0_147 = arith.constant 0 : index
    %395 = vector.load %arg6[%c93, %c0_147] : memref<152x64xf32, #tpu.memory_space<vmem>>, vector<1x32xf32>
    %396 = vector.broadcast %395 : vector<1x32xf32> to vector<56x32xf32>
    %397 = arith.addf %394, %396 : vector<56x32xf32>
    %398 = arith.truncf %391 : vector<16x64xf32> to vector<16x64xbf16>
    %cst_148 = arith.constant dense<0.000000e+00> : vector<112x64xf32>
    %399 = tpu.matmul %11, %398, %cst_148 {dimension_numbers = #tpu.dot_dimension_numbers<[1], [0], [0], [1], [0, 0, 1, 1], [], []>} : vector<112x16xbf16>, vector<16x64xbf16>, vector<112x64xf32> -> vector<112x64xf32>
    %400 = vector.extract_strided_slice %399 {offsets = [0, 0], sizes = [112, 32], strides = [1, 1]} : vector<112x64xf32> to vector<112x32xf32>
    %401 = vector.shape_cast %400 : vector<112x32xf32> to vector<2x56x32xf32>
    %402 = vector.extract_strided_slice %399 {offsets = [0, 32], sizes = [112, 32], strides = [1, 1]} : vector<112x64xf32> to vector<112x32xf32>
    %403 = vector.shape_cast %402 : vector<112x32xf32> to vector<2x56x32xf32>
    %404 = vector.shape_cast %397 : vector<56x32xf32> to vector<1x56x32xf32>
    %405 = vector.broadcast %404 : vector<1x56x32xf32> to vector<2x56x32xf32>
    %406 = arith.mulf %401, %405 : vector<2x56x32xf32>
    %407 = vector.shape_cast %406 : vector<2x56x32xf32> to vector<112x32xf32>
    %408 = arith.truncf %407 : vector<112x32xf32> to vector<112x32xbf16>
    %cst_149 = arith.constant dense<0.000000e+00> : vector<112x32xf32>
    %409 = tpu.matmul %408, %13, %cst_149 {dimension_numbers = #tpu.dot_dimension_numbers<[1], [0], [0], [1], [0, 0, 1, 1], [], []>} : vector<112x32xbf16>, vector<32x32xbf16>, vector<112x32xf32> -> vector<112x32xf32>
    %cst_150 = arith.constant 0.353553385 : f32
    %410 = vector.broadcast %cst_150 : f32 to vector<112x32xf32>
    %411 = arith.mulf %410, %409 : vector<112x32xf32>
    %412 = vector.shape_cast %411 : vector<112x32xf32> to vector<2x56x32xf32>
    %cst_151 = arith.constant dense<0xFF800000> : vector<56x32xf32>
    %413 = vector.multi_reduction <maximumf>, %412, %cst_151 [0] : vector<2x56x32xf32> to vector<56x32xf32>
    %414 = vector.shape_cast %413 : vector<56x32xf32> to vector<1x56x32xf32>
    %415 = vector.broadcast %414 : vector<1x56x32xf32> to vector<2x56x32xf32>
    %416 = arith.subf %412, %415 : vector<2x56x32xf32>
    %417 = math.exp %416 : vector<2x56x32xf32>
    %418 = arith.mulf %417, %403 : vector<2x56x32xf32>
    %cst_152 = arith.constant dense<0.000000e+00> : vector<56x32xf32>
    %419 = vector.multi_reduction <add>, %418, %cst_152 [0] : vector<2x56x32xf32> to vector<56x32xf32>
    %cst_153 = arith.constant dense<0.000000e+00> : vector<56x32xf32>
    %420 = vector.multi_reduction <add>, %417, %cst_153 [0] : vector<2x56x32xf32> to vector<56x32xf32>
    %421 = arith.divf %419, %420 : vector<56x32xf32>
    %c480_154 = arith.constant 480 : index
    %c0_155 = arith.constant 0 : index
    %422 = vector.load %arg4[%c480_154, %c0_155] : memref<1248x32xbf16, #tpu.memory_space<vmem>>, vector<32x32xbf16>
    %423 = arith.truncf %421 : vector<56x32xf32> to vector<56x32xbf16>
    %cst_156 = arith.constant dense<0.000000e+00> : vector<56x32xf32>
    %424 = tpu.matmul %423, %422, %cst_156 {dimension_numbers = #tpu.dot_dimension_numbers<[1], [0], [0], [1], [0, 0, 1, 1], [], []>} : vector<56x32xbf16>, vector<32x32xbf16>, vector<56x32xf32> -> vector<56x32xf32>
    %425 = arith.addf %342, %424 : vector<56x32xf32>
    %c94 = arith.constant 94 : index
    %c0_157 = arith.constant 0 : index
    %426 = vector.load %arg6[%c94, %c0_157] : memref<152x64xf32, #tpu.memory_space<vmem>>, vector<1x32xf32>
    %427 = vector.broadcast %426 : vector<1x32xf32> to vector<56x32xf32>
    %428 = arith.addf %425, %427 : vector<56x32xf32>
    %c97 = arith.constant 97 : index
    %c0_158 = arith.constant 0 : index
    %429 = vector.load %arg6[%c97, %c0_158] : memref<152x64xf32, #tpu.memory_space<vmem>>, vector<1x32xf32>
    %c98 = arith.constant 98 : index
    %c0_159 = arith.constant 0 : index
    %430 = vector.load %arg6[%c98, %c0_159] : memref<152x64xf32, #tpu.memory_space<vmem>>, vector<1x32xf32>
    %cst_160 = arith.constant dense<0.000000e+00> : vector<56xf32>
    %431 = vector.multi_reduction <add>, %428, %cst_160 [1] : vector<56x32xf32> to vector<56xf32>
    %432 = vector.shape_cast %431 : vector<56xf32> to vector<56x1xf32>
    %cst_161 = arith.constant 3.200000e+01 : f32
    %433 = vector.broadcast %cst_161 : f32 to vector<56x1xf32>
    %434 = arith.divf %432, %433 : vector<56x1xf32>
    %435 = vector.broadcast %434 : vector<56x1xf32> to vector<56x32xf32>
    %436 = arith.subf %428, %435 : vector<56x32xf32>
    %437 = arith.mulf %436, %436 : vector<56x32xf32>
    %cst_162 = arith.constant dense<0.000000e+00> : vector<56xf32>
    %438 = vector.multi_reduction <add>, %437, %cst_162 [1] : vector<56x32xf32> to vector<56xf32>
    %439 = vector.shape_cast %438 : vector<56xf32> to vector<56x1xf32>
    %cst_163 = arith.constant 3.200000e+01 : f32
    %440 = vector.broadcast %cst_163 : f32 to vector<56x1xf32>
    %441 = arith.divf %439, %440 : vector<56x1xf32>
    %442 = vector.broadcast %434 : vector<56x1xf32> to vector<56x32xf32>
    %443 = arith.subf %428, %442 : vector<56x32xf32>
    %cst_164 = arith.constant 9.99999974E-6 : f32
    %444 = vector.broadcast %cst_164 : f32 to vector<56x1xf32>
    %445 = arith.addf %441, %444 : vector<56x1xf32>
    %446 = math.rsqrt %445 : vector<56x1xf32>
    %447 = vector.broadcast %446 : vector<56x1xf32> to vector<56x32xf32>
    %448 = arith.mulf %443, %447 : vector<56x32xf32>
    %449 = vector.broadcast %429 : vector<1x32xf32> to vector<56x32xf32>
    %450 = arith.mulf %448, %449 : vector<56x32xf32>
    %451 = vector.broadcast %430 : vector<1x32xf32> to vector<56x32xf32>
    %452 = arith.addf %450, %451 : vector<56x32xf32>
    %c512 = arith.constant 512 : index
    %c0_165 = arith.constant 0 : index
    %453 = vector.load %arg4[%c512, %c0_165] : memref<1248x32xbf16, #tpu.memory_space<vmem>>, vector<32x32xbf16>
    %454 = arith.truncf %452 : vector<56x32xf32> to vector<56x32xbf16>
    %cst_166 = arith.constant dense<0.000000e+00> : vector<56x32xf32>
    %455 = tpu.matmul %454, %453, %cst_166 {dimension_numbers = #tpu.dot_dimension_numbers<[1], [0], [0], [1], [0, 0, 1, 1], [], []>} : vector<56x32xbf16>, vector<32x32xbf16>, vector<56x32xf32> -> vector<56x32xf32>
    %c99 = arith.constant 99 : index
    %c0_167 = arith.constant 0 : index
    %456 = vector.load %arg6[%c99, %c0_167] : memref<152x64xf32, #tpu.memory_space<vmem>>, vector<1x32xf32>
    %457 = vector.broadcast %456 : vector<1x32xf32> to vector<56x32xf32>
    %458 = arith.addf %455, %457 : vector<56x32xf32>
    %cst_168 = arith.constant 0.000000e+00 : f32
    %459 = vector.broadcast %cst_168 : f32 to vector<56x32xf32>
    %460 = arith.maximumf %458, %459 : vector<56x32xf32>
    %c544 = arith.constant 544 : index
    %c0_169 = arith.constant 0 : index
    %461 = vector.load %arg4[%c544, %c0_169] : memref<1248x32xbf16, #tpu.memory_space<vmem>>, vector<32x32xbf16>
    %462 = arith.truncf %460 : vector<56x32xf32> to vector<56x32xbf16>
    %cst_170 = arith.constant dense<0.000000e+00> : vector<56x32xf32>
    %463 = tpu.matmul %462, %461, %cst_170 {dimension_numbers = #tpu.dot_dimension_numbers<[1], [0], [0], [1], [0, 0, 1, 1], [], []>} : vector<56x32xbf16>, vector<32x32xbf16>, vector<56x32xf32> -> vector<56x32xf32>
    %c100 = arith.constant 100 : index
    %c0_171 = arith.constant 0 : index
    %464 = vector.load %arg6[%c100, %c0_171] : memref<152x64xf32, #tpu.memory_space<vmem>>, vector<1x32xf32>
    %465 = vector.broadcast %464 : vector<1x32xf32> to vector<56x32xf32>
    %466 = arith.addf %463, %465 : vector<56x32xf32>
    %cst_172 = arith.constant 0.000000e+00 : f32
    %467 = vector.broadcast %cst_172 : f32 to vector<56x32xf32>
    %468 = arith.maximumf %466, %467 : vector<56x32xf32>
    %c576 = arith.constant 576 : index
    %c0_173 = arith.constant 0 : index
    %469 = vector.load %arg4[%c576, %c0_173] : memref<1248x32xbf16, #tpu.memory_space<vmem>>, vector<32x32xbf16>
    %470 = arith.truncf %468 : vector<56x32xf32> to vector<56x32xbf16>
    %cst_174 = arith.constant dense<0.000000e+00> : vector<56x32xf32>
    %471 = tpu.matmul %470, %469, %cst_174 {dimension_numbers = #tpu.dot_dimension_numbers<[1], [0], [0], [1], [0, 0, 1, 1], [], []>} : vector<56x32xbf16>, vector<32x32xbf16>, vector<56x32xf32> -> vector<56x32xf32>
    %c101 = arith.constant 101 : index
    %c0_175 = arith.constant 0 : index
    %472 = vector.load %arg6[%c101, %c0_175] : memref<152x64xf32, #tpu.memory_space<vmem>>, vector<1x32xf32>
    %473 = vector.broadcast %472 : vector<1x32xf32> to vector<56x32xf32>
    %474 = arith.addf %471, %473 : vector<56x32xf32>
    %475 = arith.addf %428, %474 : vector<56x32xf32>
    %c130 = arith.constant 130 : index
    %c0_176 = arith.constant 0 : index
    %476 = vector.load %arg6[%c130, %c0_176] : memref<152x64xf32, #tpu.memory_space<vmem>>, vector<1x32xf32>
    %c131 = arith.constant 131 : index
    %c0_177 = arith.constant 0 : index
    %477 = vector.load %arg6[%c131, %c0_177] : memref<152x64xf32, #tpu.memory_space<vmem>>, vector<1x32xf32>
    %cst_178 = arith.constant dense<0.000000e+00> : vector<16xf32>
    %478 = vector.multi_reduction <add>, %344, %cst_178 [1] : vector<16x32xf32> to vector<16xf32>
    %479 = vector.shape_cast %478 : vector<16xf32> to vector<16x1xf32>
    %cst_179 = arith.constant 3.200000e+01 : f32
    %480 = vector.broadcast %cst_179 : f32 to vector<16x1xf32>
    %481 = arith.divf %479, %480 : vector<16x1xf32>
    %482 = vector.broadcast %481 : vector<16x1xf32> to vector<16x32xf32>
    %483 = arith.subf %344, %482 : vector<16x32xf32>
    %484 = arith.mulf %483, %483 : vector<16x32xf32>
    %cst_180 = arith.constant dense<0.000000e+00> : vector<16xf32>
    %485 = vector.multi_reduction <add>, %484, %cst_180 [1] : vector<16x32xf32> to vector<16xf32>
    %486 = vector.shape_cast %485 : vector<16xf32> to vector<16x1xf32>
    %cst_181 = arith.constant 3.200000e+01 : f32
    %487 = vector.broadcast %cst_181 : f32 to vector<16x1xf32>
    %488 = arith.divf %486, %487 : vector<16x1xf32>
    %489 = vector.broadcast %481 : vector<16x1xf32> to vector<16x32xf32>
    %490 = arith.subf %344, %489 : vector<16x32xf32>
    %cst_182 = arith.constant 9.99999974E-6 : f32
    %491 = vector.broadcast %cst_182 : f32 to vector<16x1xf32>
    %492 = arith.addf %488, %491 : vector<16x1xf32>
    %493 = math.rsqrt %492 : vector<16x1xf32>
    %494 = vector.broadcast %493 : vector<16x1xf32> to vector<16x32xf32>
    %495 = arith.mulf %490, %494 : vector<16x32xf32>
    %496 = vector.broadcast %476 : vector<1x32xf32> to vector<16x32xf32>
    %497 = arith.mulf %495, %496 : vector<16x32xf32>
    %498 = vector.broadcast %477 : vector<1x32xf32> to vector<16x32xf32>
    %499 = arith.addf %497, %498 : vector<16x32xf32>
    %c128 = arith.constant 128 : index
    %c0_183 = arith.constant 0 : index
    %500 = vector.load %arg5[%c128, %c0_183] : memref<512x64xbf16, #tpu.memory_space<vmem>>, vector<32x64xbf16>
    %501 = arith.truncf %225 : vector<56x32xf32> to vector<56x32xbf16>
    %cst_184 = arith.constant dense<0.000000e+00> : vector<56x64xf32>
    %502 = tpu.matmul %501, %500, %cst_184 {dimension_numbers = #tpu.dot_dimension_numbers<[1], [0], [0], [1], [0, 0, 1, 1], [], []>} : vector<56x32xbf16>, vector<32x64xbf16>, vector<56x64xf32> -> vector<56x64xf32>
    %c127 = arith.constant 127 : index
    %c0_185 = arith.constant 0 : index
    %503 = vector.load %arg6[%c127, %c0_185] : memref<152x64xf32, #tpu.memory_space<vmem>>, vector<1x64xf32>
    %504 = vector.broadcast %503 : vector<1x64xf32> to vector<56x64xf32>
    %505 = arith.addf %502, %504 : vector<56x64xf32>
    %506 = arith.addf %505, %360 : vector<56x64xf32>
    %c928 = arith.constant 928 : index
    %c0_186 = arith.constant 0 : index
    %507 = vector.load %arg4[%c928, %c0_186] : memref<1248x32xbf16, #tpu.memory_space<vmem>>, vector<32x32xbf16>
    %508 = arith.truncf %499 : vector<16x32xf32> to vector<16x32xbf16>
    %cst_187 = arith.constant dense<0.000000e+00> : vector<16x32xf32>
    %509 = tpu.matmul %508, %507, %cst_187 {dimension_numbers = #tpu.dot_dimension_numbers<[1], [0], [0], [1], [0, 0, 1, 1], [], []>} : vector<16x32xbf16>, vector<32x32xbf16>, vector<16x32xf32> -> vector<16x32xf32>
    %c128_188 = arith.constant 128 : index
    %c0_189 = arith.constant 0 : index
    %510 = vector.load %arg6[%c128_188, %c0_189] : memref<152x64xf32, #tpu.memory_space<vmem>>, vector<1x32xf32>
    %511 = vector.broadcast %510 : vector<1x32xf32> to vector<16x32xf32>
    %512 = arith.addf %509, %511 : vector<16x32xf32>
    %513 = arith.truncf %506 : vector<56x64xf32> to vector<56x64xbf16>
    %cst_190 = arith.constant dense<0.000000e+00> : vector<112x64xf32>
    %514 = tpu.matmul %12, %513, %cst_190 {dimension_numbers = #tpu.dot_dimension_numbers<[1], [0], [0], [1], [0, 0, 1, 1], [], []>} : vector<112x56xbf16>, vector<56x64xbf16>, vector<112x64xf32> -> vector<112x64xf32>
    %515 = vector.extract_strided_slice %514 {offsets = [0, 0], sizes = [112, 32], strides = [1, 1]} : vector<112x64xf32> to vector<112x32xf32>
    %516 = vector.shape_cast %515 : vector<112x32xf32> to vector<7x16x32xf32>
    %517 = vector.extract_strided_slice %514 {offsets = [0, 32], sizes = [112, 32], strides = [1, 1]} : vector<112x64xf32> to vector<112x32xf32>
    %518 = vector.shape_cast %517 : vector<112x32xf32> to vector<7x16x32xf32>
    %519 = vector.shape_cast %512 : vector<16x32xf32> to vector<1x16x32xf32>
    %520 = vector.broadcast %519 : vector<1x16x32xf32> to vector<7x16x32xf32>
    %521 = arith.mulf %516, %520 : vector<7x16x32xf32>
    %522 = vector.shape_cast %521 : vector<7x16x32xf32> to vector<112x32xf32>
    %523 = arith.truncf %522 : vector<112x32xf32> to vector<112x32xbf16>
    %cst_191 = arith.constant dense<0.000000e+00> : vector<112x32xf32>
    %524 = tpu.matmul %523, %13, %cst_191 {dimension_numbers = #tpu.dot_dimension_numbers<[1], [0], [0], [1], [0, 0, 1, 1], [], []>} : vector<112x32xbf16>, vector<32x32xbf16>, vector<112x32xf32> -> vector<112x32xf32>
    %cst_192 = arith.constant 0.353553385 : f32
    %525 = vector.broadcast %cst_192 : f32 to vector<112x32xf32>
    %526 = arith.mulf %525, %524 : vector<112x32xf32>
    %527 = vector.shape_cast %526 : vector<112x32xf32> to vector<7x16x32xf32>
    %cst_193 = arith.constant dense<0xFF800000> : vector<16x32xf32>
    %528 = vector.multi_reduction <maximumf>, %527, %cst_193 [0] : vector<7x16x32xf32> to vector<16x32xf32>
    %529 = vector.shape_cast %528 : vector<16x32xf32> to vector<1x16x32xf32>
    %530 = vector.broadcast %529 : vector<1x16x32xf32> to vector<7x16x32xf32>
    %531 = arith.subf %527, %530 : vector<7x16x32xf32>
    %532 = math.exp %531 : vector<7x16x32xf32>
    %533 = arith.mulf %532, %518 : vector<7x16x32xf32>
    %cst_194 = arith.constant dense<0.000000e+00> : vector<16x32xf32>
    %534 = vector.multi_reduction <add>, %533, %cst_194 [0] : vector<7x16x32xf32> to vector<16x32xf32>
    %cst_195 = arith.constant dense<0.000000e+00> : vector<16x32xf32>
    %535 = vector.multi_reduction <add>, %532, %cst_195 [0] : vector<7x16x32xf32> to vector<16x32xf32>
    %536 = arith.divf %534, %535 : vector<16x32xf32>
    %c960 = arith.constant 960 : index
    %c0_196 = arith.constant 0 : index
    %537 = vector.load %arg4[%c960, %c0_196] : memref<1248x32xbf16, #tpu.memory_space<vmem>>, vector<32x32xbf16>
    %538 = arith.truncf %536 : vector<16x32xf32> to vector<16x32xbf16>
    %cst_197 = arith.constant dense<0.000000e+00> : vector<16x32xf32>
    %539 = tpu.matmul %538, %537, %cst_197 {dimension_numbers = #tpu.dot_dimension_numbers<[1], [0], [0], [1], [0, 0, 1, 1], [], []>} : vector<16x32xbf16>, vector<32x32xbf16>, vector<16x32xf32> -> vector<16x32xf32>
    %540 = arith.addf %344, %539 : vector<16x32xf32>
    %c129 = arith.constant 129 : index
    %c0_198 = arith.constant 0 : index
    %541 = vector.load %arg6[%c129, %c0_198] : memref<152x64xf32, #tpu.memory_space<vmem>>, vector<1x32xf32>
    %542 = vector.broadcast %541 : vector<1x32xf32> to vector<16x32xf32>
    %543 = arith.addf %540, %542 : vector<16x32xf32>
    %c132 = arith.constant 132 : index
    %c0_199 = arith.constant 0 : index
    %544 = vector.load %arg6[%c132, %c0_199] : memref<152x64xf32, #tpu.memory_space<vmem>>, vector<1x32xf32>
    %c133 = arith.constant 133 : index
    %c0_200 = arith.constant 0 : index
    %545 = vector.load %arg6[%c133, %c0_200] : memref<152x64xf32, #tpu.memory_space<vmem>>, vector<1x32xf32>
    %cst_201 = arith.constant dense<0.000000e+00> : vector<16xf32>
    %546 = vector.multi_reduction <add>, %543, %cst_201 [1] : vector<16x32xf32> to vector<16xf32>
    %547 = vector.shape_cast %546 : vector<16xf32> to vector<16x1xf32>
    %cst_202 = arith.constant 3.200000e+01 : f32
    %548 = vector.broadcast %cst_202 : f32 to vector<16x1xf32>
    %549 = arith.divf %547, %548 : vector<16x1xf32>
    %550 = vector.broadcast %549 : vector<16x1xf32> to vector<16x32xf32>
    %551 = arith.subf %543, %550 : vector<16x32xf32>
    %552 = arith.mulf %551, %551 : vector<16x32xf32>
    %cst_203 = arith.constant dense<0.000000e+00> : vector<16xf32>
    %553 = vector.multi_reduction <add>, %552, %cst_203 [1] : vector<16x32xf32> to vector<16xf32>
    %554 = vector.shape_cast %553 : vector<16xf32> to vector<16x1xf32>
    %cst_204 = arith.constant 3.200000e+01 : f32
    %555 = vector.broadcast %cst_204 : f32 to vector<16x1xf32>
    %556 = arith.divf %554, %555 : vector<16x1xf32>
    %557 = vector.broadcast %549 : vector<16x1xf32> to vector<16x32xf32>
    %558 = arith.subf %543, %557 : vector<16x32xf32>
    %cst_205 = arith.constant 9.99999974E-6 : f32
    %559 = vector.broadcast %cst_205 : f32 to vector<16x1xf32>
    %560 = arith.addf %556, %559 : vector<16x1xf32>
    %561 = math.rsqrt %560 : vector<16x1xf32>
    %562 = vector.broadcast %561 : vector<16x1xf32> to vector<16x32xf32>
    %563 = arith.mulf %558, %562 : vector<16x32xf32>
    %564 = vector.broadcast %544 : vector<1x32xf32> to vector<16x32xf32>
    %565 = arith.mulf %563, %564 : vector<16x32xf32>
    %566 = vector.broadcast %545 : vector<1x32xf32> to vector<16x32xf32>
    %567 = arith.addf %565, %566 : vector<16x32xf32>
    %c992 = arith.constant 992 : index
    %c0_206 = arith.constant 0 : index
    %568 = vector.load %arg4[%c992, %c0_206] : memref<1248x32xbf16, #tpu.memory_space<vmem>>, vector<32x32xbf16>
    %569 = arith.truncf %567 : vector<16x32xf32> to vector<16x32xbf16>
    %cst_207 = arith.constant dense<0.000000e+00> : vector<16x32xf32>
    %570 = tpu.matmul %569, %568, %cst_207 {dimension_numbers = #tpu.dot_dimension_numbers<[1], [0], [0], [1], [0, 0, 1, 1], [], []>} : vector<16x32xbf16>, vector<32x32xbf16>, vector<16x32xf32> -> vector<16x32xf32>
    %c134 = arith.constant 134 : index
    %c0_208 = arith.constant 0 : index
    %571 = vector.load %arg6[%c134, %c0_208] : memref<152x64xf32, #tpu.memory_space<vmem>>, vector<1x32xf32>
    %572 = vector.broadcast %571 : vector<1x32xf32> to vector<16x32xf32>
    %573 = arith.addf %570, %572 : vector<16x32xf32>
    %cst_209 = arith.constant 0.000000e+00 : f32
    %574 = vector.broadcast %cst_209 : f32 to vector<16x32xf32>
    %575 = arith.maximumf %573, %574 : vector<16x32xf32>
    %c1024 = arith.constant 1024 : index
    %c0_210 = arith.constant 0 : index
    %576 = vector.load %arg4[%c1024, %c0_210] : memref<1248x32xbf16, #tpu.memory_space<vmem>>, vector<32x32xbf16>
    %577 = arith.truncf %575 : vector<16x32xf32> to vector<16x32xbf16>
    %cst_211 = arith.constant dense<0.000000e+00> : vector<16x32xf32>
    %578 = tpu.matmul %577, %576, %cst_211 {dimension_numbers = #tpu.dot_dimension_numbers<[1], [0], [0], [1], [0, 0, 1, 1], [], []>} : vector<16x32xbf16>, vector<32x32xbf16>, vector<16x32xf32> -> vector<16x32xf32>
    %c135 = arith.constant 135 : index
    %c0_212 = arith.constant 0 : index
    %579 = vector.load %arg6[%c135, %c0_212] : memref<152x64xf32, #tpu.memory_space<vmem>>, vector<1x32xf32>
    %580 = vector.broadcast %579 : vector<1x32xf32> to vector<16x32xf32>
    %581 = arith.addf %578, %580 : vector<16x32xf32>
    %cst_213 = arith.constant 0.000000e+00 : f32
    %582 = vector.broadcast %cst_213 : f32 to vector<16x32xf32>
    %583 = arith.maximumf %581, %582 : vector<16x32xf32>
    %c1056 = arith.constant 1056 : index
    %c0_214 = arith.constant 0 : index
    %584 = vector.load %arg4[%c1056, %c0_214] : memref<1248x32xbf16, #tpu.memory_space<vmem>>, vector<32x32xbf16>
    %585 = arith.truncf %583 : vector<16x32xf32> to vector<16x32xbf16>
    %cst_215 = arith.constant dense<0.000000e+00> : vector<16x32xf32>
    %586 = tpu.matmul %585, %584, %cst_215 {dimension_numbers = #tpu.dot_dimension_numbers<[1], [0], [0], [1], [0, 0, 1, 1], [], []>} : vector<16x32xbf16>, vector<32x32xbf16>, vector<16x32xf32> -> vector<16x32xf32>
    %c136 = arith.constant 136 : index
    %c0_216 = arith.constant 0 : index
    %587 = vector.load %arg6[%c136, %c0_216] : memref<152x64xf32, #tpu.memory_space<vmem>>, vector<1x32xf32>
    %588 = vector.broadcast %587 : vector<1x32xf32> to vector<16x32xf32>
    %589 = arith.addf %586, %588 : vector<16x32xf32>
    %590 = arith.addf %543, %589 : vector<16x32xf32>
    %c112 = arith.constant 112 : index
    %c0_217 = arith.constant 0 : index
    %591 = vector.load %arg2[%c112, %c0_217] : memref<168x32xf32, #tpu.memory_space<vmem>>, vector<56x32xf32>
    %592 = arith.addf %475, %591 : vector<56x32xf32>
    %c32_218 = arith.constant 32 : index
    %c0_219 = arith.constant 0 : index
    %593 = vector.load %arg3[%c32_218, %c0_219] : memref<48x32xf32, #tpu.memory_space<vmem>>, vector<16x32xf32>
    %594 = arith.addf %590, %593 : vector<16x32xf32>
    %c102 = arith.constant 102 : index
    %c0_220 = arith.constant 0 : index
    %595 = vector.load %arg6[%c102, %c0_220] : memref<152x64xf32, #tpu.memory_space<vmem>>, vector<1x64xf32>
    %596 = vector.broadcast %3 : vector<16x1xf32> to vector<16x64xf32>
    %597 = vector.broadcast %595 : vector<1x64xf32> to vector<16x64xf32>
    %598 = arith.mulf %596, %597 : vector<16x64xf32>
    %c137 = arith.constant 137 : index
    %c0_221 = arith.constant 0 : index
    %599 = vector.load %arg6[%c137, %c0_221] : memref<152x64xf32, #tpu.memory_space<vmem>>, vector<2x64xf32>
    %600 = vector.extract_strided_slice %6 {offsets = [0, 0], sizes = [56, 1], strides = [1, 1]} : vector<56x2xf32> to vector<56x1xf32>
    %601 = vector.extract_strided_slice %599 {offsets = [0, 0], sizes = [1, 64], strides = [1, 1]} : vector<2x64xf32> to vector<1x64xf32>
    %602 = vector.broadcast %600 : vector<56x1xf32> to vector<56x64xf32>
    %603 = vector.broadcast %601 : vector<1x64xf32> to vector<56x64xf32>
    %604 = arith.mulf %602, %603 : vector<56x64xf32>
    %605 = vector.extract_strided_slice %6 {offsets = [0, 1], sizes = [56, 1], strides = [1, 1]} : vector<56x2xf32> to vector<56x1xf32>
    %606 = vector.extract_strided_slice %599 {offsets = [1, 0], sizes = [1, 64], strides = [1, 1]} : vector<2x64xf32> to vector<1x64xf32>
    %607 = vector.broadcast %605 : vector<56x1xf32> to vector<56x64xf32>
    %608 = vector.broadcast %606 : vector<1x64xf32> to vector<56x64xf32>
    %609 = arith.mulf %607, %608 : vector<56x64xf32>
    %610 = arith.addf %604, %609 : vector<56x64xf32>
    %c106 = arith.constant 106 : index
    %c0_222 = arith.constant 0 : index
    %611 = vector.load %arg6[%c106, %c0_222] : memref<152x64xf32, #tpu.memory_space<vmem>>, vector<1x32xf32>
    %c107 = arith.constant 107 : index
    %c0_223 = arith.constant 0 : index
    %612 = vector.load %arg6[%c107, %c0_223] : memref<152x64xf32, #tpu.memory_space<vmem>>, vector<1x32xf32>
    %cst_224 = arith.constant dense<0.000000e+00> : vector<56xf32>
    %613 = vector.multi_reduction <add>, %592, %cst_224 [1] : vector<56x32xf32> to vector<56xf32>
    %614 = vector.shape_cast %613 : vector<56xf32> to vector<56x1xf32>
    %cst_225 = arith.constant 3.200000e+01 : f32
    %615 = vector.broadcast %cst_225 : f32 to vector<56x1xf32>
    %616 = arith.divf %614, %615 : vector<56x1xf32>
    %617 = vector.broadcast %616 : vector<56x1xf32> to vector<56x32xf32>
    %618 = arith.subf %592, %617 : vector<56x32xf32>
    %619 = arith.mulf %618, %618 : vector<56x32xf32>
    %cst_226 = arith.constant dense<0.000000e+00> : vector<56xf32>
    %620 = vector.multi_reduction <add>, %619, %cst_226 [1] : vector<56x32xf32> to vector<56xf32>
    %621 = vector.shape_cast %620 : vector<56xf32> to vector<56x1xf32>
    %cst_227 = arith.constant 3.200000e+01 : f32
    %622 = vector.broadcast %cst_227 : f32 to vector<56x1xf32>
    %623 = arith.divf %621, %622 : vector<56x1xf32>
    %624 = vector.broadcast %616 : vector<56x1xf32> to vector<56x32xf32>
    %625 = arith.subf %592, %624 : vector<56x32xf32>
    %cst_228 = arith.constant 9.99999974E-6 : f32
    %626 = vector.broadcast %cst_228 : f32 to vector<56x1xf32>
    %627 = arith.addf %623, %626 : vector<56x1xf32>
    %628 = math.rsqrt %627 : vector<56x1xf32>
    %629 = vector.broadcast %628 : vector<56x1xf32> to vector<56x32xf32>
    %630 = arith.mulf %625, %629 : vector<56x32xf32>
    %631 = vector.broadcast %611 : vector<1x32xf32> to vector<56x32xf32>
    %632 = arith.mulf %630, %631 : vector<56x32xf32>
    %633 = vector.broadcast %612 : vector<1x32xf32> to vector<56x32xf32>
    %634 = arith.addf %632, %633 : vector<56x32xf32>
    %c64 = arith.constant 64 : index
    %c0_229 = arith.constant 0 : index
    %635 = vector.load %arg5[%c64, %c0_229] : memref<512x64xbf16, #tpu.memory_space<vmem>>, vector<32x64xbf16>
    %636 = arith.truncf %590 : vector<16x32xf32> to vector<16x32xbf16>
    %cst_230 = arith.constant dense<0.000000e+00> : vector<16x64xf32>
    %637 = tpu.matmul %636, %635, %cst_230 {dimension_numbers = #tpu.dot_dimension_numbers<[1], [0], [0], [1], [0, 0, 1, 1], [], []>} : vector<16x32xbf16>, vector<32x64xbf16>, vector<16x64xf32> -> vector<16x64xf32>
    %c103 = arith.constant 103 : index
    %c0_231 = arith.constant 0 : index
    %638 = vector.load %arg6[%c103, %c0_231] : memref<152x64xf32, #tpu.memory_space<vmem>>, vector<1x64xf32>
    %639 = vector.broadcast %638 : vector<1x64xf32> to vector<16x64xf32>
    %640 = arith.addf %637, %639 : vector<16x64xf32>
    %641 = arith.addf %640, %598 : vector<16x64xf32>
    %c608 = arith.constant 608 : index
    %c0_232 = arith.constant 0 : index
    %642 = vector.load %arg4[%c608, %c0_232] : memref<1248x32xbf16, #tpu.memory_space<vmem>>, vector<32x32xbf16>
    %643 = arith.truncf %634 : vector<56x32xf32> to vector<56x32xbf16>
    %cst_233 = arith.constant dense<0.000000e+00> : vector<56x32xf32>
    %644 = tpu.matmul %643, %642, %cst_233 {dimension_numbers = #tpu.dot_dimension_numbers<[1], [0], [0], [1], [0, 0, 1, 1], [], []>} : vector<56x32xbf16>, vector<32x32xbf16>, vector<56x32xf32> -> vector<56x32xf32>
    %c104 = arith.constant 104 : index
    %c0_234 = arith.constant 0 : index
    %645 = vector.load %arg6[%c104, %c0_234] : memref<152x64xf32, #tpu.memory_space<vmem>>, vector<1x32xf32>
    %646 = vector.broadcast %645 : vector<1x32xf32> to vector<56x32xf32>
    %647 = arith.addf %644, %646 : vector<56x32xf32>
    %648 = arith.truncf %641 : vector<16x64xf32> to vector<16x64xbf16>
    %cst_235 = arith.constant dense<0.000000e+00> : vector<112x64xf32>
    %649 = tpu.matmul %11, %648, %cst_235 {dimension_numbers = #tpu.dot_dimension_numbers<[1], [0], [0], [1], [0, 0, 1, 1], [], []>} : vector<112x16xbf16>, vector<16x64xbf16>, vector<112x64xf32> -> vector<112x64xf32>
    %650 = vector.extract_strided_slice %649 {offsets = [0, 0], sizes = [112, 32], strides = [1, 1]} : vector<112x64xf32> to vector<112x32xf32>
    %651 = vector.shape_cast %650 : vector<112x32xf32> to vector<2x56x32xf32>
    %652 = vector.extract_strided_slice %649 {offsets = [0, 32], sizes = [112, 32], strides = [1, 1]} : vector<112x64xf32> to vector<112x32xf32>
    %653 = vector.shape_cast %652 : vector<112x32xf32> to vector<2x56x32xf32>
    %654 = vector.shape_cast %647 : vector<56x32xf32> to vector<1x56x32xf32>
    %655 = vector.broadcast %654 : vector<1x56x32xf32> to vector<2x56x32xf32>
    %656 = arith.mulf %651, %655 : vector<2x56x32xf32>
    %657 = vector.shape_cast %656 : vector<2x56x32xf32> to vector<112x32xf32>
    %658 = arith.truncf %657 : vector<112x32xf32> to vector<112x32xbf16>
    %cst_236 = arith.constant dense<0.000000e+00> : vector<112x32xf32>
    %659 = tpu.matmul %658, %13, %cst_236 {dimension_numbers = #tpu.dot_dimension_numbers<[1], [0], [0], [1], [0, 0, 1, 1], [], []>} : vector<112x32xbf16>, vector<32x32xbf16>, vector<112x32xf32> -> vector<112x32xf32>
    %cst_237 = arith.constant 0.353553385 : f32
    %660 = vector.broadcast %cst_237 : f32 to vector<112x32xf32>
    %661 = arith.mulf %660, %659 : vector<112x32xf32>
    %662 = vector.shape_cast %661 : vector<112x32xf32> to vector<2x56x32xf32>
    %cst_238 = arith.constant dense<0xFF800000> : vector<56x32xf32>
    %663 = vector.multi_reduction <maximumf>, %662, %cst_238 [0] : vector<2x56x32xf32> to vector<56x32xf32>
    %664 = vector.shape_cast %663 : vector<56x32xf32> to vector<1x56x32xf32>
    %665 = vector.broadcast %664 : vector<1x56x32xf32> to vector<2x56x32xf32>
    %666 = arith.subf %662, %665 : vector<2x56x32xf32>
    %667 = math.exp %666 : vector<2x56x32xf32>
    %668 = arith.mulf %667, %653 : vector<2x56x32xf32>
    %cst_239 = arith.constant dense<0.000000e+00> : vector<56x32xf32>
    %669 = vector.multi_reduction <add>, %668, %cst_239 [0] : vector<2x56x32xf32> to vector<56x32xf32>
    %cst_240 = arith.constant dense<0.000000e+00> : vector<56x32xf32>
    %670 = vector.multi_reduction <add>, %667, %cst_240 [0] : vector<2x56x32xf32> to vector<56x32xf32>
    %671 = arith.divf %669, %670 : vector<56x32xf32>
    %c640 = arith.constant 640 : index
    %c0_241 = arith.constant 0 : index
    %672 = vector.load %arg4[%c640, %c0_241] : memref<1248x32xbf16, #tpu.memory_space<vmem>>, vector<32x32xbf16>
    %673 = arith.truncf %671 : vector<56x32xf32> to vector<56x32xbf16>
    %cst_242 = arith.constant dense<0.000000e+00> : vector<56x32xf32>
    %674 = tpu.matmul %673, %672, %cst_242 {dimension_numbers = #tpu.dot_dimension_numbers<[1], [0], [0], [1], [0, 0, 1, 1], [], []>} : vector<56x32xbf16>, vector<32x32xbf16>, vector<56x32xf32> -> vector<56x32xf32>
    %675 = arith.addf %592, %674 : vector<56x32xf32>
    %c105 = arith.constant 105 : index
    %c0_243 = arith.constant 0 : index
    %676 = vector.load %arg6[%c105, %c0_243] : memref<152x64xf32, #tpu.memory_space<vmem>>, vector<1x32xf32>
    %677 = vector.broadcast %676 : vector<1x32xf32> to vector<56x32xf32>
    %678 = arith.addf %675, %677 : vector<56x32xf32>
    %c108 = arith.constant 108 : index
    %c0_244 = arith.constant 0 : index
    %679 = vector.load %arg6[%c108, %c0_244] : memref<152x64xf32, #tpu.memory_space<vmem>>, vector<1x32xf32>
    %c109 = arith.constant 109 : index
    %c0_245 = arith.constant 0 : index
    %680 = vector.load %arg6[%c109, %c0_245] : memref<152x64xf32, #tpu.memory_space<vmem>>, vector<1x32xf32>
    %cst_246 = arith.constant dense<0.000000e+00> : vector<56xf32>
    %681 = vector.multi_reduction <add>, %678, %cst_246 [1] : vector<56x32xf32> to vector<56xf32>
    %682 = vector.shape_cast %681 : vector<56xf32> to vector<56x1xf32>
    %cst_247 = arith.constant 3.200000e+01 : f32
    %683 = vector.broadcast %cst_247 : f32 to vector<56x1xf32>
    %684 = arith.divf %682, %683 : vector<56x1xf32>
    %685 = vector.broadcast %684 : vector<56x1xf32> to vector<56x32xf32>
    %686 = arith.subf %678, %685 : vector<56x32xf32>
    %687 = arith.mulf %686, %686 : vector<56x32xf32>
    %cst_248 = arith.constant dense<0.000000e+00> : vector<56xf32>
    %688 = vector.multi_reduction <add>, %687, %cst_248 [1] : vector<56x32xf32> to vector<56xf32>
    %689 = vector.shape_cast %688 : vector<56xf32> to vector<56x1xf32>
    %cst_249 = arith.constant 3.200000e+01 : f32
    %690 = vector.broadcast %cst_249 : f32 to vector<56x1xf32>
    %691 = arith.divf %689, %690 : vector<56x1xf32>
    %692 = vector.broadcast %684 : vector<56x1xf32> to vector<56x32xf32>
    %693 = arith.subf %678, %692 : vector<56x32xf32>
    %cst_250 = arith.constant 9.99999974E-6 : f32
    %694 = vector.broadcast %cst_250 : f32 to vector<56x1xf32>
    %695 = arith.addf %691, %694 : vector<56x1xf32>
    %696 = math.rsqrt %695 : vector<56x1xf32>
    %697 = vector.broadcast %696 : vector<56x1xf32> to vector<56x32xf32>
    %698 = arith.mulf %693, %697 : vector<56x32xf32>
    %699 = vector.broadcast %679 : vector<1x32xf32> to vector<56x32xf32>
    %700 = arith.mulf %698, %699 : vector<56x32xf32>
    %701 = vector.broadcast %680 : vector<1x32xf32> to vector<56x32xf32>
    %702 = arith.addf %700, %701 : vector<56x32xf32>
    %c672 = arith.constant 672 : index
    %c0_251 = arith.constant 0 : index
    %703 = vector.load %arg4[%c672, %c0_251] : memref<1248x32xbf16, #tpu.memory_space<vmem>>, vector<32x32xbf16>
    %704 = arith.truncf %702 : vector<56x32xf32> to vector<56x32xbf16>
    %cst_252 = arith.constant dense<0.000000e+00> : vector<56x32xf32>
    %705 = tpu.matmul %704, %703, %cst_252 {dimension_numbers = #tpu.dot_dimension_numbers<[1], [0], [0], [1], [0, 0, 1, 1], [], []>} : vector<56x32xbf16>, vector<32x32xbf16>, vector<56x32xf32> -> vector<56x32xf32>
    %c110 = arith.constant 110 : index
    %c0_253 = arith.constant 0 : index
    %706 = vector.load %arg6[%c110, %c0_253] : memref<152x64xf32, #tpu.memory_space<vmem>>, vector<1x32xf32>
    %707 = vector.broadcast %706 : vector<1x32xf32> to vector<56x32xf32>
    %708 = arith.addf %705, %707 : vector<56x32xf32>
    %cst_254 = arith.constant 0.000000e+00 : f32
    %709 = vector.broadcast %cst_254 : f32 to vector<56x32xf32>
    %710 = arith.maximumf %708, %709 : vector<56x32xf32>
    %c704 = arith.constant 704 : index
    %c0_255 = arith.constant 0 : index
    %711 = vector.load %arg4[%c704, %c0_255] : memref<1248x32xbf16, #tpu.memory_space<vmem>>, vector<32x32xbf16>
    %712 = arith.truncf %710 : vector<56x32xf32> to vector<56x32xbf16>
    %cst_256 = arith.constant dense<0.000000e+00> : vector<56x32xf32>
    %713 = tpu.matmul %712, %711, %cst_256 {dimension_numbers = #tpu.dot_dimension_numbers<[1], [0], [0], [1], [0, 0, 1, 1], [], []>} : vector<56x32xbf16>, vector<32x32xbf16>, vector<56x32xf32> -> vector<56x32xf32>
    %c111 = arith.constant 111 : index
    %c0_257 = arith.constant 0 : index
    %714 = vector.load %arg6[%c111, %c0_257] : memref<152x64xf32, #tpu.memory_space<vmem>>, vector<1x32xf32>
    %715 = vector.broadcast %714 : vector<1x32xf32> to vector<56x32xf32>
    %716 = arith.addf %713, %715 : vector<56x32xf32>
    %cst_258 = arith.constant 0.000000e+00 : f32
    %717 = vector.broadcast %cst_258 : f32 to vector<56x32xf32>
    %718 = arith.maximumf %716, %717 : vector<56x32xf32>
    %c736 = arith.constant 736 : index
    %c0_259 = arith.constant 0 : index
    %719 = vector.load %arg4[%c736, %c0_259] : memref<1248x32xbf16, #tpu.memory_space<vmem>>, vector<32x32xbf16>
    %720 = arith.truncf %718 : vector<56x32xf32> to vector<56x32xbf16>
    %cst_260 = arith.constant dense<0.000000e+00> : vector<56x32xf32>
    %721 = tpu.matmul %720, %719, %cst_260 {dimension_numbers = #tpu.dot_dimension_numbers<[1], [0], [0], [1], [0, 0, 1, 1], [], []>} : vector<56x32xbf16>, vector<32x32xbf16>, vector<56x32xf32> -> vector<56x32xf32>
    %c112_261 = arith.constant 112 : index
    %c0_262 = arith.constant 0 : index
    %722 = vector.load %arg6[%c112_261, %c0_262] : memref<152x64xf32, #tpu.memory_space<vmem>>, vector<1x32xf32>
    %723 = vector.broadcast %722 : vector<1x32xf32> to vector<56x32xf32>
    %724 = arith.addf %721, %723 : vector<56x32xf32>
    %725 = arith.addf %678, %724 : vector<56x32xf32>
    %c142 = arith.constant 142 : index
    %c0_263 = arith.constant 0 : index
    %726 = vector.load %arg6[%c142, %c0_263] : memref<152x64xf32, #tpu.memory_space<vmem>>, vector<1x32xf32>
    %c143 = arith.constant 143 : index
    %c0_264 = arith.constant 0 : index
    %727 = vector.load %arg6[%c143, %c0_264] : memref<152x64xf32, #tpu.memory_space<vmem>>, vector<1x32xf32>
    %cst_265 = arith.constant dense<0.000000e+00> : vector<16xf32>
    %728 = vector.multi_reduction <add>, %594, %cst_265 [1] : vector<16x32xf32> to vector<16xf32>
    %729 = vector.shape_cast %728 : vector<16xf32> to vector<16x1xf32>
    %cst_266 = arith.constant 3.200000e+01 : f32
    %730 = vector.broadcast %cst_266 : f32 to vector<16x1xf32>
    %731 = arith.divf %729, %730 : vector<16x1xf32>
    %732 = vector.broadcast %731 : vector<16x1xf32> to vector<16x32xf32>
    %733 = arith.subf %594, %732 : vector<16x32xf32>
    %734 = arith.mulf %733, %733 : vector<16x32xf32>
    %cst_267 = arith.constant dense<0.000000e+00> : vector<16xf32>
    %735 = vector.multi_reduction <add>, %734, %cst_267 [1] : vector<16x32xf32> to vector<16xf32>
    %736 = vector.shape_cast %735 : vector<16xf32> to vector<16x1xf32>
    %cst_268 = arith.constant 3.200000e+01 : f32
    %737 = vector.broadcast %cst_268 : f32 to vector<16x1xf32>
    %738 = arith.divf %736, %737 : vector<16x1xf32>
    %739 = vector.broadcast %731 : vector<16x1xf32> to vector<16x32xf32>
    %740 = arith.subf %594, %739 : vector<16x32xf32>
    %cst_269 = arith.constant 9.99999974E-6 : f32
    %741 = vector.broadcast %cst_269 : f32 to vector<16x1xf32>
    %742 = arith.addf %738, %741 : vector<16x1xf32>
    %743 = math.rsqrt %742 : vector<16x1xf32>
    %744 = vector.broadcast %743 : vector<16x1xf32> to vector<16x32xf32>
    %745 = arith.mulf %740, %744 : vector<16x32xf32>
    %746 = vector.broadcast %726 : vector<1x32xf32> to vector<16x32xf32>
    %747 = arith.mulf %745, %746 : vector<16x32xf32>
    %748 = vector.broadcast %727 : vector<1x32xf32> to vector<16x32xf32>
    %749 = arith.addf %747, %748 : vector<16x32xf32>
    %c160 = arith.constant 160 : index
    %c0_270 = arith.constant 0 : index
    %750 = vector.load %arg5[%c160, %c0_270] : memref<512x64xbf16, #tpu.memory_space<vmem>>, vector<32x64xbf16>
    %751 = arith.truncf %475 : vector<56x32xf32> to vector<56x32xbf16>
    %cst_271 = arith.constant dense<0.000000e+00> : vector<56x64xf32>
    %752 = tpu.matmul %751, %750, %cst_271 {dimension_numbers = #tpu.dot_dimension_numbers<[1], [0], [0], [1], [0, 0, 1, 1], [], []>} : vector<56x32xbf16>, vector<32x64xbf16>, vector<56x64xf32> -> vector<56x64xf32>
    %c139 = arith.constant 139 : index
    %c0_272 = arith.constant 0 : index
    %753 = vector.load %arg6[%c139, %c0_272] : memref<152x64xf32, #tpu.memory_space<vmem>>, vector<1x64xf32>
    %754 = vector.broadcast %753 : vector<1x64xf32> to vector<56x64xf32>
    %755 = arith.addf %752, %754 : vector<56x64xf32>
    %756 = arith.addf %755, %610 : vector<56x64xf32>
    %c1088 = arith.constant 1088 : index
    %c0_273 = arith.constant 0 : index
    %757 = vector.load %arg4[%c1088, %c0_273] : memref<1248x32xbf16, #tpu.memory_space<vmem>>, vector<32x32xbf16>
    %758 = arith.truncf %749 : vector<16x32xf32> to vector<16x32xbf16>
    %cst_274 = arith.constant dense<0.000000e+00> : vector<16x32xf32>
    %759 = tpu.matmul %758, %757, %cst_274 {dimension_numbers = #tpu.dot_dimension_numbers<[1], [0], [0], [1], [0, 0, 1, 1], [], []>} : vector<16x32xbf16>, vector<32x32xbf16>, vector<16x32xf32> -> vector<16x32xf32>
    %c140 = arith.constant 140 : index
    %c0_275 = arith.constant 0 : index
    %760 = vector.load %arg6[%c140, %c0_275] : memref<152x64xf32, #tpu.memory_space<vmem>>, vector<1x32xf32>
    %761 = vector.broadcast %760 : vector<1x32xf32> to vector<16x32xf32>
    %762 = arith.addf %759, %761 : vector<16x32xf32>
    %763 = arith.truncf %756 : vector<56x64xf32> to vector<56x64xbf16>
    %cst_276 = arith.constant dense<0.000000e+00> : vector<112x64xf32>
    %764 = tpu.matmul %12, %763, %cst_276 {dimension_numbers = #tpu.dot_dimension_numbers<[1], [0], [0], [1], [0, 0, 1, 1], [], []>} : vector<112x56xbf16>, vector<56x64xbf16>, vector<112x64xf32> -> vector<112x64xf32>
    %765 = vector.extract_strided_slice %764 {offsets = [0, 0], sizes = [112, 32], strides = [1, 1]} : vector<112x64xf32> to vector<112x32xf32>
    %766 = vector.shape_cast %765 : vector<112x32xf32> to vector<7x16x32xf32>
    %767 = vector.extract_strided_slice %764 {offsets = [0, 32], sizes = [112, 32], strides = [1, 1]} : vector<112x64xf32> to vector<112x32xf32>
    %768 = vector.shape_cast %767 : vector<112x32xf32> to vector<7x16x32xf32>
    %769 = vector.shape_cast %762 : vector<16x32xf32> to vector<1x16x32xf32>
    %770 = vector.broadcast %769 : vector<1x16x32xf32> to vector<7x16x32xf32>
    %771 = arith.mulf %766, %770 : vector<7x16x32xf32>
    %772 = vector.shape_cast %771 : vector<7x16x32xf32> to vector<112x32xf32>
    %773 = arith.truncf %772 : vector<112x32xf32> to vector<112x32xbf16>
    %cst_277 = arith.constant dense<0.000000e+00> : vector<112x32xf32>
    %774 = tpu.matmul %773, %13, %cst_277 {dimension_numbers = #tpu.dot_dimension_numbers<[1], [0], [0], [1], [0, 0, 1, 1], [], []>} : vector<112x32xbf16>, vector<32x32xbf16>, vector<112x32xf32> -> vector<112x32xf32>
    %cst_278 = arith.constant 0.353553385 : f32
    %775 = vector.broadcast %cst_278 : f32 to vector<112x32xf32>
    %776 = arith.mulf %775, %774 : vector<112x32xf32>
    %777 = vector.shape_cast %776 : vector<112x32xf32> to vector<7x16x32xf32>
    %cst_279 = arith.constant dense<0xFF800000> : vector<16x32xf32>
    %778 = vector.multi_reduction <maximumf>, %777, %cst_279 [0] : vector<7x16x32xf32> to vector<16x32xf32>
    %779 = vector.shape_cast %778 : vector<16x32xf32> to vector<1x16x32xf32>
    %780 = vector.broadcast %779 : vector<1x16x32xf32> to vector<7x16x32xf32>
    %781 = arith.subf %777, %780 : vector<7x16x32xf32>
    %782 = math.exp %781 : vector<7x16x32xf32>
    %783 = arith.mulf %782, %768 : vector<7x16x32xf32>
    %cst_280 = arith.constant dense<0.000000e+00> : vector<16x32xf32>
    %784 = vector.multi_reduction <add>, %783, %cst_280 [0] : vector<7x16x32xf32> to vector<16x32xf32>
    %cst_281 = arith.constant dense<0.000000e+00> : vector<16x32xf32>
    %785 = vector.multi_reduction <add>, %782, %cst_281 [0] : vector<7x16x32xf32> to vector<16x32xf32>
    %786 = arith.divf %784, %785 : vector<16x32xf32>
    %c1120 = arith.constant 1120 : index
    %c0_282 = arith.constant 0 : index
    %787 = vector.load %arg4[%c1120, %c0_282] : memref<1248x32xbf16, #tpu.memory_space<vmem>>, vector<32x32xbf16>
    %788 = arith.truncf %786 : vector<16x32xf32> to vector<16x32xbf16>
    %cst_283 = arith.constant dense<0.000000e+00> : vector<16x32xf32>
    %789 = tpu.matmul %788, %787, %cst_283 {dimension_numbers = #tpu.dot_dimension_numbers<[1], [0], [0], [1], [0, 0, 1, 1], [], []>} : vector<16x32xbf16>, vector<32x32xbf16>, vector<16x32xf32> -> vector<16x32xf32>
    %790 = arith.addf %594, %789 : vector<16x32xf32>
    %c141 = arith.constant 141 : index
    %c0_284 = arith.constant 0 : index
    %791 = vector.load %arg6[%c141, %c0_284] : memref<152x64xf32, #tpu.memory_space<vmem>>, vector<1x32xf32>
    %792 = vector.broadcast %791 : vector<1x32xf32> to vector<16x32xf32>
    %793 = arith.addf %790, %792 : vector<16x32xf32>
    %c144 = arith.constant 144 : index
    %c0_285 = arith.constant 0 : index
    %794 = vector.load %arg6[%c144, %c0_285] : memref<152x64xf32, #tpu.memory_space<vmem>>, vector<1x32xf32>
    %c145 = arith.constant 145 : index
    %c0_286 = arith.constant 0 : index
    %795 = vector.load %arg6[%c145, %c0_286] : memref<152x64xf32, #tpu.memory_space<vmem>>, vector<1x32xf32>
    %cst_287 = arith.constant dense<0.000000e+00> : vector<16xf32>
    %796 = vector.multi_reduction <add>, %793, %cst_287 [1] : vector<16x32xf32> to vector<16xf32>
    %797 = vector.shape_cast %796 : vector<16xf32> to vector<16x1xf32>
    %cst_288 = arith.constant 3.200000e+01 : f32
    %798 = vector.broadcast %cst_288 : f32 to vector<16x1xf32>
    %799 = arith.divf %797, %798 : vector<16x1xf32>
    %800 = vector.broadcast %799 : vector<16x1xf32> to vector<16x32xf32>
    %801 = arith.subf %793, %800 : vector<16x32xf32>
    %802 = arith.mulf %801, %801 : vector<16x32xf32>
    %cst_289 = arith.constant dense<0.000000e+00> : vector<16xf32>
    %803 = vector.multi_reduction <add>, %802, %cst_289 [1] : vector<16x32xf32> to vector<16xf32>
    %804 = vector.shape_cast %803 : vector<16xf32> to vector<16x1xf32>
    %cst_290 = arith.constant 3.200000e+01 : f32
    %805 = vector.broadcast %cst_290 : f32 to vector<16x1xf32>
    %806 = arith.divf %804, %805 : vector<16x1xf32>
    %807 = vector.broadcast %799 : vector<16x1xf32> to vector<16x32xf32>
    %808 = arith.subf %793, %807 : vector<16x32xf32>
    %cst_291 = arith.constant 9.99999974E-6 : f32
    %809 = vector.broadcast %cst_291 : f32 to vector<16x1xf32>
    %810 = arith.addf %806, %809 : vector<16x1xf32>
    %811 = math.rsqrt %810 : vector<16x1xf32>
    %812 = vector.broadcast %811 : vector<16x1xf32> to vector<16x32xf32>
    %813 = arith.mulf %808, %812 : vector<16x32xf32>
    %814 = vector.broadcast %794 : vector<1x32xf32> to vector<16x32xf32>
    %815 = arith.mulf %813, %814 : vector<16x32xf32>
    %816 = vector.broadcast %795 : vector<1x32xf32> to vector<16x32xf32>
    %817 = arith.addf %815, %816 : vector<16x32xf32>
    %c1152 = arith.constant 1152 : index
    %c0_292 = arith.constant 0 : index
    %818 = vector.load %arg4[%c1152, %c0_292] : memref<1248x32xbf16, #tpu.memory_space<vmem>>, vector<32x32xbf16>
    %819 = arith.truncf %817 : vector<16x32xf32> to vector<16x32xbf16>
    %cst_293 = arith.constant dense<0.000000e+00> : vector<16x32xf32>
    %820 = tpu.matmul %819, %818, %cst_293 {dimension_numbers = #tpu.dot_dimension_numbers<[1], [0], [0], [1], [0, 0, 1, 1], [], []>} : vector<16x32xbf16>, vector<32x32xbf16>, vector<16x32xf32> -> vector<16x32xf32>
    %c146 = arith.constant 146 : index
    %c0_294 = arith.constant 0 : index
    %821 = vector.load %arg6[%c146, %c0_294] : memref<152x64xf32, #tpu.memory_space<vmem>>, vector<1x32xf32>
    %822 = vector.broadcast %821 : vector<1x32xf32> to vector<16x32xf32>
    %823 = arith.addf %820, %822 : vector<16x32xf32>
    %cst_295 = arith.constant 0.000000e+00 : f32
    %824 = vector.broadcast %cst_295 : f32 to vector<16x32xf32>
    %825 = arith.maximumf %823, %824 : vector<16x32xf32>
    %c1184 = arith.constant 1184 : index
    %c0_296 = arith.constant 0 : index
    %826 = vector.load %arg4[%c1184, %c0_296] : memref<1248x32xbf16, #tpu.memory_space<vmem>>, vector<32x32xbf16>
    %827 = arith.truncf %825 : vector<16x32xf32> to vector<16x32xbf16>
    %cst_297 = arith.constant dense<0.000000e+00> : vector<16x32xf32>
    %828 = tpu.matmul %827, %826, %cst_297 {dimension_numbers = #tpu.dot_dimension_numbers<[1], [0], [0], [1], [0, 0, 1, 1], [], []>} : vector<16x32xbf16>, vector<32x32xbf16>, vector<16x32xf32> -> vector<16x32xf32>
    %c147 = arith.constant 147 : index
    %c0_298 = arith.constant 0 : index
    %829 = vector.load %arg6[%c147, %c0_298] : memref<152x64xf32, #tpu.memory_space<vmem>>, vector<1x32xf32>
    %830 = vector.broadcast %829 : vector<1x32xf32> to vector<16x32xf32>
    %831 = arith.addf %828, %830 : vector<16x32xf32>
    %cst_299 = arith.constant 0.000000e+00 : f32
    %832 = vector.broadcast %cst_299 : f32 to vector<16x32xf32>
    %833 = arith.maximumf %831, %832 : vector<16x32xf32>
    %c1216 = arith.constant 1216 : index
    %c0_300 = arith.constant 0 : index
    %834 = vector.load %arg4[%c1216, %c0_300] : memref<1248x32xbf16, #tpu.memory_space<vmem>>, vector<32x32xbf16>
    %835 = arith.truncf %833 : vector<16x32xf32> to vector<16x32xbf16>
    %cst_301 = arith.constant dense<0.000000e+00> : vector<16x32xf32>
    %836 = tpu.matmul %835, %834, %cst_301 {dimension_numbers = #tpu.dot_dimension_numbers<[1], [0], [0], [1], [0, 0, 1, 1], [], []>} : vector<16x32xbf16>, vector<32x32xbf16>, vector<16x32xf32> -> vector<16x32xf32>
    %c148 = arith.constant 148 : index
    %c0_302 = arith.constant 0 : index
    %837 = vector.load %arg6[%c148, %c0_302] : memref<152x64xf32, #tpu.memory_space<vmem>>, vector<1x32xf32>
    %838 = vector.broadcast %837 : vector<1x32xf32> to vector<16x32xf32>
    %839 = arith.addf %836, %838 : vector<16x32xf32>
    %840 = arith.addf %793, %839 : vector<16x32xf32>
    %c224 = arith.constant 224 : index
    %c0_303 = arith.constant 0 : index
    %841 = vector.load %arg4[%c224, %c0_303] : memref<1248x32xbf16, #tpu.memory_space<vmem>>, vector<32x32xbf16>
    %842 = arith.truncf %840 : vector<16x32xf32> to vector<16x32xbf16>
    %cst_304 = arith.constant dense<0.000000e+00> : vector<16x32xf32>
    %843 = tpu.matmul %842, %841, %cst_304 {dimension_numbers = #tpu.dot_dimension_numbers<[1], [0], [0], [1], [0, 0, 1, 1], [], []>} : vector<16x32xbf16>, vector<32x32xbf16>, vector<16x32xf32> -> vector<16x32xf32>
    %c78 = arith.constant 78 : index
    %c0_305 = arith.constant 0 : index
    %844 = vector.load %arg6[%c78, %c0_305] : memref<152x64xf32, #tpu.memory_space<vmem>>, vector<1x32xf32>
    %845 = vector.broadcast %844 : vector<1x32xf32> to vector<16x32xf32>
    %846 = arith.addf %843, %845 : vector<16x32xf32>
    %c256 = arith.constant 256 : index
    %c0_306 = arith.constant 0 : index
    %847 = vector.load %arg4[%c256, %c0_306] : memref<1248x32xbf16, #tpu.memory_space<vmem>>, vector<32x32xbf16>
    %848 = arith.truncf %725 : vector<56x32xf32> to vector<56x32xbf16>
    %cst_307 = arith.constant dense<0.000000e+00> : vector<56x32xf32>
    %849 = tpu.matmul %848, %847, %cst_307 {dimension_numbers = #tpu.dot_dimension_numbers<[1], [0], [0], [1], [0, 0, 1, 1], [], []>} : vector<56x32xbf16>, vector<32x32xbf16>, vector<56x32xf32> -> vector<56x32xf32>
    %c79 = arith.constant 79 : index
    %c0_308 = arith.constant 0 : index
    %850 = vector.load %arg6[%c79, %c0_308] : memref<152x64xf32, #tpu.memory_space<vmem>>, vector<1x32xf32>
    %851 = vector.broadcast %850 : vector<1x32xf32> to vector<56x32xf32>
    %852 = arith.addf %849, %851 : vector<56x32xf32>
    %853 = vector.extract_strided_slice %852 {offsets = [0, 0], sizes = [56, 1], strides = [1, 1]} : vector<56x32xf32> to vector<56x1xf32>
    %cst_309 = arith.constant 2.000000e+01 : f32
    %854 = vector.broadcast %cst_309 : f32 to vector<56x1xf32>
    %855 = arith.cmpf ogt, %853, %854 : vector<56x1xf32>
    %cst_310 = arith.constant 2.000000e+01 : f32
    %856 = vector.broadcast %cst_310 : f32 to vector<56x1xf32>
    %857 = arith.minimumf %853, %856 : vector<56x1xf32>
    %858 = math.exp %857 : vector<56x1xf32>
    %cst_311 = arith.constant 1.000000e+00 : f32
    %859 = vector.broadcast %cst_311 : f32 to vector<56x1xf32>
    %860 = arith.addf %859, %858 : vector<56x1xf32>
    %861 = math.log %860 : vector<56x1xf32>
    %862 = arith.select %855, %853, %861 : vector<56x1xi1>, vector<56x1xf32>
    %cst_312 = arith.constant 0.000000e+00 : f32
    %863 = vector.broadcast %cst_312 : f32 to vector<56x128xf32>
    %c0_313 = arith.constant 0 : index
    %c0_314 = arith.constant 0 : index
    %864 = vector.load %arg7[%c0_313, %c0_314] : memref<56x128xf32, #tpu.memory_space<vmem>>, vector<56x128xf32>
    tpu.vector_store %arg7[%c0_313, %c0_314], %863 {strides = array<i32>} : memref<56x128xf32, #tpu.memory_space<vmem>>, vector<56x128xf32>,
    %865 = vector.extract_strided_slice %846 {offsets = [0, 0], sizes = [16, 6], strides = [1, 1]} : vector<16x32xf32> to vector<16x6xf32>
    %c0_315 = arith.constant 0 : index
    %c0_316 = arith.constant 0 : index
    %866 = vector.load %arg7[%c0_315, %c0_316] : memref<56x128xf32, #tpu.memory_space<vmem>>, vector<16x6xf32>
    tpu.vector_store %arg7[%c0_315, %c0_316], %865 {strides = array<i32>} : memref<56x128xf32, #tpu.memory_space<vmem>>, vector<16x6xf32>,
    %c0_317 = arith.constant 0 : index
    %c6 = arith.constant 6 : index
    %867 = vector.load %arg7[%c0_317, %c6] : memref<56x128xf32, #tpu.memory_space<vmem>>, vector<56x1xf32>
    tpu.vector_store %arg7[%c0_317, %c6], %862 {strides = array<i32>} : memref<56x128xf32, #tpu.memory_space<vmem>>, vector<56x1xf32>,
    return
  }
}

</mosaic_0001>

<bundles_post_ra>
// kernel: forward.1
= control target key start
LH: loop header
LB: loop body
LE: loop exit
PB: predicated region body
PF: predicated region fallthrough
CT: control target
= control target key end

     0   :  { %v12972_v0 = vmov 0.0   ;;  %vm10084_vm0 = vmmov 0   ;;  %vm91_vm1 = vcmask 130048   ;;  %v10086_v15 = vmov 1   ;;  %s10088_s25 = smov 64   ;;  %s10090_s22 = smov 96   ;;  %s12964_s0 = inlined_call_operand.vmem [shape: f32[16,32], index: 0, kind: input, shape index: {}]   ;;  %s12965_s5 = inlined_call_operand.vmem [shape: bf16[512,64], index: 5, kind: input, shape index: {}]   ;;  %s12966_s4 = inlined_call_operand.vmem [shape: bf16[1248,32], index: 4, kind: input, shape index: {}]   ;;  %s12967_s6 = inlined_call_operand.vmem [shape: f32[152,64], index: 6, kind: input, shape index: {}]   ;;  %s12968_s1 = inlined_call_operand.vmem [shape: f32[56,32], index: 1, kind: input, shape index: {}]   ;;  %s12969_s2 = inlined_call_operand.vmem [shape: f32[168,32], index: 2, kind: input, shape index: {}]   ;;  %s12970_s3 = inlined_call_operand.vmem [shape: f32[48,32], index: 3, kind: input, shape index: {}]   ;;  %s12971_s7 = inlined_call_operand.vmem [shape: f32[56,128], index: 7, kind: output, shape index: {}]  }
   0x1   :  { %8693 = vmatprep.subr.bf16.mxu1 %v12972_v0  ;;  %v27_v1 = vld [vmem:[%s12964_s0] sm:$0xff]  ;;  %v28_v2 = vld [vmem:[%s12964_s0 + $0x8] sm:$0xff]  ;;  %8695 = vmatprep.mubr.msk.bf16.mxu1 %vm10084_vm0, %v12972_v0  ;;  %s10085_s0 = smov 32   ;;  %v9568_v9 = vld [vmem:[%s12966_s4 + $0x18] sm:$0xff]   ;;  %v10087_v17 = vmov 0   ;;  %v10089_v26 = vmov 2   ;;  %v317_v39 = vlaneseq }
   0x2   :  { %v85_v3 = vpack.c.bf16 %v28_v2, %v27_v1  ;;  %v9564_v4 = vld [vmem:[%s12965_s5 + $0xe8] sm:$0xff]   ;;  %8687 = vmatprep.subr.bf16.mxu0 %v12972_v0  ;;  %8689 = vmatprep.mubr.msk.bf16.mxu0 %vm10084_vm0, %v12972_v0  ;;  %v9565_v5 = vld [vmem:[%s12965_s5 + $0xe0] sm:$0xff]   ;;  %v9530_v6 = vpack.i.bf16 %v28_v2, %v27_v1  ;;  %v9569_v10 = vld [vmem:[%s12966_s4 + $0x10] sm:$0xff]   ;;  %vm201_vm2 = vcmask 261120   ;;  %vm204_vm3 = vcmask 523264   ;;  %s10091_s29 = smov 6  }
   0x3   :  { %v9566_v7 = vld [vmem:[%s12966_s4 + $0x28] sm:$0xff]   ;;  %v9567_v8 = vld [vmem:[%s12966_s4 + $0x20] sm:$0xff]   ;;  %9540 = vset.pattern.permute.xlu1 %v10086_v15  ;;  %9541 = vset.pattern.permute.xlu0 %v10087_v17  ;;  %vm262_vm4 = vcmask 785408   ;;  %v318_v40 = vshrl.u32 %v317_v39, 7  ;;  %vm2433_vm9 = vcmask 1043456   ;;  %vm2411_vm10 = vcmask 457728  }
   0x4   :  { %8694 = vmatpush3.bf16.msra.mxu1 %v85_v3  ;;  %8688 = vmatpush3.bf16.msra.mxu0 %v85_v3  ;;  %v9570_v11 = vld [vmem:[%s12966_s4 + $0x8] sm:$0xff]   ;;  %v9571_v12 = vld [vmem:[%s12966_s4] sm:$0xff]  }
   0x5   :  { %8699 = vmatprep.subr.bf16.mxu0 %v12972_v0  ;;  %8715 = vmatprep.subr.bf16.mxu1 %v12972_v0  ;;  %v36_v16 = vld [vmem:[%s12967_s6] sm:$0xff]  ;;  %v37_v20 = vld [vmem:[%s12967_s6 + $0x8] sm:$0xff]  ;;  %v10202_v42 = vsub.s32 0, %v318_v40  ;;  %v10204_v43 = vsub.s32 1, %v318_v40  ;;  %v351_v46 = vsub.s32 2, %v318_v40 }
   0x6   :  { %9531 = vrot.lane.b32.xlu0 %v9530_v6, %s10085_s0  ;;  %309 = vperm.xlu1 %9540, %v36_v16   ;;  %v207_v44 = vld [vmem:[%s12967_s6 + $0x48] sm:$0x7]  ;;  %v8016_v49 = vld [vmem:[%s12967_s6 + $0x4b] ss:$0 sm:$0xff] }
   0x7   :  { %8696 = vmatmul.mubr.msk.bf16.vlgmr.msra.gmra.mxu1 %vm91_vm1, %v9564_v4  ;;  %8690 = vmatmul.mubr.msk.bf16.vlgmr.msra.gmra.mxu0 %vm91_vm1, %v9565_v5  ;;  %v320_v47 = vrot.slane %v207_v44, %v10202_v42  ;;  %v336_v48 = vrot.slane %v207_v44, %v10204_v43  ;;  %v352_v51 = vrot.slane %v207_v44, %v351_v46 }
   0x8   :  { %8711 = vmatprep.mubr.msk.bf16.mxu0 %vm10084_vm0, %v12972_v0  ;;  %8717 = vmatprep.mubr.msk.bf16.mxu1 %vm10084_vm0, %v12972_v0 }
   0x9   :  { %8700 = vmatpush3.bf16.msra.mxu0 %v9566_v7 }
   0xa   :  { %8701 = vmatprep.subr.bf16.mxu0 %v12972_v0  ;;  %314 = vperm.xlu1 %9540, %v37_v20  }
   0xd   :  { %8702 = vmatpush3.bf16.msra.mxu0 %v9567_v8 }
   0xe   :  { %8703 = vmatprep.subr.bf16.mxu0 %v12972_v0  ;;  %9542 = vset.pattern.permute.xlu1 %v10087_v17 }
   0xf   :  { %330 = vperm.xlu1 %9542, %v37_v20  }
  0x11   :  { %8704 = vmatpush3.bf16.msra.mxu0 %v9568_v9 }
  0x12   :  { %8705 = vmatprep.subr.bf16.mxu0 %v12972_v0 }
  0x13   :  { %9543 = vset.pattern.permute.xlu1 %v10089_v26 }
  0x14   :  { %342 = vperm.xlu1 %9543, %v36_v16  }
  0x15   :  { %8706 = vmatpush3.bf16.msra.mxu0 %v9569_v10 }
  0x16   :  { %8707 = vmatprep.subr.bf16.mxu0 %v12972_v0 }
  0x18   :  { %9555 = vset.pattern.permute.xlu1 %v10087_v17 }
  0x19   :  { %8708 = vmatpush3.bf16.msra.mxu0 %v9570_v11 }
  0x1a   :  { %8709 = vmatprep.subr.bf16.mxu0 %v12972_v0 }
  0x1d   :  { %8710 = vmatpush3.bf16.msra.mxu0 %v9571_v12 }
  0x1e   :  { %8751 = vmatprep.subr.bf16.mxu0 %v12972_v0 }
  0x78   :  { %v9532_v27 = vpop.permute.xlu0 %9531 }
  0x79   :  { %v9534_v28 = vunpack.i.h.bf16 %v9532_v27  ;;  %v9533_v29 = vunpack.i.l.bf16 %v9532_v27 }
  0x81   :  { %v310_v38 = vpop.permute.xlu1 %309 }
  0x82   :  { %v321_v54 = vmul.f32 %v320_v47, %v310_v38 }
  0x85   :  { %v315_v41 = vpop.permute.xlu1 %314 }
  0x86   :  { %v322_v62 = vmul.f32 %v320_v47, %v315_v41 }
  0x8a   :  { %v10209_v45 = vpop.permute.xlu1 %330 }
  0x8b   :  { %v338_v5 = vmul.f32 %v336_v48, %v10209_v45 }
  0x8f   :  { %v343_v53 = vpop.permute.xlu1 %342 }
  0x90   :  { %v353_v59 = vmul.f32 %v352_v51, %v343_v53 }
  0xc7   :  { %v178_v13 = vpop.f32.mrf.mxu1  ;;  %v129_v14 = vpop.f32.mrf.mxu0 }
  0xc8   :  { %v202_v33 = vsel %vm201_vm2, %v129_v14, %v9533_v29 }
  0xc9   :  { %v8697_v18 = vpop.f32.mrf.mxu1  ;;  %v8691_v19 = vpop.f32.mrf.mxu0 }
  0xcb   :  { %v181_v21 = vpop.f32.mrf.mxu1  ;;  %v132_v22 = vpop.f32.mrf.mxu0 }
  0xcc   :  { %v9535_v23 = vpack.i.bf16 %v181_v21, %v178_v13  ;;  %v203_v34 = vsel %vm201_vm2, %v132_v22, %v9534_v28 }
  0xcd   :  { %v8698_v24 = vpop.f32.mrf.mxu1  ;;  %v8692_v25 = vpop.f32.mrf.mxu0 }
  0xce   :  { %9536 = vrot.lane.b32.xlu0 %v9535_v23, %s10088_s25 }
  0xd2   :  { %326 = vperm.xlu0 %9541, %v36_v16  }
  0xd6   :  { %9544 = vset.pattern.permute.xlu0 %v10089_v26 }
  0xd7   :  { %346 = vperm.xlu0 %9544, %v37_v20  }
  0xdb   :  { %9556 = vset.pattern.permute.xlu0 %v10086_v15 }
 0x140   :  { %v9537_v30 = vpop.permute.xlu0 %9536 }
 0x141   :  { %v9539_v31 = vunpack.i.h.bf16 %v9537_v30  ;;  %v9538_v32 = vunpack.i.l.bf16 %v9537_v30 }
 0x143   :  { %v205_v35 = vsel %vm204_vm3, %v202_v33, %v9538_v32  ;;  %v206_v36 = vsel %vm204_vm3, %v203_v34, %v9539_v31 }
 0x144   :  { %v220_v37 = vpack.c.bf16 %v206_v36, %v205_v35 }
 0x146   :  { %8712 = vmatmul.mubr.msk.bf16.vlgmr.msra.gmra.mxu0 %vm262_vm4, %v220_v37 }
 0x147   :  { %8755 = vmatprep.mubr.msk.bf16.mxu0 %vm10084_vm0, %v12972_v0 }
 0x14d   :  { %v10216_v50 = vpop.permute.xlu0 %326 }
 0x14e   :  { %v337_v56 = vmul.f32 %v336_v48, %v10216_v50 }
 0x152   :  { %v347_v61 = vpop.permute.xlu0 %346 }
 0x153   :  { %v354_v6 = vmul.f32 %v352_v51, %v347_v61 }
 0x206   :  { %v300_v52 = vpop.f32.mrf.mxu0 }
 0x207   :  { %v301_v55 = vadd.f32 %v8016_v49, %v300_v52 }
 0x208   :  { %v8713_v57 = vpop.f32.mrf.mxu0 }
 0x209   :  { %v323_v58 = vadd.f32 %v321_v54, %v301_v55 }
 0x20a   :  { %v303_v60 = vpop.f32.mrf.mxu0 }
 0x20b   :  { %v339_v63 = vadd.f32 %v337_v56, %v323_v58  ;;  %v304_v1 = vadd.f32 %v8016_v49, %v303_v60 }
 0x20c   :  { %v8714_v2 = vpop.f32.mrf.mxu0 }
 0x20d   :  { %v355_v3 = vadd.f32 %v353_v59, %v339_v63  ;;  %v324_v4 = vadd.f32 %v322_v62, %v304_v1 }
 0x20f   :  { %v359_v7 = vmin.f32 %v355_v3, 0.0  ;;  %v340_v8 = vadd.f32 %v338_v5, %v324_v4  ;;  %vm357_vm5 = vcmp.gt.f32.partialorder %v355_v3, 0.0 }
 0x211   :  { %v361_v9 = vmul.f32 1.442695, %v359_v7  ;;  %v356_v10 = vadd.f32 %v354_v6, %v340_v8  ;;  %v9572_v6 = vld [vmem:[%s12965_s5 + $0xf0] sm:$0xff]   ;;  %v9573_v7 = vld [vmem:[%s12965_s5 + $0xf8] sm:$0xff]  }
 0x212   :  { %v9574_v8 = vld [vmem:[%s12966_s4 + $0x58] sm:$0xff]  }
 0x213   :  { %9674 = vpow2.f32 %v361_v9  ;;  %v360_v11 = vmin.f32 %v356_v10, 0.0  ;;  %vm358_vm6 = vcmp.gt.f32.partialorder %v356_v10, 0.0  ;;  %v9575_v9 = vld [vmem:[%s12966_s4 + $0x50] sm:$0xff]  }
 0x215   :  { %v363_v12 = vmul.f32 1.442695, %v360_v11  ;;  %v9577_v11 = vld [vmem:[%s12966_s4 + $0x40] sm:$0xff]  }
 0x217   :  { %9676 = vpow2.f32 %v363_v12  ;;  %v9578_v12 = vld [vmem:[%s12966_s4 + $0x38] sm:$0xff]  }
 0x220   :  { %v9675_v13 = vpop.eup %9674 }
 0x221   :  { %v8024_v14 = vadd.f32 -1.0, %v9675_v13 }
 0x223   :  { %v10220_v16 = vsel %vm357_vm5, %v355_v3, %v8024_v14 }
 0x224   :  { %v9677_v18 = vpop.eup %9676  ;;  %v369_v19 = vsel %vm201_vm2, %v10220_v16, 0.0 }
 0x225   :  { %v370_v20 = vrot.slane %v369_v19, 4  ;;  %v8025_v21 = vadd.f32 -1.0, %v9677_v18  ;;  %v9579_v18 = vld [vmem:[%s12966_s4 + $0x30] sm:$0xff]  }
 0x227   :  { %v371_v22 = vadd.f32 %v370_v20, %v369_v19  ;;  %v10224_v23 = vsel %vm358_vm6, %v356_v10, %v8025_v21  ;;  %v9576_v10 = vld [vmem:[%s12966_s4 + $0x48] sm:$0xff]  }
 0x228   :  { %v376_v24 = vsel %vm201_vm2, %v10224_v23, 0.0 }
 0x229   :  { %v372_v25 = vrot.slane %v371_v22, 2  ;;  %v377_v26 = vrot.slane %v376_v24, 4 }
 0x22b   :  { %v378_v27 = vadd.f32 %v377_v26, %v376_v24  ;;  %v373_v28 = vadd.f32 %v372_v25, %v371_v22  ;;  %v10274_v22 = vld [vmem:[%s12968_s1] sm:$0xff]  ;;  %v10282_v25 = vld [vmem:[%s12968_s1 + $0x10] sm:$0xff] }
 0x22c   :  { %v709_v24 = vld [vmem:[%s12969_s2] sm:$0xff] }
 0x22d   :  { %v379_v29 = vrot.slane %v378_v27, 2  ;;  %v374_v30 = vrot.slane %v373_v28, 1  ;;  %v10285_v26 = vadd.f32 %v709_v24, %v10274_v22 }
 0x22f   :  { %v375_v31 = vadd.f32 %v374_v30, %v373_v28  ;;  %v380_v32 = vadd.f32 %v379_v29, %v378_v27  ;;  %v711_v27 = vld [vmem:[%s12969_s2 + $0x10] sm:$0xff]  ;;  %v10293_v28 = vld [vmem:[%s12968_s1 + $0x8] sm:$0xff] }
 0x230   :  { %v10296_v30 = vadd.f32 %v711_v27, %v10282_v25 }
 0x231   :  { %v381_v33 = vrot.slane %v380_v32, 1  ;;  %v384_v34 = vmul.f32 0.125, %v375_v31  ;;  %v2202_v31 = vpack.c.bf16 %v10293_v28, %v10274_v22 }
 0x233   :  { %v382_v35 = vadd.f32 %v381_v33, %v380_v32  ;;  %v386_v36 = vsub.f32 %v10220_v16, %v384_v34  ;;  %v10303_v32 = vld [vmem:[%s12968_s1 + $0x18] sm:$0xff]  ;;  %v829_v34 = vsel %vm201_vm2, %v10285_v26, 0.0 }
 0x234   :  { %v712_v33 = vld [vmem:[%s12969_s2 + $0x18] sm:$0xff]  ;;  %830 = vadd.xlane.f32.xlu0 %v829_v34 }
 0x235   :  { %v385_v37 = vmul.f32 0.125, %v382_v35  ;;  %v388_v38 = vmul.f32 %v386_v36, %v386_v36  ;;  %v2203_v35 = vpack.c.bf16 %v10303_v32, %v10282_v25 }
 0x237   :  { %v387_v39 = vsub.f32 %v10224_v23, %v385_v37  ;;  %v390_v40 = vsel %vm201_vm2, %v388_v38, 0.0  ;;  %v10315_v37 = vld [vmem:[%s12968_s1 + $0x20] sm:$0xff]  ;;  %v10320_v38 = vld [vmem:[%s12968_s1 + $0x28] sm:$0xff] }
 0x238   :  { %v391_v41 = vrot.slane %v390_v40, 4 }
 0x239   :  { %v389_v44 = vmul.f32 %v387_v39, %v387_v39 }
 0x23a   :  { %v392_v46 = vadd.f32 %v391_v41, %v390_v40  ;;  %v835_v40 = vsel %vm201_vm2, %v10296_v30, 0.0  ;;  %v10325_v41 = vadd.f32 %v712_v33, %v10303_v32  ;;  %v734_v32 = vld [vmem:[%s12967_s6 + $0x71] sm:$0x3] }
 0x23b   :  { %v397_v47 = vsel %vm201_vm2, %v389_v44, 0.0  ;;  %v2204_v44 = vpack.c.bf16 %v10320_v38, %v10315_v37  ;;  %836 = vadd.xlane.f32.xlu0 %v835_v40 }
 0x23c   :  { %v393_v48 = vrot.slane %v392_v46, 2  ;;  %v398_v49 = vrot.slane %v397_v47, 4 }
 0x23e   :  { %v394_v51 = vadd.f32 %v393_v48, %v392_v46  ;;  %v399_v52 = vadd.f32 %v398_v49, %v397_v47  ;;  %v714_v47 = vld [vmem:[%s12969_s2 + $0x28] sm:$0xff]  ;;  %v838_v48 = vsel %vm201_vm2, %v10325_v41, 0.0 }
 0x23f   :  { %v10336_v49 = vadd.f32 %v714_v47, %v10320_v38  ;;  %839 = vadd.xlane.f32.xlu0 %v838_v48  ;;  %v812_v38 = vrot.slane %v734_v32, %v10204_v43 }
 0x240   :  { %v395_v53 = vrot.slane %v394_v51, 1  ;;  %v400_v54 = vrot.slane %v399_v52, 2 }
 0x242   :  { %v396_v55 = vadd.f32 %v395_v53, %v394_v51  ;;  %v401_v56 = vadd.f32 %v400_v54, %v399_v52  ;;  %v844_v51 = vsel %vm201_vm2, %v10336_v49, 0.0  ;;  %v710_v52 = vld [vmem:[%s12969_s2 + $0x8] sm:$0xff]  ;;  %v713_v54 = vld [vmem:[%s12969_s2 + $0x20] sm:$0xff] }
 0x243   :  { %845 = vadd.xlane.f32.xlu0 %v844_v51  ;;  %v10344_v53 = vadd.f32 %v710_v52, %v10293_v28 }
 0x244   :  { %v402_v57 = vrot.slane %v401_v56, 1  ;;  %v404_v58 = vmul.f32 0.125, %v396_v55 }
 0x245   :  { %v832_v55 = vsel %vm201_vm2, %v10344_v53, 0.0 }
 0x246   :  { %v403_v59 = vadd.f32 %v402_v57, %v401_v56  ;;  %v406_v60 = vadd.f32 1e-05, %v404_v58  ;;  %v10352_v56 = vadd.f32 %v713_v54, %v10315_v37  ;;  %v35_v57 = vld [vmem:[%s12968_s1 + $0x30] sm:$0xff]  ;;  %v773_v37 = vrot.slane %v734_v32, %v10202_v42 }
 0x247   :  { %v715_v58 = vld [vmem:[%s12969_s2 + $0x30] sm:$0xff] }
 0x248   :  { %v405_v61 = vmul.f32 0.125, %v403_v59  ;;  %9678 = vrsqrt.f32 %v406_v60  ;;  %v841_v59 = vsel %vm201_vm2, %v10352_v56, 0.0  ;;  %v10362_v60 = vadd.f32 %v715_v58, %v35_v57 }
 0x24a   :  { %v407_v62 = vadd.f32 1e-05, %v405_v61  ;;  %v847_v61 = vsel %vm201_vm2, %v10362_v60, 0.0 }
 0x24c   :  { %9680 = vrsqrt.f32 %v407_v62 }
 0x255   :  { %v9679_v63 = vpop.eup %9678 }
 0x256   :  { %v410_v2 = vmul.f32 %v9679_v63, %v386_v36 }
 0x259   :  { %v9681_v1 = vpop.eup %9680 }
 0x25a   :  { %v411_v3 = vmul.f32 %v9681_v1, %v387_v39 }
 0x25c   :  { %v9545_v4 = vpack.i.bf16 %v411_v3, %v410_v2  ;;  %v412_v5 = vpack.c.bf16 %v411_v3, %v410_v2 }
 0x25e   :  { %9546 = vrot.lane.b32.xlu1 %v9545_v4, %s10085_s0  ;;  %8716 = vmatpush3.bf16.msra.mxu1 %v412_v5 }
 0x25f   :  { %8721 = vmatprep.subr.bf16.mxu1 %v12972_v0 }
 0x261   :  { %8718 = vmatmul.mubr.msk.bf16.vlgmr.msra.gmra.mxu1 %vm91_vm1, %v9572_v6 }
 0x262   :  { %8722 = vmatpush3.bf16.msra.mxu1 %v412_v5  ;;  %8723 = vmatprep.mubr.msk.bf16.mxu1 %vm10084_vm0, %v12972_v0 }
 0x263   :  { %8727 = vmatprep.subr.bf16.mxu1 %v12972_v0 }
 0x269   :  { %8724 = vmatmul.mubr.msk.bf16.vlgmr.msra.gmra.mxu1 %vm91_vm1, %v9573_v7 }
 0x26a   :  { %8739 = vmatprep.mubr.msk.bf16.mxu1 %vm10084_vm0, %v12972_v0  ;;  %8728 = vmatpush3.bf16.msra.mxu1 %v9574_v8 }
 0x26b   :  { %8729 = vmatprep.subr.bf16.mxu1 %v12972_v0 }
 0x26e   :  { %8730 = vmatpush3.bf16.msra.mxu1 %v9575_v9 }
 0x26f   :  { %8731 = vmatprep.subr.bf16.mxu1 %v12972_v0 }
 0x272   :  { %8732 = vmatpush3.bf16.msra.mxu1 %v9576_v10  ;;  %v9580_v10 = vld [vmem:[%s12966_s4 + $0x68] sm:$0xff]  }
 0x273   :  { %8733 = vmatprep.subr.bf16.mxu1 %v12972_v0 }
 0x276   :  { %8734 = vmatpush3.bf16.msra.mxu1 %v9577_v11  ;;  %v9581_v11 = vld [vmem:[%s12966_s4 + $0x60] sm:$0xff]  }
 0x277   :  { %8735 = vmatprep.subr.bf16.mxu1 %v12972_v0 }
 0x27a   :  { %8736 = vmatpush3.bf16.msra.mxu1 %v9578_v12 }
 0x27b   :  { %8737 = vmatprep.subr.bf16.mxu1 %v12972_v0 }
 0x27e   :  { %8738 = vmatpush3.bf16.msra.mxu1 %v9579_v18 }
 0x27f   :  { %8743 = vmatprep.subr.bf16.mxu1 %v12972_v0 }
 0x2bd   :  { %v831_v12 = vpop.xlane.xlu0 %830 }
 0x2d0   :  { %v9547_v62 = vpop.permute.xlu1 %9546 }
 0x2d1   :  { %v9549_v63 = vunpack.i.h.bf16 %v9547_v62  ;;  %v9548_v1 = vunpack.i.l.bf16 %v9547_v62 }
 0x321   :  { %v455_v13 = vpop.f32.mrf.mxu1 }
 0x322   :  { %v527_v5 = vsel %vm201_vm2, %v455_v13, %v9548_v1 }
 0x323   :  { %v8719_v14 = vpop.f32.mrf.mxu1 }
 0x324   :  { %v851_v14 = vmul.f32 0.03125, %v831_v12 }
 0x325   :  { %v458_v19 = vpop.f32.mrf.mxu1 }
 0x326   :  { %v528_v6 = vsel %vm201_vm2, %v458_v19, %v9549_v63  ;;  %v10382_v19 = vsub.f32 %v10285_v26, %v851_v14 }
 0x327   :  { %v8720_v20 = vpop.f32.mrf.mxu1 }
 0x329   :  { %v504_v21 = vpop.f32.mrf.mxu1 }
 0x32b   :  { %v8725_v29 = vpop.f32.mrf.mxu1 }
 0x32c   :  { %v865_v29 = vmul.f32 %v10382_v19, %v10382_v19 }
 0x32d   :  { %v507_v36 = vpop.f32.mrf.mxu1 }
 0x32e   :  { %v9550_v39 = vpack.i.bf16 %v507_v36, %v504_v21  ;;  %v837_v21 = vpop.xlane.xlu0 %836 }
 0x32f   :  { %v8726_v46 = vpop.f32.mrf.mxu1  ;;  %v853_v27 = vmul.f32 0.03125, %v837_v21 }
 0x330   :  { %9551 = vrot.lane.b32.xlu1 %v9550_v39, %s10088_s25  ;;  %v872_v39 = vsel %vm201_vm2, %v865_v29, 0.0 }
 0x331   :  { %v10392_v36 = vsub.f32 %v10296_v30, %v853_v27  ;;  %873 = vadd.xlane.f32.xlu0 %v872_v39 }
 0x332   :  { %v840_v47 = vpop.xlane.xlu0 %839 }
 0x333   :  { %v854_v51 = vmul.f32 0.03125, %v840_v47  ;;  %v867_v52 = vmul.f32 %v10392_v36, %v10392_v36 }
 0x335   :  { %v10404_v57 = vsub.f32 %v10325_v41, %v854_v51  ;;  %v878_v58 = vsel %vm201_vm2, %v867_v52, 0.0  ;;  %v9583_v52 = vld [vmem:[%s12965_s5] sm:$0xff]  }
 0x336   :  { %879 = vadd.xlane.f32.xlu0 %v878_v58 }
 0x337   :  { %v868_v62 = vmul.f32 %v10404_v57, %v10404_v57 }
 0x354   :  { %833 = vadd.xlane.f32.xlu1 %v832_v55 }
 0x358   :  { %842 = vadd.xlane.f32.xlu1 %v841_v59 }
 0x35c   :  { %848 = vadd.xlane.f32.xlu1 %v847_v61  ;;  %v846_v61 = vpop.xlane.xlu0 %845 }
 0x35d   :  { %v856_v63 = vmul.f32 0.03125, %v846_v61 }
 0x3a2   :  { %v9552_v2 = vpop.permute.xlu1 %9551 }
 0x3a3   :  { %v9554_v3 = vunpack.i.h.bf16 %v9552_v2  ;;  %v9553_v4 = vunpack.i.l.bf16 %v9552_v2 }
 0x3a5   :  { %v530_v7 = vsel %vm204_vm3, %v528_v6, %v9554_v3  ;;  %v529_v8 = vsel %vm204_vm3, %v527_v5, %v9553_v4  ;;  %v881_v3 = vsel %vm201_vm2, %v868_v62, 0.0  ;;  %v10417_v4 = vsub.f32 %v10336_v49, %v856_v63 }
 0x3a6   :  { %v543_v9 = vpack.c.bf16 %v530_v7, %v529_v8  ;;  %v8030_v8 = vld [vmem:[%s12967_s6 + $0x4c] ss:$0 sm:$0xff]  ;;  %vm7969_vm3 = vcmask 48128  }
 0x3a7   :  { %v870_v5 = vmul.f32 %v10417_v4, %v10417_v4 }
 0x3a8   :  { %8740 = vmatmul.mubr.msk.bf16.vlgmr.msra.gmra.mxu1 %vm262_vm4, %v543_v9 }
 0x3a9   :  { %8747 = vmatprep.mubr.msk.bf16.mxu1 %vm10084_vm0, %v12972_v0  ;;  %8744 = vmatpush3.bf16.msra.mxu1 %v9580_v10  ;;  %v887_v7 = vsel %vm201_vm2, %v870_v5, 0.0 }
 0x3aa   :  { %8745 = vmatprep.subr.bf16.mxu1 %v12972_v0 }
 0x3ad   :  { %8746 = vmatpush3.bf16.msra.mxu1 %v9581_v11 }
 0x3ae   :  { %8771 = vmatprep.subr.bf16.mxu1 %v12972_v0 }
 0x3ba   :  { %v874_v58 = vpop.xlane.xlu0 %873 }
 0x3bb   :  { %v893_v61 = vmul.f32 0.03125, %v874_v58 }
 0x3dd   :  { %v834_v13 = vpop.xlane.xlu1 %833 }
 0x3de   :  { %v852_v18 = vmul.f32 0.03125, %v834_v13 }
 0x3e0   :  { %v10385_v20 = vsub.f32 %v10344_v53, %v852_v18 }
 0x3e1   :  { %v843_v24 = vpop.xlane.xlu1 %842 }
 0x3e2   :  { %v866_v33 = vmul.f32 %v10385_v20, %v10385_v20  ;;  %v855_v34 = vmul.f32 0.03125, %v843_v24 }
 0x3e4   :  { %v875_v40 = vsel %vm201_vm2, %v866_v33, 0.0  ;;  %v10397_v46 = vsub.f32 %v10352_v56, %v855_v34 }
 0x3e5   :  { %876 = vadd.xlane.f32.xlu1 %v875_v40  ;;  %v849_v48 = vpop.xlane.xlu1 %848 }
 0x3e6   :  { %v857_v54 = vmul.f32 0.03125, %v849_v48  ;;  %v869_v55 = vmul.f32 %v10397_v46, %v10397_v46 }
 0x3e8   :  { %v10408_v59 = vsub.f32 %v10362_v60, %v857_v54  ;;  %v884_v1 = vsel %vm201_vm2, %v869_v55, 0.0  ;;  %v10441_v54 = vld [vmem:[%s12966_s4 + $0x98] sm:$0xff]  }
 0x3e9   :  { %882 = vadd.xlane.f32.xlu1 %v881_v3  ;;  %885 = vadd.xlane.f32.xlu0 %v884_v1  ;;  %v880_v1 = vpop.xlane.xlu0 %879 }
 0x3ea   :  { %v871_v2 = vmul.f32 %v10408_v59, %v10408_v59  ;;  %v895_v5 = vmul.f32 0.03125, %v880_v1 }
 0x3ec   :  { %v890_v6 = vsel %vm201_vm2, %v871_v2, 0.0  ;;  %v900_v2 = vadd.f32 1e-05, %v893_v61 }
 0x3ed   :  { %888 = vadd.xlane.f32.xlu1 %v887_v7  ;;  %891 = vadd.xlane.f32.xlu0 %v890_v6 }
 0x468   :  { %v622_v9 = vpop.f32.mrf.mxu1 }
 0x469   :  { %v623_v10 = vadd.f32 %v8030_v8, %v622_v9 }
 0x46a   :  { %v8741_v11 = vpop.f32.mrf.mxu1 }
 0x46b   :  { %v629_v12 = vadd.f32 %v623_v10, %v10220_v16  ;;  %v902_v11 = vadd.f32 1e-05, %v895_v5 }
 0x46c   :  { %v625_v13 = vpop.f32.mrf.mxu1 }
 0x46d   :  { %v633_v14 = vmin.f32 %v629_v12, 0.0  ;;  %v626_v18 = vadd.f32 %v8030_v8, %v625_v13  ;;  %vm631_vm7 = vcmp.gt.f32.partialorder %v629_v12, 0.0 }
 0x46e   :  { %v8742_v21 = vpop.f32.mrf.mxu1  ;;  %v877_v55 = vpop.xlane.xlu1 %876 }
 0x46f   :  { %v635_v24 = vmul.f32 1.442695, %v633_v14  ;;  %v630_v27 = vadd.f32 %v626_v18, %v10224_v23  ;;  %v9582_v23 = vld [vmem:[%s12965_s5 + $0x8] sm:$0xff]   ;;  %v894_v62 = vmul.f32 0.03125, %v877_v55 }
 0x470   :  { %8752 = vmatpush3.bf16.msra.mxu0 %v9582_v23 }
 0x471   :  { %9682 = vpow2.f32 %v635_v24  ;;  %v634_v29 = vmin.f32 %v630_v27, 0.0  ;;  %vm632_vm8 = vcmp.gt.f32.partialorder %v630_v27, 0.0  ;;  %8753 = vmatprep.subr.bf16.mxu0 %v12972_v0  ;;  %v901_v3 = vadd.f32 1e-05, %v894_v62 }
 0x472   :  { %v883_v63 = vpop.xlane.xlu1 %882  ;;  %v886_v8 = vpop.xlane.xlu0 %885 }
 0x473   :  { %v637_v33 = vmul.f32 1.442695, %v634_v29  ;;  %v896_v7 = vmul.f32 0.03125, %v883_v63  ;;  %v897_v9 = vmul.f32 0.03125, %v886_v8 }
 0x474   :  { %8754 = vmatpush3.bf16.msra.mxu0 %v9583_v52  ;;  %v8046_v52 = vld [vmem:[%s12967_s6 + $0x55] ss:$0 sm:$0xff] }
 0x475   :  { %9684 = vpow2.f32 %v637_v33  ;;  %8759 = vmatprep.subr.bf16.mxu0 %v10441_v54  ;;  %v904_v13 = vadd.f32 1e-05, %v897_v9 }
 0x476   :  { %v889_v6 = vpop.xlane.xlu1 %888  ;;  %9686 = vrsqrt.f32 %v900_v2  ;;  %v892_v18 = vpop.xlane.xlu0 %891 }
 0x477   :  { %9688 = vrsqrt.f32 %v901_v3  ;;  %v898_v10 = vmul.f32 0.03125, %v889_v6  ;;  %v899_v21 = vmul.f32 0.03125, %v892_v18 }
 0x478   :  { %9690 = vrsqrt.f32 %v902_v11 }
 0x479   :  { %v905_v14 = vadd.f32 1e-05, %v898_v10  ;;  %v906_v24 = vadd.f32 1e-05, %v899_v21 }
 0x47e   :  { %v9683_v34 = vpop.eup %9682 }
 0x47f   :  { %v8038_v39 = vadd.f32 -1.0, %v9683_v34 }
 0x481   :  { %v641_v48 = vsel %vm631_vm7, %v629_v12, %v8038_v39  ;;  %v903_v12 = vadd.f32 1e-05, %v896_v7  ;;  %v8045_v39 = vld [vmem:[%s12967_s6 + $0x54] ss:$0 sm:$0xff] }
 0x482   :  { %v9685_v40 = vpop.eup %9684 }
 0x483   :  { %v8039_v47 = vadd.f32 -1.0, %v9685_v40  ;;  %9692 = vrsqrt.f32 %v903_v12 }
 0x484   :  { %9694 = vrsqrt.f32 %v904_v13 }
 0x485   :  { %v642_v51 = vsel %vm632_vm8, %v630_v27, %v8039_v47  ;;  %9696 = vrsqrt.f32 %v905_v14  ;;  %v9687_v27 = vpop.eup %9686 }
 0x486   :  { %v647_v16 = vpack.c.bf16 %v642_v51, %v641_v48  ;;  %v9689_v29 = vpop.eup %9688  ;;  %9698 = vrsqrt.f32 %v906_v24  ;;  %v914_v33 = vmul.f32 %v9687_v27, %v10382_v19 }
 0x487   :  { %v915_v34 = vmul.f32 %v9689_v29, %v10385_v20  ;;  %v9691_v40 = vpop.eup %9690  ;;  %v8040_v20 = vld [vmem:[%s12967_s6 + $0x4d] ss:$0 sm:$0xff] }
 0x488   :  { %8748 = vmatmul.mubr.msk.bf16.vlgmr.msra.gmra.mxu1 %vm201_vm2, %v647_v16  ;;  %v925_v51 = vmul.f32 %v8045_v39, %v914_v33  ;;  %v916_v58 = vmul.f32 %v9691_v40, %v10392_v36  ;;  %v8044_v40 = vld [vmem:[%s12967_s6 + $0x50] ss:$0 sm:$0xff] }
 0x489   :  { %8773 = vmatprep.mubr.msk.bf16.mxu1 %vm10084_vm0, %v12972_v0  ;;  %v926_v16 = vmul.f32 %v8045_v39, %v915_v34 }
 0x48a   :  { %v936_v62 = vadd.f32 %v8046_v52, %v925_v51  ;;  %v927_v7 = vmul.f32 %v8045_v39, %v916_v58 }
 0x48b   :  { %v937_v63 = vadd.f32 %v8046_v52, %v926_v16  ;;  %v732_v16 = vmul.f32 %v8044_v40, %v10216_v50 }
 0x48d   :  { %v1015_v9 = vpack.c.bf16 %v937_v63, %v936_v62  ;;  %v9586_v62 = vld [vmem:[%s12965_s5 + $0x60] sm:$0xff]  }
 0x490   :  { %v9693_v47 = vpop.eup %9692 }
 0x491   :  { %v9695_v48 = vpop.eup %9694  ;;  %v917_v19 = vmul.f32 %v9693_v47, %v10404_v57 }
 0x492   :  { %v9697_v23 = vpop.eup %9696  ;;  %v918_v1 = vmul.f32 %v9695_v48, %v10397_v46  ;;  %v9585_v46 = vld [vmem:[%s12966_s4 + $0x90] sm:$0xff]  }
 0x493   :  { %v919_v2 = vmul.f32 %v9697_v23, %v10417_v4  ;;  %v928_v36 = vmul.f32 %v8045_v39, %v917_v19  ;;  %v9699_v8 = vpop.eup %9698  ;;  %v938_v4 = vadd.f32 %v8046_v52, %v927_v7  ;;  %v733_v23 = vmul.f32 %v8044_v40, %v10209_v45  ;;  %v9587_v7 = vld [vmem:[%s12965_s5 + $0x68] sm:$0xff]  }
 0x494   :  { %v929_v10 = vmul.f32 %v8045_v39, %v918_v1  ;;  %v920_v14 = vmul.f32 %v9699_v8, %v10408_v59  ;;  %v9593_v59 = vld [vmem:[%s12965_s5 + $0xd8] sm:$0xff]  }
 0x495   :  { %v930_v11 = vmul.f32 %v8045_v39, %v919_v2  ;;  %v939_v13 = vadd.f32 %v8046_v52, %v928_v36 }
 0x496   :  { %v940_v18 = vadd.f32 %v8046_v52, %v929_v10  ;;  %v931_v27 = vmul.f32 %v8045_v39, %v920_v14  ;;  %v9590_v10 = vld [vmem:[%s12965_s5 + $0x80] sm:$0xff]  }
 0x497   :  { %v941_v21 = vadd.f32 %v8046_v52, %v930_v11  ;;  %v1016_v24 = vpack.c.bf16 %v939_v13, %v938_v4  ;;  %v9591_v11 = vld [vmem:[%s12965_s5 + $0x88] sm:$0xff]   ;;  %v8051_v4 = vld [vmem:[%s12967_s6 + $0x52] ss:$0 sm:$0xff] }
 0x498   :  { %v942_v33 = vadd.f32 %v8046_v52, %v931_v27 }
 0x499   :  { %v1017_v29 = vpack.c.bf16 %v941_v21, %v940_v18 }
 0x49a   :  { %v1018_v34 = vpack.c.bf16 %v942_v33, %v942_v33 }
 0x548   :  { %v702_v55 = vpop.f32.mrf.mxu1 }
 0x549   :  { %v10459_v5 = vadd.f32 %v8040_v20, %v702_v55 }
 0x54a   :  { %v8749_v61 = vpop.f32.mrf.mxu1 }
 0x54c   :  { %v705_v3 = vpop.f32.mrf.mxu1 }
 0x54d   :  { %v10461_v6 = vadd.f32 %v8040_v20, %v705_v3 }
 0x54e   :  { %v8750_v57 = vpop.f32.mrf.mxu1 }
 0x54f   :  { %v947_v12 = vpack.c.bf16 %v10461_v6, %v10459_v5  ;;  %v9588_v57 = vld [vmem:[%s12965_s5 + $0x70] sm:$0xff]  }
 0x551   :  { %8756 = vmatmul.mubr.msk.bf16.vlgmr.msra.gmra.mxu0 %vm201_vm2, %v947_v12  ;;  %v9592_v12 = vld [vmem:[%s12965_s5 + $0x90] sm:$0xff]  }
 0x552   :  { %8760 = vmatpush3.bf16.msra.mxu0 %v10441_v54  ;;  %8763 = vmatprep.mubr.msk.bf16.mxu0 %vm201_vm2, %v1015_v9  ;;  %v8047_v54 = vld [vmem:[%s12967_s6 + $0x51] ss:$0 sm:$0xff]  ;;  %v9589_v9 = vld [vmem:[%s12965_s5 + $0x78] sm:$0xff]  }
 0x553   :  { %8761 = vmatprep.subr.bf16.mxu0 %v9585_v46 }
 0x556   :  { %8762 = vmatpush3.bf16.msra.mxu0 %v9585_v46  ;;  %v9594_v46 = vld [vmem:[%s12965_s5 + $0xd0] sm:$0xff]  }
 0x557   :  { %8801 = vmatprep.subr.bf16.mxu0 %v12972_v0 }
 0x559   :  { %8764 = vmatmul.mubr.msk.bf16.vlgmr.msra.gmra.mxu0 %vm201_vm2, %v1016_v24 }
 0x55a   :  { %8767 = vmatprep.mubr.msk.bf16.mxu0 %vm201_vm2, %v1017_v29  ;;  %8802 = vmatpush3.bf16.msra.mxu0 %v9593_v59 }
 0x55b   :  { %8803 = vmatprep.subr.bf16.mxu0 %v12972_v0 }
 0x55e   :  { %8804 = vmatpush3.bf16.msra.mxu0 %v9594_v46 }
 0x561   :  { %8768 = vmatmul.mubr.msk.bf16.gmra.mxu0 %vm201_vm2, %v1018_v34 }
 0x562   :  { %8805 = vmatprep.mubr.msk.bf16.mxu0 %vm10084_vm0, %v12972_v0 }
 0x611   :  { %v1002_v39 = vpop.f32.mrf.mxu0 }
 0x612   :  { %v1003_v48 = vadd.f32 %v8047_v54, %v1002_v39 }
 0x613   :  { %v8757_v47 = vpop.f32.mrf.mxu0 }
 0x614   :  { %v1009_v58 = vadd.f32 %v1003_v48, %v732_v16 }
 0x615   :  { %v1005_v51 = vpop.f32.mrf.mxu0 }
 0x616   :  { %v1006_v52 = vadd.f32 %v8047_v54, %v1005_v51 }
 0x617   :  { %v8758_v55 = vpop.f32.mrf.mxu0 }
 0x618   :  { %v1010_v19 = vadd.f32 %v1006_v52, %v733_v23 }
 0x619   :  { %v8765_v20 = vpop.f32.mrf.mxu0 }
 0x61a   :  { %v1112_v61 = vpack.c.bf16 %v1010_v19, %v1009_v58  ;;  %v1091_v39 = vadd.f32 %v8765_v20, %v8051_v4 }
 0x61b   :  { %v1082_v63 = vpop.f32.mrf.mxu0 }
 0x61c   :  { %8772 = vmatpush3.bf16.msra.mxu1 %v1112_v61  ;;  %v1083_v18 = vadd.f32 %v8051_v4, %v1082_v63 }
 0x61d   :  { %v8766_v1 = vpop.f32.mrf.mxu0 }
 0x61e   :  { %v1094_v40 = vadd.f32 %v8766_v1, %v8051_v4 }
 0x61f   :  { %8774 = vmatmul.mubr.msk.bf16.vlgmr.msra.gmra.mxu1 %vm91_vm1, %v9586_v62  ;;  %v1085_v2 = vpop.f32.mrf.mxu0 }
 0x620   :  { %8777 = vmatprep.mubr.msk.bf16.mxu1 %vm10084_vm0, %v12972_v0  ;;  %v1086_v21 = vadd.f32 %v8051_v4, %v1085_v2 }
 0x621   :  { %v10496_v3 = vpop.f32.mrf.mxu0 }
 0x623   :  { %v1098_v36 = vpop.f32.mrf.mxu0 }
 0x624   :  { %v1099_v19 = vadd.f32 %v8051_v4, %v1098_v36 }
 0x625   :  { %v8770_v8 = vpop.f32.mrf.mxu0 }
 0x627   :  { %8778 = vmatmul.mubr.msk.bf16.gmra.mxu1 %vm91_vm1, %v9587_v7  ;;  %v1101_v52 = vpop.f32.mrf.mxu0 }
 0x628   :  { %8781 = vmatprep.mubr.msk.bf16.mxu1 %vm10084_vm0, %v12972_v0  ;;  %v1102_v20 = vadd.f32 %v8051_v4, %v1101_v52  ;;  %v9595_v52 = vld [vmem:[%s12966_s4 + $0xa8] sm:$0xff]  }
 0x629   :  { %8833 = vmatprep.subr.bf16.mxu1 %v9595_v52 }
 0x62a   :  { %8834 = vmatpush3.bf16.msra.mxu1 %v9595_v52 }
 0x62f   :  { %8782 = vmatmul.mubr.msk.bf16.gmra.mxu1 %vm91_vm1, %v9588_v57  ;;  %v1107_v57 = vadd.f32 %v10496_v3, %v8051_v4 }
 0x630   :  { %8785 = vmatprep.mubr.msk.bf16.mxu1 %vm10084_vm0, %v12972_v0 }
 0x637   :  { %8786 = vmatmul.mubr.msk.bf16.gmra.mxu1 %vm91_vm1, %v9589_v9 }
 0x638   :  { %8789 = vmatprep.mubr.msk.bf16.mxu1 %vm10084_vm0, %v12972_v0 }
 0x63f   :  { %8790 = vmatmul.mubr.msk.bf16.gmra.mxu1 %vm91_vm1, %v9590_v10 }
 0x640   :  { %8793 = vmatprep.mubr.msk.bf16.mxu1 %vm10084_vm0, %v12972_v0 }
 0x647   :  { %8794 = vmatmul.mubr.msk.bf16.gmra.mxu1 %vm91_vm1, %v9591_v11 }
 0x648   :  { %8797 = vmatprep.mubr.msk.bf16.mxu1 %vm10084_vm0, %v12972_v0 }
 0x64f   :  { %8798 = vmatmul.mubr.msk.bf16.gmra.mxu1 %vm91_vm1, %v9592_v12 }
 0x6df   :  { %v1203_v13 = vpop.f32.mrf.mxu1 }
 0x6e0   :  { %1492 = vrot.lane.b32.xlu1 %v1203_v13, %s10090_s22  ;;  %v1258_v27 = vmul.f32 %v1203_v13, %v1083_v18 }
 0x6e1   :  { %v8775_v14 = vpop.f32.mrf.mxu1 }
 0x6e3   :  { %v1206_v24 = vpop.f32.mrf.mxu1 }
 0x6e4   :  { %v1259_v29 = vmul.f32 %v1206_v24, %v1086_v21  ;;  %1494 = vrot.lane.b32.xlu0 %v1206_v24, %s10090_s22 }
 0x6e5   :  { %v8776_v33 = vpop.f32.mrf.mxu1 }
 0x6e6   :  { %v1272_v34 = vpack.c.bf16 %v1259_v29, %v1258_v27 }
 0x6e7   :  { %v1211_v59 = vpop.f32.mrf.mxu1 }
 0x6e8   :  { %1496 = vrot.lane.b32.xlu0 %v1211_v59, %s10090_s22  ;;  %8806 = vmatmul.mubr.msk.bf16.vlgmr.msra.gmra.mxu0 %vm201_vm2, %v1272_v34  ;;  %v1260_v48 = vmul.f32 %v1211_v59, %v1091_v39 }
 0x6e9   :  { %v8779_v54 = vpop.f32.mrf.mxu1  ;;  %8809 = vmatprep.mubr.msk.bf16.mxu0 %vm10084_vm0, %v12972_v0 }
 0x6eb   :  { %v1214_v47 = vpop.f32.mrf.mxu1 }
 0x6ec   :  { %v1261_v51 = vmul.f32 %v1214_v47, %v1094_v40  ;;  %1498 = vrot.lane.b32.xlu1 %v1214_v47, %s10090_s22 }
 0x6ed   :  { %v8780_v16 = vpop.f32.mrf.mxu1 }
 0x6ee   :  { %v1273_v23 = vpack.c.bf16 %v1261_v51, %v1260_v48 }
 0x6ef   :  { %v1219_v55 = vpop.f32.mrf.mxu1 }
 0x6f0   :  { %1500 = vrot.lane.b32.xlu0 %v1219_v55, %s10090_s22  ;;  %8810 = vmatmul.mubr.msk.bf16.gmra.mxu0 %vm201_vm2, %v1273_v23  ;;  %v1262_v62 = vmul.f32 %v1219_v55, %v1099_v19  ;;  %v9596_v55 = vld [vmem:[%s12966_s4 + $0xa0] sm:$0xff]  }
 0x6f1   :  { %v8783_v58 = vpop.f32.mrf.mxu1  ;;  %8813 = vmatprep.mubr.msk.bf16.mxu0 %vm10084_vm0, %v12972_v0  ;;  %8835 = vmatprep.subr.bf16.mxu1 %v9596_v55 }
 0x6f2   :  { %8836 = vmatpush3.bf16.msra.mxu1 %v9596_v55 }
 0x6f3   :  { %v1222_v61 = vpop.f32.mrf.mxu1 }
 0x6f4   :  { %v1263_v63 = vmul.f32 %v1222_v61, %v1102_v20  ;;  %1502 = vrot.lane.b32.xlu1 %v1222_v61, %s10090_s22 }
 0x6f5   :  { %v8784_v1 = vpop.f32.mrf.mxu1 }
 0x6f6   :  { %v1274_v2 = vpack.c.bf16 %v1263_v63, %v1262_v62 }
 0x6f7   :  { %v1227_v7 = vpop.f32.mrf.mxu1 }
 0x6f8   :  { %8814 = vmatmul.mubr.msk.bf16.gmra.mxu0 %vm201_vm2, %v1274_v2  ;;  %v1264_v10 = vmul.f32 %v1227_v7, %v1107_v57 }
 0x6f9   :  { %v8787_v8 = vpop.f32.mrf.mxu1  ;;  %8817 = vmatprep.mubr.msk.bf16.mxu0 %vm10084_vm0, %v12972_v0 }
 0x6fb   :  { %v1230_v9 = vpop.f32.mrf.mxu1 }
 0x6fc   :  { %v1265_v36 = vmul.f32 %v1230_v9, %v1083_v18  ;;  %1506 = vrot.lane.b32.xlu1 %v1230_v9, %s10090_s22 }
 0x6fd   :  { %v8788_v11 = vpop.f32.mrf.mxu1 }
 0x6fe   :  { %v1275_v12 = vpack.c.bf16 %v1265_v36, %v1264_v10 }
 0x6ff   :  { %v1235_v46 = vpop.f32.mrf.mxu1 }
 0x700   :  { %1508 = vrot.lane.b32.xlu1 %v1235_v46, %s10090_s22  ;;  %8818 = vmatmul.mubr.msk.bf16.gmra.mxu0 %vm201_vm2, %v1275_v12  ;;  %v1266_v24 = vmul.f32 %v1235_v46, %v1086_v21 }
 0x701   :  { %v8791_v13 = vpop.f32.mrf.mxu1  ;;  %8821 = vmatprep.mubr.msk.bf16.mxu0 %vm10084_vm0, %v12972_v0 }
 0x703   :  { %v1238_v14 = vpop.f32.mrf.mxu1 }
 0x704   :  { %v1267_v27 = vmul.f32 %v1238_v14, %v1091_v39  ;;  %1510 = vrot.lane.b32.xlu0 %v1238_v14, %s10090_s22 }
 0x705   :  { %v8792_v3 = vpop.f32.mrf.mxu1 }
 0x706   :  { %v1276_v4 = vpack.c.bf16 %v1267_v27, %v1266_v24 }
 0x707   :  { %v1243_v18 = vpop.f32.mrf.mxu1 }
 0x708   :  { %1512 = vrot.lane.b32.xlu1 %v1243_v18, %s10090_s22  ;;  %8822 = vmatmul.mubr.msk.bf16.gmra.mxu0 %vm201_vm2, %v1276_v4  ;;  %v1268_v34 = vmul.f32 %v1243_v18, %v1094_v40 }
 0x709   :  { %v8795_v29 = vpop.f32.mrf.mxu1  ;;  %8825 = vmatprep.mubr.msk.bf16.mxu0 %vm10084_vm0, %v12972_v0 }
 0x70b   :  { %v1246_v33 = vpop.f32.mrf.mxu1 }
 0x70c   :  { %v1269_v59 = vmul.f32 %v1246_v33, %v1099_v19  ;;  %1514 = vrot.lane.b32.xlu0 %v1246_v33, %s10090_s22 }
 0x70d   :  { %v8796_v21 = vpop.f32.mrf.mxu1 }
 0x70e   :  { %v1277_v54 = vpack.c.bf16 %v1269_v59, %v1268_v34 }
 0x70f   :  { %v1251_v39 = vpop.f32.mrf.mxu1 }
 0x710   :  { %1504 = vrot.lane.b32.xlu0 %v1227_v7, %s10090_s22  ;;  %1516 = vrot.lane.b32.xlu1 %v1251_v39, %s10090_s22  ;;  %v1270_v51 = vmul.f32 %v1251_v39, %v1102_v20 }
 0x711   :  { %8826 = vmatmul.mubr.msk.bf16.gmra.mxu0 %vm201_vm2, %v1277_v54  ;;  %v8799_v47 = vpop.f32.mrf.mxu1 }
 0x712   :  { %8829 = vmatprep.mubr.msk.bf16.mxu0 %vm10084_vm0, %v12972_v0 }
 0x713   :  { %v1254_v48 = vpop.f32.mrf.mxu1 }
 0x714   :  { %v1271_v16 = vmul.f32 %v1254_v48, %v1107_v57  ;;  %1518 = vrot.lane.b32.xlu1 %v1254_v48, %s10090_s22 }
 0x715   :  { %v8800_v40 = vpop.f32.mrf.mxu1 }
 0x716   :  { %v1278_v23 = vpack.c.bf16 %v1271_v16, %v1270_v51 }
 0x719   :  { %8830 = vmatmul.mubr.msk.bf16.gmra.mxu0 %vm201_vm2, %v1278_v23 }
 0x7a8   :  { %v1346_v58 = vpop.f32.mrf.mxu0 }
 0x7a9   :  { %v1401_v11 = vmul.f32 0.35355338, %v1346_v58 }
 0x7aa   :  { %v8807_v19 = vpop.f32.mrf.mxu0 }
 0x7ab   :  { %v1415_v14 = vsel %vm201_vm2, %v1401_v11, -inf }
 0x7ac   :  { %v1349_v20 = vpop.f32.mrf.mxu0 }
 0x7ad   :  { %v1402_v24 = vmul.f32 0.35355338, %v1349_v20 }
 0x7ae   :  { %v8808_v61 = vpop.f32.mrf.mxu0 }
 0x7af   :  { %v1418_v59 = vsel %vm201_vm2, %v1402_v24, -inf }
 0x7b0   :  { %v1354_v62 = vpop.f32.mrf.mxu0 }
 0x7b1   :  { %v1403_v21 = vmul.f32 0.35355338, %v1354_v62 }
 0x7b2   :  { %v8811_v63 = vpop.f32.mrf.mxu0 }
 0x7b3   :  { %v1421_v55 = vsel %vm201_vm2, %v1403_v21, -inf }
 0x7b4   :  { %v1357_v1 = vpop.f32.mrf.mxu0 }
 0x7b5   :  { %v1404_v19 = vmul.f32 0.35355338, %v1357_v1  ;;  %v10588_v1 = vpop.permute.xlu1 %1492 }
 0x7b6   :  { %v8812_v2 = vpop.f32.mrf.mxu0 }
 0x7b8   :  { %v1362_v7 = vpop.f32.mrf.mxu0 }
 0x7ba   :  { %v8815_v8 = vpop.f32.mrf.mxu0 }
 0x7bc   :  { %v1365_v57 = vpop.f32.mrf.mxu0 }
 0x7be   :  { %v8816_v9 = vpop.f32.mrf.mxu0 }
 0x7c0   :  { %v10578_v10 = vpop.f32.mrf.mxu0 }
 0x7c2   :  { %v8819_v36 = vpop.f32.mrf.mxu0 }
 0x7c3   :  { %v1405_v36 = vmul.f32 0.35355338, %v1362_v7 }
 0x7c4   :  { %v1373_v12 = vpop.f32.mrf.mxu0 }
 0x7c5   :  { %v1408_v46 = vmul.f32 0.35355338, %v1373_v12  ;;  %v1424_v12 = vsel %vm201_vm2, %v1404_v19, -inf  ;;  %v1427_v7 = vsel %vm201_vm2, %v1405_v36, -inf }
 0x7c6   :  { %v8820_v13 = vpop.f32.mrf.mxu0 }
 0x7c7   :  { %v1416_v27 = vsel %vm201_vm2, %v1408_v46, -inf }
 0x7c8   :  { %v1417_v3 = vmax.f32 %v1415_v14, %v1416_v27  ;;  %v1378_v4 = vpop.f32.mrf.mxu0 }
 0x7c9   :  { %v1409_v18 = vmul.f32 0.35355338, %v1378_v4  ;;  %v1406_v4 = vmul.f32 0.35355338, %v1365_v57 }
 0x7ca   :  { %v1436_v29 = vsub.f32 %v1401_v11, %v1417_v3  ;;  %v1443_v33 = vsub.f32 %v1408_v46, %v1417_v3  ;;  %v8823_v34 = vpop.f32.mrf.mxu0 }
 0x7cb   :  { %v1419_v54 = vsel %vm201_vm2, %v1409_v18, -inf }
 0x7cc   :  { %v1450_v39 = vmul.f32 1.442695, %v1436_v29  ;;  %v1464_v47 = vmul.f32 1.442695, %v1443_v33  ;;  %v1420_v48 = vmax.f32 %v1418_v59, %v1419_v54  ;;  %v1381_v51 = vpop.f32.mrf.mxu0 }
 0x7cd   :  { %v1410_v16 = vmul.f32 0.35355338, %v1381_v51 }
 0x7ce   :  { %9700 = vpow2.f32 %v1450_v39  ;;  %v1437_v40 = vsub.f32 %v1402_v24, %v1420_v48  ;;  %v1444_v23 = vsub.f32 %v1409_v18, %v1420_v48  ;;  %v8824_v52 = vpop.f32.mrf.mxu0 }
 0x7cf   :  { %9702 = vpow2.f32 %v1464_v47  ;;  %v1422_v58 = vsel %vm201_vm2, %v1410_v16, -inf  ;;  %v10592_v47 = vpop.permute.xlu1 %1498 }
 0x7d0   :  { %v1452_v20 = vmul.f32 1.442695, %v1437_v40  ;;  %v1466_v61 = vmul.f32 1.442695, %v1444_v23  ;;  %v1423_v62 = vmax.f32 %v1421_v55, %v1422_v58  ;;  %v1407_v55 = vmul.f32 0.35355338, %v10578_v10 }
 0x7d1   :  { %v1386_v63 = vpop.f32.mrf.mxu0 }
 0x7d2   :  { %9704 = vpow2.f32 %v1452_v20  ;;  %v1438_v2 = vsub.f32 %v1403_v21, %v1423_v62  ;;  %v1445_v8 = vsub.f32 %v1410_v16, %v1423_v62  ;;  %v1411_v9 = vmul.f32 0.35355338, %v1386_v63 }
 0x7d3   :  { %9706 = vpow2.f32 %v1466_v61  ;;  %v8827_v11 = vpop.f32.mrf.mxu0  ;;  %v1430_v16 = vsel %vm201_vm2, %v1406_v4, -inf }
 0x7d4   :  { %v1454_v46 = vmul.f32 1.442695, %v1438_v2  ;;  %v1468_v13 = vmul.f32 1.442695, %v1445_v8  ;;  %v1425_v14 = vsel %vm201_vm2, %v1411_v9, -inf  ;;  %v10599_v8 = vpop.permute.xlu1 %1502 }
 0x7d5   :  { %v1426_v24 = vmax.f32 %v1424_v12, %v1425_v14  ;;  %v1389_v27 = vpop.f32.mrf.mxu0  ;;  %v1433_v14 = vsel %vm201_vm2, %v1407_v55, -inf }
 0x7d6   :  { %9708 = vpow2.f32 %v1454_v46  ;;  %v1412_v3 = vmul.f32 0.35355338, %v1389_v27 }
 0x7d7   :  { %9710 = vpow2.f32 %v1468_v13  ;;  %v1439_v18 = vsub.f32 %v1404_v19, %v1426_v24  ;;  %v1446_v29 = vsub.f32 %v1411_v9, %v1426_v24  ;;  %v8828_v33 = vpop.f32.mrf.mxu0 }
 0x7d8   :  { %v1428_v34 = vsel %vm201_vm2, %v1412_v3, -inf  ;;  %v1495_v33 = vpop.permute.xlu0 %1494 }
 0x7d9   :  { %v1456_v59 = vmul.f32 1.442695, %v1439_v18  ;;  %v1470_v21 = vmul.f32 1.442695, %v1446_v29  ;;  %v1429_v54 = vmax.f32 %v1427_v7, %v1428_v34  ;;  %v1394_v39 = vpop.f32.mrf.mxu0  ;;  %v1507_v7 = vpop.permute.xlu1 %1506 }
 0x7da   :  { %v1413_v48 = vmul.f32 0.35355338, %v1394_v39 }
 0x7db   :  { %v9701_v51 = vpop.eup %9700  ;;  %9712 = vpow2.f32 %v1456_v59  ;;  %v1440_v57 = vsub.f32 %v1405_v36, %v1429_v54  ;;  %v1447_v40 = vsub.f32 %v1412_v3, %v1429_v54  ;;  %v8831_v23 = vpop.f32.mrf.mxu0 }
 0x7dc   :  { %v9703_v52 = vpop.eup %9702  ;;  %v1569_v58 = vsel %vm201_vm2, %v9701_v51, 0.0  ;;  %9714 = vpow2.f32 %v1470_v21  ;;  %v1431_v19 = vsel %vm201_vm2, %v1413_v48, -inf }
 0x7dd   :  { %v1570_v20 = vsel %vm201_vm2, %v9703_v52, 0.0  ;;  %v1458_v61 = vmul.f32 1.442695, %v1440_v57  ;;  %v1472_v62 = vmul.f32 1.442695, %v1447_v40  ;;  %v1432_v63 = vmax.f32 %v1430_v16, %v1431_v19  ;;  %v1397_v2 = vpop.f32.mrf.mxu0  ;;  %v1497_v19 = vpop.permute.xlu0 %1496 }
 0x7de   :  { %v1571_v9 = vadd.f32 %v1570_v20, %v1569_v58  ;;  %v1414_v36 = vmul.f32 0.35355338, %v1397_v2  ;;  %v1509_v20 = vpop.permute.xlu1 %1508 }
 0x7df   :  { %v9705_v11 = vpop.eup %9704  ;;  %9716 = vpow2.f32 %v1458_v61  ;;  %v1441_v12 = vsub.f32 %v1406_v4, %v1432_v63  ;;  %v1448_v46 = vsub.f32 %v1413_v48, %v1432_v63  ;;  %v8832_v10 = vpop.f32.mrf.mxu0  ;;  %v1534_v61 = vmul.f32 %v9701_v51, %v10588_v1 }
 0x7e0   :  { %v9707_v13 = vpop.eup %9706  ;;  %v1572_v24 = vsel %vm201_vm2, %v9705_v11, 0.0  ;;  %v1434_v27 = vsel %vm201_vm2, %v1414_v36, -inf  ;;  %9718 = vpow2.f32 %v1472_v62  ;;  %v1541_v62 = vmul.f32 %v9703_v52, %v1507_v7 }
 0x7e1   :  { %v1573_v3 = vsel %vm201_vm2, %v9707_v13, 0.0  ;;  %v1460_v18 = vmul.f32 1.442695, %v1441_v12  ;;  %v1474_v29 = vmul.f32 1.442695, %v1448_v46  ;;  %9720 = vrcp.f32 %v1571_v9  ;;  %v1501_v10 = vpop.permute.xlu0 %1500 }
 0x7e2   :  { %v1574_v34 = vadd.f32 %v1573_v3, %v1572_v24  ;;  %v1435_v59 = vmax.f32 %v1433_v14, %v1434_v27  ;;  %v1535_v9 = vmul.f32 %v9705_v11, %v1495_v33  ;;  %v1542_v12 = vmul.f32 %v9707_v13, %v1509_v20 }
 0x7e3   :  { %v9709_v4 = vpop.eup %9708  ;;  %9722 = vpow2.f32 %v1460_v18  ;;  %v1548_v14 = vsel %vm201_vm2, %v1534_v61, 0.0  ;;  %v1549_v24 = vsel %vm201_vm2, %v1541_v62, 0.0 }
 0x7e4   :  { %v9711_v21 = vpop.eup %9710  ;;  %9724 = vrcp.f32 %v1574_v34  ;;  %v1575_v54 = vsel %vm201_vm2, %v9709_v4, 0.0  ;;  %v1442_v39 = vsub.f32 %v1407_v55, %v1435_v59  ;;  %v1449_v16 = vsub.f32 %v1414_v36, %v1435_v59  ;;  %v1513_v59 = vpop.permute.xlu1 %1512 }
 0x7e5   :  { %v1576_v48 = vsel %vm201_vm2, %v9711_v21, 0.0  ;;  %9726 = vpow2.f32 %v1474_v29  ;;  %v1551_v51 = vsel %vm201_vm2, %v1535_v9, 0.0  ;;  %v1552_v52 = vsel %vm201_vm2, %v1542_v12, 0.0  ;;  %v1511_v18 = vpop.permute.xlu0 %1510 }
 0x7e6   :  { %v1462_v57 = vmul.f32 1.442695, %v1442_v39  ;;  %v1577_v40 = vadd.f32 %v1576_v48, %v1575_v54  ;;  %v1476_v23 = vmul.f32 1.442695, %v1449_v16  ;;  %v1550_v33 = vadd.f32 %v1549_v24, %v1548_v14 }
 0x7e7   :  { %v1553_v7 = vadd.f32 %v1552_v52, %v1551_v51  ;;  %v1536_v54 = vmul.f32 %v9709_v4, %v1497_v19  ;;  %v1543_v39 = vmul.f32 %v9711_v21, %v1511_v18 }
 0x7e8   :  { %v9713_v58 = vpop.eup %9712  ;;  %9728 = vpow2.f32 %v1462_v57  ;;  %v1517_v14 = vpop.permute.xlu1 %1516 }
 0x7e9   :  { %v9715_v63 = vpop.eup %9714  ;;  %v1578_v2 = vsel %vm201_vm2, %v9713_v58, 0.0  ;;  %9730 = vpow2.f32 %v1476_v23  ;;  %v1537_v57 = vmul.f32 %v9713_v58, %v10592_v47  ;;  %v1554_v9 = vsel %vm201_vm2, %v1536_v54, 0.0 }
 0x7ea   :  { %v1579_v55 = vsel %vm201_vm2, %v9715_v63, 0.0  ;;  %9732 = vrcp.f32 %v1577_v40  ;;  %v1544_v40 = vmul.f32 %v9715_v63, %v1513_v59 }
 0x7eb   :  { %v1580_v36 = vadd.f32 %v1579_v55, %v1578_v2  ;;  %v1555_v55 = vsel %vm201_vm2, %v1543_v39, 0.0  ;;  %v1557_v4 = vsel %vm201_vm2, %v1537_v57, 0.0 }
 0x7ec   :  { %v9717_v46 = vpop.eup %9716  ;;  %v1558_v21 = vsel %vm201_vm2, %v1544_v40, 0.0  ;;  %v1556_v24 = vadd.f32 %v1555_v55, %v1554_v9  ;;  %v1519_v54 = vpop.permute.xlu1 %1518 }
 0x7ed   :  { %9734 = vrcp.f32 %v1580_v36  ;;  %v1581_v1 = vsel %vm201_vm2, %v9717_v46, 0.0  ;;  %v9719_v11 = vpop.eup %9718  ;;  %v1515_v36 = vpop.permute.xlu0 %1514 }
 0x7ee   :  { %v9721_v13 = vpop.eup %9720  ;;  %v1582_v27 = vsel %vm201_vm2, %v9719_v11, 0.0  ;;  %v1545_v18 = vmul.f32 %v9719_v11, %v1515_v36 }
 0x7ef   :  { %v1583_v29 = vadd.f32 %v1582_v27, %v1581_v1  ;;  %v1591_v23 = vmul.f32 %v9721_v13, %v1550_v33  ;;  %v1559_v1 = vadd.f32 %v1558_v21, %v1557_v4  ;;  %v1538_v13 = vmul.f32 %v9717_v46, %v1501_v10 }
 0x7f0   :  { %v9723_v3 = vpop.eup %9722 }
 0x7f1   :  { %v9725_v34 = vpop.eup %9724  ;;  %v1584_v48 = vsel %vm201_vm2, %v9723_v3, 0.0  ;;  %9736 = vrcp.f32 %v1583_v29  ;;  %v1539_v27 = vmul.f32 %v9723_v3, %v10599_v8  ;;  %v1505_v59 = vpop.permute.xlu0 %1504  ;;  %v1560_v39 = vsel %vm201_vm2, %v1538_v13, 0.0 }
 0x7f2   :  { %v9727_v16 = vpop.eup %9726  ;;  %v1593_v20 = vmul.f32 %v9725_v34, %v1553_v7 }
 0x7f3   :  { %v1585_v61 = vsel %vm201_vm2, %v9727_v16, 0.0  ;;  %v1546_v7 = vmul.f32 %v9727_v16, %v1517_v14  ;;  %v1563_v57 = vsel %vm201_vm2, %v1539_v27, 0.0 }
 0x7f4   :  { %v1586_v62 = vadd.f32 %v1585_v61, %v1584_v48  ;;  %v1608_v2 = vpack.c.bf16 %v1593_v20, %v1591_v23  ;;  %v1561_v48 = vsel %vm201_vm2, %v1545_v18, 0.0 }
 0x7f5   :  { %v9729_v12 = vpop.eup %9728  ;;  %v1564_v46 = vsel %vm201_vm2, %v1546_v7, 0.0  ;;  %v1562_v3 = vadd.f32 %v1561_v48, %v1560_v39 }
 0x7f6   :  { %9738 = vrcp.f32 %v1586_v62  ;;  %8837 = vmatprep.mubr.msk.bf16.mxu1 %vm201_vm2, %v1608_v2  ;;  %v9731_v47 = vpop.eup %9730  ;;  %v1587_v58 = vsel %vm201_vm2, %v9729_v12, 0.0  ;;  %v1540_v10 = vmul.f32 %v9729_v12, %v1505_v59  ;;  %v1565_v40 = vadd.f32 %v1564_v46, %v1563_v57 }
 0x7f7   :  { %v9733_v19 = vpop.eup %9732  ;;  %v1588_v63 = vsel %vm201_vm2, %v9731_v47, 0.0  ;;  %v1547_v8 = vmul.f32 %v9731_v47, %v1519_v54 }
 0x7f8   :  { %v1589_v51 = vadd.f32 %v1588_v63, %v1587_v58  ;;  %v1595_v29 = vmul.f32 %v9733_v19, %v1556_v24  ;;  %v1566_v61 = vsel %vm201_vm2, %v1540_v10, 0.0  ;;  %v8087_v63 = vld [vmem:[%s12967_s6 + $0x53] ss:$0 sm:$0xff] }
 0x7f9   :  { %v1567_v62 = vsel %vm201_vm2, %v1547_v8, 0.0 }
 0x7fa   :  { %v9735_v52 = vpop.eup %9734  ;;  %9740 = vrcp.f32 %v1589_v51  ;;  %v1568_v9 = vadd.f32 %v1567_v62, %v1566_v61 }
 0x7fb   :  { %v1597_v33 = vmul.f32 %v9735_v52, %v1559_v1 }
 0x7fd   :  { %v1609_v34 = vpack.c.bf16 %v1597_v33, %v1595_v29 }
 0x7fe   :  { %v9737_v11 = vpop.eup %9736 }
 0x7ff   :  { %8838 = vmatmul.mubr.msk.bf16.vlgmr.msra.gmra.mxu1 %vm201_vm2, %v1609_v34  ;;  %v1599_v16 = vmul.f32 %v9737_v11, %v1562_v3 }
 0x803   :  { %v9739_v23 = vpop.eup %9738 }
 0x804   :  { %v1601_v20 = vmul.f32 %v9739_v23, %v1565_v40 }
 0x806   :  { %v1610_v2 = vpack.c.bf16 %v1601_v20, %v1599_v16 }
 0x807   :  { %v9741_v55 = vpop.eup %9740 }
 0x808   :  { %8841 = vmatprep.mubr.msk.bf16.mxu1 %vm201_vm2, %v1610_v2  ;;  %v1603_v4 = vmul.f32 %v9741_v55, %v1568_v9 }
 0x80a   :  { %v1611_v21 = vpack.c.bf16 %v1603_v4, %v1603_v4 }
 0x80c   :  { %8842 = vmatmul.mubr.msk.bf16.gmra.mxu1 %vm201_vm2, %v1611_v21 }
 0x8bf   :  { %v8839_v12 = vpop.f32.mrf.mxu1 }
 0x8c0   :  { %v1702_v58 = vadd.f32 %v8839_v12, %v10296_v30 }
 0x8c1   :  { %v1670_v47 = vpop.f32.mrf.mxu1 }
 0x8c2   :  { %v1700_v19 = vadd.f32 %v1670_v47, %v10285_v26  ;;  %v10643_v1 = vadd.f32 %v8087_v63, %v1702_v58 }
 0x8c3   :  { %v8840_v36 = vpop.f32.mrf.mxu1 }
 0x8c4   :  { %v10641_v14 = vadd.f32 %v8087_v63, %v1700_v19  ;;  %v1703_v51 = vadd.f32 %v8840_v36, %v10325_v41  ;;  %v1727_v27 = vsel %vm201_vm2, %v10643_v1, 0.0 }
 0x8c5   :  { %v1673_v24 = vpop.f32.mrf.mxu1 }
 0x8c6   :  { %v1701_v52 = vadd.f32 %v1673_v24, %v10344_v53  ;;  %v1721_v13 = vsel %vm201_vm2, %v10641_v14, 0.0  ;;  %v10651_v26 = vadd.f32 %v8087_v63, %v1703_v51 }
 0x8c7   :  { %1722 = vadd.xlane.f32.xlu0 %v1721_v13 }
 0x8c8   :  { %v10649_v30 = vadd.f32 %v8087_v63, %v1701_v52  ;;  %v1730_v41 = vsel %vm201_vm2, %v10651_v26, 0.0 }
 0x8ca   :  { %v1724_v18 = vsel %vm201_vm2, %v10649_v30, 0.0 }
 0x8cb   :  { %1728 = vadd.xlane.f32.xlu0 %v1727_v27  ;;  %1725 = vadd.xlane.f32.xlu1 %v1724_v18 }
 0x8cc   :  { %v8843_v29 = vpop.f32.mrf.mxu1 }
 0x8cd   :  { %v1706_v33 = vadd.f32 %v8843_v29, %v10362_v60  ;;  %v9597_v60 = vld [vmem:[%s12966_s4 + $0xb8] sm:$0xff]  }
 0x8ce   :  { %v1686_v53 = vpop.f32.mrf.mxu1  ;;  %8845 = vmatprep.subr.bf16.mxu0 %v9597_v60 }
 0x8cf   :  { %1731 = vadd.xlane.f32.xlu0 %v1730_v41  ;;  %v1704_v7 = vadd.f32 %v1686_v53, %v10352_v56  ;;  %v10663_v39 = vadd.f32 %v8087_v63, %v1706_v33  ;;  %8846 = vmatpush3.bf16.msra.mxu0 %v9597_v60 }
 0x8d0   :  { %v8844_v34 = vpop.f32.mrf.mxu1 }
 0x8d1   :  { %v10661_v59 = vadd.f32 %v8087_v63, %v1704_v7  ;;  %v1739_v10 = vsel %vm201_vm2, %v10663_v39, 0.0  ;;  %v723_v7 = vld [vmem:[%s12970_s3] sm:$0xff]  ;;  %v724_v34 = vld [vmem:[%s12970_s3 + $0x8] sm:$0xff] }
 0x8d2   :  { %v1689_v54 = vpop.f32.mrf.mxu1 }
 0x8d3   :  { %v1705_v48 = vadd.f32 %v1689_v54, %v10336_v49  ;;  %v1733_v57 = vsel %vm201_vm2, %v10661_v59, 0.0 }
 0x8d4   :  { %1734 = vadd.xlane.f32.xlu1 %v1733_v57  ;;  %v10724_v57 = vadd.f32 %v723_v7, %v10459_v5  ;;  %v9598_v5 = vld [vmem:[%s12966_s4 + $0xb0] sm:$0xff]  }
 0x8d5   :  { %v10668_v46 = vadd.f32 %v8087_v63, %v1705_v48  ;;  %8847 = vmatprep.subr.bf16.mxu0 %v9598_v5 }
 0x8d6   :  { %8848 = vmatpush3.bf16.msra.mxu0 %v9598_v5  ;;  %v8089_v5 = vld [vmem:[%s12967_s6 + $0x57] ss:$0 sm:$0xff] }
 0x8d7   :  { %v1736_v56 = vsel %vm201_vm2, %v10668_v46, 0.0 }
 0x8d8   :  { %1740 = vadd.xlane.f32.xlu1 %v1739_v10  ;;  %1737 = vadd.xlane.f32.xlu0 %v1736_v56  ;;  %v10727_v10 = vadd.f32 %v724_v34, %v10461_v6 }
 0x950   :  { %v1723_v49 = vpop.xlane.xlu0 %1722 }
 0x951   :  { %v1742_v8 = vmul.f32 0.03125, %v1723_v49  ;;  %v2163_v49 = vsel %vm201_vm2, %v10727_v10, 0.0 }
 0x953   :  { %v10678_v11 = vsub.f32 %v10641_v14, %v1742_v8  ;;  %v2160_v8 = vsel %vm201_vm2, %v10724_v57, 0.0 }
 0x954   :  { %v1729_v3 = vpop.xlane.xlu0 %1728  ;;  %v1726_v40 = vpop.xlane.xlu1 %1725 }
 0x955   :  { %v1744_v23 = vmul.f32 0.03125, %v1729_v3  ;;  %v1743_v16 = vmul.f32 0.03125, %v1726_v40  ;;  %v1756_v20 = vmul.f32 %v10678_v11, %v10678_v11 }
 0x957   :  { %v10683_v61 = vsub.f32 %v10643_v1, %v1744_v23  ;;  %v10686_v62 = vsub.f32 %v10649_v30, %v1743_v16  ;;  %v1763_v2 = vsel %vm201_vm2, %v1756_v20, 0.0 }
 0x958   :  { %v1732_v9 = vpop.xlane.xlu0 %1731  ;;  %1764 = vadd.xlane.f32.xlu0 %v1763_v2 }
 0x959   :  { %v1745_v55 = vmul.f32 0.03125, %v1732_v9  ;;  %v1757_v4 = vmul.f32 %v10686_v62, %v10686_v62  ;;  %v1758_v21 = vmul.f32 %v10683_v61, %v10683_v61 }
 0x95b   :  { %v10694_v12 = vsub.f32 %v10651_v26, %v1745_v55  ;;  %v1766_v47 = vsel %vm201_vm2, %v1757_v4, 0.0  ;;  %v1769_v58 = vsel %vm201_vm2, %v1758_v21, 0.0 }
 0x95c   :  { %1767 = vadd.xlane.f32.xlu1 %v1766_v47  ;;  %1770 = vadd.xlane.f32.xlu0 %v1769_v58 }
 0x95d   :  { %v1759_v19 = vmul.f32 %v10694_v12, %v10694_v12  ;;  %v1735_v63 = vpop.xlane.xlu1 %1734 }
 0x95e   :  { %v1746_v36 = vmul.f32 0.03125, %v1735_v63 }
 0x95f   :  { %v1772_v24 = vsel %vm201_vm2, %v1759_v19, 0.0 }
 0x960   :  { %1773 = vadd.xlane.f32.xlu1 %v1772_v24  ;;  %v10702_v51 = vsub.f32 %v10661_v59, %v1746_v36 }
 0x961   :  { %v1741_v52 = vpop.xlane.xlu1 %1740  ;;  %v1738_v13 = vpop.xlane.xlu0 %1737 }
 0x962   :  { %v1748_v27 = vmul.f32 0.03125, %v1741_v52  ;;  %v1747_v18 = vmul.f32 0.03125, %v1738_v13  ;;  %v1760_v29 = vmul.f32 %v10702_v51, %v10702_v51  ;;  %v8088_v13 = vld [vmem:[%s12967_s6 + $0x56] ss:$0 sm:$0xff] }
 0x964   :  { %v10707_v41 = vsub.f32 %v10663_v39, %v1748_v27  ;;  %v10710_v53 = vsub.f32 %v10668_v46, %v1747_v18  ;;  %v1775_v33 = vsel %vm201_vm2, %v1760_v29, 0.0 }
 0x965   :  { %1776 = vadd.xlane.f32.xlu0 %v1775_v33 }
 0x966   :  { %v1762_v54 = vmul.f32 %v10707_v41, %v10707_v41  ;;  %v1761_v48 = vmul.f32 %v10710_v53, %v10710_v53 }
 0x968   :  { %v1781_v56 = vsel %vm201_vm2, %v1762_v54, 0.0  ;;  %v1778_v60 = vsel %vm201_vm2, %v1761_v48, 0.0 }
 0x969   :  { %1782 = vadd.xlane.f32.xlu0 %v1781_v56  ;;  %1779 = vadd.xlane.f32.xlu1 %v1778_v60 }
 0x96d   :  { %2164 = vadd.xlane.f32.xlu0 %v2163_v49  ;;  %2161 = vadd.xlane.f32.xlu1 %v2160_v8 }
 0x9e1   :  { %v1765_v6 = vpop.xlane.xlu0 %1764 }
 0x9e2   :  { %v1784_v3 = vmul.f32 0.03125, %v1765_v6 }
 0x9e4   :  { %v1791_v40 = vadd.f32 1e-05, %v1784_v3 }
 0x9e5   :  { %v1768_v23 = vpop.xlane.xlu1 %1767  ;;  %v1771_v16 = vpop.xlane.xlu0 %1770 }
 0x9e6   :  { %9742 = vrsqrt.f32 %v1791_v40  ;;  %v1785_v20 = vmul.f32 0.03125, %v1768_v23  ;;  %v1786_v2 = vmul.f32 0.03125, %v1771_v16 }
 0x9e8   :  { %v1792_v9 = vadd.f32 1e-05, %v1785_v20  ;;  %v1793_v55 = vadd.f32 1e-05, %v1786_v2 }
 0x9e9   :  { %v1774_v4 = vpop.xlane.xlu1 %1773 }
 0x9ea   :  { %9744 = vrsqrt.f32 %v1792_v9  ;;  %v1787_v21 = vmul.f32 0.03125, %v1774_v4 }
 0x9eb   :  { %9746 = vrsqrt.f32 %v1793_v55 }
 0x9ec   :  { %v1794_v47 = vadd.f32 1e-05, %v1787_v21 }
 0x9ee   :  { %9748 = vrsqrt.f32 %v1794_v47  ;;  %v1777_v58 = vpop.xlane.xlu0 %1776 }
 0x9ef   :  { %v1788_v19 = vmul.f32 0.03125, %v1777_v58 }
 0x9f1   :  { %v1795_v63 = vadd.f32 1e-05, %v1788_v19 }
 0x9f2   :  { %v1780_v24 = vpop.xlane.xlu1 %1779  ;;  %v1783_v52 = vpop.xlane.xlu0 %1782 }
 0x9f3   :  { %v9743_v36 = vpop.eup %9742  ;;  %9750 = vrsqrt.f32 %v1795_v63  ;;  %v1789_v27 = vmul.f32 0.03125, %v1780_v24  ;;  %v1790_v18 = vmul.f32 0.03125, %v1783_v52 }
 0x9f4   :  { %v1805_v29 = vmul.f32 %v9743_v36, %v10678_v11 }
 0x9f5   :  { %v1796_v33 = vadd.f32 1e-05, %v1789_v27  ;;  %v1797_v7 = vadd.f32 1e-05, %v1790_v18 }
 0x9f6   :  { %v2162_v54 = vpop.xlane.xlu1 %2161  ;;  %v2165_v48 = vpop.xlane.xlu0 %2164  ;;  %v1816_v56 = vmul.f32 %v8088_v13, %v1805_v29 }
 0x9f7   :  { %v9745_v34 = vpop.eup %9744  ;;  %9752 = vrsqrt.f32 %v1796_v33  ;;  %v2166_v49 = vmul.f32 0.03125, %v2162_v54  ;;  %v2167_v8 = vmul.f32 0.03125, %v2165_v48 }
 0x9f8   :  { %v9747_v60 = vpop.eup %9746  ;;  %v1806_v6 = vmul.f32 %v9745_v34, %v10686_v62  ;;  %9754 = vrsqrt.f32 %v1797_v7  ;;  %v1827_v2 = vadd.f32 %v8089_v5, %v1816_v56 }
 0x9f9   :  { %v1807_v3 = vmul.f32 %v9747_v60, %v10683_v61  ;;  %v10748_v11 = vsub.f32 %v10724_v57, %v2166_v49  ;;  %v10751_v40 = vsub.f32 %v10727_v10, %v2167_v8  ;;  %v42_v8 = vld [vmem:[%s12967_s6 + $0x30] sm:$0xff] }
 0x9fa   :  { %v1817_v23 = vmul.f32 %v8088_v13, %v1806_v6  ;;  %v43_v6 = vld [vmem:[%s12967_s6 + $0x38] sm:$0xff] }
 0x9fb   :  { %v9749_v16 = vpop.eup %9748  ;;  %v1818_v20 = vmul.f32 %v8088_v13, %v1807_v3  ;;  %v2170_v55 = vmul.f32 %v10748_v11, %v10748_v11  ;;  %v2171_v62 = vmul.f32 %v10751_v40, %v10751_v40  ;;  %v39_v3 = vld [vmem:[%s12967_s6 + $0x18] sm:$0xff] }
 0x9fc   :  { %v1808_v9 = vmul.f32 %v9749_v16, %v10694_v12  ;;  %v1828_v61 = vadd.f32 %v8089_v5, %v1817_v23  ;;  %v40_v23 = vld [vmem:[%s12967_s6 + $0x20] sm:$0xff]  ;;  %v41_v16 = vld [vmem:[%s12967_s6 + $0x28] sm:$0xff] }
 0x9fd   :  { %v2172_v21 = vsel %vm201_vm2, %v2170_v55, 0.0  ;;  %v2175_v47 = vsel %vm201_vm2, %v2171_v62, 0.0  ;;  %v1829_v19 = vadd.f32 %v8089_v5, %v1818_v20 }
 0x9fe   :  { %v1819_v4 = vmul.f32 %v8088_v13, %v1808_v9  ;;  %v1838_v58 = vpack.c.bf16 %v1828_v61, %v1827_v2  ;;  %2173 = vadd.xlane.f32.xlu1 %v2172_v21  ;;  %2176 = vadd.xlane.f32.xlu0 %v2175_v47  ;;  %v8090_v9 = vld [vmem:[%s12967_s6 + $0x58] ss:$0 sm:$0xff] }
 0xa00   :  { %8849 = vmatprep.mubr.msk.bf16.mxu0 %vm201_vm2, %v1838_v58  ;;  %v1830_v63 = vadd.f32 %v8089_v5, %v1819_v4  ;;  %v9751_v12 = vpop.eup %9750 }
 0xa01   :  { %v1809_v24 = vmul.f32 %v9751_v12, %v10702_v51  ;;  %v9599_v51 = vld [vmem:[%s12966_s4 + $0xc8] sm:$0xff]  }
 0xa02   :  { %v1839_v36 = vpack.c.bf16 %v1830_v63, %v1829_v19  ;;  %8857 = vmatprep.subr.bf16.mxu1 %v9599_v51 }
 0xa03   :  { %v1820_v29 = vmul.f32 %v8088_v13, %v1809_v24  ;;  %8858 = vmatpush3.bf16.msra.mxu1 %v9599_v51  ;;  %v9602_v24 = vld [vmem:[%s12965_s5 + $0x30] sm:$0xff]  }
 0xa04   :  { %8850 = vmatmul.mubr.msk.bf16.vlgmr.msra.gmra.mxu0 %vm201_vm2, %v1839_v36  ;;  %v9753_v52 = vpop.eup %9752 }
 0xa05   :  { %v9755_v27 = vpop.eup %9754  ;;  %v1810_v18 = vmul.f32 %v9753_v52, %v10710_v53  ;;  %v1831_v54 = vadd.f32 %v8089_v5, %v1820_v29  ;;  %v9601_v53 = vld [vmem:[%s12965_s5 + $0x38] sm:$0xff]  }
 0xa06   :  { %v1811_v33 = vmul.f32 %v9755_v27, %v10707_v41  ;;  %v9600_v41 = vld [vmem:[%s12966_s4 + $0xc0] sm:$0xff]  }
 0xa07   :  { %v1821_v7 = vmul.f32 %v8088_v13, %v1810_v18  ;;  %8859 = vmatprep.subr.bf16.mxu1 %v9600_v41 }
 0xa08   :  { %v1822_v34 = vmul.f32 %v8088_v13, %v1811_v33  ;;  %8860 = vmatpush3.bf16.msra.mxu1 %v9600_v41  ;;  %v44_v13 = vld [vmem:[%s12967_s6 + $0x40] sm:$0xff] }
 0xa09   :  { %v1832_v48 = vadd.f32 %v8089_v5, %v1821_v7  ;;  %8881 = vmatprep.subr.bf16.mxu1 %v9601_v53 }
 0xa0a   :  { %v1833_v56 = vadd.f32 %v8089_v5, %v1822_v34  ;;  %v38_v5 = vld [vmem:[%s12967_s6 + $0x10] sm:$0xff] }
 0xa0b   :  { %v1840_v60 = vpack.c.bf16 %v1832_v48, %v1831_v54 }
 0xa0c   :  { %v1841_v49 = vpack.c.bf16 %v1833_v56, %v1833_v56 }
 0xa0d   :  { %8853 = vmatprep.mubr.msk.bf16.mxu0 %vm201_vm2, %v1840_v60 }
 0xa0e   :  { %8854 = vmatmul.mubr.msk.bf16.gmra.mxu0 %vm201_vm2, %v1841_v49  ;;  %v10044_v49 = vld [vmem:[%s12968_s1 + $0x30] sm:$0xff] }
 0xa0f   :  { %767 = vperm.xlu1 %9555, %v44_v13   ;;  %v2205_v51 = vpack.c.bf16 %v10044_v49, %v10044_v49 }
 0xa13   :  { %757 = vperm.xlu1 %9555, %v42_v8  }
 0xa14   :  { %806 = vperm.xlu0 %9556, %v44_v13  }
 0xa17   :  { %762 = vperm.xlu1 %9555, %v43_v6  }
 0xa18   :  { %9560 = vset.pattern.permute.xlu0 %v10087_v17 }
 0xa19   :  { %737 = vperm.xlu0 %9560, %v38_v5  }
 0xa1b   :  { %9557 = vset.pattern.permute.xlu1 %v10086_v15 }
 0xa1c   :  { %798 = vperm.xlu1 %9557, %v42_v8  }
 0xa1d   :  { %9563 = vset.pattern.permute.xlu0 %v10086_v15 }
 0xa1e   :  { %786 = vperm.xlu0 %9563, %v39_v3  }
 0xa20   :  { %802 = vperm.xlu1 %9557, %v43_v6  }
 0xa24   :  { %9558 = vset.pattern.permute.xlu1 %v10087_v17 }
 0xa25   :  { %747 = vperm.xlu1 %9558, %v40_v23  }
 0xa29   :  { %752 = vperm.xlu1 %9558, %v41_v16  }
 0xa2d   :  { %9559 = vset.pattern.permute.xlu1 %v10086_v15 }
 0xa2e   :  { %790 = vperm.xlu1 %9559, %v40_v23  }
 0xa32   :  { %794 = vperm.xlu1 %9559, %v41_v16  }
 0xa36   :  { %9561 = vset.pattern.permute.xlu1 %v10087_v17 }
 0xa37   :  { %742 = vperm.xlu1 %9561, %v39_v3  }
 0xa3b   :  { %9562 = vset.pattern.permute.xlu1 %v10086_v15 }
 0xa3c   :  { %782 = vperm.xlu1 %9562, %v38_v5  }
 0xa87   :  { %v10830_v41 = vpop.xlane.xlu1 %2173 }
 0xa8b   :  { %v768_v22 = vpop.permute.xlu1 %767 }
 0xa8c   :  { %v780_v13 = vmul.f32 %v773_v37, %v768_v22 }
 0xa8f   :  { %v758_v25 = vpop.permute.xlu1 %757 }
 0xa90   :  { %v778_v5 = vmul.f32 %v773_v37, %v758_v25 }
 0xa93   :  { %v763_v28 = vpop.permute.xlu1 %762 }
 0xa94   :  { %v779_v6 = vmul.f32 %v773_v37, %v763_v28 }
 0xac4   :  { %v8851_v20 = vpop.f32.mrf.mxu0 }
 0xac5   :  { %v1914_v4 = vadd.f32 %v8851_v20, %v8090_v9  ;;  %v3204_v20 = vld [vmem:[%s12967_s6 + $0x7d] sm:$0x3] }
 0xac6   :  { %v1905_v2 = vpop.f32.mrf.mxu0 }
 0xac7   :  { %v1906_v62 = vadd.f32 %v8090_v9, %v1905_v2  ;;  %v1937_v17 = vmax.f32 %v1914_v4, 0.0 }
 0xac8   :  { %v8852_v55 = vpop.f32.mrf.mxu0 }
 0xac9   :  { %v1917_v61 = vadd.f32 %v8852_v55, %v8090_v9  ;;  %v1935_v19 = vmax.f32 %v1906_v62, 0.0  ;;  %v10852_v62 = vrot.slane %v3204_v20, %v10202_v42 }
 0xaca   :  { %v1908_v21 = vpop.f32.mrf.mxu0 }
 0xacb   :  { %v1909_v47 = vadd.f32 %v8090_v9, %v1908_v21  ;;  %v1938_v58 = vmax.f32 %v1917_v61, 0.0  ;;  %v10855_v61 = vrot.slane %v3204_v20, %v10204_v43  ;;  %v3215_v21 = vmul.f32 %v10852_v62, %v768_v22 }
 0xacd   :  { %v1936_v63 = vmax.f32 %v1909_v47, 0.0  ;;  %v1947_v15 = vpack.c.bf16 %v1938_v58, %v1937_v17  ;;  %v3213_v58 = vmul.f32 %v10852_v62, %v758_v25 }
 0xace   :  { %v8855_v36 = vpop.f32.mrf.mxu0 }
 0xacf   :  { %v1946_v12 = vpack.c.bf16 %v1936_v63, %v1935_v19  ;;  %v1930_v27 = vadd.f32 %v8855_v36, %v8090_v9  ;;  %v3214_v19 = vmul.f32 %v10852_v62, %v763_v28  ;;  %v5484_v36 = vld [vmem:[%s12967_s6 + $0x89] sm:$0x3] }
 0xad0   :  { %v1921_v52 = vpop.f32.mrf.mxu0 }
 0xad1   :  { %8861 = vmatprep.mubr.msk.bf16.mxu1 %vm201_vm2, %v1946_v12  ;;  %v1922_v29 = vadd.f32 %v8090_v9, %v1921_v52  ;;  %v1941_v34 = vmax.f32 %v1930_v27, 0.0  ;;  %v9603_v12 = vld [vmem:[%s12966_s4 + $0xd8] sm:$0xff]  }
 0xad2   :  { %8862 = vmatmul.mubr.msk.bf16.vlgmr.msra.gmra.mxu1 %vm201_vm2, %v1947_v15  ;;  %v8856_v18 = vpop.f32.mrf.mxu0  ;;  %8869 = vmatprep.subr.bf16.mxu0 %v9603_v12 }
 0xad3   :  { %8882 = vmatpush3.bf16.msra.mxu1 %v9601_v53  ;;  %v1939_v54 = vmax.f32 %v1922_v29, 0.0  ;;  %v1949_v60 = vpack.c.bf16 %v1941_v34, %v1941_v34  ;;  %8870 = vmatpush3.bf16.msra.mxu0 %v9603_v12  ;;  %v5488_v18 = vrot.slane %v5484_v36, %v10202_v42  ;;  %v5499_v29 = vrot.slane %v5484_v36, %v10204_v43 }
 0xad4   :  { %8883 = vmatprep.subr.bf16.mxu1 %v9602_v24  ;;  %v1924_v33 = vpop.f32.mrf.mxu0 }
 0xad5   :  { %v1925_v7 = vadd.f32 %v8090_v9, %v1924_v33  ;;  %v9604_v33 = vld [vmem:[%s12966_s4 + $0xd0] sm:$0xff]   ;;  %v5495_v34 = vmul.f32 %v5488_v18, %v768_v22 }
 0xad6   :  { %8871 = vmatprep.subr.bf16.mxu0 %v9604_v33 }
 0xad7   :  { %8884 = vmatpush3.bf16.msra.mxu1 %v9602_v24  ;;  %v1940_v48 = vmax.f32 %v1925_v7, 0.0  ;;  %8872 = vmatpush3.bf16.msra.mxu0 %v9604_v33 }
 0xad8   :  { %8901 = vmatprep.subr.bf16.mxu1 %v12972_v0  ;;  %8893 = vmatprep.subr.bf16.mxu0 %v12972_v0 }
 0xad9   :  { %v1948_v56 = vpack.c.bf16 %v1940_v48, %v1939_v54  ;;  %v5493_v54 = vmul.f32 %v5488_v18, %v758_v25 }
 0xadb   :  { %8865 = vmatprep.mubr.msk.bf16.mxu1 %vm201_vm2, %v1948_v56 }
 0xadc   :  { %8866 = vmatmul.mubr.msk.bf16.gmra.mxu1 %vm201_vm2, %v1949_v60 }
 0xadd   :  { %8885 = vmatprep.mubr.msk.bf16.mxu1 %vm201_vm2, %v2202_v31  ;;  %v799_v31 = vpop.permute.xlu1 %798 }
 0xade   :  { %v817_v3 = vmul.f32 %v812_v38, %v799_v31  ;;  %v3224_v63 = vmul.f32 %v10855_v61, %v799_v31  ;;  %v5504_v48 = vmul.f32 %v5499_v29, %v799_v31 }
 0xae0   :  { %v10847_v9 = vadd.f32 %v817_v3, %v778_v5  ;;  %v10871_v52 = vadd.f32 %v3224_v63, %v3213_v58  ;;  %v10887_v22 = vadd.f32 %v5504_v48, %v5493_v54 }
 0xae1   :  { %v803_v53 = vpop.permute.xlu1 %802 }
 0xae2   :  { %v818_v23 = vmul.f32 %v812_v38, %v803_v53  ;;  %v3225_v17 = vmul.f32 %v10855_v61, %v803_v53  ;;  %v5505_v43 = vmul.f32 %v5499_v29, %v803_v53  ;;  %12975 = vst [vmem:[#allocation3_spill] sm:$0xff] %v10887_v22 }
 0xae4   :  { %8886 = vmatmul.mubr.msk.bf16.vlgmr.msra.gmra.mxu1 %vm201_vm2, %v2203_v35  ;;  %v10838_v35 = vpop.xlane.xlu0 %2176  ;;  %v10849_v55 = vadd.f32 %v818_v23, %v779_v6  ;;  %v10873_v27 = vadd.f32 %v3225_v17, %v3214_v19 }
 0xae5   :  { %8889 = vmatprep.mubr.msk.bf16.mxu1 %vm201_vm2, %v2204_v44  ;;  %v748_v16 = vpop.permute.xlu1 %747 }
 0xae6   :  { %v776_v60 = vmul.f32 %v773_v37, %v748_v16  ;;  %v3211_v53 = vmul.f32 %v10852_v62, %v748_v16  ;;  %v5491_v33 = vmul.f32 %v5488_v18, %v748_v16 }
 0xae8   :  { %v807_v44 = vpop.permute.xlu0 %806 }
 0xae9   :  { %v819_v8 = vmul.f32 %v812_v38, %v807_v44  ;;  %v753_v4 = vpop.permute.xlu1 %752  ;;  %v3226_v47 = vmul.f32 %v10855_v61, %v807_v44  ;;  %v5506_v56 = vmul.f32 %v5499_v29, %v807_v44 }
 0xaea   :  { %v777_v49 = vmul.f32 %v773_v37, %v753_v4  ;;  %v3212_v58 = vmul.f32 %v10852_v62, %v753_v4 }
 0xaeb   :  { %v10845_v2 = vadd.f32 %v819_v8, %v780_v13  ;;  %v10869_v24 = vadd.f32 %v3226_v47, %v3215_v21  ;;  %v5494_v13 = vmul.f32 %v5488_v18, %v763_v28  ;;  %v10885_v23 = vadd.f32 %v5506_v56, %v5495_v34 }
 0xaec   :  { %8890 = vmatmul.mubr.msk.bf16.gmra.mxu1 %vm201_vm2, %v2205_v51  ;;  %v738_v5 = vpop.permute.xlu0 %737 }
 0xaed   :  { %8909 = vmatprep.mubr.msk.bf16.mxu1 %vm10084_vm0, %v12972_v0  ;;  %v791_v15 = vpop.permute.xlu1 %790  ;;  %12974 = vst [vmem:[#allocation2_spill] sm:$0xff] %v10885_v23  ;;  %v774_v31 = vmul.f32 %v773_v37, %v738_v5  ;;  %v10889_v44 = vadd.f32 %v5505_v43, %v5494_v13 }
 0xaee   :  { %v815_v51 = vmul.f32 %v812_v38, %v791_v15  ;;  %v3222_v19 = vmul.f32 %v10855_v61, %v791_v15  ;;  %v5502_v34 = vmul.f32 %v5499_v29, %v791_v15  ;;  %v5489_v15 = vmul.f32 %v5488_v18, %v738_v5 }
 0xaef   :  { %12976 = vst [vmem:[#allocation4_spill] sm:$0xff] %v10889_v44 }
 0xaf0   :  { %v10881_v6 = vadd.f32 %v815_v51, %v776_v60  ;;  %v787_v47 = vpop.permute.xlu0 %786  ;;  %v10899_v12 = vadd.f32 %v3222_v19, %v3211_v53  ;;  %v10903_v48 = vadd.f32 %v5502_v34, %v5491_v33  ;;  %v9605_v34 = vld [vmem:[%s12966_s4 + $0x188] sm:$0xff]  }
 0xaf1   :  { %v795_v7 = vpop.permute.xlu1 %794  ;;  %v814_v28 = vmul.f32 %v812_v38, %v787_v47  ;;  %v3221_v51 = vmul.f32 %v10855_v61, %v787_v47 }
 0xaf2   :  { %v816_v32 = vmul.f32 %v812_v38, %v795_v7  ;;  %v3223_v63 = vmul.f32 %v10855_v61, %v795_v7  ;;  %v5503_v54 = vmul.f32 %v5499_v29, %v795_v7  ;;  %v5501_v7 = vmul.f32 %v5499_v29, %v787_v47 }
 0xaf4   :  { %v10883_v3 = vadd.f32 %v816_v32, %v777_v49  ;;  %v10901_v36 = vadd.f32 %v3223_v63, %v3212_v58  ;;  %v3209_v49 = vmul.f32 %v10852_v62, %v738_v5 }
 0xaf5   :  { %v743_v42 = vpop.permute.xlu1 %742 }
 0xaf6   :  { %v775_v20 = vmul.f32 %v773_v37, %v743_v42  ;;  %v5492_v37 = vmul.f32 %v5488_v18, %v753_v4  ;;  %v3210_v56 = vmul.f32 %v10852_v62, %v743_v42  ;;  %v5490_v16 = vmul.f32 %v5488_v18, %v743_v42  ;;  %v8097_v42 = vld [vmem:[%s12967_s6 + $0x59] ss:$0 sm:$0xff] }
 0xaf8   :  { %v10897_v17 = vadd.f32 %v814_v28, %v775_v20  ;;  %v10913_v13 = vadd.f32 %v3221_v51, %v3210_v56  ;;  %v2179_v20 = vmul.f32 0.03125, %v10838_v35 }
 0xaf9   :  { %v783_v8 = vpop.permute.xlu1 %782 }
 0xafa   :  { %v813_v25 = vmul.f32 %v812_v38, %v783_v8  ;;  %v10905_v38 = vadd.f32 %v5503_v54, %v5492_v37  ;;  %v3220_v60 = vmul.f32 %v10855_v61, %v783_v8  ;;  %v5500_v4 = vmul.f32 %v5499_v29, %v783_v8 }
 0xafb   :  { %v2181_v62 = vadd.f32 1e-05, %v2179_v20 }
 0xafc   :  { %v10891_v21 = vadd.f32 %v813_v25, %v774_v31  ;;  %v10911_v32 = vadd.f32 %v3220_v60, %v3209_v49  ;;  %v10915_v43 = vadd.f32 %v5500_v4, %v5489_v15  ;;  %v10917_v25 = vadd.f32 %v5501_v7, %v5490_v16  ;;  %v9606_v16 = vld [vmem:[%s12966_s4 + $0x180] sm:$0xff]  }
 0xafd   :  { %v2178_v31 = vmul.f32 0.03125, %v10830_v41 }
 0xafe   :  { %12977 = vst [vmem:[#allocation5_spill] sm:$0xff] %v10917_v25 }
 0xaff   :  { %v2180_v28 = vadd.f32 1e-05, %v2178_v31 }
 0xb01   :  { %9756 = vrsqrt.f32 %v2180_v28 }
 0xb02   :  { %9758 = vrsqrt.f32 %v2181_v62 }
 0xb0e   :  { %v9757_v60 = vpop.eup %9756 }
 0xb0f   :  { %v9759_v4 = vpop.eup %9758  ;;  %v2184_v20 = vmul.f32 %v9757_v60, %v10748_v11 }
 0xb10   :  { %v2185_v28 = vmul.f32 %v9759_v4, %v10751_v40 }
 0xb92   :  { %v8863_v53 = vpop.f32.mrf.mxu1 }
 0xb93   :  { %v2022_v5 = vadd.f32 %v8863_v53, %v8097_v42 }
 0xb94   :  { %v2013_v61 = vpop.f32.mrf.mxu1 }
 0xb95   :  { %v2014_v29 = vadd.f32 %v8097_v42, %v2013_v61  ;;  %v2045_v35 = vmax.f32 %v2022_v5, 0.0  ;;  %v8113_v61 = vld [vmem:[%s12967_s6 + $0x73] ss:$0 sm:$0xff] }
 0xb96   :  { %v8864_v18 = vpop.f32.mrf.mxu1 }
 0xb97   :  { %v2025_v8 = vadd.f32 %v8864_v18, %v8097_v42  ;;  %v2043_v41 = vmax.f32 %v2014_v29, 0.0  ;;  %v8111_v18 = vld [vmem:[%s12967_s6 + $0x76] ss:$0 sm:$0xff] }
 0xb98   :  { %v2016_v47 = vpop.f32.mrf.mxu1  ;;  %v2191_v40 = vmul.f32 %v8111_v18, %v2185_v28 }
 0xb99   :  { %v2017_v58 = vadd.f32 %v8097_v42, %v2016_v47  ;;  %v2046_v19 = vmax.f32 %v2025_v8, 0.0  ;;  %v2190_v47 = vmul.f32 %v8111_v18, %v2184_v20 }
 0xb9b   :  { %v2044_v63 = vmax.f32 %v2017_v58, 0.0  ;;  %v2055_v54 = vpack.c.bf16 %v2046_v19, %v2045_v35  ;;  %v8112_v35 = vld [vmem:[%s12967_s6 + $0x77] ss:$0 sm:$0xff] }
 0xb9c   :  { %v8867_v37 = vpop.f32.mrf.mxu1  ;;  %v2196_v60 = vadd.f32 %v8112_v35, %v2190_v47  ;;  %v9612_v47 = vld [vmem:[%s12965_s5 + $0xc0] sm:$0xff]  }
 0xb9d   :  { %v2054_v33 = vpack.c.bf16 %v2044_v63, %v2043_v41  ;;  %v2038_v49 = vadd.f32 %v8867_v37, %v8097_v42 }
 0xb9e   :  { %v2029_v56 = vpop.f32.mrf.mxu1 }
 0xb9f   :  { %8873 = vmatprep.mubr.msk.bf16.mxu0 %vm201_vm2, %v2054_v33  ;;  %v2030_v15 = vadd.f32 %v8097_v42, %v2029_v56  ;;  %v2049_v62 = vmax.f32 %v2038_v49, 0.0  ;;  %v2197_v49 = vadd.f32 %v8112_v35, %v2191_v40  ;;  %v9613_v40 = vld [vmem:[%s12965_s5 + $0xc8] sm:$0xff]  }
 0xba0   :  { %8874 = vmatmul.mubr.msk.bf16.vlgmr.msra.gmra.mxu0 %vm201_vm2, %v2055_v54  ;;  %v8868_v51 = vpop.f32.mrf.mxu1 }
 0xba1   :  { %8894 = vmatpush3.bf16.msra.mxu0 %v9605_v34  ;;  %v2047_v29 = vmax.f32 %v2030_v15, 0.0  ;;  %v2057_v58 = vpack.c.bf16 %v2049_v62, %v2049_v62  ;;  %v2310_v28 = vpack.c.bf16 %v2197_v49, %v2196_v60 }
 0xba2   :  { %8895 = vmatprep.subr.bf16.mxu0 %v12972_v0  ;;  %v2032_v7 = vpop.f32.mrf.mxu1 }
 0xba3   :  { %v2033_v31 = vadd.f32 %v8097_v42, %v2032_v7 }
 0xba4   :  { %v8887_v53 = vpop.f32.mrf.mxu1 }
 0xba5   :  { %8896 = vmatpush3.bf16.msra.mxu0 %v9606_v16  ;;  %v2048_v8 = vmax.f32 %v2033_v31, 0.0  ;;  %v2278_v11 = vadd.f32 %v8887_v53, %v8113_v61 }
 0xba6   :  { %8937 = vmatprep.subr.bf16.mxu0 %v12972_v0  ;;  %v2269_v42 = vpop.f32.mrf.mxu1 }
 0xba7   :  { %v2056_v5 = vpack.c.bf16 %v2048_v8, %v2047_v29  ;;  %v2270_v41 = vadd.f32 %v8113_v61, %v2269_v42  ;;  %v2301_v37 = vadd.f32 %v2278_v11, %v10881_v6  ;;  %v10046_v8 = vld [vmem:[%s12965_s5 + $0xd0] sm:$0xff]   ;;  %v9609_v42 = vld [vmem:[%s12965_s5 + $0xa8] sm:$0xff]   ;;  %v9611_v11 = vld [vmem:[%s12965_s5 + $0xb8] sm:$0xff]  }
 0xba8   :  { %v8888_v19 = vpop.f32.mrf.mxu1 }
 0xba9   :  { %v2281_v63 = vadd.f32 %v8888_v19, %v8113_v61  ;;  %8877 = vmatprep.mubr.msk.bf16.mxu0 %vm201_vm2, %v2056_v5  ;;  %v2299_v51 = vadd.f32 %v2270_v41, %v10891_v21  ;;  %v10045_v21 = vld [vmem:[%s12965_s5 + $0xd8] sm:$0xff]   ;;  %v9610_v5 = vld [vmem:[%s12965_s5 + $0xb0] sm:$0xff]  }
 0xbaa   :  { %8878 = vmatmul.mubr.msk.bf16.gmra.mxu0 %vm201_vm2, %v2057_v58  ;;  %v2272_v33 = vpop.f32.mrf.mxu1  ;;  %v11017_v19 = vld [vmem:[%s12967_s6 + $0x5a] ss:$0 sm:$0xff] }
 0xbab   :  { %v2302_v34 = vadd.f32 %v2281_v63, %v10883_v3  ;;  %v2273_v54 = vadd.f32 %v8113_v61, %v2272_v33  ;;  %8897 = vmatprep.mubr.msk.bf16.mxu0 %vm10084_vm0, %v12972_v0 }
 0xbac   :  { %v8891_v56 = vpop.f32.mrf.mxu1 }
 0xbad   :  { %v2373_v16 = vpack.c.bf16 %v2302_v34, %v2301_v37  ;;  %v2300_v4 = vadd.f32 %v2273_v54, %v10897_v17  ;;  %v2294_v15 = vadd.f32 %v8891_v56, %v8113_v61 }
 0xbae   :  { %v2285_v7 = vpop.f32.mrf.mxu1 }
 0xbaf   :  { %v2372_v31 = vpack.c.bf16 %v2300_v4, %v2299_v51  ;;  %v2305_v20 = vadd.f32 %v2294_v15, %v10845_v2  ;;  %v2286_v62 = vadd.f32 %v8113_v61, %v2285_v7 }
 0xbb0   :  { %v8892_v6 = vpop.f32.mrf.mxu1 }
 0xbb1   :  { %v2375_v3 = vpack.c.bf16 %v2305_v20, %v2305_v20  ;;  %v2303_v2 = vadd.f32 %v2286_v62, %v10847_v9  ;;  %v9607_v9 = vld [vmem:[%s12965_s5 + $0x98] sm:$0xff]  }
 0xbb2   :  { %v2288_v53 = vpop.f32.mrf.mxu1  ;;  %8898 = vmatmul.mubr.msk.bf16.vlgmr.msra.gmra.mxu0 %vm201_vm2, %v2310_v28 }
 0xbb3   :  { %v2289_v18 = vadd.f32 %v8113_v61, %v2288_v53  ;;  %v2435_v29 = vsel %vm2433_vm9, %v2375_v3, 0  ;;  %8938 = vmatpush3.bf16.msra.mxu0 %v10045_v21  ;;  %8941 = vmatprep.mubr.msk.bf16.mxu0 %vm10084_vm0, %v12972_v0 }
 0xbb4   :  { %8902 = vmatpush3.bf16.msra.mxu1 %v2435_v29  ;;  %8939 = vmatprep.subr.bf16.mxu0 %v12972_v0 }
 0xbb5   :  { %v2304_v17 = vadd.f32 %v2289_v18, %v10849_v55  ;;  %8903 = vmatprep.subr.bf16.mxu1 %v12972_v0  ;;  %v9608_v55 = vld [vmem:[%s12965_s5 + $0xa0] sm:$0xff]   ;;  %v8120_v18 = vld [vmem:[%s12967_s6 + $0x74] ss:$0 sm:$0xff] }
 0xbb7   :  { %v2374_v61 = vpack.c.bf16 %v2304_v17, %v2303_v2  ;;  %8940 = vmatpush3.bf16.msra.mxu0 %v10046_v8 }
 0xbb8   :  { %8977 = vmatprep.subr.bf16.mxu0 %v12972_v0 }
 0xbb9   :  { %8904 = vmatpush3.bf16.msra.mxu1 %v2374_v61 }
 0xbba   :  { %8905 = vmatprep.subr.bf16.mxu1 %v12972_v0 }
 0xbbd   :  { %8906 = vmatpush3.bf16.msra.mxu1 %v2373_v16 }
 0xbbe   :  { %8907 = vmatprep.subr.bf16.mxu1 %v12972_v0 }
 0xbc1   :  { %8908 = vmatpush3.bf16.msra.mxu1 %v2372_v31 }
 0xbc2   :  { %8969 = vmatprep.subr.bf16.mxu1 %v12972_v0 }
 0xbc4   :  { %8910 = vmatmul.mubr.msk.bf16.vlgmr.msra.gmra.mxu1 %vm2411_vm10, %v9607_v9 }
 0xbc5   :  { %8913 = vmatprep.mubr.msk.bf16.mxu1 %vm10084_vm0, %v12972_v0 }
 0xbcc   :  { %8914 = vmatmul.mubr.msk.bf16.gmra.mxu1 %vm2411_vm10, %v9608_v55 }
 0xbcd   :  { %8917 = vmatprep.mubr.msk.bf16.mxu1 %vm10084_vm0, %v12972_v0 }
 0xbd4   :  { %8918 = vmatmul.mubr.msk.bf16.gmra.mxu1 %vm2411_vm10, %v9609_v42 }
 0xbd5   :  { %8921 = vmatprep.mubr.msk.bf16.mxu1 %vm10084_vm0, %v12972_v0 }
 0xbdc   :  { %8922 = vmatmul.mubr.msk.bf16.gmra.mxu1 %vm2411_vm10, %v9610_v5 }
 0xbdd   :  { %8925 = vmatprep.mubr.msk.bf16.mxu1 %vm10084_vm0, %v12972_v0 }
 0xbe4   :  { %8926 = vmatmul.mubr.msk.bf16.gmra.mxu1 %vm2411_vm10, %v9611_v11 }
 0xbe5   :  { %8929 = vmatprep.mubr.msk.bf16.mxu1 %vm10084_vm0, %v12972_v0 }
 0xbec   :  { %8930 = vmatmul.mubr.msk.bf16.gmra.mxu1 %vm2411_vm10, %v9612_v47 }
 0xbed   :  { %8933 = vmatprep.mubr.msk.bf16.mxu1 %vm10084_vm0, %v12972_v0 }
 0xbf4   :  { %8934 = vmatmul.mubr.msk.bf16.gmra.mxu1 %vm2411_vm10, %v9613_v40 }
 0xbf5   :  { %8973 = vmatprep.mubr.msk.bf16.mxu1 %vm10084_vm0, %v12972_v0 }
 0xc60   :  { %v8875_v58 = vpop.f32.mrf.mxu0 }
 0xc61   :  { %v2130_v63 = vadd.f32 %v8875_v58, %v11017_v19 }
 0xc62   :  { %v2121_v41 = vpop.f32.mrf.mxu0 }
 0xc63   :  { %v2122_v33 = vadd.f32 %v11017_v19, %v2121_v41  ;;  %v11023_v54 = vadd.f32 %v2130_v63, %v10643_v1 }
 0xc64   :  { %v8876_v35 = vpop.f32.mrf.mxu0 }
 0xc65   :  { %v2133_v37 = vadd.f32 %v8876_v35, %v11017_v19  ;;  %v11030_v49 = vadd.f32 %v2122_v33, %v10641_v14 }
 0xc66   :  { %v2124_v34 = vpop.f32.mrf.mxu0 }
 0xc67   :  { %v11026_v56 = vadd.f32 %v2133_v37, %v10651_v26  ;;  %v2125_v60 = vadd.f32 %v11017_v19, %v2124_v34 }
 0xc69   :  { %v11035_v16 = vadd.f32 %v2125_v60, %v10649_v30 }
 0xc6a   :  { %v11039_v15 = vpop.f32.mrf.mxu0 }
 0xc6c   :  { %v2137_v1 = vpop.f32.mrf.mxu0 }
 0xc6d   :  { %v2138_v26 = vadd.f32 %v11017_v19, %v2137_v1 }
 0xc6e   :  { %v8880_v7 = vpop.f32.mrf.mxu0 }
 0xc6f   :  { %v11044_v6 = vadd.f32 %v2138_v26, %v10661_v59 }
 0xc70   :  { %v2140_v31 = vpop.f32.mrf.mxu0 }
 0xc71   :  { %v2141_v20 = vadd.f32 %v11017_v19, %v2140_v31 }
 0xc72   :  { %v2365_v14 = vpop.f32.mrf.mxu0 }
 0xc73   :  { %v11047_v28 = vadd.f32 %v2141_v20, %v10668_v46  ;;  %v11055_v2 = vadd.f32 %v8120_v18, %v2365_v14 }
 0xc74   :  { %v8899_v30 = vpop.f32.mrf.mxu0 }
 0xc76   :  { %v2368_v62 = vpop.f32.mrf.mxu0 }
 0xc77   :  { %v11057_v59 = vadd.f32 %v8120_v18, %v2368_v62 }
 0xc78   :  { %v8900_v53 = vpop.f32.mrf.mxu0 }
 0xc84   :  { %v2471_v29 = vpop.f32.mrf.mxu1 }
 0xc85   :  { %2753 = vrot.lane.b32.xlu1 %v2471_v29, %s10090_s22  ;;  %v2526_v17 = vmul.f32 %v2471_v29, %v11055_v2 }
 0xc86   :  { %v8911_v21 = vpop.f32.mrf.mxu1 }
 0xc88   :  { %v2474_v46 = vpop.f32.mrf.mxu1 }
 0xc89   :  { %v2527_v61 = vmul.f32 %v2474_v46, %v11057_v59  ;;  %2755 = vrot.lane.b32.xlu1 %v2474_v46, %s10090_s22 }
 0xc8a   :  { %v8912_v8 = vpop.f32.mrf.mxu1 }
 0xc8b   :  { %v2540_v9 = vpack.c.bf16 %v2527_v61, %v2526_v17 }
 0xc8c   :  { %v2479_v55 = vpop.f32.mrf.mxu1 }
 0xc8d   :  { %2757 = vrot.lane.b32.xlu0 %v2479_v55, %s10090_s22  ;;  %8942 = vmatmul.mubr.msk.bf16.vlgmr.msra.gmra.mxu0 %vm201_vm2, %v2540_v9  ;;  %v2528_v11 = vmul.f32 %v2479_v55, %v11055_v2 }
 0xc8e   :  { %v8915_v42 = vpop.f32.mrf.mxu1  ;;  %8945 = vmatprep.mubr.msk.bf16.mxu0 %vm10084_vm0, %v12972_v0 }
 0xc90   :  { %v2482_v5 = vpop.f32.mrf.mxu1 }
 0xc91   :  { %v2529_v47 = vmul.f32 %v2482_v5, %v11057_v59  ;;  %2759 = vrot.lane.b32.xlu1 %v2482_v5, %s10090_s22 }
 0xc92   :  { %v8916_v40 = vpop.f32.mrf.mxu1 }
 0xc93   :  { %v2541_v58 = vpack.c.bf16 %v2529_v47, %v2528_v11 }
 0xc94   :  { %v2487_v41 = vpop.f32.mrf.mxu1 }
 0xc95   :  { %2761 = vrot.lane.b32.xlu0 %v2487_v41, %s10090_s22  ;;  %8946 = vmatmul.mubr.msk.bf16.gmra.mxu0 %vm201_vm2, %v2541_v58  ;;  %v2530_v33 = vmul.f32 %v2487_v41, %v11055_v2 }
 0xc96   :  { %v8919_v63 = vpop.f32.mrf.mxu1  ;;  %8949 = vmatprep.mubr.msk.bf16.mxu0 %vm10084_vm0, %v12972_v0 }
 0xc98   :  { %v2490_v35 = vpop.f32.mrf.mxu1 }
 0xc99   :  { %v2531_v37 = vmul.f32 %v2490_v35, %v11057_v59  ;;  %2763 = vrot.lane.b32.xlu1 %v2490_v35, %s10090_s22 }
 0xc9a   :  { %v8920_v34 = vpop.f32.mrf.mxu1 }
 0xc9b   :  { %v2542_v60 = vpack.c.bf16 %v2531_v37, %v2530_v33  ;;  %v9614_v37 = vld [vmem:[%s12966_s4 + $0x198] sm:$0xff]  }
 0xc9c   :  { %v2495_v1 = vpop.f32.mrf.mxu1  ;;  %8970 = vmatpush3.bf16.msra.mxu1 %v9614_v37 }
 0xc9d   :  { %2765 = vrot.lane.b32.xlu0 %v2495_v1, %s10090_s22  ;;  %8950 = vmatmul.mubr.msk.bf16.gmra.mxu0 %vm201_vm2, %v2542_v60  ;;  %v2532_v31 = vmul.f32 %v2495_v1, %v11055_v2 }
 0xc9e   :  { %v8923_v7 = vpop.f32.mrf.mxu1  ;;  %8953 = vmatprep.mubr.msk.bf16.mxu0 %vm10084_vm0, %v12972_v0  ;;  %8971 = vmatprep.subr.bf16.mxu1 %v12972_v0 }
 0xca0   :  { %v2498_v26 = vpop.f32.mrf.mxu1 }
 0xca1   :  { %v2533_v20 = vmul.f32 %v2498_v26, %v11057_v59  ;;  %2767 = vrot.lane.b32.xlu1 %v2498_v26, %s10090_s22 }
 0xca2   :  { %v8924_v14 = vpop.f32.mrf.mxu1 }
 0xca3   :  { %v2543_v30 = vpack.c.bf16 %v2533_v20, %v2532_v31 }
 0xca4   :  { %v2503_v62 = vpop.f32.mrf.mxu1 }
 0xca5   :  { %2769 = vrot.lane.b32.xlu0 %v2503_v62, %s10090_s22  ;;  %8954 = vmatmul.mubr.msk.bf16.gmra.mxu0 %vm201_vm2, %v2543_v30  ;;  %v2534_v29 = vmul.f32 %v2503_v62, %v11055_v2 }
 0xca6   :  { %v8927_v53 = vpop.f32.mrf.mxu1  ;;  %8957 = vmatprep.mubr.msk.bf16.mxu0 %vm10084_vm0, %v12972_v0 }
 0xca8   :  { %v2506_v18 = vpop.f32.mrf.mxu1 }
 0xca9   :  { %v2535_v21 = vmul.f32 %v2506_v18, %v11057_v59  ;;  %2771 = vrot.lane.b32.xlu1 %v2506_v18, %s10090_s22 }
 0xcaa   :  { %v8928_v46 = vpop.f32.mrf.mxu1 }
 0xcab   :  { %v2544_v17 = vpack.c.bf16 %v2535_v21, %v2534_v29 }
 0xcac   :  { %v2511_v61 = vpop.f32.mrf.mxu1 }
 0xcad   :  { %2773 = vrot.lane.b32.xlu0 %v2511_v61, %s10090_s22  ;;  %8958 = vmatmul.mubr.msk.bf16.gmra.mxu0 %vm201_vm2, %v2544_v17  ;;  %v2536_v55 = vmul.f32 %v2511_v61, %v11055_v2 }
 0xcae   :  { %v8931_v8 = vpop.f32.mrf.mxu1  ;;  %8961 = vmatprep.mubr.msk.bf16.mxu0 %vm10084_vm0, %v12972_v0 }
 0xcb0   :  { %v2514_v9 = vpop.f32.mrf.mxu1 }
 0xcb1   :  { %v2537_v42 = vmul.f32 %v2514_v9, %v11057_v59  ;;  %2775 = vrot.lane.b32.xlu1 %v2514_v9, %s10090_s22 }
 0xcb2   :  { %v8932_v5 = vpop.f32.mrf.mxu1 }
 0xcb3   :  { %v2545_v11 = vpack.c.bf16 %v2537_v42, %v2536_v55 }
 0xcb4   :  { %v2519_v47 = vpop.f32.mrf.mxu1 }
 0xcb5   :  { %2777 = vrot.lane.b32.xlu0 %v2519_v47, %s10090_s22  ;;  %8962 = vmatmul.mubr.msk.bf16.gmra.mxu0 %vm201_vm2, %v2545_v11  ;;  %v2538_v41 = vmul.f32 %v2519_v47, %v11055_v2  ;;  %v9615_v2 = vld [vmem:[%s12966_s4 + $0x190] sm:$0xff]  }
 0xcb6   :  { %v8935_v40 = vpop.f32.mrf.mxu1  ;;  %8965 = vmatprep.mubr.msk.bf16.mxu0 %vm10084_vm0, %v12972_v0  ;;  %8972 = vmatpush3.bf16.msra.mxu1 %v9615_v2 }
 0xcb7   :  { %8985 = vmatprep.subr.bf16.mxu1 %v12972_v0 }
 0xcb8   :  { %v2522_v58 = vpop.f32.mrf.mxu1 }
 0xcb9   :  { %v2539_v63 = vmul.f32 %v2522_v58, %v11057_v59  ;;  %2779 = vrot.lane.b32.xlu1 %v2522_v58, %s10090_s22 }
 0xcba   :  { %v8936_v35 = vpop.f32.mrf.mxu1 }
 0xcbb   :  { %v2546_v33 = vpack.c.bf16 %v2539_v63, %v2538_v41 }
 0xcbd   :  { %8966 = vmatmul.mubr.msk.bf16.gmra.mxu0 %vm201_vm2, %v2546_v33 }
 0xcbe   :  { %8981 = vmatprep.mubr.msk.bf16.mxu0 %vm10084_vm0, %v12972_v0 }
 0xd4d   :  { %v2602_v59 = vpop.f32.mrf.mxu0 }
 0xd4e   :  { %v2657_v11 = vmul.f32 0.35355338, %v2602_v59 }
 0xd4f   :  { %v8943_v34 = vpop.f32.mrf.mxu0 }
 0xd50   :  { %v2671_v2 = vsel %vm201_vm2, %v2657_v11, -inf }
 0xd51   :  { %v2605_v60 = vpop.f32.mrf.mxu0 }
 0xd52   :  { %v2658_v34 = vmul.f32 0.35355338, %v2605_v60 }
 0xd53   :  { %v8944_v1 = vpop.f32.mrf.mxu0 }
 0xd55   :  { %v2610_v7 = vpop.f32.mrf.mxu0 }
 0xd56   :  { %v2659_v41 = vmul.f32 0.35355338, %v2610_v7 }
 0xd57   :  { %v8947_v26 = vpop.f32.mrf.mxu0 }
 0xd58   :  { %v2672_v7 = vsel %vm201_vm2, %v2659_v41, -inf }
 0xd59   :  { %v2613_v31 = vpop.f32.mrf.mxu0 }
 0xd5b   :  { %v8948_v20 = vpop.f32.mrf.mxu0 }
 0xd5d   :  { %v2618_v14 = vpop.f32.mrf.mxu0 }
 0xd5e   :  { %v2661_v42 = vmul.f32 0.35355338, %v2618_v14 }
 0xd5f   :  { %v8951_v30 = vpop.f32.mrf.mxu0 }
 0xd60   :  { %v2673_v63 = vsel %vm201_vm2, %v2661_v42, -inf }
 0xd61   :  { %v2621_v62 = vpop.f32.mrf.mxu0  ;;  %v2674_v20 = vmax.f32 %v2671_v2, %v2673_v63 }
 0xd62   :  { %v11116_v33 = vmul.f32 0.35355338, %v2621_v62 }
 0xd63   :  { %v8952_v53 = vpop.f32.mrf.mxu0 }
 0xd64   :  { %v2660_v53 = vmul.f32 0.35355338, %v2613_v31 }
 0xd65   :  { %v2626_v18 = vpop.f32.mrf.mxu0 }
 0xd66   :  { %v2663_v47 = vmul.f32 0.35355338, %v2626_v18 }
 0xd67   :  { %v8955_v29 = vpop.f32.mrf.mxu0 }
 0xd68   :  { %v2675_v1 = vsel %vm201_vm2, %v2663_v47, -inf  ;;  %v2686_v29 = vsel %vm201_vm2, %v11116_v33, -inf }
 0xd69   :  { %v2629_v21 = vpop.f32.mrf.mxu0 }
 0xd6a   :  { %v2664_v14 = vmul.f32 0.35355338, %v2629_v21 }
 0xd6b   :  { %v8956_v46 = vpop.f32.mrf.mxu0 }
 0xd6c   :  { %v2676_v46 = vmax.f32 %v2672_v7, %v2675_v1 }
 0xd6d   :  { %v2634_v17 = vpop.f32.mrf.mxu0 }
 0xd6e   :  { %v2665_v40 = vmul.f32 0.35355338, %v2634_v17 }
 0xd6f   :  { %v8959_v61 = vpop.f32.mrf.mxu0 }
 0xd70   :  { %v2677_v26 = vsel %vm201_vm2, %v2665_v40, -inf }
 0xd71   :  { %v2637_v8 = vpop.f32.mrf.mxu0  ;;  %v2678_v60 = vmax.f32 %v2674_v20, %v2677_v26 }
 0xd72   :  { %v11121_v59 = vmul.f32 0.35355338, %v2637_v8  ;;  %v2688_v8 = vsel %vm201_vm2, %v2664_v14, -inf }
 0xd73   :  { %v8960_v9 = vpop.f32.mrf.mxu0 }
 0xd74   :  { %v2684_v9 = vsel %vm201_vm2, %v2658_v34, -inf }
 0xd75   :  { %v2642_v55 = vpop.f32.mrf.mxu0 }
 0xd76   :  { %v2667_v35 = vmul.f32 0.35355338, %v2642_v55  ;;  %v2690_v55 = vsel %vm201_vm2, %v11121_v59, -inf }
 0xd77   :  { %v8963_v5 = vpop.f32.mrf.mxu0 }
 0xd78   :  { %v2679_v18 = vsel %vm201_vm2, %v2667_v35, -inf }
 0xd79   :  { %v2645_v58 = vpop.f32.mrf.mxu0  ;;  %v2680_v31 = vmax.f32 %v2676_v46, %v2679_v18 }
 0xd7a   :  { %v2668_v17 = vmul.f32 0.35355338, %v2645_v58 }
 0xd7b   :  { %v8964_v37 = vpop.f32.mrf.mxu0 }
 0xd7c   :  { %v2687_v37 = vmax.f32 %v2684_v9, %v2686_v29  ;;  %v2692_v1 = vsel %vm201_vm2, %v2668_v17, -inf }
 0xd7d   :  { %v2650_v30 = vpop.f32.mrf.mxu0 }
 0xd7e   :  { %v2669_v62 = vmul.f32 0.35355338, %v2650_v30  ;;  %v2685_v30 = vsel %vm201_vm2, %v2660_v53, -inf  ;;  %v2691_v7 = vmax.f32 %v2687_v37, %v2690_v55 }
 0xd7f   :  { %v8967_v61 = vpop.f32.mrf.mxu0  ;;  %v2689_v20 = vmax.f32 %v2685_v30, %v2688_v8 }
 0xd80   :  { %v2681_v21 = vsel %vm201_vm2, %v2669_v62, -inf }
 0xd81   :  { %v2682_v5 = vmax.f32 %v2678_v60, %v2681_v21  ;;  %v2653_v63 = vpop.f32.mrf.mxu0  ;;  %v2693_v44 = vmax.f32 %v2689_v20, %v2692_v1 }
 0xd82   :  { %v2670_v2 = vmul.f32 0.35355338, %v2653_v63 }
 0xd83   :  { %v2683_v58 = vmax.f32 %v2682_v5, %v2680_v31  ;;  %v8968_v26 = vpop.f32.mrf.mxu0 }
 0xd84   :  { %v2694_v61 = vsel %vm201_vm2, %v2670_v2, -inf }
 0xd85   :  { %v2697_v3 = vsub.f32 %v2657_v11, %v2683_v58  ;;  %v2699_v51 = vsub.f32 %v2659_v41, %v2683_v58  ;;  %v2701_v4 = vsub.f32 %v2661_v42, %v2683_v58  ;;  %v2703_v0 = vsub.f32 %v2663_v47, %v2683_v58 }
 0xd86   :  { %v2695_v18 = vmax.f32 %v2691_v7, %v2694_v61  ;;  %v2705_v46 = vsub.f32 %v2665_v40, %v2683_v58  ;;  %v2707_v22 = vsub.f32 %v2667_v35, %v2683_v58  ;;  %v2709_v5 = vsub.f32 %v2669_v62, %v2683_v58 }
 0xd87   :  { %v2711_v60 = vmul.f32 1.442695, %v2697_v3  ;;  %v2715_v29 = vmul.f32 1.442695, %v2699_v51  ;;  %v2719_v9 = vmul.f32 1.442695, %v2701_v4 }
 0xd88   :  { %v2723_v21 = vmul.f32 1.442695, %v2703_v0  ;;  %v2696_v63 = vmax.f32 %v2695_v18, %v2693_v44  ;;  %v2727_v55 = vmul.f32 1.442695, %v2705_v46  ;;  %v2731_v40 = vmul.f32 1.442695, %v2707_v22  ;;  %v2758_v18 = vpop.permute.xlu0 %2757 }
 0xd89   :  { %9760 = vpow2.f32 %v2711_v60  ;;  %v2735_v3 = vmul.f32 1.442695, %v2709_v5 }
 0xd8a   :  { %9762 = vpow2.f32 %v2715_v29  ;;  %v2698_v31 = vsub.f32 %v2658_v34, %v2696_v63  ;;  %v2700_v8 = vsub.f32 %v2660_v53, %v2696_v63  ;;  %v2702_v11 = vsub.f32 %v11116_v33, %v2696_v63  ;;  %v2754_v33 = vpop.permute.xlu1 %2753 }
 0xd8b   :  { %9764 = vpow2.f32 %v2719_v9  ;;  %v2704_v47 = vsub.f32 %v2664_v14, %v2696_v63  ;;  %v2706_v51 = vsub.f32 %v11121_v59, %v2696_v63  ;;  %v2708_v44 = vsub.f32 %v2668_v17, %v2696_v63 }
 0xd8c   :  { %9766 = vpow2.f32 %v2723_v21  ;;  %v2713_v42 = vmul.f32 1.442695, %v2698_v31  ;;  %v2717_v41 = vmul.f32 1.442695, %v2700_v8  ;;  %v2721_v0 = vmul.f32 1.442695, %v2702_v11 }
 0xd8d   :  { %9768 = vpow2.f32 %v2727_v55  ;;  %v2725_v4 = vmul.f32 1.442695, %v2704_v47  ;;  %v2710_v35 = vsub.f32 %v2670_v2, %v2696_v63  ;;  %v2729_v34 = vmul.f32 1.442695, %v2706_v51 }
 0xd8e   :  { %9770 = vpow2.f32 %v2713_v42  ;;  %v2733_v53 = vmul.f32 1.442695, %v2708_v44  ;;  %v2756_v58 = vpop.permute.xlu1 %2755 }
 0xd8f   :  { %9772 = vpow2.f32 %v2717_v41  ;;  %v2737_v59 = vmul.f32 1.442695, %v2710_v35 }
 0xd90   :  { %9774 = vpow2.f32 %v2731_v40 }
 0xd91   :  { %9776 = vpow2.f32 %v2721_v0 }
 0xd92   :  { %9778 = vpow2.f32 %v2725_v4  ;;  %v2760_v29 = vpop.permute.xlu1 %2759  ;;  %v2762_v4 = vpop.permute.xlu0 %2761 }
 0xd93   :  { %9780 = vpow2.f32 %v2735_v3 }
 0xd94   :  { %9782 = vpow2.f32 %v2729_v34 }
 0xd95   :  { %9784 = vpow2.f32 %v2733_v53 }
 0xd96   :  { %v9761_v14 = vpop.eup %9760  ;;  %9786 = vpow2.f32 %v2737_v59 }
 0xd97   :  { %v9763_v62 = vpop.eup %9762  ;;  %v2835_v22 = vsel %vm201_vm2, %v9761_v14, 0.0  ;;  %v2795_v9 = vmul.f32 %v9761_v14, %v2754_v33  ;;  %v2764_v14 = vpop.permute.xlu1 %2763 }
 0xd98   :  { %v9765_v37 = vpop.eup %9764  ;;  %v2836_v17 = vsel %vm201_vm2, %v9763_v62, 0.0  ;;  %v2797_v21 = vmul.f32 %v9763_v62, %v2758_v18 }
 0xd99   :  { %v9767_v30 = vpop.eup %9766  ;;  %v2837_v1 = vadd.f32 %v2836_v17, %v2835_v22  ;;  %v2838_v2 = vsel %vm201_vm2, %v9765_v37, 0.0  ;;  %v2809_v40 = vsel %vm201_vm2, %v2795_v9, 0.0  ;;  %v2799_v59 = vmul.f32 %v9765_v37, %v2762_v4 }
 0xd9a   :  { %v9769_v20 = vpop.eup %9768  ;;  %v2840_v7 = vsel %vm201_vm2, %v9767_v30, 0.0  ;;  %v2810_v51 = vsel %vm201_vm2, %v2797_v21, 0.0 }
 0xd9b   :  { %v2839_v26 = vadd.f32 %v2838_v2, %v2837_v1  ;;  %v9771_v61 = vpop.eup %9770  ;;  %v2842_v31 = vsel %vm201_vm2, %v9769_v20, 0.0  ;;  %v2811_v2 = vadd.f32 %v2810_v51, %v2809_v40 }
 0xd9c   :  { %v9773_v60 = vpop.eup %9772  ;;  %v2796_v8 = vmul.f32 %v9771_v61, %v2756_v58  ;;  %v2848_v11 = vsel %vm201_vm2, %v9771_v61, 0.0  ;;  %v2766_v61 = vpop.permute.xlu0 %2765 }
 0xd9d   :  { %v2841_v46 = vadd.f32 %v2840_v7, %v2839_v26  ;;  %v9775_v63 = vpop.eup %9774  ;;  %v2798_v55 = vmul.f32 %v9773_v60, %v2760_v29  ;;  %v2849_v41 = vsel %vm201_vm2, %v9773_v60, 0.0  ;;  %v2768_v29 = vpop.permute.xlu1 %2767  ;;  %v2801_v9 = vmul.f32 %v9767_v30, %v2766_v61 }
 0xd9e   :  { %v9777_v42 = vpop.eup %9776  ;;  %v2850_v0 = vadd.f32 %v2849_v41, %v2848_v11  ;;  %v2844_v3 = vsel %vm201_vm2, %v9775_v63, 0.0  ;;  %v2822_v35 = vsel %vm201_vm2, %v2796_v8, 0.0  ;;  %v2812_v8 = vsel %vm201_vm2, %v2799_v59, 0.0 }
 0xd9f   :  { %v2843_v47 = vadd.f32 %v2842_v31, %v2841_v46  ;;  %v9779_v5 = vpop.eup %9778  ;;  %v2823_v34 = vsel %vm201_vm2, %v2798_v55, 0.0  ;;  %v2851_v33 = vsel %vm201_vm2, %v9777_v42, 0.0  ;;  %v2800_v17 = vmul.f32 %v9777_v42, %v2764_v14 }
 0xda0   :  { %v9781_v44 = vpop.eup %9780  ;;  %v2852_v22 = vadd.f32 %v2851_v33, %v2850_v0  ;;  %v2853_v1 = vsel %vm201_vm2, %v9779_v5, 0.0  ;;  %v2824_v26 = vadd.f32 %v2823_v34, %v2822_v35  ;;  %v2802_v37 = vmul.f32 %v9779_v5, %v2768_v29  ;;  %v2770_v51 = vpop.permute.xlu0 %2769 }
 0xda1   :  { %v9783_v53 = vpop.eup %9782  ;;  %v2845_v62 = vadd.f32 %v2844_v3, %v2843_v47  ;;  %v2846_v18 = vsel %vm201_vm2, %v9781_v44, 0.0  ;;  %v2825_v55 = vsel %vm201_vm2, %v2800_v17, 0.0  ;;  %v2813_v42 = vadd.f32 %v2812_v8, %v2811_v2  ;;  %v2772_v0 = vpop.permute.xlu1 %2771 }
 0xda2   :  { %v9785_v58 = vpop.eup %9784  ;;  %v2854_v7 = vadd.f32 %v2853_v1, %v2852_v22  ;;  %v2855_v46 = vsel %vm201_vm2, %v9783_v53, 0.0  ;;  %v2826_v47 = vadd.f32 %v2825_v55, %v2824_v26  ;;  %v2803_v3 = vmul.f32 %v9769_v20, %v2770_v51 }
 0xda3   :  { %v9787_v60 = vpop.eup %9786  ;;  %v2847_v21 = vadd.f32 %v2846_v18, %v2845_v62  ;;  %v2857_v11 = vsel %vm201_vm2, %v9785_v58, 0.0  ;;  %v2814_v30 = vsel %vm201_vm2, %v2801_v9, 0.0  ;;  %v2804_v35 = vmul.f32 %v9783_v53, %v2772_v0 }
 0xda4   :  { %v2856_v31 = vadd.f32 %v2855_v46, %v2854_v7  ;;  %v2859_v40 = vsel %vm201_vm2, %v9787_v60, 0.0  ;;  %v2827_v34 = vsel %vm201_vm2, %v2802_v37, 0.0  ;;  %v2815_v5 = vadd.f32 %v2814_v30, %v2813_v42  ;;  %v2774_v14 = vpop.permute.xlu0 %2773  ;;  %v3179_v30 = vld [vmem:[%s12969_s2 + $0x38] sm:$0xff] }
 0xda5   :  { %9788 = vrcp.f32 %v2847_v21  ;;  %v2828_v33 = vadd.f32 %v2827_v34, %v2826_v47  ;;  %v2776_v62 = vpop.permute.xlu1 %2775  ;;  %v2805_v22 = vmul.f32 %v9775_v63, %v2774_v14  ;;  %v2816_v59 = vsel %vm201_vm2, %v2803_v3, 0.0  ;;  %v8148_v47 = vld [vmem:[%s12967_s6 + $0x75] ss:$0 sm:$0xff] }
 0xda6   :  { %v2858_v41 = vadd.f32 %v2857_v11, %v2856_v31  ;;  %v2806_v17 = vmul.f32 %v9785_v58, %v2776_v62  ;;  %v2829_v1 = vsel %vm201_vm2, %v2804_v35, 0.0  ;;  %v2817_v2 = vadd.f32 %v2816_v59, %v2815_v5 }
 0xda7   :  { %v2830_v26 = vadd.f32 %v2829_v1, %v2828_v33  ;;  %v2818_v53 = vsel %vm201_vm2, %v2805_v22, 0.0  ;;  %v11183_v5 = vadd.f32 %v3179_v30, %v11030_v49  ;;  %v2146_v14 = vadd.f32 %v11039_v15, %v11017_v19  ;;  %v3183_v22 = vld [vmem:[%s12969_s2 + $0x58] sm:$0xff]  ;;  %v3185_v19 = vld [vmem:[%s12969_s2 + $0x68] sm:$0xff] }
 0xda8   :  { %v2860_v4 = vadd.f32 %v2859_v40, %v2858_v41  ;;  %v2778_v7 = vpop.permute.xlu0 %2777  ;;  %v2831_v46 = vsel %vm201_vm2, %v2806_v17, 0.0  ;;  %v2819_v29 = vadd.f32 %v2818_v53, %v2817_v2  ;;  %v11204_v17 = vadd.f32 %v3183_v22, %v11044_v6 }
 0xda9   :  { %v2780_v20 = vpop.permute.xlu1 %2779  ;;  %v2807_v61 = vmul.f32 %v9781_v44, %v2778_v7  ;;  %v2832_v9 = vadd.f32 %v2831_v46, %v2830_v26  ;;  %v12978_v44 = vmov 0.0   ;;  %v3236_v62 = vsel %vm201_vm2, %v11183_v5, 0.0  ;;  %v9616_v26 = vld [vmem:[%s12966_s4 + $0x1a8] sm:$0xff]  }
 0xdaa   :  { %9790 = vrcp.f32 %v2860_v4  ;;  %v2808_v18 = vmul.f32 %v9787_v60, %v2780_v20  ;;  %v11201_v59 = vadd.f32 %v2146_v14, %v10663_v39  ;;  %v3248_v2 = vsel %vm201_vm2, %v11204_v17, 0.0  ;;  %8978 = vmatpush3.bf16.msra.mxu0 %v9616_v26  ;;  %7964 = vst [vmem:[%s12971_s7 + $0x10] sm:$0xff] %v12978_v44  ;;  %7962 = vst [vmem:[%s12971_s7] sm:$0xff] %v12978_v44 }
 0xdab   :  { %v2820_v63 = vsel %vm201_vm2, %v2807_v61, 0.0  ;;  %8979 = vmatprep.subr.bf16.mxu0 %v12978_v44  ;;  %7963 = vst [vmem:[%s12971_s7 + $0x8] sm:$0xff] %v12978_v44  ;;  %7965 = vst [vmem:[%s12971_s7 + $0x18] sm:$0xff] %v12978_v44 }
 0xdac   :  { %v2833_v31 = vsel %vm201_vm2, %v2808_v18, 0.0  ;;  %v2821_v58 = vadd.f32 %v2820_v63, %v2819_v29  ;;  %v11212_v15 = vadd.f32 %v3185_v19, %v11201_v59  ;;  %v3180_v63 = vld [vmem:[%s12969_s2 + $0x40] sm:$0xff]  ;;  %7966 = vst [vmem:[%s12971_s7 + $0x20] sm:$0xff] %v12978_v44  ;;  %7967 = vst [vmem:[%s12971_s7 + $0x28] sm:$0xff] %v12978_v44 }
 0xdad   :  { %v2834_v8 = vadd.f32 %v2833_v31, %v2832_v9  ;;  %7968 = vst [vmem:[%s12971_s7 + $0x30] sm:$0xff] %v12978_v44 }
 0xdae   :  { %v3254_v39 = vsel %vm201_vm2, %v11212_v15, 0.0 }
 0xdb2   :  { %v9789_v21 = vpop.eup %9788 }
 0xdb3   :  { %v2862_v55 = vmul.f32 %v9789_v21, %v2821_v58 }
 0xdb7   :  { %v9791_v37 = vpop.eup %9790 }
 0xdb8   :  { %v2864_v11 = vmul.f32 %v9791_v37, %v2834_v8  ;;  %v11238_v8 = vadd.f32 %v3180_v63, %v11035_v16  ;;  %v3182_v37 = vld [vmem:[%s12969_s2 + $0x50] sm:$0xff] }
 0xdba   :  { %v2869_v42 = vpack.c.bf16 %v2864_v11, %v2862_v55  ;;  %v11244_v11 = vadd.f32 %v3182_v37, %v11026_v56 }
 0xdbc   :  { %8974 = vmatmul.mubr.msk.bf16.vlgmr.msra.gmra.mxu1 %vm201_vm2, %v2869_v42 }
 0xdbd   :  { %8989 = vmatprep.mubr.msk.bf16.mxu1 %vm10084_vm0, %v12978_v44 }
 0xe7c   :  { %v2919_v60 = vpop.f32.mrf.mxu1 }
 0xe7d   :  { %v2926_v41 = vadd.f32 %v2919_v60, %v10724_v57  ;;  %v3239_v60 = vsel %vm201_vm2, %v11238_v8, 0.0 }
 0xe7e   :  { %v8975_v40 = vpop.f32.mrf.mxu1 }
 0xe7f   :  { %v11172_v51 = vadd.f32 %v8148_v47, %v2926_v41 }
 0xe80   :  { %v2922_v0 = vpop.f32.mrf.mxu1 }
 0xe81   :  { %v2927_v4 = vadd.f32 %v2922_v0, %v10727_v10  ;;  %v2937_v3 = vsel %vm201_vm2, %v11172_v51, 0.0  ;;  %v3181_v10 = vld [vmem:[%s12969_s2 + $0x48] sm:$0xff] }
 0xe82   :  { %2938 = vadd.xlane.f32.xlu0 %v2937_v3  ;;  %v8976_v35 = vpop.f32.mrf.mxu1  ;;  %v11191_v33 = vadd.f32 %v3181_v10, %v11023_v54 }
 0xe83   :  { %v11180_v34 = vadd.f32 %v8148_v47, %v2927_v4  ;;  %v3184_v47 = vld [vmem:[%s12969_s2 + $0x60] sm:$0xff]  ;;  %v3245_v4 = vsel %vm201_vm2, %v11244_v11, 0.0 }
 0xe84   :  { %v3242_v1 = vsel %vm201_vm2, %v11191_v33, 0.0  ;;  %v11257_v3 = vadd.f32 %v3184_v47, %v11047_v28 }
 0xe85   :  { %v2940_v57 = vsel %vm201_vm2, %v11180_v34, 0.0 }
 0xe86   :  { %2941 = vadd.xlane.f32.xlu1 %v2940_v57  ;;  %v3251_v57 = vsel %vm201_vm2, %v11257_v3, 0.0 }
 0xe8a   :  { %3237 = vadd.xlane.f32.xlu1 %v3236_v62 }
 0xe8e   :  { %3243 = vadd.xlane.f32.xlu1 %v3242_v1 }
 0xe92   :  { %3249 = vadd.xlane.f32.xlu1 %v3248_v2 }
 0xe96   :  { %3255 = vadd.xlane.f32.xlu1 %v3254_v39 }
 0xf0b   :  { %v2939_v7 = vpop.xlane.xlu0 %2938 }
 0xf0c   :  { %v2943_v20 = vmul.f32 0.03125, %v2939_v7 }
 0xf0e   :  { %v11223_v61 = vsub.f32 %v11172_v51, %v2943_v20 }
 0xf0f   :  { %v2942_v53 = vpop.xlane.xlu1 %2941 }
 0xf10   :  { %v2944_v18 = vmul.f32 0.03125, %v2942_v53  ;;  %v2947_v46 = vmul.f32 %v11223_v61, %v11223_v61 }
 0xf12   :  { %v11228_v29 = vsub.f32 %v11180_v34, %v2944_v18  ;;  %v2949_v9 = vsel %vm201_vm2, %v2947_v46, 0.0  ;;  %v9617_v18 = vld [vmem:[%s12966_s4 + $0x1a0] sm:$0xff]  }
 0xf13   :  { %2950 = vadd.xlane.f32.xlu0 %v2949_v9  ;;  %v3238_v21 = vpop.xlane.xlu1 %3237  ;;  %8980 = vmatpush3.bf16.msra.mxu0 %v9617_v18 }
 0xf14   :  { %v2948_v31 = vmul.f32 %v11228_v29, %v11228_v29  ;;  %v3257_v42 = vmul.f32 0.03125, %v3238_v21  ;;  %8993 = vmatprep.subr.bf16.mxu0 %v12978_v44 }
 0xf16   :  { %v2952_v58 = vsel %vm201_vm2, %v2948_v31, 0.0  ;;  %v11252_v40 = vsub.f32 %v11183_v5, %v3257_v42 }
 0xf17   :  { %2953 = vadd.xlane.f32.xlu0 %v2952_v58  ;;  %v3244_v55 = vpop.xlane.xlu1 %3243 }
 0xf18   :  { %v3259_v0 = vmul.f32 0.03125, %v3244_v55  ;;  %v3271_v10 = vmul.f32 %v11252_v40, %v11252_v40 }
 0xf1a   :  { %v11260_v30 = vsub.f32 %v11191_v33, %v3259_v0  ;;  %v3278_v1 = vsel %vm201_vm2, %v3271_v10, 0.0 }
 0xf1b   :  { %3240 = vadd.xlane.f32.xlu0 %v3239_v60  ;;  %v3250_v41 = vpop.xlane.xlu1 %3249 }
 0xf1c   :  { %v3261_v35 = vmul.f32 0.03125, %v3250_v41  ;;  %v3273_v19 = vmul.f32 %v11260_v30, %v11260_v30 }
 0xf1e   :  { %v11267_v62 = vsub.f32 %v11204_v17, %v3261_v35  ;;  %v3284_v39 = vsel %vm201_vm2, %v3273_v19, 0.0 }
 0xf1f   :  { %3246 = vadd.xlane.f32.xlu0 %v3245_v4  ;;  %v3256_v14 = vpop.xlane.xlu1 %3255 }
 0xf20   :  { %v3263_v22 = vmul.f32 0.03125, %v3256_v14  ;;  %v3275_v26 = vmul.f32 %v11267_v62, %v11267_v62 }
 0xf22   :  { %v11273_v2 = vsub.f32 %v11212_v15, %v3263_v22  ;;  %v3290_v7 = vsel %vm201_vm2, %v3275_v26, 0.0 }
 0xf23   :  { %3252 = vadd.xlane.f32.xlu0 %v3251_v57 }
 0xf24   :  { %v3277_v20 = vmul.f32 %v11273_v2, %v11273_v2 }
 0xf26   :  { %v3296_v53 = vsel %vm201_vm2, %v3277_v20, 0.0 }
 0xf27   :  { %3279 = vadd.xlane.f32.xlu0 %v3278_v1 }
 0xf2b   :  { %3285 = vadd.xlane.f32.xlu0 %v3284_v39  ;;  %v8149_v39 = vld [vmem:[%s12967_s6 + $0x78] ss:$0 sm:$0xff] }
 0xf2f   :  { %3291 = vadd.xlane.f32.xlu0 %v3290_v7 }
 0xf33   :  { %3297 = vadd.xlane.f32.xlu0 %v3296_v53 }
 0xf9c   :  { %v2951_v46 = vpop.xlane.xlu0 %2950 }
 0xf9d   :  { %v2955_v9 = vmul.f32 0.03125, %v2951_v46 }
 0xf9f   :  { %v2957_v21 = vadd.f32 1e-05, %v2955_v9 }
 0xfa0   :  { %v2954_v63 = vpop.xlane.xlu0 %2953 }
 0xfa1   :  { %9792 = vrsqrt.f32 %v2957_v21  ;;  %v2956_v31 = vmul.f32 0.03125, %v2954_v63 }
 0xfa3   :  { %v2958_v58 = vadd.f32 1e-05, %v2956_v31  ;;  %v9619_v31 = vld [vmem:[%s12966_s4 + $0x1b0] sm:$0xff]  }
 0xfa4   :  { %v3241_v37 = vpop.xlane.xlu0 %3240 }
 0xfa5   :  { %9794 = vrsqrt.f32 %v2958_v58  ;;  %v3258_v55 = vmul.f32 0.03125, %v3241_v37  ;;  %v8151_v58 = vld [vmem:[%s12967_s6 + $0x7a] ss:$0 sm:$0xff] }
 0xfa7   :  { %v11287_v42 = vsub.f32 %v11238_v8, %v3258_v55 }
 0xfa8   :  { %v3247_v60 = vpop.xlane.xlu0 %3246 }
 0xfa9   :  { %v3260_v47 = vmul.f32 0.03125, %v3247_v60  ;;  %v3272_v41 = vmul.f32 %v11287_v42, %v11287_v42 }
 0xfab   :  { %v11292_v0 = vsub.f32 %v11244_v11, %v3260_v47  ;;  %v3281_v4 = vsel %vm201_vm2, %v3272_v41, 0.0 }
 0xfac   :  { %v3253_v35 = vpop.xlane.xlu0 %3252  ;;  %3282 = vadd.xlane.f32.xlu1 %v3281_v4 }
 0xfad   :  { %v3262_v57 = vmul.f32 0.03125, %v3253_v35  ;;  %v3274_v10 = vmul.f32 %v11292_v0, %v11292_v0 }
 0xfae   :  { %v9793_v14 = vpop.eup %9792 }
 0xfaf   :  { %v2961_v22 = vmul.f32 %v9793_v14, %v11223_v61  ;;  %v11299_v1 = vsub.f32 %v11257_v3, %v3262_v57  ;;  %v3287_v19 = vsel %vm201_vm2, %v3274_v10, 0.0  ;;  %v8150_v61 = vld [vmem:[%s12967_s6 + $0x79] ss:$0 sm:$0xff]  ;;  %v9620_v14 = vld [vmem:[%s12966_s4 + $0x1c8] sm:$0xff]  }
 0xfb0   :  { %3288 = vadd.xlane.f32.xlu1 %v3287_v19  ;;  %v11339_v19 = vld [vmem:[%s12966_s4 + $0xe8] sm:$0xff]  }
 0xfb1   :  { %v3276_v26 = vmul.f32 %v11299_v1, %v11299_v1  ;;  %v2967_v20 = vmul.f32 %v8149_v39, %v2961_v22  ;;  %v9621_v22 = vld [vmem:[%s12966_s4 + $0x1c0] sm:$0xff]  }
 0xfb2   :  { %v9795_v7 = vpop.eup %9794 }
 0xfb3   :  { %v2962_v53 = vmul.f32 %v9795_v7, %v11228_v29  ;;  %v3293_v18 = vsel %vm201_vm2, %v3276_v26, 0.0  ;;  %v2973_v9 = vadd.f32 %v8150_v61, %v2967_v20  ;;  %v9618_v29 = vld [vmem:[%s12966_s4 + $0x1b8] sm:$0xff]   ;;  %v3280_v26 = vpop.xlane.xlu0 %3279 }
 0xfb4   :  { %3294 = vadd.xlane.f32.xlu1 %v3293_v18  ;;  %8986 = vmatpush3.bf16.msra.mxu1 %v9618_v29  ;;  %v3299_v18 = vmul.f32 0.03125, %v3280_v26 }
 0xfb5   :  { %v2968_v46 = vmul.f32 %v8149_v39, %v2962_v53  ;;  %8987 = vmatprep.subr.bf16.mxu1 %v12978_v44 }
 0xfb7   :  { %v2974_v21 = vadd.f32 %v8150_v61, %v2968_v46  ;;  %v3286_v20 = vpop.xlane.xlu0 %3285 }
 0xfb8   :  { %8988 = vmatpush3.bf16.msra.mxu1 %v9619_v31  ;;  %v3301_v31 = vmul.f32 0.03125, %v3286_v20 }
 0xfb9   :  { %v2979_v63 = vpack.c.bf16 %v2974_v21, %v2973_v9  ;;  %9001 = vmatprep.subr.bf16.mxu1 %v12978_v44  ;;  %v3306_v9 = vadd.f32 1e-05, %v3299_v18 }
 0xfbb   :  { %8982 = vmatmul.mubr.msk.bf16.vlgmr.msra.gmra.mxu0 %vm201_vm2, %v2979_v63  ;;  %v3292_v21 = vpop.xlane.xlu0 %3291 }
 0xfbc   :  { %8997 = vmatprep.mubr.msk.bf16.mxu0 %vm10084_vm0, %v12978_v44  ;;  %8994 = vmatpush3.bf16.msra.mxu0 %v9620_v14 }
 0xfbd   :  { %8995 = vmatprep.subr.bf16.mxu0 %v12978_v44 }
 0xfc0   :  { %8996 = vmatpush3.bf16.msra.mxu0 %v9621_v22  ;;  %v8155_v22 = vld [vmem:[%s12967_s6 + $0x7b] ss:$0 sm:$0xff] }
 0xfc1   :  { %9009 = vmatprep.subr.bf16.mxu0 %v11339_v19 }
0x1035   :  { %v3283_v39 = vpop.xlane.xlu1 %3282 }
0x1036   :  { %v3300_v53 = vmul.f32 0.03125, %v3283_v39 }
0x1038   :  { %v3307_v61 = vadd.f32 1e-05, %v3300_v53 }
0x1039   :  { %v3289_v7 = vpop.xlane.xlu1 %3288 }
0x103a   :  { %v3302_v63 = vmul.f32 0.03125, %v3289_v7  ;;  %9796 = vrsqrt.f32 %v3307_v61  ;;  %v8164_v7 = vld [vmem:[%s12967_s6 + $0x5f] ss:$0 sm:$0xff] }
0x103b   :  { %9798 = vrsqrt.f32 %v3306_v9 }
0x103d   :  { %v3295_v46 = vpop.xlane.xlu1 %3294 }
0x103e   :  { %v3304_v29 = vmul.f32 0.03125, %v3295_v46 }
0x107b   :  { %v3034_v37 = vpop.f32.mrf.mxu0 }
0x107c   :  { %v3035_v60 = vadd.f32 %v8151_v58, %v3034_v37  ;;  %v3309_v37 = vadd.f32 1e-05, %v3302_v63 }
0x107d   :  { %v8983_v55 = vpop.f32.mrf.mxu0 }
0x107e   :  { %v3041_v35 = vmax.f32 %v3035_v60, 0.0  ;;  %v3298_v55 = vpop.xlane.xlu0 %3297  ;;  %v3311_v60 = vadd.f32 1e-05, %v3304_v29  ;;  %9800 = vrsqrt.f32 %v3309_v37 }
0x107f   :  { %v3037_v47 = vpop.f32.mrf.mxu0 }
0x1080   :  { %v3038_v41 = vadd.f32 %v8151_v58, %v3037_v47  ;;  %v3303_v58 = vmul.f32 0.03125, %v3292_v21  ;;  %v3308_v47 = vadd.f32 1e-05, %v3301_v31  ;;  %9802 = vrsqrt.f32 %v3311_v60 }
0x1081   :  { %v8984_v4 = vpop.f32.mrf.mxu0 }
0x1082   :  { %v3042_v57 = vmax.f32 %v3038_v41, 0.0  ;;  %v3310_v41 = vadd.f32 1e-05, %v3303_v58  ;;  %v3305_v4 = vmul.f32 0.03125, %v3298_v55  ;;  %9804 = vrsqrt.f32 %v3308_v47 }
0x1084   :  { %v3047_v10 = vpack.c.bf16 %v3042_v57, %v3041_v35  ;;  %9806 = vrsqrt.f32 %v3310_v41  ;;  %v3312_v35 = vadd.f32 1e-05, %v3305_v4  ;;  %v9797_v57 = vpop.eup %9796 }
0x1085   :  { %v3321_v14 = vmul.f32 %v9797_v57, %v11287_v42 }
0x1086   :  { %8990 = vmatmul.mubr.msk.bf16.vlgmr.msra.gmra.mxu1 %vm201_vm2, %v3047_v10  ;;  %v9799_v10 = vpop.eup %9798  ;;  %9808 = vrsqrt.f32 %v3312_v35 }
0x1087   :  { %9005 = vmatprep.mubr.msk.bf16.mxu1 %vm10084_vm0, %v12978_v44  ;;  %v3320_v26 = vmul.f32 %v9799_v10, %v11252_v40  ;;  %v3332_v18 = vmul.f32 %v8164_v7, %v3321_v14  ;;  %v8165_v40 = vld [vmem:[%s12967_s6 + $0x60] ss:$0 sm:$0xff] }
0x1089   :  { %v3331_v63 = vmul.f32 %v8164_v7, %v3320_v26  ;;  %v3343_v37 = vadd.f32 %v8165_v40, %v3332_v18 }
0x108b   :  { %v9801_v20 = vpop.eup %9800  ;;  %v3342_v4 = vadd.f32 %v8165_v40, %v3331_v63  ;;  %v9624_v63 = vld [vmem:[%s12965_s5 + $0x18] sm:$0xff]  }
0x108c   :  { %v3323_v29 = vmul.f32 %v9801_v20, %v11292_v0  ;;  %v9623_v0 = vld [vmem:[%s12966_s4 + $0xe0] sm:$0xff]   ;;  %9002 = vmatpush3.bf16.msra.mxu1 %v9624_v63  ;;  %v10052_v63 = vld [vmem:[%s12965_s5 + $0x78] sm:$0xff]  }
0x108d   :  { %v9803_v61 = vpop.eup %9802  ;;  %9003 = vmatprep.subr.bf16.mxu1 %v12978_v44 }
0x108e   :  { %v3325_v55 = vmul.f32 %v9803_v61, %v11299_v1  ;;  %v3334_v10 = vmul.f32 %v8164_v7, %v3323_v29  ;;  %v8159_v29 = vld [vmem:[%s12967_s6 + $0x7c] ss:$0 sm:$0xff] }
0x108f   :  { %v9805_v9 = vpop.eup %9804 }
0x1090   :  { %v3322_v60 = vmul.f32 %v9805_v9, %v11260_v30  ;;  %v3345_v1 = vadd.f32 %v8165_v40, %v3334_v10 }
0x1091   :  { %v9807_v42 = vpop.eup %9806 }
0x1092   :  { %v3324_v35 = vmul.f32 %v9807_v42, %v11267_v62  ;;  %v3333_v26 = vmul.f32 %v8164_v7, %v3322_v60  ;;  %v9625_v42 = vld [vmem:[%s12965_s5 + $0x10] sm:$0xff]  }
0x1093   :  { %v9809_v14 = vpop.eup %9808  ;;  %9004 = vmatpush3.bf16.msra.mxu1 %v9625_v42  ;;  %v10053_v42 = vld [vmem:[%s12965_s5 + $0x80] sm:$0xff]  }
0x1094   :  { %v3335_v30 = vmul.f32 %v8164_v7, %v3324_v35  ;;  %v3326_v62 = vmul.f32 %v9809_v14, %v11273_v2  ;;  %v10048_v2 = vld [vmem:[%s12965_s5 + $0xd0] sm:$0xff]   ;;  %9021 = vmatprep.subr.bf16.mxu1 %v12978_v44 }
0x1096   :  { %v3346_v18 = vadd.f32 %v8165_v40, %v3335_v30 }
0x1146   :  { %v3102_v39 = vpop.f32.mrf.mxu1 }
0x1147   :  { %v3103_v46 = vadd.f32 %v8155_v22, %v3102_v39  ;;  %v3336_v39 = vmul.f32 %v8164_v7, %v3325_v55 }
0x1148   :  { %v8991_v53 = vpop.f32.mrf.mxu1 }
0x1149   :  { %v3109_v47 = vmax.f32 %v3103_v46, 0.0  ;;  %v3347_v20 = vadd.f32 %v8165_v40, %v3336_v39  ;;  %v3344_v53 = vadd.f32 %v8165_v40, %v3333_v26  ;;  %v3337_v46 = vmul.f32 %v8164_v7, %v3326_v62  ;;  %v8163_v26 = vld [vmem:[%s12967_s6 + $0x5b] ss:$0 sm:$0xff] }
0x114a   :  { %v3105_v21 = vpop.f32.mrf.mxu1 }
0x114b   :  { %v3106_v31 = vadd.f32 %v8155_v22, %v3105_v21  ;;  %v3421_v22 = vpack.c.bf16 %v3343_v37, %v3342_v4  ;;  %v3422_v61 = vpack.c.bf16 %v3345_v1, %v3344_v53  ;;  %v3423_v9 = vpack.c.bf16 %v3347_v20, %v3346_v18 }
0x114c   :  { %v8992_v58 = vpop.f32.mrf.mxu1  ;;  %v3348_v21 = vadd.f32 %v8165_v40, %v3337_v46  ;;  %v3202_v20 = vmul.f32 %v8163_v26, %v10216_v50  ;;  %v3203_v53 = vmul.f32 %v8163_v26, %v10209_v45 }
0x114d   :  { %v3110_v41 = vmax.f32 %v3106_v31, 0.0 }
0x114e   :  { %v3424_v7 = vpack.c.bf16 %v3348_v21, %v3348_v21  ;;  %v10049_v21 = vld [vmem:[%s12965_s5 + $0x60] sm:$0xff]  }
0x114f   :  { %v3115_v57 = vpack.c.bf16 %v3110_v41, %v3109_v47 }
0x1151   :  { %8998 = vmatmul.mubr.msk.bf16.vlgmr.msra.gmra.mxu0 %vm201_vm2, %v3115_v57 }
0x1152   :  { %9010 = vmatpush3.bf16.msra.mxu0 %v11339_v19  ;;  %9013 = vmatprep.mubr.msk.bf16.mxu0 %vm201_vm2, %v3421_v22  ;;  %v10047_v19 = vld [vmem:[%s12965_s5 + $0xd8] sm:$0xff]  }
0x1153   :  { %9011 = vmatprep.subr.bf16.mxu0 %v9623_v0 }
0x1156   :  { %9012 = vmatpush3.bf16.msra.mxu0 %v9623_v0 }
0x1157   :  { %9051 = vmatprep.subr.bf16.mxu0 %v12978_v44 }
0x1159   :  { %9014 = vmatmul.mubr.msk.bf16.vlgmr.msra.gmra.mxu0 %vm201_vm2, %v3422_v61 }
0x115a   :  { %9017 = vmatprep.mubr.msk.bf16.mxu0 %vm201_vm2, %v3423_v9  ;;  %9052 = vmatpush3.bf16.msra.mxu0 %v10047_v19 }
0x115b   :  { %9053 = vmatprep.subr.bf16.mxu0 %v12978_v44 }
0x115e   :  { %9054 = vmatpush3.bf16.msra.mxu0 %v10048_v2  ;;  %v10050_v2 = vld [vmem:[%s12965_s5 + $0x68] sm:$0xff]  }
0x1161   :  { %9018 = vmatmul.mubr.msk.bf16.gmra.mxu0 %vm201_vm2, %v3424_v7  ;;  %v10051_v7 = vld [vmem:[%s12965_s5 + $0x70] sm:$0xff]  }
0x1162   :  { %9055 = vmatprep.mubr.msk.bf16.mxu0 %vm10084_vm0, %v12978_v44 }
0x1211   :  { %v3170_v31 = vpop.f32.mrf.mxu0 }
0x1212   :  { %v3171_v58 = vadd.f32 %v8159_v29, %v3170_v31  ;;  %v10055_v31 = vld [vmem:[%s12965_s5 + $0x90] sm:$0xff]  }
0x1213   :  { %v8999_v40 = vpop.f32.mrf.mxu0 }
0x1214   :  { %v11389_v47 = vadd.f32 %v3171_v58, %v11172_v51  ;;  %v8170_v58 = vld [vmem:[%s12967_s6 + $0x5d] ss:$0 sm:$0xff] }
0x1215   :  { %v3173_v37 = vpop.f32.mrf.mxu0 }
0x1216   :  { %v3174_v55 = vadd.f32 %v8159_v29, %v3173_v37  ;;  %v10054_v29 = vld [vmem:[%s12965_s5 + $0x88] sm:$0xff]  }
0x1217   :  { %v9000_v60 = vpop.f32.mrf.mxu0 }
0x1218   :  { %v11392_v41 = vadd.f32 %v3174_v55, %v11180_v34  ;;  %v8166_v34 = vld [vmem:[%s12967_s6 + $0x5c] ss:$0 sm:$0xff] }
0x1219   :  { %v9015_v4 = vpop.f32.mrf.mxu0 }
0x121a   :  { %v3353_v35 = vpack.c.bf16 %v11392_v41, %v11389_v47 }
0x121b   :  { %v3488_v57 = vpop.f32.mrf.mxu0 }
0x121c   :  { %9006 = vmatmul.mubr.msk.bf16.vlgmr.msra.gmra.mxu1 %vm201_vm2, %v3353_v35  ;;  %v3489_v55 = vadd.f32 %v8170_v58, %v3488_v57 }
0x121d   :  { %v9016_v0 = vpop.f32.mrf.mxu0  ;;  %9023 = vmatprep.mubr.msk.bf16.mxu1 %vm10084_vm0, %v12978_v44 }
0x121f   :  { %v3491_v10 = vpop.f32.mrf.mxu0 }
0x1220   :  { %v3492_v60 = vadd.f32 %v8170_v58, %v3491_v10 }
0x1221   :  { %v11399_v14 = vpop.f32.mrf.mxu0 }
0x1223   :  { %v11401_v22 = vpop.f32.mrf.mxu0 }
0x1225   :  { %v9020_v51 = vpop.f32.mrf.mxu0 }
0x12dc   :  { %v3408_v39 = vpop.f32.mrf.mxu1 }
0x12dd   :  { %v3409_v1 = vadd.f32 %v8166_v34, %v3408_v39 }
0x12de   :  { %v9007_v30 = vpop.f32.mrf.mxu1 }
0x12df   :  { %v3415_v46 = vadd.f32 %v3409_v1, %v3202_v20  ;;  %v3500_v20 = vadd.f32 %v9016_v0, %v8170_v58 }
0x12e0   :  { %v3411_v62 = vpop.f32.mrf.mxu1 }
0x12e1   :  { %v3412_v18 = vadd.f32 %v8166_v34, %v3411_v62  ;;  %v3497_v62 = vadd.f32 %v9015_v4, %v8170_v58  ;;  %v3505_v4 = vadd.f32 %v8170_v58, %v11401_v22 }
0x12e2   :  { %v9008_v61 = vpop.f32.mrf.mxu1 }
0x12e3   :  { %v3416_v9 = vadd.f32 %v3412_v18, %v3203_v53 }
0x12e5   :  { %v3518_v19 = vpack.c.bf16 %v3416_v9, %v3415_v46  ;;  %v3507_v46 = vpop.f32.mrf.mxu0 }
0x12e6   :  { %v3508_v0 = vadd.f32 %v8170_v58, %v3507_v46 }
0x12e7   :  { %9022 = vmatpush3.bf16.msra.mxu1 %v3518_v19 }
0x12ea   :  { %9024 = vmatmul.mubr.msk.bf16.vlgmr.msra.gmra.mxu1 %vm91_vm1, %v10049_v21 }
0x12eb   :  { %9027 = vmatprep.mubr.msk.bf16.mxu1 %vm10084_vm0, %v12978_v44 }
0x12f2   :  { %9028 = vmatmul.mubr.msk.bf16.gmra.mxu1 %vm91_vm1, %v10050_v2 }
0x12f3   :  { %9031 = vmatprep.mubr.msk.bf16.mxu1 %vm10084_vm0, %v12978_v44 }
0x12fa   :  { %9032 = vmatmul.mubr.msk.bf16.gmra.mxu1 %vm91_vm1, %v10051_v7 }
0x12fb   :  { %9035 = vmatprep.mubr.msk.bf16.mxu1 %vm10084_vm0, %v12978_v44 }
0x1302   :  { %9036 = vmatmul.mubr.msk.bf16.gmra.mxu1 %vm91_vm1, %v10052_v63 }
0x1303   :  { %9039 = vmatprep.mubr.msk.bf16.mxu1 %vm10084_vm0, %v12978_v44 }
0x130a   :  { %9040 = vmatmul.mubr.msk.bf16.gmra.mxu1 %vm91_vm1, %v10053_v42 }
0x130b   :  { %9043 = vmatprep.mubr.msk.bf16.mxu1 %vm10084_vm0, %v12978_v44 }
0x1312   :  { %9044 = vmatmul.mubr.msk.bf16.gmra.mxu1 %vm91_vm1, %v10054_v29 }
0x1313   :  { %9047 = vmatprep.mubr.msk.bf16.mxu1 %vm10084_vm0, %v12978_v44 }
0x131a   :  { %9048 = vmatmul.mubr.msk.bf16.gmra.mxu1 %vm91_vm1, %v10055_v31 }
0x13aa   :  { %v3553_v40 = vpop.f32.mrf.mxu1 }
0x13ab   :  { %3830 = vrot.lane.b32.xlu1 %v3553_v40, %s10090_s22  ;;  %v3608_v51 = vmul.f32 %v3553_v40, %v3489_v55  ;;  %v3513_v40 = vadd.f32 %v11399_v14, %v8170_v58 }
0x13ac   :  { %v9025_v37 = vpop.f32.mrf.mxu1 }
0x13ae   :  { %v3556_v35 = vpop.f32.mrf.mxu1 }
0x13af   :  { %v3609_v34 = vmul.f32 %v3556_v35, %v3492_v60  ;;  %3832 = vrot.lane.b32.xlu0 %v3556_v35, %s10090_s22 }
0x13b0   :  { %v9026_v39 = vpop.f32.mrf.mxu1 }
0x13b1   :  { %v3622_v26 = vpack.c.bf16 %v3609_v34, %v3608_v51 }
0x13b2   :  { %v3561_v30 = vpop.f32.mrf.mxu1 }
0x13b3   :  { %3834 = vrot.lane.b32.xlu0 %v3561_v30, %s10090_s22  ;;  %9056 = vmatmul.mubr.msk.bf16.vlgmr.msra.gmra.mxu0 %vm201_vm2, %v3622_v26  ;;  %v3610_v10 = vmul.f32 %v3561_v30, %v3497_v62 }
0x13b4   :  { %v9029_v1 = vpop.f32.mrf.mxu1  ;;  %9059 = vmatprep.mubr.msk.bf16.mxu0 %vm10084_vm0, %v12978_v44 }
0x13b6   :  { %v3564_v57 = vpop.f32.mrf.mxu1 }
0x13b7   :  { %v3611_v53 = vmul.f32 %v3564_v57, %v3500_v20  ;;  %3836 = vrot.lane.b32.xlu1 %v3564_v57, %s10090_s22 }
0x13b8   :  { %v9030_v18 = vpop.f32.mrf.mxu1 }
0x13b9   :  { %v3623_v61 = vpack.c.bf16 %v3611_v53, %v3610_v10 }
0x13ba   :  { %v3569_v9 = vpop.f32.mrf.mxu1 }
0x13bb   :  { %3838 = vrot.lane.b32.xlu0 %v3569_v9, %s10090_s22  ;;  %9060 = vmatmul.mubr.msk.bf16.gmra.mxu0 %vm201_vm2, %v3623_v61  ;;  %v3612_v2 = vmul.f32 %v3569_v9, %v3505_v4 }
0x13bc   :  { %v9033_v19 = vpop.f32.mrf.mxu1  ;;  %9063 = vmatprep.mubr.msk.bf16.mxu0 %vm10084_vm0, %v12978_v44 }
0x13be   :  { %v3572_v21 = vpop.f32.mrf.mxu1 }
0x13bf   :  { %v3613_v7 = vmul.f32 %v3572_v21, %v3508_v0  ;;  %3840 = vrot.lane.b32.xlu1 %v3572_v21, %s10090_s22 }
0x13c0   :  { %v9034_v63 = vpop.f32.mrf.mxu1 }
0x13c1   :  { %v3624_v42 = vpack.c.bf16 %v3613_v7, %v3612_v2  ;;  %v9626_v7 = vld [vmem:[%s12966_s4 + $0xf8] sm:$0xff]   ;;  %v9627_v63 = vld [vmem:[%s12966_s4 + $0xf0] sm:$0xff]  }
0x13c2   :  { %v3577_v29 = vpop.f32.mrf.mxu1  ;;  %9083 = vmatprep.subr.bf16.mxu1 %v9626_v7 }
0x13c3   :  { %9064 = vmatmul.mubr.msk.bf16.gmra.mxu0 %vm201_vm2, %v3624_v42  ;;  %v3614_v35 = vmul.f32 %v3577_v29, %v3513_v40  ;;  %9084 = vmatpush3.bf16.msra.mxu1 %v9626_v7 }
0x13c4   :  { %v9037_v31 = vpop.f32.mrf.mxu1  ;;  %9067 = vmatprep.mubr.msk.bf16.mxu0 %vm10084_vm0, %v12978_v44  ;;  %9085 = vmatprep.subr.bf16.mxu1 %v9627_v63 }
0x13c6   :  { %v3580_v37 = vpop.f32.mrf.mxu1 }
0x13c7   :  { %v3615_v22 = vmul.f32 %v3580_v37, %v3489_v55  ;;  %3844 = vrot.lane.b32.xlu1 %v3580_v37, %s10090_s22  ;;  %9086 = vmatpush3.bf16.msra.mxu1 %v9627_v63 }
0x13c8   :  { %v9038_v51 = vpop.f32.mrf.mxu1 }
0x13c9   :  { %v3625_v34 = vpack.c.bf16 %v3615_v22, %v3614_v35 }
0x13ca   :  { %v3585_v39 = vpop.f32.mrf.mxu1 }
0x13cb   :  { %3846 = vrot.lane.b32.xlu1 %v3585_v39, %s10090_s22  ;;  %9068 = vmatmul.mubr.msk.bf16.gmra.mxu0 %vm201_vm2, %v3625_v34  ;;  %v3616_v1 = vmul.f32 %v3585_v39, %v3492_v60 }
0x13cc   :  { %v9041_v26 = vpop.f32.mrf.mxu1  ;;  %9071 = vmatprep.mubr.msk.bf16.mxu0 %vm10084_vm0, %v12978_v44 }
0x13ce   :  { %v3588_v30 = vpop.f32.mrf.mxu1 }
0x13cf   :  { %v3617_v57 = vmul.f32 %v3588_v30, %v3497_v62  ;;  %3848 = vrot.lane.b32.xlu0 %v3588_v30, %s10090_s22 }
0x13d0   :  { %v9042_v14 = vpop.f32.mrf.mxu1 }
0x13d1   :  { %v3626_v58 = vpack.c.bf16 %v3617_v57, %v3616_v1 }
0x13d2   :  { %v3593_v55 = vpop.f32.mrf.mxu1 }
0x13d3   :  { %3850 = vrot.lane.b32.xlu1 %v3593_v55, %s10090_s22  ;;  %9072 = vmatmul.mubr.msk.bf16.gmra.mxu0 %vm201_vm2, %v3626_v58  ;;  %v3618_v18 = vmul.f32 %v3593_v55, %v3500_v20 }
0x13d4   :  { %v9045_v10 = vpop.f32.mrf.mxu1  ;;  %9075 = vmatprep.mubr.msk.bf16.mxu0 %vm10084_vm0, %v12978_v44 }
0x13d6   :  { %v3596_v53 = vpop.f32.mrf.mxu1 }
0x13d7   :  { %v3619_v61 = vmul.f32 %v3596_v53, %v3505_v4  ;;  %3852 = vrot.lane.b32.xlu0 %v3596_v53, %s10090_s22 }
0x13d8   :  { %v9046_v60 = vpop.f32.mrf.mxu1 }
0x13d9   :  { %v3627_v62 = vpack.c.bf16 %v3619_v61, %v3618_v18 }
0x13da   :  { %v3601_v46 = vpop.f32.mrf.mxu1 }
0x13db   :  { %3854 = vrot.lane.b32.xlu1 %v3601_v46, %s10090_s22  ;;  %3842 = vrot.lane.b32.xlu0 %v3577_v29, %s10090_s22  ;;  %v3620_v21 = vmul.f32 %v3601_v46, %v3508_v0 }
0x13dc   :  { %9076 = vmatmul.mubr.msk.bf16.gmra.mxu0 %vm201_vm2, %v3627_v62  ;;  %v9049_v9 = vpop.f32.mrf.mxu1 }
0x13dd   :  { %9079 = vmatprep.mubr.msk.bf16.mxu0 %vm10084_vm0, %v12978_v44 }
0x13de   :  { %v3604_v19 = vpop.f32.mrf.mxu1 }
0x13df   :  { %v3621_v2 = vmul.f32 %v3604_v19, %v3513_v40  ;;  %3856 = vrot.lane.b32.xlu1 %v3604_v19, %s10090_s22 }
0x13e0   :  { %v9050_v20 = vpop.f32.mrf.mxu1 }
0x13e1   :  { %v3628_v4 = vpack.c.bf16 %v3621_v2, %v3620_v21 }
0x13e4   :  { %9080 = vmatmul.mubr.msk.bf16.gmra.mxu0 %vm201_vm2, %v3628_v4 }
0x1473   :  { %v3684_v0 = vpop.f32.mrf.mxu0 }
0x1474   :  { %v3739_v57 = vmul.f32 0.35355338, %v3684_v0 }
0x1475   :  { %v9057_v42 = vpop.f32.mrf.mxu0 }
0x1476   :  { %v3753_v10 = vsel %vm201_vm2, %v3739_v57, -inf }
0x1477   :  { %v3687_v29 = vpop.f32.mrf.mxu0 }
0x1478   :  { %v3740_v53 = vmul.f32 0.35355338, %v3687_v29 }
0x1479   :  { %v9058_v31 = vpop.f32.mrf.mxu0 }
0x147a   :  { %v3756_v21 = vsel %vm201_vm2, %v3740_v53, -inf }
0x147b   :  { %v3692_v40 = vpop.f32.mrf.mxu0 }
0x147c   :  { %v3741_v2 = vmul.f32 0.35355338, %v3692_v40 }
0x147d   :  { %v9061_v37 = vpop.f32.mrf.mxu0 }
0x147f   :  { %v3695_v35 = vpop.f32.mrf.mxu0 }
0x1481   :  { %v9062_v22 = vpop.f32.mrf.mxu0 }
0x1482   :  { %v3759_v22 = vsel %vm201_vm2, %v3741_v2, -inf }
0x1483   :  { %v3700_v51 = vpop.f32.mrf.mxu0 }
0x1485   :  { %v9065_v34 = vpop.f32.mrf.mxu0 }
0x1487   :  { %v3703_v39 = vpop.f32.mrf.mxu0 }
0x1489   :  { %v9066_v26 = vpop.f32.mrf.mxu0 }
0x148a   :  { %v3742_v26 = vmul.f32 0.35355338, %v3695_v35  ;;  %v11505_v35 = vpop.permute.xlu1 %3830 }
0x148b   :  { %v11495_v30 = vpop.f32.mrf.mxu0 }
0x148d   :  { %v9069_v1 = vpop.f32.mrf.mxu0 }
0x148f   :  { %v3711_v14 = vpop.f32.mrf.mxu0 }
0x1490   :  { %v3746_v58 = vmul.f32 0.35355338, %v3711_v14 }
0x1491   :  { %v9070_v55 = vpop.f32.mrf.mxu0 }
0x1492   :  { %v3754_v18 = vsel %vm201_vm2, %v3746_v58, -inf }
0x1493   :  { %v3755_v61 = vmax.f32 %v3753_v10, %v3754_v18  ;;  %v3716_v60 = vpop.f32.mrf.mxu0  ;;  %v3743_v18 = vmul.f32 0.35355338, %v3700_v51 }
0x1494   :  { %v3747_v62 = vmul.f32 0.35355338, %v3716_v60 }
0x1495   :  { %v3774_v46 = vsub.f32 %v3739_v57, %v3755_v61  ;;  %v3781_v9 = vsub.f32 %v3746_v58, %v3755_v61  ;;  %v9073_v19 = vpop.f32.mrf.mxu0  ;;  %v3765_v51 = vsel %vm201_vm2, %v3743_v18, -inf }
0x1496   :  { %v3757_v20 = vsel %vm201_vm2, %v3747_v62, -inf }
0x1497   :  { %v3788_v4 = vmul.f32 1.442695, %v3774_v46  ;;  %v3802_v7 = vmul.f32 1.442695, %v3781_v9  ;;  %v3758_v63 = vmax.f32 %v3756_v21, %v3757_v20  ;;  %v3719_v0 = vpop.f32.mrf.mxu0  ;;  %v3744_v20 = vmul.f32 0.35355338, %v3703_v39 }
0x1498   :  { %v3748_v42 = vmul.f32 0.35355338, %v3719_v0 }
0x1499   :  { %9810 = vpow2.f32 %v3788_v4  ;;  %v3775_v29 = vsub.f32 %v3740_v53, %v3758_v63  ;;  %v3782_v31 = vsub.f32 %v3747_v62, %v3758_v63  ;;  %v9074_v37 = vpop.f32.mrf.mxu0  ;;  %v3762_v53 = vsel %vm201_vm2, %v3742_v26, -inf }
0x149a   :  { %9812 = vpow2.f32 %v3802_v7  ;;  %v3760_v34 = vsel %vm201_vm2, %v3748_v42, -inf  ;;  %v11509_v37 = vpop.permute.xlu1 %3836 }
0x149b   :  { %v3790_v1 = vmul.f32 1.442695, %v3775_v29  ;;  %v3804_v57 = vmul.f32 1.442695, %v3782_v31  ;;  %v3761_v40 = vmax.f32 %v3759_v22, %v3760_v34 }
0x149c   :  { %v3724_v14 = vpop.f32.mrf.mxu0 }
0x149d   :  { %9814 = vpow2.f32 %v3790_v1  ;;  %v3776_v58 = vsub.f32 %v3741_v2, %v3761_v40  ;;  %v3783_v55 = vsub.f32 %v3748_v42, %v3761_v40  ;;  %v3749_v10 = vmul.f32 0.35355338, %v3724_v14 }
0x149e   :  { %9816 = vpow2.f32 %v3804_v57  ;;  %v9077_v61 = vpop.f32.mrf.mxu0  ;;  %v3768_v1 = vsel %vm201_vm2, %v3744_v20, -inf  ;;  %v3745_v14 = vmul.f32 0.35355338, %v11495_v30 }
0x149f   :  { %v3792_v60 = vmul.f32 1.442695, %v3776_v58  ;;  %v3806_v62 = vmul.f32 1.442695, %v3783_v55  ;;  %v3763_v46 = vsel %vm201_vm2, %v3749_v10, -inf }
0x14a0   :  { %v3764_v9 = vmax.f32 %v3762_v53, %v3763_v46  ;;  %v3727_v19 = vpop.f32.mrf.mxu0  ;;  %v11516_v46 = vpop.permute.xlu1 %3840 }
0x14a1   :  { %9818 = vpow2.f32 %v3792_v60  ;;  %v3750_v21 = vmul.f32 0.35355338, %v3727_v19 }
0x14a2   :  { %9820 = vpow2.f32 %v3806_v62  ;;  %v3777_v2 = vsub.f32 %v3742_v26, %v3764_v9  ;;  %v3784_v4 = vsub.f32 %v3749_v10, %v3764_v9  ;;  %v9078_v7 = vpop.f32.mrf.mxu0 }
0x14a3   :  { %v3766_v63 = vsel %vm201_vm2, %v3750_v21, -inf  ;;  %v3771_v7 = vsel %vm201_vm2, %v3745_v14, -inf }
0x14a4   :  { %v3794_v0 = vmul.f32 1.442695, %v3777_v2  ;;  %v3808_v42 = vmul.f32 1.442695, %v3784_v4  ;;  %v3767_v29 = vmax.f32 %v3765_v51, %v3766_v63  ;;  %v3732_v31 = vpop.f32.mrf.mxu0 }
0x14a5   :  { %v3751_v22 = vmul.f32 0.35355338, %v3732_v31  ;;  %v3833_v31 = vpop.permute.xlu0 %3832 }
0x14a6   :  { %v9811_v34 = vpop.eup %9810  ;;  %9822 = vpow2.f32 %v3794_v0  ;;  %v3778_v39 = vsub.f32 %v3743_v18, %v3767_v29  ;;  %v3785_v57 = vsub.f32 %v3750_v21, %v3767_v29  ;;  %v9081_v26 = vpop.f32.mrf.mxu0 }
0x14a7   :  { %v9813_v40 = vpop.eup %9812  ;;  %v3907_v58 = vsel %vm201_vm2, %v9811_v34, 0.0  ;;  %9824 = vpow2.f32 %v3808_v42  ;;  %v3769_v55 = vsel %vm201_vm2, %v3751_v22, -inf }
0x14a8   :  { %v3908_v10 = vsel %vm201_vm2, %v9813_v40, 0.0  ;;  %v3796_v61 = vmul.f32 1.442695, %v3778_v39  ;;  %v3810_v53 = vmul.f32 1.442695, %v3785_v57  ;;  %v3770_v60 = vmax.f32 %v3768_v1, %v3769_v55  ;;  %v3735_v62 = vpop.f32.mrf.mxu0  ;;  %v3845_v1 = vpop.permute.xlu1 %3844 }
0x14a9   :  { %v3909_v9 = vadd.f32 %v3908_v10, %v3907_v58  ;;  %v3752_v18 = vmul.f32 0.35355338, %v3735_v62 }
0x14aa   :  { %v9815_v19 = vpop.eup %9814  ;;  %9826 = vpow2.f32 %v3796_v61  ;;  %v3779_v21 = vsub.f32 %v3744_v20, %v3770_v60  ;;  %v3786_v2 = vsub.f32 %v3751_v22, %v3770_v60  ;;  %v9082_v30 = vpop.f32.mrf.mxu0 }
0x14ab   :  { %v9817_v4 = vpop.eup %9816  ;;  %v3910_v51 = vsel %vm201_vm2, %v9815_v19, 0.0  ;;  %v3772_v63 = vsel %vm201_vm2, %v3752_v18, -inf  ;;  %9828 = vpow2.f32 %v3810_v53  ;;  %v3879_v30 = vmul.f32 %v9813_v40, %v3845_v1 }
0x14ac   :  { %v3911_v0 = vsel %vm201_vm2, %v9817_v4, 0.0  ;;  %v3798_v42 = vmul.f32 1.442695, %v3779_v21  ;;  %v3812_v29 = vmul.f32 1.442695, %v3786_v2  ;;  %9830 = vrcp.f32 %v3909_v9  ;;  %v3835_v21 = vpop.permute.xlu0 %3834  ;;  %v3847_v2 = vpop.permute.xlu1 %3846 }
0x14ad   :  { %v3912_v39 = vadd.f32 %v3911_v0, %v3910_v51  ;;  %v3773_v57 = vmax.f32 %v3771_v7, %v3772_v63  ;;  %v3872_v9 = vmul.f32 %v9811_v34, %v11505_v35  ;;  %v3873_v63 = vmul.f32 %v9815_v19, %v3833_v31 }
0x14ae   :  { %v9819_v20 = vpop.eup %9818  ;;  %9832 = vpow2.f32 %v3798_v42  ;;  %v3880_v0 = vmul.f32 %v9817_v4, %v3847_v2 }
0x14af   :  { %v9821_v22 = vpop.eup %9820  ;;  %9834 = vrcp.f32 %v3912_v39  ;;  %v3913_v26 = vsel %vm201_vm2, %v9819_v20, 0.0  ;;  %v3780_v58 = vsub.f32 %v3745_v14, %v3773_v57  ;;  %v3787_v10 = vsub.f32 %v3752_v18, %v3773_v57 }
0x14b0   :  { %v3914_v55 = vsel %vm201_vm2, %v9821_v22, 0.0  ;;  %9836 = vpow2.f32 %v3812_v29  ;;  %v3839_v29 = vpop.permute.xlu0 %3838  ;;  %v3886_v39 = vsel %vm201_vm2, %v3872_v9, 0.0  ;;  %v3887_v57 = vsel %vm201_vm2, %v3879_v30, 0.0 }
0x14b1   :  { %v3800_v61 = vmul.f32 1.442695, %v3780_v58  ;;  %v3915_v53 = vadd.f32 %v3914_v55, %v3913_v26  ;;  %v3814_v60 = vmul.f32 1.442695, %v3787_v10  ;;  %v3889_v34 = vsel %vm201_vm2, %v3873_v63, 0.0 }
0x14b2   :  { %v3890_v40 = vsel %vm201_vm2, %v3880_v0, 0.0  ;;  %v3888_v55 = vadd.f32 %v3887_v57, %v3886_v39 }
0x14b3   :  { %v9823_v62 = vpop.eup %9822  ;;  %9838 = vpow2.f32 %v3800_v61  ;;  %v3891_v10 = vadd.f32 %v3890_v40, %v3889_v34 }
0x14b4   :  { %v9825_v7 = vpop.eup %9824  ;;  %v3916_v51 = vsel %vm201_vm2, %v9823_v62, 0.0  ;;  %9840 = vpow2.f32 %v3814_v60  ;;  %v3849_v26 = vpop.permute.xlu0 %3848  ;;  %v3874_v60 = vmul.f32 %v9819_v20, %v3835_v21 }
0x14b5   :  { %v3917_v14 = vsel %vm201_vm2, %v9825_v7, 0.0  ;;  %9842 = vrcp.f32 %v3915_v53  ;;  %v3851_v53 = vpop.permute.xlu1 %3850  ;;  %v3881_v2 = vmul.f32 %v9821_v22, %v3849_v26 }
0x14b6   :  { %v3918_v18 = vadd.f32 %v3917_v14, %v3916_v51  ;;  %v3875_v51 = vmul.f32 %v9823_v62, %v11509_v37  ;;  %v3882_v63 = vmul.f32 %v9825_v7, %v3851_v53  ;;  %v3892_v39 = vsel %vm201_vm2, %v3874_v60, 0.0 }
0x14b7   :  { %v9827_v42 = vpop.eup %9826 }
0x14b8   :  { %9844 = vrcp.f32 %v3918_v18  ;;  %v3919_v35 = vsel %vm201_vm2, %v9827_v42, 0.0  ;;  %v9829_v19 = vpop.eup %9828  ;;  %v3895_v20 = vsel %vm201_vm2, %v3875_v51, 0.0  ;;  %v3896_v22 = vsel %vm201_vm2, %v3882_v63, 0.0  ;;  %v3853_v34 = vpop.permute.xlu0 %3852 }
0x14b9   :  { %v9831_v4 = vpop.eup %9830  ;;  %v3920_v31 = vsel %vm201_vm2, %v9829_v19, 0.0  ;;  %v3855_v40 = vpop.permute.xlu1 %3854 }
0x14ba   :  { %v3921_v58 = vadd.f32 %v3920_v31, %v3919_v35  ;;  %v3929_v0 = vmul.f32 %v9831_v4, %v3888_v55  ;;  %v3893_v35 = vsel %vm201_vm2, %v3881_v2, 0.0  ;;  %v3897_v31 = vadd.f32 %v3896_v22, %v3895_v20 }
0x14bb   :  { %v9833_v1 = vpop.eup %9832  ;;  %v3894_v4 = vadd.f32 %v3893_v35, %v3892_v39  ;;  %v3876_v55 = vmul.f32 %v9827_v42, %v3839_v29 }
0x14bc   :  { %v9835_v61 = vpop.eup %9834  ;;  %v3922_v9 = vsel %vm201_vm2, %v9833_v1, 0.0  ;;  %9846 = vrcp.f32 %v3921_v58  ;;  %v3843_v2 = vpop.permute.xlu0 %3842 }
0x14bd   :  { %v9837_v30 = vpop.eup %9836  ;;  %v3931_v14 = vmul.f32 %v9835_v61, %v3891_v10  ;;  %v3877_v10 = vmul.f32 %v9833_v1, %v11516_v46  ;;  %v3883_v61 = vmul.f32 %v9829_v19, %v3853_v34  ;;  %v3898_v51 = vsel %vm201_vm2, %v3876_v55, 0.0 }
0x14be   :  { %v3923_v18 = vsel %vm201_vm2, %v9837_v30, 0.0 }
0x14bf   :  { %v3924_v23 = vadd.f32 %v3923_v18, %v3922_v9  ;;  %v3946_v25 = vpack.c.bf16 %v3931_v14, %v3929_v0  ;;  %v3857_v9 = vpop.permute.xlu1 %3856  ;;  %v3899_v63 = vsel %vm201_vm2, %v3883_v61, 0.0  ;;  %v3901_v0 = vsel %vm201_vm2, %v3877_v10, 0.0 }
0x14c0   :  { %v9839_v57 = vpop.eup %9838  ;;  %v3900_v1 = vadd.f32 %v3899_v63, %v3898_v51 }
0x14c1   :  { %9848 = vrcp.f32 %v3924_v23  ;;  %9087 = vmatprep.mubr.msk.bf16.mxu1 %vm201_vm2, %v3946_v25  ;;  %v9841_v37 = vpop.eup %9840  ;;  %v3925_v62 = vsel %vm201_vm2, %v9839_v57, 0.0  ;;  %v3884_v25 = vmul.f32 %v9837_v30, %v3855_v40  ;;  %v3878_v29 = vmul.f32 %v9839_v57, %v3843_v2 }
0x14c2   :  { %v9843_v21 = vpop.eup %9842  ;;  %v3926_v7 = vsel %vm201_vm2, %v9841_v37, 0.0  ;;  %v3885_v46 = vmul.f32 %v9841_v37, %v3857_v9 }
0x14c3   :  { %v3927_v26 = vadd.f32 %v3926_v7, %v3925_v62  ;;  %v3933_v53 = vmul.f32 %v9843_v21, %v3894_v4  ;;  %v3902_v42 = vsel %vm201_vm2, %v3884_v25, 0.0  ;;  %v3904_v35 = vsel %vm201_vm2, %v3878_v29, 0.0 }
0x14c4   :  { %v3903_v14 = vadd.f32 %v3902_v42, %v3901_v0  ;;  %v3905_v20 = vsel %vm201_vm2, %v3885_v46, 0.0 }
0x14c5   :  { %v9845_v58 = vpop.eup %9844  ;;  %9850 = vrcp.f32 %v3927_v26  ;;  %v3906_v62 = vadd.f32 %v3905_v20, %v3904_v35 }
0x14c6   :  { %v3935_v23 = vmul.f32 %v9845_v58, %v3897_v31  ;;  %v8197_v31 = vld [vmem:[%s12967_s6 + $0x5e] ss:$0 sm:$0xff] }
0x14c8   :  { %v3947_v60 = vpack.c.bf16 %v3935_v23, %v3933_v53 }
0x14c9   :  { %v9847_v19 = vpop.eup %9846 }
0x14ca   :  { %9088 = vmatmul.mubr.msk.bf16.vlgmr.msra.gmra.mxu1 %vm201_vm2, %v3947_v60  ;;  %v3937_v30 = vmul.f32 %v9847_v19, %v3900_v1 }
0x14ce   :  { %v9849_v18 = vpop.eup %9848 }
0x14cf   :  { %v3939_v39 = vmul.f32 %v9849_v18, %v3903_v14 }
0x14d1   :  { %v3948_v22 = vpack.c.bf16 %v3939_v39, %v3937_v30 }
0x14d2   :  { %v9851_v21 = vpop.eup %9850 }
0x14d3   :  { %9091 = vmatprep.mubr.msk.bf16.mxu1 %vm201_vm2, %v3948_v22  ;;  %v3941_v7 = vmul.f32 %v9851_v21, %v3906_v62 }
0x14d5   :  { %v3949_v34 = vpack.c.bf16 %v3941_v7, %v3941_v7 }
0x14d7   :  { %9092 = vmatmul.mubr.msk.bf16.gmra.mxu1 %vm201_vm2, %v3949_v34 }
0x158a   :  { %v9089_v57 = vpop.f32.mrf.mxu1 }
0x158b   :  { %v4040_v40 = vadd.f32 %v9089_v57, %v11191_v33 }
0x158c   :  { %v4008_v37 = vpop.f32.mrf.mxu1 }
0x158d   :  { %v4038_v4 = vadd.f32 %v4008_v37, %v11183_v5  ;;  %v11560_v10 = vadd.f32 %v8197_v31, %v4040_v40 }
0x158e   :  { %v9090_v26 = vpop.f32.mrf.mxu1 }
0x158f   :  { %v11558_v58 = vadd.f32 %v8197_v31, %v4038_v4  ;;  %v4041_v61 = vadd.f32 %v9090_v26, %v11244_v11  ;;  %v4065_v25 = vsel %vm201_vm2, %v11560_v10, 0.0 }
0x1590   :  { %v4011_v55 = vpop.f32.mrf.mxu1 }
0x1591   :  { %v4039_v53 = vadd.f32 %v4011_v55, %v11238_v8  ;;  %v4059_v23 = vsel %vm201_vm2, %v11558_v58, 0.0  ;;  %v11568_v5 = vadd.f32 %v8197_v31, %v4041_v61 }
0x1592   :  { %4060 = vadd.xlane.f32.xlu0 %v4059_v23 }
0x1593   :  { %v11566_v33 = vadd.f32 %v8197_v31, %v4039_v53  ;;  %v4068_v8 = vsel %vm201_vm2, %v11568_v5, 0.0 }
0x1595   :  { %v4062_v60 = vsel %vm201_vm2, %v11566_v33, 0.0 }
0x1596   :  { %4066 = vadd.xlane.f32.xlu0 %v4065_v25  ;;  %4063 = vadd.xlane.f32.xlu1 %v4062_v60 }
0x1597   :  { %v9093_v2 = vpop.f32.mrf.mxu1 }
0x1598   :  { %v4044_v9 = vadd.f32 %v9093_v2, %v11212_v15  ;;  %v9628_v15 = vld [vmem:[%s12966_s4 + $0x108] sm:$0xff]  }
0x1599   :  { %v4024_v11 = vpop.f32.mrf.mxu1  ;;  %9095 = vmatprep.subr.bf16.mxu0 %v9628_v15 }
0x159a   :  { %4069 = vadd.xlane.f32.xlu0 %v4068_v8  ;;  %v4042_v51 = vadd.f32 %v4024_v11, %v11204_v17  ;;  %v11580_v29 = vadd.f32 %v8197_v31, %v4044_v9  ;;  %9096 = vmatpush3.bf16.msra.mxu0 %v9628_v15 }
0x159b   :  { %v9094_v63 = vpop.f32.mrf.mxu1 }
0x159c   :  { %v11578_v0 = vadd.f32 %v8197_v31, %v4042_v51  ;;  %v4077_v14 = vsel %vm201_vm2, %v11580_v29, 0.0 }
0x159d   :  { %v4027_v42 = vpop.f32.mrf.mxu1 }
0x159e   :  { %v4043_v46 = vadd.f32 %v4027_v42, %v11257_v3  ;;  %v4071_v19 = vsel %vm201_vm2, %v11578_v0, 0.0 }
0x159f   :  { %4072 = vadd.xlane.f32.xlu1 %v4071_v19  ;;  %v3193_v19 = vld [vmem:[%s12970_s3 + $0x10] sm:$0xff] }
0x15a0   :  { %v11585_v1 = vadd.f32 %v8197_v31, %v4043_v46 }
0x15a2   :  { %v4074_v17 = vsel %vm201_vm2, %v11585_v1, 0.0 }
0x15a3   :  { %4078 = vadd.xlane.f32.xlu1 %v4077_v14  ;;  %4075 = vadd.xlane.f32.xlu0 %v4074_v17  ;;  %v3194_v14 = vld [vmem:[%s12970_s3 + $0x18] sm:$0xff] }
0x161b   :  { %v4061_v3 = vpop.xlane.xlu0 %4060 }
0x161c   :  { %v4080_v18 = vmul.f32 0.03125, %v4061_v3  ;;  %v11641_v3 = vadd.f32 %v3193_v19, %v11389_v47  ;;  %v9629_v47 = vld [vmem:[%s12966_s4 + $0x100] sm:$0xff]  }
0x161d   :  { %9097 = vmatprep.subr.bf16.mxu0 %v9629_v47 }
0x161e   :  { %v11595_v30 = vsub.f32 %v11558_v58, %v4080_v18  ;;  %v11644_v18 = vadd.f32 %v3194_v14, %v11392_v41  ;;  %9098 = vmatpush3.bf16.msra.mxu0 %v9629_v47 }
0x161f   :  { %v4067_v39 = vpop.xlane.xlu0 %4066  ;;  %v4064_v35 = vpop.xlane.xlu1 %4063 }
0x1620   :  { %v4082_v20 = vmul.f32 0.03125, %v4067_v39  ;;  %v4081_v22 = vmul.f32 0.03125, %v4064_v35  ;;  %v4094_v62 = vmul.f32 %v11595_v30, %v11595_v30 }
0x1622   :  { %v11600_v21 = vsub.f32 %v11560_v10, %v4082_v20  ;;  %v11603_v7 = vsub.f32 %v11566_v33, %v4081_v22  ;;  %v4101_v34 = vsel %vm201_vm2, %v4094_v62, 0.0  ;;  %v4498_v20 = vsel %vm201_vm2, %v11641_v3, 0.0 }
0x1623   :  { %v4070_v57 = vpop.xlane.xlu0 %4069  ;;  %4102 = vadd.xlane.f32.xlu0 %v4101_v34  ;;  %v4501_v22 = vsel %vm201_vm2, %v11644_v18, 0.0 }
0x1624   :  { %v4083_v37 = vmul.f32 0.03125, %v4070_v57  ;;  %v4096_v40 = vmul.f32 %v11600_v21, %v11600_v21  ;;  %v4095_v4 = vmul.f32 %v11603_v7, %v11603_v7 }
0x1626   :  { %v11611_v31 = vsub.f32 %v11568_v5, %v4083_v37  ;;  %v4107_v26 = vsel %vm201_vm2, %v4096_v40, 0.0  ;;  %v4104_v55 = vsel %vm201_vm2, %v4095_v4, 0.0 }
0x1627   :  { %4108 = vadd.xlane.f32.xlu0 %v4107_v26  ;;  %4105 = vadd.xlane.f32.xlu1 %v4104_v55 }
0x1628   :  { %v4097_v61 = vmul.f32 %v11611_v31, %v11611_v31  ;;  %v4073_v53 = vpop.xlane.xlu1 %4072 }
0x1629   :  { %v4084_v23 = vmul.f32 0.03125, %v4073_v53 }
0x162a   :  { %v4110_v25 = vsel %vm201_vm2, %v4097_v61, 0.0 }
0x162b   :  { %4111 = vadd.xlane.f32.xlu1 %v4110_v25  ;;  %v11619_v60 = vsub.f32 %v11578_v0, %v4084_v23 }
0x162c   :  { %v4076_v2 = vpop.xlane.xlu0 %4075  ;;  %v4079_v8 = vpop.xlane.xlu1 %4078 }
0x162d   :  { %v4085_v11 = vmul.f32 0.03125, %v4076_v2  ;;  %v4086_v9 = vmul.f32 0.03125, %v4079_v8  ;;  %v4098_v51 = vmul.f32 %v11619_v60, %v11619_v60 }
0x162f   :  { %v11624_v63 = vsub.f32 %v11585_v1, %v4085_v11  ;;  %v11627_v42 = vsub.f32 %v11580_v29, %v4086_v9  ;;  %v4113_v46 = vsel %vm201_vm2, %v4098_v51, 0.0 }
0x1630   :  { %4114 = vadd.xlane.f32.xlu0 %v4113_v46 }
0x1631   :  { %v4099_v17 = vmul.f32 %v11624_v63, %v11624_v63  ;;  %v4100_v15 = vmul.f32 %v11627_v42, %v11627_v42 }
0x1633   :  { %v4116_v39 = vsel %vm201_vm2, %v4099_v17, 0.0  ;;  %v4119_v35 = vsel %vm201_vm2, %v4100_v15, 0.0  ;;  %v8198_v17 = vld [vmem:[%s12967_s6 + $0x61] ss:$0 sm:$0xff] }
0x1634   :  { %4117 = vadd.xlane.f32.xlu1 %v4116_v39  ;;  %4120 = vadd.xlane.f32.xlu0 %v4119_v35 }
0x1638   :  { %4499 = vadd.xlane.f32.xlu1 %v4498_v20  ;;  %4502 = vadd.xlane.f32.xlu0 %v4501_v22 }
0x16ac   :  { %v4103_v41 = vpop.xlane.xlu0 %4102 }
0x16ad   :  { %v4122_v62 = vmul.f32 0.03125, %v4103_v41 }
0x16af   :  { %v4129_v34 = vadd.f32 1e-05, %v4122_v62 }
0x16b0   :  { %v4109_v57 = vpop.xlane.xlu0 %4108  ;;  %v4106_v37 = vpop.xlane.xlu1 %4105 }
0x16b1   :  { %9852 = vrsqrt.f32 %v4129_v34  ;;  %v4124_v40 = vmul.f32 0.03125, %v4109_v57  ;;  %v4123_v4 = vmul.f32 0.03125, %v4106_v37 }
0x16b3   :  { %v4131_v26 = vadd.f32 1e-05, %v4124_v40  ;;  %v4130_v55 = vadd.f32 1e-05, %v4123_v4 }
0x16b4   :  { %v4112_v61 = vpop.xlane.xlu1 %4111 }
0x16b5   :  { %9854 = vrsqrt.f32 %v4131_v26  ;;  %v4125_v53 = vmul.f32 0.03125, %v4112_v61 }
0x16b6   :  { %9856 = vrsqrt.f32 %v4130_v55 }
0x16b7   :  { %v4132_v23 = vadd.f32 1e-05, %v4125_v53 }
0x16b9   :  { %9858 = vrsqrt.f32 %v4132_v23  ;;  %v4115_v25 = vpop.xlane.xlu0 %4114 }
0x16ba   :  { %v4126_v2 = vmul.f32 0.03125, %v4115_v25 }
0x16bc   :  { %v4133_v8 = vadd.f32 1e-05, %v4126_v2 }
0x16bd   :  { %v4121_v9 = vpop.xlane.xlu0 %4120  ;;  %v4118_v51 = vpop.xlane.xlu1 %4117 }
0x16be   :  { %v9853_v11 = vpop.eup %9852  ;;  %9860 = vrsqrt.f32 %v4133_v8  ;;  %v4128_v46 = vmul.f32 0.03125, %v4121_v9  ;;  %v4127_v19 = vmul.f32 0.03125, %v4118_v51 }
0x16bf   :  { %v4143_v14 = vmul.f32 %v9853_v11, %v11595_v30  ;;  %v8199_v30 = vld [vmem:[%s12967_s6 + $0x62] ss:$0 sm:$0xff] }
0x16c0   :  { %v4135_v15 = vadd.f32 1e-05, %v4128_v46  ;;  %v4134_v39 = vadd.f32 1e-05, %v4127_v19 }
0x16c1   :  { %v4503_v20 = vpop.xlane.xlu0 %4502  ;;  %v4500_v22 = vpop.xlane.xlu1 %4499  ;;  %v4154_v37 = vmul.f32 %v8198_v17, %v4143_v14 }
0x16c2   :  { %v9855_v35 = vpop.eup %9854  ;;  %9862 = vrsqrt.f32 %v4135_v15  ;;  %v4505_v62 = vmul.f32 0.03125, %v4503_v20  ;;  %v4504_v34 = vmul.f32 0.03125, %v4500_v22 }
0x16c3   :  { %v9857_v47 = vpop.eup %9856  ;;  %v4145_v41 = vmul.f32 %v9855_v35, %v11600_v21  ;;  %9864 = vrsqrt.f32 %v4134_v39  ;;  %v4165_v23 = vadd.f32 %v8199_v30, %v4154_v37 }
0x16c4   :  { %v4144_v57 = vmul.f32 %v9857_v47, %v11603_v7  ;;  %v11665_v40 = vsub.f32 %v11644_v18, %v4505_v62  ;;  %v11668_v4 = vsub.f32 %v11641_v3, %v4504_v34 }
0x16c5   :  { %v4156_v21 = vmul.f32 %v8198_v17, %v4145_v41 }
0x16c6   :  { %v9859_v26 = vpop.eup %9858  ;;  %v4155_v55 = vmul.f32 %v8198_v17, %v4144_v57  ;;  %v4509_v53 = vmul.f32 %v11665_v40, %v11665_v40  ;;  %v4508_v7 = vmul.f32 %v11668_v4, %v11668_v4 }
0x16c7   :  { %v4146_v61 = vmul.f32 %v9859_v26, %v11611_v31  ;;  %v4167_v51 = vadd.f32 %v8199_v30, %v4156_v21 }
0x16c8   :  { %v4166_v25 = vadd.f32 %v8199_v30, %v4155_v55  ;;  %v4513_v8 = vsel %vm201_vm2, %v4509_v53, 0.0  ;;  %v4510_v11 = vsel %vm201_vm2, %v4508_v7, 0.0  ;;  %v8200_v55 = vld [vmem:[%s12967_s6 + $0x63] ss:$0 sm:$0xff] }
0x16c9   :  { %v4157_v2 = vmul.f32 %v8198_v17, %v4146_v61  ;;  %4514 = vadd.xlane.f32.xlu0 %v4513_v8  ;;  %4511 = vadd.xlane.f32.xlu1 %v4510_v11 }
0x16ca   :  { %v4176_v9 = vpack.c.bf16 %v4166_v25, %v4165_v23 }
0x16cb   :  { %v4168_v46 = vadd.f32 %v8199_v30, %v4157_v2  ;;  %v9861_v19 = vpop.eup %9860 }
0x16cc   :  { %9099 = vmatprep.mubr.msk.bf16.mxu0 %vm201_vm2, %v4176_v9  ;;  %v4147_v14 = vmul.f32 %v9861_v19, %v11619_v60  ;;  %v9630_v60 = vld [vmem:[%s12966_s4 + $0x118] sm:$0xff]  }
0x16cd   :  { %v4177_v31 = vpack.c.bf16 %v4168_v46, %v4167_v51  ;;  %9107 = vmatprep.subr.bf16.mxu1 %v9630_v60 }
0x16ce   :  { %v4158_v22 = vmul.f32 %v8198_v17, %v4147_v14  ;;  %9108 = vmatpush3.bf16.msra.mxu1 %v9630_v60  ;;  %v12981_v60 = vpack.c.bf16 %v11047_v28, %v11044_v6 }
0x16cf   :  { %9100 = vmatmul.mubr.msk.bf16.vlgmr.msra.gmra.mxu0 %vm201_vm2, %v4177_v31  ;;  %v9863_v15 = vpop.eup %9862  ;;  %v9633_v31 = vld [vmem:[%s12965_s5 + $0x40] sm:$0xff]  }
0x16d0   :  { %v9865_v39 = vpop.eup %9864  ;;  %v4149_v35 = vmul.f32 %v9863_v15, %v11627_v42  ;;  %v4169_v34 = vadd.f32 %v8199_v30, %v4158_v22  ;;  %v9632_v42 = vld [vmem:[%s12965_s5 + $0x48] sm:$0xff]  }
0x16d1   :  { %v4148_v20 = vmul.f32 %v9865_v39, %v11624_v63  ;;  %v9631_v63 = vld [vmem:[%s12966_s4 + $0x110] sm:$0xff]  }
0x16d2   :  { %v4160_v47 = vmul.f32 %v8198_v17, %v4149_v35  ;;  %9109 = vmatprep.subr.bf16.mxu1 %v9631_v63 }
0x16d3   :  { %v4159_v41 = vmul.f32 %v8198_v17, %v4148_v20  ;;  %9110 = vmatpush3.bf16.msra.mxu1 %v9631_v63  ;;  %v4543_v63 = vpack.c.bf16 %v11201_v59, %v11201_v59 }
0x16d4   :  { %v4171_v62 = vadd.f32 %v8199_v30, %v4160_v47  ;;  %9131 = vmatprep.subr.bf16.mxu1 %v9632_v42 }
0x16d5   :  { %v4170_v57 = vadd.f32 %v8199_v30, %v4159_v41 }
0x16d6   :  { %v4179_v37 = vpack.c.bf16 %v4171_v62, %v4171_v62 }
0x16d7   :  { %v4178_v26 = vpack.c.bf16 %v4170_v57, %v4169_v34 }
0x16d9   :  { %9103 = vmatprep.mubr.msk.bf16.mxu0 %vm201_vm2, %v4178_v26  ;;  %v12980_v26 = vpack.c.bf16 %v11026_v56, %v11023_v54  ;;  %v9635_v54 = vld [vmem:[%s12966_s4 + $0x120] sm:$0xff]  }
0x16da   :  { %9104 = vmatmul.mubr.msk.bf16.gmra.mxu0 %vm201_vm2, %v4179_v37  ;;  %v12979_v37 = vpack.c.bf16 %v11035_v16, %v11030_v49  ;;  %v9634_v49 = vld [vmem:[%s12966_s4 + $0x128] sm:$0xff]  }
0x16db   :  { %9119 = vmatprep.subr.bf16.mxu0 %v9634_v49 }
0x16dc   :  { %9120 = vmatpush3.bf16.msra.mxu0 %v9634_v49 }
0x16dd   :  { %9121 = vmatprep.subr.bf16.mxu0 %v9635_v54 }
0x16e0   :  { %9122 = vmatpush3.bf16.msra.mxu0 %v9635_v54 }
0x16e1   :  { %9143 = vmatprep.subr.bf16.mxu0 %v12978_v44 }
0x1752   :  { %v4515_v56 = vpop.xlane.xlu0 %4514  ;;  %v4512_v16 = vpop.xlane.xlu1 %4511 }
0x1753   :  { %v4517_v6 = vmul.f32 0.03125, %v4515_v56  ;;  %v4516_v28 = vmul.f32 0.03125, %v4512_v16 }
0x1755   :  { %v4519_v59 = vadd.f32 1e-05, %v4517_v6 }
0x1757   :  { %9866 = vrsqrt.f32 %v4519_v59 }
0x178f   :  { %v9101_v17 = vpop.f32.mrf.mxu0 }
0x1790   :  { %v4252_v7 = vadd.f32 %v9101_v17, %v8200_v55 }
0x1791   :  { %v4243_v30 = vpop.f32.mrf.mxu0 }
0x1792   :  { %v4244_v61 = vadd.f32 %v8200_v55, %v4243_v30  ;;  %v4275_v9 = vmax.f32 %v4252_v7, 0.0 }
0x1793   :  { %v9102_v21 = vpop.f32.mrf.mxu0 }
0x1794   :  { %v4255_v53 = vadd.f32 %v9102_v21, %v8200_v55  ;;  %v4273_v8 = vmax.f32 %v4244_v61, 0.0 }
0x1795   :  { %v4246_v23 = vpop.f32.mrf.mxu0 }
0x1796   :  { %v4247_v25 = vadd.f32 %v8200_v55, %v4246_v23  ;;  %v4276_v2 = vmax.f32 %v4255_v53, 0.0 }
0x1798   :  { %v4274_v11 = vmax.f32 %v4247_v25, 0.0  ;;  %v4285_v46 = vpack.c.bf16 %v4276_v2, %v4275_v9 }
0x179a   :  { %v4284_v51 = vpack.c.bf16 %v4274_v11, %v4273_v8  ;;  %v9105_v19 = vpop.f32.mrf.mxu0 }
0x179b   :  { %v4268_v15 = vadd.f32 %v9105_v19, %v8200_v55 }
0x179c   :  { %9111 = vmatprep.mubr.msk.bf16.mxu1 %vm201_vm2, %v4284_v51  ;;  %v4259_v14 = vpop.f32.mrf.mxu0 }
0x179d   :  { %9112 = vmatmul.mubr.msk.bf16.vlgmr.msra.gmra.mxu1 %vm201_vm2, %v4285_v46  ;;  %v4260_v35 = vadd.f32 %v8200_v55, %v4259_v14  ;;  %v4279_v47 = vmax.f32 %v4268_v15, 0.0  ;;  %v9636_v46 = vld [vmem:[%s12966_s4 + $0x1d8] sm:$0xff]   ;;  %v9637_v15 = vld [vmem:[%s12966_s4 + $0x1d0] sm:$0xff]  }
0x179e   :  { %9132 = vmatpush3.bf16.msra.mxu1 %v9632_v42  ;;  %v9106_v39 = vpop.f32.mrf.mxu0  ;;  %v4518_v42 = vadd.f32 1e-05, %v4516_v28 }
0x179f   :  { %9133 = vmatprep.subr.bf16.mxu1 %v9633_v31  ;;  %v4277_v41 = vmax.f32 %v4260_v35, 0.0  ;;  %v4287_v57 = vpack.c.bf16 %v4279_v47, %v4279_v47  ;;  %v9867_v39 = vpop.eup %9866 }
0x17a0   :  { %v4262_v20 = vpop.f32.mrf.mxu0  ;;  %9868 = vrsqrt.f32 %v4518_v42  ;;  %v8222_v42 = vld [vmem:[%s12967_s6 + $0x83] ss:$0 sm:$0xff] }
0x17a1   :  { %v4263_v22 = vadd.f32 %v8200_v55, %v4262_v20  ;;  %v8207_v55 = vld [vmem:[%s12967_s6 + $0x64] ss:$0 sm:$0xff] }
0x17a2   :  { %9134 = vmatpush3.bf16.msra.mxu1 %v9633_v31 }
0x17a3   :  { %9151 = vmatprep.subr.bf16.mxu1 %v12978_v44  ;;  %v4278_v62 = vmax.f32 %v4263_v22, 0.0 }
0x17a5   :  { %v4286_v34 = vpack.c.bf16 %v4278_v62, %v4277_v41 }
0x17a7   :  { %9115 = vmatprep.mubr.msk.bf16.mxu1 %vm201_vm2, %v4286_v34  ;;  %v4523_v34 = vmul.f32 %v9867_v39, %v11665_v40 }
0x17a8   :  { %9116 = vmatmul.mubr.msk.bf16.gmra.mxu1 %vm201_vm2, %v4287_v57 }
0x17a9   :  { %9135 = vmatprep.mubr.msk.bf16.mxu1 %vm201_vm2, %v12979_v37 }
0x17ad   :  { %v9869_v22 = vpop.eup %9868 }
0x17ae   :  { %v4522_v57 = vmul.f32 %v9869_v22, %v11668_v4  ;;  %v10057_v22 = vld [vmem:[%s12965_s5 + $0xd0] sm:$0xff]  }
0x17b0   :  { %9136 = vmatmul.mubr.msk.bf16.vlgmr.msra.gmra.mxu1 %vm201_vm2, %v12980_v26 }
0x17b1   :  { %9139 = vmatprep.mubr.msk.bf16.mxu1 %vm201_vm2, %v12981_v60  ;;  %v8223_v60 = vld [vmem:[%s12967_s6 + $0x7f] ss:$0 sm:$0xff] }
0x17b8   :  { %9140 = vmatmul.mubr.msk.bf16.gmra.mxu1 %vm201_vm2, %v4543_v63  ;;  %v8221_v63 = vld [vmem:[%s12967_s6 + $0x82] ss:$0 sm:$0xff] }
0x17b9   :  { %9159 = vmatprep.mubr.msk.bf16.mxu1 %vm10084_vm0, %v12978_v44  ;;  %v4529_v40 = vmul.f32 %v8221_v63, %v4523_v34  ;;  %v4528_v28 = vmul.f32 %v8221_v63, %v4522_v57  ;;  %v10063_v34 = vld [vmem:[%s12965_s5 + $0xc0] sm:$0xff]   ;;  %v10064_v57 = vld [vmem:[%s12965_s5 + $0xc8] sm:$0xff]  }
0x185d   :  { %v9113_v17 = vpop.f32.mrf.mxu1 }
0x185e   :  { %v4360_v7 = vadd.f32 %v9113_v17, %v8207_v55 }
0x185f   :  { %v4351_v30 = vpop.f32.mrf.mxu1 }
0x1860   :  { %v4352_v61 = vadd.f32 %v8207_v55, %v4351_v30  ;;  %v4383_v9 = vmax.f32 %v4360_v7, 0.0  ;;  %v4535_v7 = vadd.f32 %v8222_v42, %v4529_v40 }
0x1861   :  { %v9114_v21 = vpop.f32.mrf.mxu1 }
0x1862   :  { %v4363_v53 = vadd.f32 %v9114_v21, %v8207_v55  ;;  %v4381_v8 = vmax.f32 %v4352_v61, 0.0 }
0x1863   :  { %v4354_v23 = vpop.f32.mrf.mxu1 }
0x1864   :  { %v4355_v25 = vadd.f32 %v8207_v55, %v4354_v23  ;;  %v4384_v2 = vmax.f32 %v4363_v53, 0.0  ;;  %v4534_v23 = vadd.f32 %v8222_v42, %v4528_v28 }
0x1866   :  { %v4382_v11 = vmax.f32 %v4355_v25, 0.0  ;;  %v4393_v19 = vpack.c.bf16 %v4384_v2, %v4383_v9 }
0x1868   :  { %v4392_v51 = vpack.c.bf16 %v4382_v11, %v4381_v8  ;;  %v9117_v31 = vpop.f32.mrf.mxu1 }
0x1869   :  { %v4376_v35 = vadd.f32 %v9117_v31, %v8207_v55 }
0x186a   :  { %9123 = vmatprep.mubr.msk.bf16.mxu0 %vm201_vm2, %v4392_v51  ;;  %v4367_v14 = vpop.f32.mrf.mxu1 }
0x186b   :  { %9124 = vmatmul.mubr.msk.bf16.vlgmr.msra.gmra.mxu0 %vm201_vm2, %v4393_v19  ;;  %v4368_v47 = vadd.f32 %v8207_v55, %v4367_v14  ;;  %v4387_v37 = vmax.f32 %v4376_v35, 0.0 }
0x186c   :  { %9144 = vmatpush3.bf16.msra.mxu0 %v9636_v46  ;;  %v9118_v20 = vpop.f32.mrf.mxu1 }
0x186d   :  { %9145 = vmatprep.subr.bf16.mxu0 %v12978_v44  ;;  %v4385_v49 = vmax.f32 %v4368_v47, 0.0  ;;  %v4395_v4 = vpack.c.bf16 %v4387_v37, %v4387_v37  ;;  %v10060_v47 = vld [vmem:[%s12965_s5 + $0xa8] sm:$0xff]  }
0x186e   :  { %v4370_v41 = vpop.f32.mrf.mxu1 }
0x186f   :  { %v4371_v62 = vadd.f32 %v8207_v55, %v4370_v41  ;;  %v10061_v41 = vld [vmem:[%s12965_s5 + $0xb0] sm:$0xff]  }
0x1870   :  { %9146 = vmatpush3.bf16.msra.mxu0 %v9637_v15  ;;  %v9137_v26 = vpop.f32.mrf.mxu1 }
0x1871   :  { %9187 = vmatprep.subr.bf16.mxu0 %v12978_v44  ;;  %v4386_v54 = vmax.f32 %v4371_v62, 0.0  ;;  %v4616_v6 = vadd.f32 %v9137_v26, %v8223_v60  ;;  %v10062_v62 = vld [vmem:[%s12965_s5 + $0xb8] sm:$0xff]   ;;  %v11824_v26 = vld [vmem:[%s12967_s6 + $0x65] ss:$0 sm:$0xff] }
0x1872   :  { %v4607_v56 = vpop.f32.mrf.mxu1 }
0x1873   :  { %v4394_v16 = vpack.c.bf16 %v4386_v54, %v4385_v49  ;;  %v4608_v17 = vadd.f32 %v8223_v60, %v4607_v56  ;;  %v4639_v21 = vadd.f32 %v4616_v6, %v10899_v12  ;;  %v4648_v12 = vpack.c.bf16 %v4535_v7, %v4534_v23 }
0x1874   :  { %v9138_v59 = vpop.f32.mrf.mxu1 }
0x1875   :  { %v4619_v30 = vadd.f32 %v9138_v59, %v8223_v60  ;;  %9127 = vmatprep.mubr.msk.bf16.mxu0 %vm201_vm2, %v4394_v16  ;;  %v4637_v2 = vadd.f32 %v4608_v17, %v10911_v32  ;;  %v10056_v32 = vld [vmem:[%s12965_s5 + $0xd8] sm:$0xff]  }
0x1876   :  { %9128 = vmatmul.mubr.msk.bf16.gmra.mxu0 %vm201_vm2, %v4395_v4  ;;  %v4610_v55 = vpop.f32.mrf.mxu1 }
0x1877   :  { %v4640_v61 = vadd.f32 %v4619_v30, %v10901_v36  ;;  %v4611_v53 = vadd.f32 %v8223_v60, %v4610_v55  ;;  %9147 = vmatprep.mubr.msk.bf16.mxu0 %vm10084_vm0, %v12978_v44 }
0x1878   :  { %v9141_v25 = vpop.f32.mrf.mxu1 }
0x1879   :  { %v4711_v8 = vpack.c.bf16 %v4640_v61, %v4639_v21  ;;  %v4638_v11 = vadd.f32 %v4611_v53, %v10913_v13  ;;  %v4632_v9 = vadd.f32 %v9141_v25, %v8223_v60 }
0x187a   :  { %v4623_v51 = vpop.f32.mrf.mxu1 }
0x187b   :  { %v4710_v46 = vpack.c.bf16 %v4638_v11, %v4637_v2  ;;  %v4643_v19 = vadd.f32 %v4632_v9, %v10869_v24  ;;  %v4624_v14 = vadd.f32 %v8223_v60, %v4623_v51 }
0x187c   :  { %v9142_v31 = vpop.f32.mrf.mxu1 }
0x187d   :  { %v4713_v36 = vpack.c.bf16 %v4643_v19, %v4643_v19  ;;  %v4641_v24 = vadd.f32 %v4624_v14, %v10871_v52  ;;  %v10058_v52 = vld [vmem:[%s12965_s5 + $0x98] sm:$0xff]  }
0x187e   :  { %v4626_v15 = vpop.f32.mrf.mxu1  ;;  %9148 = vmatmul.mubr.msk.bf16.vlgmr.msra.gmra.mxu0 %vm201_vm2, %v4648_v12 }
0x187f   :  { %v4627_v39 = vadd.f32 %v8223_v60, %v4626_v15  ;;  %v4715_v35 = vsel %vm2433_vm9, %v4713_v36, 0  ;;  %9188 = vmatpush3.bf16.msra.mxu0 %v10056_v32  ;;  %9191 = vmatprep.mubr.msk.bf16.mxu0 %vm10084_vm0, %v12978_v44 }
0x1880   :  { %9152 = vmatpush3.bf16.msra.mxu1 %v4715_v35  ;;  %9189 = vmatprep.subr.bf16.mxu0 %v12978_v44 }
0x1881   :  { %v4642_v13 = vadd.f32 %v4627_v39, %v10873_v27  ;;  %9153 = vmatprep.subr.bf16.mxu1 %v12978_v44  ;;  %v10059_v27 = vld [vmem:[%s12965_s5 + $0xa0] sm:$0xff]  }
0x1883   :  { %v4712_v20 = vpack.c.bf16 %v4642_v13, %v4641_v24  ;;  %9190 = vmatpush3.bf16.msra.mxu0 %v10057_v22 }
0x1884   :  { %9227 = vmatprep.subr.bf16.mxu0 %v12978_v44 }
0x1885   :  { %9154 = vmatpush3.bf16.msra.mxu1 %v4712_v20 }
0x1886   :  { %9155 = vmatprep.subr.bf16.mxu1 %v12978_v44 }
0x1889   :  { %9156 = vmatpush3.bf16.msra.mxu1 %v4711_v8  ;;  %v8230_v8 = vld [vmem:[%s12967_s6 + $0x80] ss:$0 sm:$0xff] }
0x188a   :  { %9157 = vmatprep.subr.bf16.mxu1 %v12978_v44 }
0x188d   :  { %9158 = vmatpush3.bf16.msra.mxu1 %v4710_v46 }
0x188e   :  { %9219 = vmatprep.subr.bf16.mxu1 %v12978_v44 }
0x1890   :  { %9160 = vmatmul.mubr.msk.bf16.vlgmr.msra.gmra.mxu1 %vm2411_vm10, %v10058_v52 }
0x1891   :  { %9163 = vmatprep.mubr.msk.bf16.mxu1 %vm10084_vm0, %v12978_v44 }
0x1898   :  { %9164 = vmatmul.mubr.msk.bf16.gmra.mxu1 %vm2411_vm10, %v10059_v27 }
0x1899   :  { %9167 = vmatprep.mubr.msk.bf16.mxu1 %vm10084_vm0, %v12978_v44 }
0x18a0   :  { %9168 = vmatmul.mubr.msk.bf16.gmra.mxu1 %vm2411_vm10, %v10060_v47 }
0x18a1   :  { %9171 = vmatprep.mubr.msk.bf16.mxu1 %vm10084_vm0, %v12978_v44 }
0x18a8   :  { %9172 = vmatmul.mubr.msk.bf16.gmra.mxu1 %vm2411_vm10, %v10061_v41 }
0x18a9   :  { %9175 = vmatprep.mubr.msk.bf16.mxu1 %vm10084_vm0, %v12978_v44 }
0x18b0   :  { %9176 = vmatmul.mubr.msk.bf16.gmra.mxu1 %vm2411_vm10, %v10062_v62 }
0x18b1   :  { %9179 = vmatprep.mubr.msk.bf16.mxu1 %vm10084_vm0, %v12978_v44 }
0x18b8   :  { %9180 = vmatmul.mubr.msk.bf16.gmra.mxu1 %vm2411_vm10, %v10063_v34 }
0x18b9   :  { %9183 = vmatprep.mubr.msk.bf16.mxu1 %vm10084_vm0, %v12978_v44 }
0x18c0   :  { %9184 = vmatmul.mubr.msk.bf16.gmra.mxu1 %vm2411_vm10, %v10064_v57 }
0x18c1   :  { %9223 = vmatprep.mubr.msk.bf16.mxu1 %vm10084_vm0, %v12978_v44 }
0x192b   :  { %v9125_v37 = vpop.f32.mrf.mxu0 }
0x192c   :  { %v4468_v63 = vadd.f32 %v9125_v37, %v11824_v26 }
0x192d   :  { %v4459_v60 = vpop.f32.mrf.mxu0 }
0x192e   :  { %v4460_v54 = vadd.f32 %v11824_v26, %v4459_v60  ;;  %v11830_v6 = vadd.f32 %v4468_v63, %v11560_v10 }
0x192f   :  { %v9126_v49 = vpop.f32.mrf.mxu0 }
0x1930   :  { %v4471_v56 = vadd.f32 %v9126_v49, %v11824_v26  ;;  %v11837_v4 = vadd.f32 %v4460_v54, %v11558_v58 }
0x1931   :  { %v4462_v16 = vpop.f32.mrf.mxu0 }
0x1932   :  { %v11833_v40 = vadd.f32 %v4471_v56, %v11568_v5  ;;  %v4463_v28 = vadd.f32 %v11824_v26, %v4462_v16 }
0x1934   :  { %v6821_v59 = vpack.c.bf16 %v11833_v40, %v11830_v6  ;;  %v11842_v42 = vadd.f32 %v4463_v28, %v11566_v33 }
0x1936   :  { %v6820_v17 = vpack.c.bf16 %v11842_v42, %v11837_v4  ;;  %v11846_v30 = vpop.f32.mrf.mxu0 }
0x1938   :  { %v4475_v10 = vpop.f32.mrf.mxu0 }
0x1939   :  { %v4476_v5 = vadd.f32 %v11824_v26, %v4475_v10 }
0x193a   :  { %v9130_v55 = vpop.f32.mrf.mxu0 }
0x193b   :  { %v11851_v53 = vadd.f32 %v4476_v5, %v11578_v0 }
0x193c   :  { %v4478_v21 = vpop.f32.mrf.mxu0 }
0x193d   :  { %v4479_v61 = vadd.f32 %v11824_v26, %v4478_v21 }
0x193e   :  { %v4703_v58 = vpop.f32.mrf.mxu0 }
0x193f   :  { %v11854_v7 = vadd.f32 %v4479_v61, %v11585_v1  ;;  %v11862_v51 = vadd.f32 %v8230_v8, %v4703_v58 }
0x1940   :  { %v9149_v33 = vpop.f32.mrf.mxu0 }
0x1941   :  { %v6822_v23 = vpack.c.bf16 %v11854_v7, %v11851_v53 }
0x1942   :  { %v4706_v25 = vpop.f32.mrf.mxu0 }
0x1943   :  { %v11864_v0 = vadd.f32 %v8230_v8, %v4706_v25 }
0x1944   :  { %v9150_v2 = vpop.f32.mrf.mxu0 }
0x1950   :  { %v4751_v11 = vpop.f32.mrf.mxu1 }
0x1951   :  { %5033 = vrot.lane.b32.xlu1 %v4751_v11, %s10090_s22  ;;  %v4806_v46 = vmul.f32 %v4751_v11, %v11862_v51 }
0x1952   :  { %v9161_v9 = vpop.f32.mrf.mxu1 }
0x1954   :  { %v4754_v1 = vpop.f32.mrf.mxu1 }
0x1955   :  { %v4807_v19 = vmul.f32 %v4754_v1, %v11864_v0  ;;  %5035 = vrot.lane.b32.xlu0 %v4754_v1, %s10090_s22 }
0x1956   :  { %v9162_v12 = vpop.f32.mrf.mxu1 }
0x1957   :  { %v4820_v31 = vpack.c.bf16 %v4807_v19, %v4806_v46 }
0x1958   :  { %v4759_v36 = vpop.f32.mrf.mxu1 }
0x1959   :  { %5037 = vrot.lane.b32.xlu1 %v4759_v36, %s10090_s22  ;;  %9192 = vmatmul.mubr.msk.bf16.vlgmr.msra.gmra.mxu0 %vm201_vm2, %v4820_v31  ;;  %v4808_v39 = vmul.f32 %v4759_v36, %v11862_v51  ;;  %v9638_v36 = vld [vmem:[%s12966_s4 + $0x1e8] sm:$0xff]  }
0x195a   :  { %v9165_v14 = vpop.f32.mrf.mxu1  ;;  %9195 = vmatprep.mubr.msk.bf16.mxu0 %vm10084_vm0, %v12978_v44  ;;  %9220 = vmatpush3.bf16.msra.mxu1 %v9638_v36 }
0x195b   :  { %9221 = vmatprep.subr.bf16.mxu1 %v12978_v44 }
0x195c   :  { %v4762_v15 = vpop.f32.mrf.mxu1 }
0x195d   :  { %v4809_v35 = vmul.f32 %v4762_v15, %v11864_v0  ;;  %5039 = vrot.lane.b32.xlu1 %v4762_v15, %s10090_s22 }
0x195e   :  { %v9166_v32 = vpop.f32.mrf.mxu1 }
0x195f   :  { %v4821_v24 = vpack.c.bf16 %v4809_v35, %v4808_v39 }
0x1960   :  { %v4767_v13 = vpop.f32.mrf.mxu1 }
0x1961   :  { %5041 = vrot.lane.b32.xlu0 %v4767_v13, %s10090_s22  ;;  %9196 = vmatmul.mubr.msk.bf16.gmra.mxu0 %vm201_vm2, %v4821_v24  ;;  %v4810_v52 = vmul.f32 %v4767_v13, %v11862_v51 }
0x1962   :  { %v9169_v20 = vpop.f32.mrf.mxu1  ;;  %9199 = vmatprep.mubr.msk.bf16.mxu0 %vm10084_vm0, %v12978_v44 }
0x1964   :  { %v4770_v22 = vpop.f32.mrf.mxu1 }
0x1965   :  { %v4811_v27 = vmul.f32 %v4770_v22, %v11864_v0  ;;  %5043 = vrot.lane.b32.xlu1 %v4770_v22, %s10090_s22 }
0x1966   :  { %v9170_v47 = vpop.f32.mrf.mxu1 }
0x1967   :  { %v4822_v41 = vpack.c.bf16 %v4811_v27, %v4810_v52 }
0x1968   :  { %v4775_v62 = vpop.f32.mrf.mxu1 }
0x1969   :  { %5045 = vrot.lane.b32.xlu0 %v4775_v62, %s10090_s22  ;;  %9200 = vmatmul.mubr.msk.bf16.gmra.mxu0 %vm201_vm2, %v4822_v41  ;;  %v4812_v37 = vmul.f32 %v4775_v62, %v11862_v51 }
0x196a   :  { %v9173_v34 = vpop.f32.mrf.mxu1  ;;  %9203 = vmatprep.mubr.msk.bf16.mxu0 %vm10084_vm0, %v12978_v44 }
0x196c   :  { %v4778_v57 = vpop.f32.mrf.mxu1 }
0x196d   :  { %v4813_v60 = vmul.f32 %v4778_v57, %v11864_v0  ;;  %5047 = vrot.lane.b32.xlu1 %v4778_v57, %s10090_s22 }
0x196e   :  { %v9174_v63 = vpop.f32.mrf.mxu1 }
0x196f   :  { %v4823_v49 = vpack.c.bf16 %v4813_v60, %v4812_v37 }
0x1970   :  { %v4783_v54 = vpop.f32.mrf.mxu1 }
0x1971   :  { %5049 = vrot.lane.b32.xlu0 %v4783_v54, %s10090_s22  ;;  %9204 = vmatmul.mubr.msk.bf16.gmra.mxu0 %vm201_vm2, %v4823_v49  ;;  %v4814_v28 = vmul.f32 %v4783_v54, %v11862_v51 }
0x1972   :  { %v9177_v56 = vpop.f32.mrf.mxu1  ;;  %9207 = vmatprep.mubr.msk.bf16.mxu0 %vm10084_vm0, %v12978_v44 }
0x1974   :  { %v4786_v16 = vpop.f32.mrf.mxu1 }
0x1975   :  { %v4815_v10 = vmul.f32 %v4786_v16, %v11864_v0  ;;  %5051 = vrot.lane.b32.xlu1 %v4786_v16, %s10090_s22 }
0x1976   :  { %v9178_v55 = vpop.f32.mrf.mxu1 }
0x1977   :  { %v4824_v5 = vpack.c.bf16 %v4815_v10, %v4814_v28 }
0x1978   :  { %v4791_v21 = vpop.f32.mrf.mxu1 }
0x1979   :  { %5053 = vrot.lane.b32.xlu0 %v4791_v21, %s10090_s22  ;;  %9208 = vmatmul.mubr.msk.bf16.gmra.mxu0 %vm201_vm2, %v4824_v5  ;;  %v4816_v33 = vmul.f32 %v4791_v21, %v11862_v51 }
0x197a   :  { %v9181_v61 = vpop.f32.mrf.mxu1  ;;  %9211 = vmatprep.mubr.msk.bf16.mxu0 %vm10084_vm0, %v12978_v44 }
0x197c   :  { %v4794_v58 = vpop.f32.mrf.mxu1 }
0x197d   :  { %v4817_v25 = vmul.f32 %v4794_v58, %v11864_v0  ;;  %5055 = vrot.lane.b32.xlu1 %v4794_v58, %s10090_s22 }
0x197e   :  { %v9182_v2 = vpop.f32.mrf.mxu1 }
0x197f   :  { %v4825_v8 = vpack.c.bf16 %v4817_v25, %v4816_v33 }
0x1980   :  { %v4799_v11 = vpop.f32.mrf.mxu1 }
0x1981   :  { %5057 = vrot.lane.b32.xlu0 %v4799_v11, %s10090_s22  ;;  %9212 = vmatmul.mubr.msk.bf16.gmra.mxu0 %vm201_vm2, %v4825_v8  ;;  %v4818_v46 = vmul.f32 %v4799_v11, %v11862_v51  ;;  %v9639_v51 = vld [vmem:[%s12966_s4 + $0x1e0] sm:$0xff]  }
0x1982   :  { %v9185_v9 = vpop.f32.mrf.mxu1  ;;  %9215 = vmatprep.mubr.msk.bf16.mxu0 %vm10084_vm0, %v12978_v44  ;;  %9222 = vmatpush3.bf16.msra.mxu1 %v9639_v51 }
0x1983   :  { %9235 = vmatprep.subr.bf16.mxu1 %v12978_v44 }
0x1984   :  { %v4802_v1 = vpop.f32.mrf.mxu1 }
0x1985   :  { %v4819_v19 = vmul.f32 %v4802_v1, %v11864_v0  ;;  %5059 = vrot.lane.b32.xlu1 %v4802_v1, %s10090_s22 }
0x1986   :  { %v9186_v12 = vpop.f32.mrf.mxu1 }
0x1987   :  { %v4826_v31 = vpack.c.bf16 %v4819_v19, %v4818_v46 }
0x1989   :  { %9216 = vmatmul.mubr.msk.bf16.gmra.mxu0 %vm201_vm2, %v4826_v31 }
0x198a   :  { %9231 = vmatprep.mubr.msk.bf16.mxu0 %vm10084_vm0, %v12978_v44 }
0x1a19   :  { %v4882_v0 = vpop.f32.mrf.mxu0 }
0x1a1a   :  { %v4937_v16 = vmul.f32 0.35355338, %v4882_v0 }
0x1a1b   :  { %v9193_v14 = vpop.f32.mrf.mxu0 }
0x1a1c   :  { %v4951_v25 = vsel %vm201_vm2, %v4937_v16, -inf }
0x1a1d   :  { %v4885_v15 = vpop.f32.mrf.mxu0 }
0x1a1e   :  { %v4938_v2 = vmul.f32 0.35355338, %v4885_v15 }
0x1a1f   :  { %v9194_v39 = vpop.f32.mrf.mxu0 }
0x1a21   :  { %v4890_v35 = vpop.f32.mrf.mxu0 }
0x1a22   :  { %v4939_v5 = vmul.f32 0.35355338, %v4890_v35 }
0x1a23   :  { %v9197_v32 = vpop.f32.mrf.mxu0 }
0x1a24   :  { %v4952_v12 = vsel %vm201_vm2, %v4939_v5, -inf  ;;  %v4964_v32 = vsel %vm201_vm2, %v4938_v2, -inf }
0x1a25   :  { %v4893_v24 = vpop.f32.mrf.mxu0 }
0x1a26   :  { %v4940_v31 = vmul.f32 0.35355338, %v4893_v24 }
0x1a27   :  { %v9198_v13 = vpop.f32.mrf.mxu0 }
0x1a29   :  { %v4898_v20 = vpop.f32.mrf.mxu0 }
0x1a2a   :  { %v4941_v54 = vmul.f32 0.35355338, %v4898_v20 }
0x1a2b   :  { %v9201_v22 = vpop.f32.mrf.mxu0 }
0x1a2c   :  { %v4953_v21 = vsel %vm201_vm2, %v4941_v54, -inf }
0x1a2d   :  { %v4901_v52 = vpop.f32.mrf.mxu0  ;;  %v4954_v9 = vmax.f32 %v4951_v25, %v4953_v21 }
0x1a2e   :  { %v11923_v58 = vmul.f32 0.35355338, %v4901_v52 }
0x1a2f   :  { %v9202_v27 = vpop.f32.mrf.mxu0 }
0x1a30   :  { %v4966_v0 = vsel %vm201_vm2, %v11923_v58, -inf }
0x1a31   :  { %v4906_v47 = vpop.f32.mrf.mxu0 }
0x1a32   :  { %v4943_v28 = vmul.f32 0.35355338, %v4906_v47  ;;  %v4967_v47 = vmax.f32 %v4964_v32, %v4966_v0 }
0x1a33   :  { %v9205_v41 = vpop.f32.mrf.mxu0 }
0x1a34   :  { %v4955_v8 = vsel %vm201_vm2, %v4943_v28, -inf }
0x1a35   :  { %v4909_v62 = vpop.f32.mrf.mxu0  ;;  %v4956_v14 = vmax.f32 %v4952_v12, %v4955_v8 }
0x1a36   :  { %v4944_v1 = vmul.f32 0.35355338, %v4909_v62  ;;  %v4965_v62 = vsel %vm201_vm2, %v4940_v31, -inf }
0x1a37   :  { %v9206_v34 = vpop.f32.mrf.mxu0 }
0x1a38   :  { %v4968_v20 = vsel %vm201_vm2, %v4944_v1, -inf }
0x1a39   :  { %v4914_v57 = vpop.f32.mrf.mxu0 }
0x1a3a   :  { %v4945_v10 = vmul.f32 0.35355338, %v4914_v57 }
0x1a3b   :  { %v9209_v37 = vpop.f32.mrf.mxu0 }
0x1a3c   :  { %v4957_v11 = vsel %vm201_vm2, %v4945_v10, -inf }
0x1a3d   :  { %v4917_v60 = vpop.f32.mrf.mxu0  ;;  %v4958_v15 = vmax.f32 %v4954_v9, %v4957_v11 }
0x1a3e   :  { %v11928_v46 = vmul.f32 0.35355338, %v4917_v60  ;;  %v4969_v60 = vmax.f32 %v4965_v62, %v4968_v20 }
0x1a3f   :  { %v9210_v63 = vpop.f32.mrf.mxu0 }
0x1a40   :  { %v4970_v22 = vsel %vm201_vm2, %v11928_v46, -inf }
0x1a41   :  { %v4922_v49 = vpop.f32.mrf.mxu0  ;;  %v4971_v63 = vmax.f32 %v4967_v47, %v4970_v22 }
0x1a42   :  { %v4947_v61 = vmul.f32 0.35355338, %v4922_v49 }
0x1a43   :  { %v9213_v56 = vpop.f32.mrf.mxu0 }
0x1a44   :  { %v4959_v36 = vsel %vm201_vm2, %v4947_v61, -inf }
0x1a45   :  { %v4925_v55 = vpop.f32.mrf.mxu0  ;;  %v4960_v24 = vmax.f32 %v4956_v14, %v4959_v36 }
0x1a46   :  { %v4948_v39 = vmul.f32 0.35355338, %v4925_v55 }
0x1a47   :  { %v9214_v33 = vpop.f32.mrf.mxu0 }
0x1a48   :  { %v4972_v34 = vsel %vm201_vm2, %v4948_v39, -inf }
0x1a49   :  { %v4930_v19 = vpop.f32.mrf.mxu0  ;;  %v4973_v25 = vmax.f32 %v4969_v60, %v4972_v34 }
0x1a4a   :  { %v4949_v51 = vmul.f32 0.35355338, %v4930_v19 }
0x1a4b   :  { %v9217_v35 = vpop.f32.mrf.mxu0 }
0x1a4c   :  { %v4961_v13 = vsel %vm201_vm2, %v4949_v51, -inf }
0x1a4d   :  { %v4962_v52 = vmax.f32 %v4958_v15, %v4961_v13  ;;  %v4933_v27 = vpop.f32.mrf.mxu0 }
0x1a4e   :  { %v4950_v41 = vmul.f32 0.35355338, %v4933_v27 }
0x1a4f   :  { %v4963_v57 = vmax.f32 %v4962_v52, %v4960_v24  ;;  %v9218_v37 = vpop.f32.mrf.mxu0 }
0x1a50   :  { %v4974_v49 = vsel %vm201_vm2, %v4950_v41, -inf }
0x1a51   :  { %v4977_v56 = vsub.f32 %v4937_v16, %v4963_v57  ;;  %v4979_v55 = vsub.f32 %v4939_v5, %v4963_v57  ;;  %v4981_v21 = vsub.f32 %v4941_v54, %v4963_v57  ;;  %v4983_v33 = vsub.f32 %v4943_v28, %v4963_v57 }
0x1a52   :  { %v4975_v8 = vmax.f32 %v4971_v63, %v4974_v49  ;;  %v4985_v11 = vsub.f32 %v4945_v10, %v4963_v57  ;;  %v4987_v14 = vsub.f32 %v4947_v61, %v4963_v57  ;;  %v4989_v13 = vsub.f32 %v4949_v51, %v4963_v57 }
0x1a53   :  { %v4991_v9 = vmul.f32 1.442695, %v4977_v56  ;;  %v4995_v19 = vmul.f32 1.442695, %v4979_v55  ;;  %v4999_v12 = vmul.f32 1.442695, %v4981_v21 }
0x1a54   :  { %v5003_v36 = vmul.f32 1.442695, %v4983_v33  ;;  %v4976_v0 = vmax.f32 %v4975_v8, %v4973_v25  ;;  %v5007_v32 = vmul.f32 1.442695, %v4985_v11  ;;  %v5011_v10 = vmul.f32 1.442695, %v4987_v14  ;;  %v5036_v33 = vpop.permute.xlu0 %5035 }
0x1a55   :  { %9870 = vpow2.f32 %v4991_v9 }
0x1a56   :  { %9872 = vpow2.f32 %v4995_v19  ;;  %v4978_v15 = vsub.f32 %v4938_v2, %v4976_v0  ;;  %v4980_v35 = vsub.f32 %v4940_v31, %v4976_v0  ;;  %v4982_v16 = vsub.f32 %v11923_v58, %v4976_v0  ;;  %v5034_v58 = vpop.permute.xlu1 %5033 }
0x1a57   :  { %9874 = vpow2.f32 %v4999_v12  ;;  %v4984_v28 = vsub.f32 %v4944_v1, %v4976_v0  ;;  %v4986_v20 = vsub.f32 %v11928_v46, %v4976_v0  ;;  %v4988_v24 = vsub.f32 %v4948_v39, %v4976_v0 }
0x1a58   :  { %9876 = vpow2.f32 %v5003_v36  ;;  %v4993_v54 = vmul.f32 1.442695, %v4978_v15  ;;  %v4997_v5 = vmul.f32 1.442695, %v4980_v35  ;;  %v5001_v22 = vmul.f32 1.442695, %v4982_v16 }
0x1a59   :  { %9878 = vpow2.f32 %v5007_v32  ;;  %v5005_v61 = vmul.f32 1.442695, %v4984_v28  ;;  %v5015_v2 = vmul.f32 1.442695, %v4989_v13  ;;  %v4990_v31 = vsub.f32 %v4950_v41, %v4976_v0  ;;  %v5042_v13 = vpop.permute.xlu0 %5041 }
0x1a5a   :  { %9880 = vpow2.f32 %v4993_v54  ;;  %v5009_v52 = vmul.f32 1.442695, %v4986_v20  ;;  %v5013_v27 = vmul.f32 1.442695, %v4988_v24  ;;  %v5038_v34 = vpop.permute.xlu1 %5037 }
0x1a5b   :  { %9882 = vpow2.f32 %v4997_v5  ;;  %v5017_v46 = vmul.f32 1.442695, %v4990_v31 }
0x1a5c   :  { %9884 = vpow2.f32 %v5011_v10 }
0x1a5d   :  { %9886 = vpow2.f32 %v5001_v22 }
0x1a5e   :  { %9888 = vpow2.f32 %v5005_v61  ;;  %v5040_v25 = vpop.permute.xlu1 %5039 }
0x1a5f   :  { %9890 = vpow2.f32 %v5015_v2 }
0x1a60   :  { %9892 = vpow2.f32 %v5009_v52 }
0x1a61   :  { %9894 = vpow2.f32 %v5013_v27 }
0x1a62   :  { %v9871_v1 = vpop.eup %9870  ;;  %9896 = vpow2.f32 %v5017_v46  ;;  %v5044_v2 = vpop.permute.xlu1 %5043 }
0x1a63   :  { %v9873_v51 = vpop.eup %9872  ;;  %v5115_v47 = vsel %vm201_vm2, %v9871_v1, 0.0  ;;  %v5075_v8 = vmul.f32 %v9871_v1, %v5034_v58 }
0x1a64   :  { %v9875_v62 = vpop.eup %9874  ;;  %v5116_v39 = vsel %vm201_vm2, %v9873_v51, 0.0  ;;  %v5077_v11 = vmul.f32 %v9873_v51, %v5038_v34 }
0x1a65   :  { %v9877_v57 = vpop.eup %9876  ;;  %v5117_v37 = vadd.f32 %v5116_v39, %v5115_v47  ;;  %v5118_v41 = vsel %vm201_vm2, %v9875_v62, 0.0  ;;  %v5089_v16 = vsel %vm201_vm2, %v5075_v8, 0.0  ;;  %v5079_v58 = vmul.f32 %v9875_v62, %v5042_v13  ;;  %v5046_v39 = vpop.permute.xlu0 %5045 }
0x1a66   :  { %v9879_v63 = vpop.eup %9878  ;;  %v5120_v49 = vsel %vm201_vm2, %v9877_v57, 0.0  ;;  %v5090_v54 = vsel %vm201_vm2, %v5077_v11, 0.0 }
0x1a67   :  { %v5119_v60 = vadd.f32 %v5118_v41, %v5117_v37  ;;  %v9881_v56 = vpop.eup %9880  ;;  %v5122_v19 = vsel %vm201_vm2, %v9879_v63, 0.0  ;;  %v5091_v47 = vadd.f32 %v5090_v54, %v5089_v16 }
0x1a68   :  { %v9883_v21 = vpop.eup %9882  ;;  %v5076_v12 = vmul.f32 %v9881_v56, %v5036_v33  ;;  %v5128_v0 = vsel %vm201_vm2, %v9881_v56, 0.0  ;;  %v5081_v56 = vmul.f32 %v9877_v57, %v5046_v39  ;;  %v5092_v33 = vsel %vm201_vm2, %v5079_v58, 0.0 }
0x1a69   :  { %v5121_v55 = vadd.f32 %v5120_v49, %v5119_v60  ;;  %v9885_v9 = vpop.eup %9884  ;;  %v5078_v36 = vmul.f32 %v9883_v21, %v5040_v25  ;;  %v5129_v35 = vsel %vm201_vm2, %v9883_v21, 0.0  ;;  %v5048_v49 = vpop.permute.xlu1 %5047  ;;  %v5093_v11 = vadd.f32 %v5092_v33, %v5091_v47 }
0x1a6a   :  { %v9887_v14 = vpop.eup %9886  ;;  %v5130_v28 = vadd.f32 %v5129_v35, %v5128_v0  ;;  %v5124_v10 = vsel %vm201_vm2, %v9885_v9, 0.0  ;;  %v5102_v20 = vsel %vm201_vm2, %v5076_v12, 0.0  ;;  %v5050_v0 = vpop.permute.xlu0 %5049  ;;  %v5094_v57 = vsel %vm201_vm2, %v5081_v56, 0.0 }
0x1a6b   :  { %v5123_v15 = vadd.f32 %v5122_v19, %v5121_v55  ;;  %v9889_v32 = vpop.eup %9888  ;;  %v5103_v22 = vsel %vm201_vm2, %v5078_v36, 0.0  ;;  %v5131_v24 = vsel %vm201_vm2, %v9887_v14, 0.0  ;;  %v5080_v27 = vmul.f32 %v9887_v14, %v5044_v2 }
0x1a6c   :  { %v9891_v5 = vpop.eup %9890  ;;  %v5132_v52 = vadd.f32 %v5131_v24, %v5130_v28  ;;  %v5133_v1 = vsel %vm201_vm2, %v9889_v32, 0.0  ;;  %v5104_v46 = vadd.f32 %v5103_v22, %v5102_v20  ;;  %v5082_v62 = vmul.f32 %v9889_v32, %v5048_v49 }
0x1a6d   :  { %v9893_v61 = vpop.eup %9892  ;;  %v5125_v31 = vadd.f32 %v5124_v10, %v5123_v15  ;;  %v5126_v37 = vsel %vm201_vm2, %v9891_v5, 0.0  ;;  %v5105_v25 = vsel %vm201_vm2, %v5080_v27, 0.0  ;;  %v5052_v14 = vpop.permute.xlu1 %5051  ;;  %v5083_v35 = vmul.f32 %v9879_v63, %v5050_v0 }
0x1a6e   :  { %v9895_v51 = vpop.eup %9894  ;;  %v5134_v34 = vadd.f32 %v5133_v1, %v5132_v52  ;;  %v5135_v41 = vsel %vm201_vm2, %v9893_v61, 0.0  ;;  %v5106_v19 = vadd.f32 %v5105_v25, %v5104_v46  ;;  %v5084_v16 = vmul.f32 %v9893_v61, %v5052_v14  ;;  %v5054_v13 = vpop.permute.xlu0 %5053 }
0x1a6f   :  { %v9897_v60 = vpop.eup %9896  ;;  %v5127_v55 = vadd.f32 %v5126_v37, %v5125_v31  ;;  %v5137_v8 = vsel %vm201_vm2, %v9895_v51, 0.0  ;;  %v5107_v54 = vsel %vm201_vm2, %v5082_v62, 0.0  ;;  %v5095_v32 = vadd.f32 %v5094_v57, %v5093_v11 }
0x1a70   :  { %v5136_v21 = vadd.f32 %v5135_v41, %v5134_v34  ;;  %v5139_v36 = vsel %vm201_vm2, %v9897_v60, 0.0  ;;  %v5108_v28 = vadd.f32 %v5107_v54, %v5106_v19  ;;  %v5085_v20 = vmul.f32 %v9885_v9, %v5054_v13 }
0x1a71   :  { %9898 = vrcp.f32 %v5127_v55  ;;  %v5056_v10 = vpop.permute.xlu1 %5055  ;;  %v5096_v22 = vsel %vm201_vm2, %v5083_v35, 0.0  ;;  %v5109_v2 = vsel %vm201_vm2, %v5084_v16, 0.0  ;;  %v4484_v35 = vadd.f32 %v11846_v30, %v11824_v26  ;;  %v5463_v16 = vld [vmem:[%s12969_s2 + $0x90] sm:$0xff]  ;;  %v5465_v26 = vld [vmem:[%s12969_s2 + $0xa0] sm:$0xff] }
0x1a72   :  { %v5138_v12 = vadd.f32 %v5137_v8, %v5136_v21  ;;  %v5086_v24 = vmul.f32 %v9895_v51, %v5056_v10  ;;  %v5097_v31 = vadd.f32 %v5096_v22, %v5095_v32  ;;  %v5110_v52 = vadd.f32 %v5109_v2, %v5108_v28  ;;  %v5058_v58 = vpop.permute.xlu0 %5057  ;;  %v9640_v10 = vld [vmem:[%s12966_s4 + $0x1f8] sm:$0xff]  }
0x1a73   :  { %v5087_v27 = vmul.f32 %v9891_v5, %v5058_v58  ;;  %v5098_v61 = vsel %vm201_vm2, %v5085_v20, 0.0  ;;  %v12008_v54 = vadd.f32 %v4484_v35, %v11580_v29  ;;  %v12011_v32 = vadd.f32 %v5463_v16, %v11851_v53  ;;  %9228 = vmatpush3.bf16.msra.mxu0 %v9640_v10 }
0x1a74   :  { %v5140_v15 = vadd.f32 %v5139_v36, %v5138_v12  ;;  %v5111_v47 = vsel %vm201_vm2, %v5086_v24, 0.0  ;;  %v5099_v46 = vadd.f32 %v5098_v61, %v5097_v31  ;;  %v5459_v12 = vld [vmem:[%s12969_s2 + $0x70] sm:$0xff]  ;;  %9229 = vmatprep.subr.bf16.mxu0 %v12978_v44 }
0x1a75   :  { %v5060_v63 = vpop.permute.xlu1 %5059  ;;  %v5112_v34 = vadd.f32 %v5111_v47, %v5110_v52  ;;  %v5100_v9 = vsel %vm201_vm2, %v5087_v27, 0.0  ;;  %v11990_v14 = vadd.f32 %v5459_v12, %v11837_v4  ;;  %v12019_v30 = vadd.f32 %v5465_v26, %v12008_v54  ;;  %v5460_v27 = vld [vmem:[%s12969_s2 + $0x78] sm:$0xff] }
0x1a76   :  { %9900 = vrcp.f32 %v5140_v15  ;;  %v5088_v1 = vmul.f32 %v9897_v60, %v5060_v63  ;;  %v5101_v51 = vadd.f32 %v5100_v9, %v5099_v46  ;;  %v8251_v60 = vld [vmem:[%s12967_s6 + $0x81] ss:$0 sm:$0xff]  ;;  %v5528_v13 = vsel %vm201_vm2, %v12011_v32, 0.0  ;;  %v9658_v4 = vld [vmem:[%s12966_s4 + $0x178] sm:$0xff]  }
0x1a77   :  { %v5516_v57 = vsel %vm201_vm2, %v11990_v14, 0.0  ;;  %v5534_v29 = vsel %vm201_vm2, %v12019_v30, 0.0  ;;  %v12044_v47 = vadd.f32 %v5460_v27, %v11842_v42 }
0x1a78   :  { %v5113_v37 = vsel %vm201_vm2, %v5088_v1, 0.0 }
0x1a79   :  { %v5114_v41 = vadd.f32 %v5113_v37, %v5112_v34  ;;  %v5462_v34 = vld [vmem:[%s12969_s2 + $0x88] sm:$0xff] }
0x1a7a   :  { %v12051_v9 = vadd.f32 %v5462_v34, %v11833_v40 }
0x1a7e   :  { %v9899_v39 = vpop.eup %9898 }
0x1a7f   :  { %v5142_v56 = vmul.f32 %v9899_v39, %v5101_v51  ;;  %v5519_v51 = vsel %vm201_vm2, %v12044_v47, 0.0 }
0x1a83   :  { %v9901_v49 = vpop.eup %9900 }
0x1a84   :  { %v5144_v55 = vmul.f32 %v9901_v49, %v5114_v41  ;;  %v5464_v41 = vld [vmem:[%s12969_s2 + $0x98] sm:$0xff] }
0x1a86   :  { %v5149_v21 = vpack.c.bf16 %v5144_v55, %v5142_v56  ;;  %v12059_v56 = vadd.f32 %v5464_v41, %v11854_v7 }
0x1a88   :  { %9224 = vmatmul.mubr.msk.bf16.vlgmr.msra.gmra.mxu1 %vm201_vm2, %v5149_v21 }
0x1a89   :  { %9239 = vmatprep.mubr.msk.bf16.mxu1 %vm10084_vm0, %v12978_v44 }
0x1b48   :  { %v5199_v5 = vpop.f32.mrf.mxu1 }
0x1b49   :  { %v5206_v33 = vadd.f32 %v5199_v5, %v11641_v3  ;;  %v5525_v5 = vsel %vm201_vm2, %v12051_v9, 0.0 }
0x1b4a   :  { %v9225_v62 = vpop.f32.mrf.mxu1 }
0x1b4b   :  { %v11979_v25 = vadd.f32 %v8251_v60, %v5206_v33  ;;  %v5531_v62 = vsel %vm201_vm2, %v12059_v56, 0.0 }
0x1b4c   :  { %v5202_v8 = vpop.f32.mrf.mxu1 }
0x1b4d   :  { %v5207_v11 = vadd.f32 %v5202_v8, %v11644_v18  ;;  %v5217_v19 = vsel %vm201_vm2, %v11979_v25, 0.0  ;;  %v5461_v18 = vld [vmem:[%s12969_s2 + $0x80] sm:$0xff] }
0x1b4e   :  { %5218 = vadd.xlane.f32.xlu0 %v5217_v19  ;;  %v9226_v36 = vpop.f32.mrf.mxu1  ;;  %v11998_v15 = vadd.f32 %v5461_v18, %v11830_v6  ;;  %v9659_v6 = vld [vmem:[%s12966_s4 + $0x170] sm:$0xff]  }
0x1b4f   :  { %v11987_v0 = vadd.f32 %v8251_v60, %v5207_v11 }
0x1b50   :  { %v5522_v28 = vsel %vm201_vm2, %v11998_v15, 0.0 }
0x1b51   :  { %v5220_v3 = vsel %vm201_vm2, %v11987_v0, 0.0 }
0x1b52   :  { %5221 = vadd.xlane.f32.xlu1 %v5220_v3 }
0x1b56   :  { %5517 = vadd.xlane.f32.xlu1 %v5516_v57 }
0x1b5a   :  { %5523 = vadd.xlane.f32.xlu1 %v5522_v28 }
0x1b5e   :  { %5529 = vadd.xlane.f32.xlu1 %v5528_v13  ;;  %v9641_v13 = vld [vmem:[%s12966_s4 + $0x1f0] sm:$0xff]  }
0x1b5f   :  { %9230 = vmatpush3.bf16.msra.mxu0 %v9641_v13  ;;  %v8254_v13 = vld [vmem:[%s12967_s6 + $0x86] ss:$0 sm:$0xff] }
0x1b60   :  { %9243 = vmatprep.subr.bf16.mxu0 %v12978_v44 }
0x1b62   :  { %5535 = vadd.xlane.f32.xlu1 %v5534_v29 }
0x1bd7   :  { %v5219_v20 = vpop.xlane.xlu0 %5218 }
0x1bd8   :  { %v5223_v22 = vmul.f32 0.03125, %v5219_v20 }
0x1bda   :  { %v12030_v24 = vsub.f32 %v11979_v25, %v5223_v22 }
0x1bdb   :  { %v5222_v2 = vpop.xlane.xlu1 %5221 }
0x1bdc   :  { %v5224_v31 = vmul.f32 0.03125, %v5222_v2  ;;  %v5227_v52 = vmul.f32 %v12030_v24, %v12030_v24 }
0x1bde   :  { %v12035_v58 = vsub.f32 %v11987_v0, %v5224_v31  ;;  %v5229_v63 = vsel %vm201_vm2, %v5227_v52, 0.0 }
0x1bdf   :  { %5230 = vadd.xlane.f32.xlu0 %v5229_v63  ;;  %v5518_v61 = vpop.xlane.xlu1 %5517 }
0x1be0   :  { %v5228_v1 = vmul.f32 %v12035_v58, %v12035_v58  ;;  %v5537_v37 = vmul.f32 0.03125, %v5518_v61 }
0x1be2   :  { %v5232_v46 = vsel %vm201_vm2, %v5228_v1, 0.0  ;;  %v12062_v55 = vsub.f32 %v11990_v14, %v5537_v37 }
0x1be3   :  { %5233 = vadd.xlane.f32.xlu0 %v5232_v46  ;;  %v5524_v39 = vpop.xlane.xlu1 %5523 }
0x1be4   :  { %v5539_v21 = vmul.f32 0.03125, %v5524_v39  ;;  %v5551_v8 = vmul.f32 %v12062_v55, %v12062_v55 }
0x1be6   :  { %v12067_v60 = vsub.f32 %v11998_v15, %v5539_v21  ;;  %v5558_v36 = vsel %vm201_vm2, %v5551_v8, 0.0 }
0x1be7   :  { %5520 = vadd.xlane.f32.xlu0 %v5519_v51  ;;  %v5530_v49 = vpop.xlane.xlu1 %5529 }
0x1be8   :  { %v5541_v33 = vmul.f32 0.03125, %v5530_v49  ;;  %v5553_v3 = vmul.f32 %v12067_v60, %v12067_v60 }
0x1bea   :  { %v12074_v19 = vsub.f32 %v12011_v32, %v5541_v33  ;;  %v5564_v35 = vsel %vm201_vm2, %v5553_v3, 0.0 }
0x1beb   :  { %5526 = vadd.xlane.f32.xlu0 %v5525_v5  ;;  %v5536_v11 = vpop.xlane.xlu1 %5535 }
0x1bec   :  { %v5543_v12 = vmul.f32 0.03125, %v5536_v11  ;;  %v5555_v57 = vmul.f32 %v12074_v19, %v12074_v19 }
0x1bee   :  { %v12080_v18 = vsub.f32 %v12019_v30, %v5543_v12  ;;  %v5570_v16 = vsel %vm201_vm2, %v5555_v57, 0.0 }
0x1bef   :  { %5532 = vadd.xlane.f32.xlu0 %v5531_v62  ;;  %v8252_v62 = vld [vmem:[%s12967_s6 + $0x84] ss:$0 sm:$0xff] }
0x1bf0   :  { %v5557_v28 = vmul.f32 %v12080_v18, %v12080_v18 }
0x1bf2   :  { %v5576_v26 = vsel %vm201_vm2, %v5557_v28, 0.0 }
0x1bf3   :  { %5559 = vadd.xlane.f32.xlu0 %v5558_v36 }
0x1bf7   :  { %5565 = vadd.xlane.f32.xlu0 %v5564_v35 }
0x1bfb   :  { %5571 = vadd.xlane.f32.xlu0 %v5570_v16 }
0x1bff   :  { %5577 = vadd.xlane.f32.xlu0 %v5576_v26  ;;  %v9643_v26 = vld [vmem:[%s12966_s4 + $0x200] sm:$0xff]  }
0x1c68   :  { %v5231_v29 = vpop.xlane.xlu0 %5230 }
0x1c69   :  { %v5235_v10 = vmul.f32 0.03125, %v5231_v29 }
0x1c6b   :  { %v5237_v20 = vadd.f32 1e-05, %v5235_v10 }
0x1c6c   :  { %v5234_v22 = vpop.xlane.xlu0 %5233 }
0x1c6d   :  { %9902 = vrsqrt.f32 %v5237_v20  ;;  %v5236_v2 = vmul.f32 0.03125, %v5234_v22 }
0x1c6f   :  { %v5238_v31 = vadd.f32 1e-05, %v5236_v2 }
0x1c70   :  { %v5521_v52 = vpop.xlane.xlu0 %5520 }
0x1c71   :  { %9904 = vrsqrt.f32 %v5238_v31  ;;  %v5538_v63 = vmul.f32 0.03125, %v5521_v52 }
0x1c73   :  { %v12094_v27 = vsub.f32 %v12044_v47, %v5538_v63 }
0x1c74   :  { %v5527_v61 = vpop.xlane.xlu0 %5526 }
0x1c75   :  { %v5540_v1 = vmul.f32 0.03125, %v5527_v61  ;;  %v5552_v46 = vmul.f32 %v12094_v27, %v12094_v27 }
0x1c77   :  { %v12099_v34 = vsub.f32 %v12051_v9, %v5540_v1  ;;  %v5561_v39 = vsel %vm201_vm2, %v5552_v46, 0.0  ;;  %v9644_v1 = vld [vmem:[%s12966_s4 + $0x218] sm:$0xff]   ;;  %v9645_v46 = vld [vmem:[%s12966_s4 + $0x210] sm:$0xff]  }
0x1c78   :  { %5562 = vadd.xlane.f32.xlu1 %v5561_v39  ;;  %v5533_v37 = vpop.xlane.xlu0 %5532  ;;  %v12146_v39 = vld [vmem:[%s12966_s4 + $0x138] sm:$0xff]  }
0x1c79   :  { %v5542_v51 = vmul.f32 0.03125, %v5533_v37  ;;  %v5554_v41 = vmul.f32 %v12099_v34, %v12099_v34 }
0x1c7a   :  { %v9903_v49 = vpop.eup %9902 }
0x1c7b   :  { %v5241_v21 = vmul.f32 %v9903_v49, %v12030_v24  ;;  %v12106_v5 = vsub.f32 %v12059_v56, %v5542_v51  ;;  %v5567_v33 = vsel %vm201_vm2, %v5554_v41, 0.0  ;;  %v8253_v24 = vld [vmem:[%s12967_s6 + $0x85] ss:$0 sm:$0xff] }
0x1c7c   :  { %5568 = vadd.xlane.f32.xlu1 %v5567_v33  ;;  %v5560_v51 = vpop.xlane.xlu0 %5559 }
0x1c7d   :  { %v5556_v8 = vmul.f32 %v12106_v5, %v12106_v5  ;;  %v5247_v12 = vmul.f32 %v8252_v62, %v5241_v21  ;;  %v5579_v33 = vmul.f32 0.03125, %v5560_v51 }
0x1c7e   :  { %v9905_v11 = vpop.eup %9904 }
0x1c7f   :  { %v5242_v36 = vmul.f32 %v9905_v11, %v12035_v58  ;;  %v5573_v3 = vsel %vm201_vm2, %v5556_v8, 0.0  ;;  %v5253_v57 = vadd.f32 %v8253_v24, %v5247_v12  ;;  %v9642_v58 = vld [vmem:[%s12966_s4 + $0x208] sm:$0xff]   ;;  %v5586_v11 = vadd.f32 1e-05, %v5579_v33 }
0x1c80   :  { %5574 = vadd.xlane.f32.xlu1 %v5573_v3  ;;  %9236 = vmatpush3.bf16.msra.mxu1 %v9642_v58  ;;  %v5566_v49 = vpop.xlane.xlu0 %5565 }
0x1c81   :  { %v5248_v35 = vmul.f32 %v8252_v62, %v5242_v36  ;;  %9237 = vmatprep.subr.bf16.mxu1 %v12978_v44 }
0x1c83   :  { %v5254_v16 = vadd.f32 %v8253_v24, %v5248_v35  ;;  %v5581_v24 = vmul.f32 0.03125, %v5566_v49 }
0x1c84   :  { %9238 = vmatpush3.bf16.msra.mxu1 %v9643_v26  ;;  %v5572_v12 = vpop.xlane.xlu0 %5571 }
0x1c85   :  { %v5259_v28 = vpack.c.bf16 %v5254_v16, %v5253_v57  ;;  %9251 = vmatprep.subr.bf16.mxu1 %v12978_v44  ;;  %v5583_v35 = vmul.f32 0.03125, %v5572_v12  ;;  %v5588_v58 = vadd.f32 1e-05, %v5581_v24 }
0x1c87   :  { %9232 = vmatmul.mubr.msk.bf16.vlgmr.msra.gmra.mxu0 %vm201_vm2, %v5259_v28  ;;  %v5590_v26 = vadd.f32 1e-05, %v5583_v35 }
0x1c88   :  { %9247 = vmatprep.mubr.msk.bf16.mxu0 %vm10084_vm0, %v12978_v44  ;;  %9244 = vmatpush3.bf16.msra.mxu0 %v9644_v1  ;;  %v5578_v16 = vpop.xlane.xlu0 %5577 }
0x1c89   :  { %9245 = vmatprep.subr.bf16.mxu0 %v12978_v44 }
0x1c8c   :  { %9246 = vmatpush3.bf16.msra.mxu0 %v9645_v46 }
0x1c8d   :  { %9259 = vmatprep.subr.bf16.mxu0 %v12146_v39 }
0x1d01   :  { %v5563_v37 = vpop.xlane.xlu1 %5562 }
0x1d02   :  { %v5580_v21 = vmul.f32 0.03125, %v5563_v37 }
0x1d04   :  { %v5587_v62 = vadd.f32 1e-05, %v5580_v21 }
0x1d05   :  { %v5569_v41 = vpop.xlane.xlu1 %5568 }
0x1d06   :  { %v5582_v36 = vmul.f32 0.03125, %v5569_v41  ;;  %9906 = vrsqrt.f32 %v5587_v62 }
0x1d07   :  { %9908 = vrsqrt.f32 %v5586_v11 }
0x1d08   :  { %v5589_v57 = vadd.f32 1e-05, %v5582_v36 }
0x1d09   :  { %v5575_v8 = vpop.xlane.xlu1 %5574 }
0x1d0a   :  { %v5584_v3 = vmul.f32 0.03125, %v5575_v8  ;;  %9910 = vrsqrt.f32 %v5589_v57 }
0x1d0c   :  { %v5591_v28 = vadd.f32 1e-05, %v5584_v3 }
0x1d0e   :  { %9912 = vrsqrt.f32 %v5591_v28 }
0x1d0f   :  { %9914 = vrsqrt.f32 %v5588_v58 }
0x1d10   :  { %9916 = vrsqrt.f32 %v5590_v26 }
0x1d47   :  { %v5314_v29 = vpop.f32.mrf.mxu0 }
0x1d48   :  { %v5315_v20 = vadd.f32 %v8254_v13, %v5314_v29 }
0x1d49   :  { %v9233_v10 = vpop.f32.mrf.mxu0 }
0x1d4a   :  { %v5321_v52 = vmax.f32 %v5315_v20, 0.0  ;;  %v9907_v10 = vpop.eup %9906 }
0x1d4b   :  { %v5317_v22 = vpop.f32.mrf.mxu0  ;;  %v9909_v20 = vpop.eup %9908 }
0x1d4c   :  { %v5318_v2 = vadd.f32 %v8254_v13, %v5317_v22  ;;  %v5585_v13 = vmul.f32 0.03125, %v5578_v16  ;;  %v5601_v22 = vmul.f32 %v9907_v10, %v12094_v27 }
0x1d4d   :  { %v9234_v31 = vpop.f32.mrf.mxu0 }
0x1d4e   :  { %v5322_v63 = vmax.f32 %v5318_v2, 0.0  ;;  %v5592_v29 = vadd.f32 1e-05, %v5585_v13  ;;  %v8258_v2 = vld [vmem:[%s12967_s6 + $0x87] ss:$0 sm:$0xff] }
0x1d50   :  { %v5327_v61 = vpack.c.bf16 %v5322_v63, %v5321_v52  ;;  %9918 = vrsqrt.f32 %v5592_v29  ;;  %v5600_v52 = vmul.f32 %v9909_v20, %v12062_v55  ;;  %v8267_v63 = vld [vmem:[%s12967_s6 + $0x6a] ss:$0 sm:$0xff]  ;;  %v8268_v55 = vld [vmem:[%s12967_s6 + $0x6b] ss:$0 sm:$0xff] }
0x1d51   :  { %v5612_v46 = vmul.f32 %v8267_v63, %v5601_v22 }
0x1d52   :  { %9240 = vmatmul.mubr.msk.bf16.vlgmr.msra.gmra.mxu1 %vm201_vm2, %v5327_v61  ;;  %v9911_v61 = vpop.eup %9910  ;;  %v5611_v21 = vmul.f32 %v8267_v63, %v5600_v52 }
0x1d53   :  { %9255 = vmatprep.mubr.msk.bf16.mxu1 %vm10084_vm0, %v12978_v44  ;;  %v9913_v37 = vpop.eup %9912  ;;  %v5603_v33 = vmul.f32 %v9911_v61, %v12099_v34  ;;  %v5623_v11 = vadd.f32 %v8268_v55, %v5612_v46  ;;  %v9647_v34 = vld [vmem:[%s12966_s4 + $0x130] sm:$0xff]   ;;  %v9649_v46 = vld [vmem:[%s12965_s5 + $0x20] sm:$0xff]  }
0x1d54   :  { %v9915_v41 = vpop.eup %9914  ;;  %v5605_v12 = vmul.f32 %v9913_v37, %v12106_v5  ;;  %v5622_v35 = vadd.f32 %v8268_v55, %v5611_v21  ;;  %v10066_v61 = vld [vmem:[%s12965_s5 + $0xd0] sm:$0xff]   ;;  %v8262_v37 = vld [vmem:[%s12967_s6 + $0x88] ss:$0 sm:$0xff] }
0x1d55   :  { %v9917_v27 = vpop.eup %9916  ;;  %v5602_v36 = vmul.f32 %v9915_v41, %v12067_v60  ;;  %v5614_v16 = vmul.f32 %v8267_v63, %v5603_v33 }
0x1d56   :  { %v5604_v57 = vmul.f32 %v9917_v27, %v12074_v19  ;;  %v5701_v26 = vpack.c.bf16 %v5623_v11, %v5622_v35  ;;  %v5616_v13 = vmul.f32 %v8267_v63, %v5605_v12 }
0x1d57   :  { %v5613_v29 = vmul.f32 %v8267_v63, %v5602_v36  ;;  %v5625_v19 = vadd.f32 %v8268_v55, %v5614_v16  ;;  %v8266_v16 = vld [vmem:[%s12967_s6 + $0x66] ss:$0 sm:$0xff] }
0x1d58   :  { %v5615_v60 = vmul.f32 %v8267_v63, %v5604_v57  ;;  %v5627_v10 = vadd.f32 %v8268_v55, %v5616_v13  ;;  %v5483_v13 = vmul.f32 %v8266_v16, %v10209_v45  ;;  %v10069_v45 = vld [vmem:[%s12965_s5 + $0x70] sm:$0xff]  }
0x1d59   :  { %v5624_v20 = vadd.f32 %v8268_v55, %v5613_v29 }
0x1d5a   :  { %v5626_v22 = vadd.f32 %v8268_v55, %v5615_v60 }
0x1d5c   :  { %v5703_v52 = vpack.c.bf16 %v5627_v10, %v5626_v22  ;;  %v10070_v22 = vld [vmem:[%s12965_s5 + $0x78] sm:$0xff]  }
0x1d5d   :  { %v9919_v58 = vpop.eup %9918 }
0x1d5e   :  { %v5606_v5 = vmul.f32 %v9919_v58, %v12080_v18 }
0x1e12   :  { %v5382_v31 = vpop.f32.mrf.mxu1 }
0x1e13   :  { %v5383_v51 = vadd.f32 %v8258_v2, %v5382_v31  ;;  %v5617_v31 = vmul.f32 %v8267_v63, %v5606_v5 }
0x1e14   :  { %v9241_v1 = vpop.f32.mrf.mxu1 }
0x1e15   :  { %v5389_v3 = vmax.f32 %v5383_v51, 0.0  ;;  %v5628_v18 = vadd.f32 %v8268_v55, %v5617_v31  ;;  %v9648_v1 = vld [vmem:[%s12965_s5 + $0x28] sm:$0xff]  }
0x1e16   :  { %v5385_v49 = vpop.f32.mrf.mxu1  ;;  %9252 = vmatpush3.bf16.msra.mxu1 %v9648_v1  ;;  %v10072_v31 = vld [vmem:[%s12965_s5 + $0x88] sm:$0xff]  }
0x1e17   :  { %v5386_v62 = vadd.f32 %v8258_v2, %v5385_v49  ;;  %v5702_v2 = vpack.c.bf16 %v5625_v19, %v5624_v20  ;;  %v5704_v63 = vpack.c.bf16 %v5628_v18, %v5628_v18  ;;  %9253 = vmatprep.subr.bf16.mxu1 %v12978_v44  ;;  %v10067_v20 = vld [vmem:[%s12965_s5 + $0x60] sm:$0xff]   ;;  %v8273_v18 = vld [vmem:[%s12967_s6 + $0x68] ss:$0 sm:$0xff] }
0x1e18   :  { %v9242_v8 = vpop.f32.mrf.mxu1 }
0x1e19   :  { %v5390_v24 = vmax.f32 %v5386_v62, 0.0 }
0x1e1a   :  { %9254 = vmatpush3.bf16.msra.mxu1 %v9649_v46 }
0x1e1b   :  { %v5395_v28 = vpack.c.bf16 %v5390_v24, %v5389_v3  ;;  %9271 = vmatprep.subr.bf16.mxu1 %v12978_v44 }
0x1e1d   :  { %9248 = vmatmul.mubr.msk.bf16.vlgmr.msra.gmra.mxu0 %vm201_vm2, %v5395_v28 }
0x1e1e   :  { %9260 = vmatpush3.bf16.msra.mxu0 %v12146_v39  ;;  %9263 = vmatprep.mubr.msk.bf16.mxu0 %vm201_vm2, %v5701_v26  ;;  %v10065_v39 = vld [vmem:[%s12965_s5 + $0xd8] sm:$0xff]   ;;  %v5482_v26 = vmul.f32 %v8266_v16, %v10216_v50  ;;  %v10068_v50 = vld [vmem:[%s12965_s5 + $0x68] sm:$0xff]  }
0x1e1f   :  { %9261 = vmatprep.subr.bf16.mxu0 %v9647_v34 }
0x1e22   :  { %9262 = vmatpush3.bf16.msra.mxu0 %v9647_v34 }
0x1e23   :  { %9301 = vmatprep.subr.bf16.mxu0 %v12978_v44 }
0x1e25   :  { %9264 = vmatmul.mubr.msk.bf16.vlgmr.msra.gmra.mxu0 %vm201_vm2, %v5702_v2  ;;  %v10071_v2 = vld [vmem:[%s12965_s5 + $0x80] sm:$0xff]  }
0x1e26   :  { %9267 = vmatprep.mubr.msk.bf16.mxu0 %vm201_vm2, %v5703_v52  ;;  %9302 = vmatpush3.bf16.msra.mxu0 %v10065_v39  ;;  %v10073_v52 = vld [vmem:[%s12965_s5 + $0x90] sm:$0xff]  }
0x1e27   :  { %9303 = vmatprep.subr.bf16.mxu0 %v12978_v44 }
0x1e2a   :  { %9304 = vmatpush3.bf16.msra.mxu0 %v10066_v61 }
0x1e2d   :  { %9268 = vmatmul.mubr.msk.bf16.gmra.mxu0 %vm201_vm2, %v5704_v63 }
0x1e2e   :  { %9305 = vmatprep.mubr.msk.bf16.mxu0 %vm10084_vm0, %v12978_v44 }
0x1edd   :  { %v5450_v51 = vpop.f32.mrf.mxu0 }
0x1ede   :  { %v5451_v49 = vadd.f32 %v8262_v37, %v5450_v51 }
0x1edf   :  { %v9249_v41 = vpop.f32.mrf.mxu0 }
0x1ee0   :  { %v12196_v62 = vadd.f32 %v5451_v49, %v11979_v25 }
0x1ee1   :  { %v5453_v21 = vpop.f32.mrf.mxu0 }
0x1ee2   :  { %v5454_v27 = vadd.f32 %v8262_v37, %v5453_v21 }
0x1ee3   :  { %v9250_v33 = vpop.f32.mrf.mxu0 }
0x1ee4   :  { %v12199_v55 = vadd.f32 %v5454_v27, %v11987_v0  ;;  %v8269_v0 = vld [vmem:[%s12967_s6 + $0x67] ss:$0 sm:$0xff] }
0x1ee5   :  { %v9265_v8 = vpop.f32.mrf.mxu0 }
0x1ee6   :  { %v5633_v11 = vpack.c.bf16 %v12199_v55, %v12196_v62  ;;  %v5777_v33 = vadd.f32 %v9265_v8, %v8273_v18 }
0x1ee7   :  { %v5768_v12 = vpop.f32.mrf.mxu0 }
0x1ee8   :  { %9256 = vmatmul.mubr.msk.bf16.vlgmr.msra.gmra.mxu1 %vm201_vm2, %v5633_v11  ;;  %v5769_v63 = vadd.f32 %v8273_v18, %v5768_v12 }
0x1ee9   :  { %v9266_v36 = vpop.f32.mrf.mxu0  ;;  %9273 = vmatprep.mubr.msk.bf16.mxu1 %vm10084_vm0, %v12978_v44 }
0x1eea   :  { %v5780_v11 = vadd.f32 %v9266_v36, %v8273_v18 }
0x1eeb   :  { %v5771_v3 = vpop.f32.mrf.mxu0 }
0x1eec   :  { %v5772_v1 = vadd.f32 %v8273_v18, %v5771_v3 }
0x1eed   :  { %v12206_v24 = vpop.f32.mrf.mxu0 }
0x1eef   :  { %v12208_v35 = vpop.f32.mrf.mxu0 }
0x1ef0   :  { %v5785_v8 = vadd.f32 %v8273_v18, %v12208_v35 }
0x1ef1   :  { %v9270_v25 = vpop.f32.mrf.mxu0 }
0x1ef3   :  { %v5787_v16 = vpop.f32.mrf.mxu0 }
0x1ef4   :  { %v5788_v36 = vadd.f32 %v8273_v18, %v5787_v16 }
0x1fa8   :  { %v5688_v57 = vpop.f32.mrf.mxu1 }
0x1fa9   :  { %v5689_v34 = vadd.f32 %v8269_v0, %v5688_v57 }
0x1faa   :  { %v9257_v28 = vpop.f32.mrf.mxu1 }
0x1fab   :  { %v5695_v5 = vadd.f32 %v5689_v34, %v5482_v26 }
0x1fac   :  { %v5691_v58 = vpop.f32.mrf.mxu1 }
0x1fad   :  { %v5692_v29 = vadd.f32 %v8269_v0, %v5691_v58 }
0x1fae   :  { %v9258_v60 = vpop.f32.mrf.mxu1 }
0x1faf   :  { %v5696_v19 = vadd.f32 %v5692_v29, %v5483_v13 }
0x1fb1   :  { %v5798_v10 = vpack.c.bf16 %v5696_v19, %v5695_v5 }
0x1fb3   :  { %9272 = vmatpush3.bf16.msra.mxu1 %v5798_v10  ;;  %v5793_v10 = vadd.f32 %v12206_v24, %v8273_v18 }
0x1fb6   :  { %9274 = vmatmul.mubr.msk.bf16.vlgmr.msra.gmra.mxu1 %vm91_vm1, %v10067_v20 }
0x1fb7   :  { %9277 = vmatprep.mubr.msk.bf16.mxu1 %vm10084_vm0, %v12978_v44 }
0x1fbe   :  { %9278 = vmatmul.mubr.msk.bf16.gmra.mxu1 %vm91_vm1, %v10068_v50 }
0x1fbf   :  { %9281 = vmatprep.mubr.msk.bf16.mxu1 %vm10084_vm0, %v12978_v44 }
0x1fc6   :  { %9282 = vmatmul.mubr.msk.bf16.gmra.mxu1 %vm91_vm1, %v10069_v45 }
0x1fc7   :  { %9285 = vmatprep.mubr.msk.bf16.mxu1 %vm10084_vm0, %v12978_v44 }
0x1fce   :  { %9286 = vmatmul.mubr.msk.bf16.gmra.mxu1 %vm91_vm1, %v10070_v22 }
0x1fcf   :  { %9289 = vmatprep.mubr.msk.bf16.mxu1 %vm10084_vm0, %v12978_v44 }
0x1fd6   :  { %9290 = vmatmul.mubr.msk.bf16.gmra.mxu1 %vm91_vm1, %v10071_v2 }
0x1fd7   :  { %9293 = vmatprep.mubr.msk.bf16.mxu1 %vm10084_vm0, %v12978_v44 }
0x1fde   :  { %9294 = vmatmul.mubr.msk.bf16.gmra.mxu1 %vm91_vm1, %v10072_v31 }
0x1fdf   :  { %9297 = vmatprep.mubr.msk.bf16.mxu1 %vm10084_vm0, %v12978_v44 }
0x1fe6   :  { %9298 = vmatmul.mubr.msk.bf16.gmra.mxu1 %vm91_vm1, %v10073_v52 }
0x2076   :  { %v5833_v39 = vpop.f32.mrf.mxu1 }
0x2077   :  { %6110 = vrot.lane.b32.xlu1 %v5833_v39, %s10090_s22  ;;  %v5888_v37 = vmul.f32 %v5833_v39, %v5769_v63 }
0x2078   :  { %v9275_v61 = vpop.f32.mrf.mxu1 }
0x207a   :  { %v5836_v46 = vpop.f32.mrf.mxu1 }
0x207b   :  { %v5889_v51 = vmul.f32 %v5836_v46, %v5772_v1  ;;  %6112 = vrot.lane.b32.xlu0 %v5836_v46, %s10090_s22 }
0x207c   :  { %v9276_v41 = vpop.f32.mrf.mxu1 }
0x207d   :  { %v5902_v49 = vpack.c.bf16 %v5889_v51, %v5888_v37 }
0x207e   :  { %v5841_v21 = vpop.f32.mrf.mxu1 }
0x207f   :  { %9306 = vmatmul.mubr.msk.bf16.vlgmr.msra.gmra.mxu0 %vm201_vm2, %v5902_v49  ;;  %6114 = vrot.lane.b32.xlu0 %v5841_v21, %s10090_s22  ;;  %v5890_v3 = vmul.f32 %v5841_v21, %v5777_v33 }
0x2080   :  { %v9279_v27 = vpop.f32.mrf.mxu1  ;;  %9309 = vmatprep.mubr.msk.bf16.mxu0 %vm10084_vm0, %v12978_v44 }
0x2082   :  { %v5844_v12 = vpop.f32.mrf.mxu1 }
0x2083   :  { %v5891_v25 = vmul.f32 %v5844_v12, %v5780_v11  ;;  %6116 = vrot.lane.b32.xlu1 %v5844_v12, %s10090_s22 }
0x2084   :  { %v9280_v0 = vpop.f32.mrf.mxu1 }
0x2085   :  { %v5903_v57 = vpack.c.bf16 %v5891_v25, %v5890_v3  ;;  %v9650_v0 = vld [vmem:[%s12966_s4 + $0x148] sm:$0xff]  }
0x2086   :  { %v5849_v28 = vpop.f32.mrf.mxu1  ;;  %9333 = vmatprep.subr.bf16.mxu1 %v9650_v0 }
0x2087   :  { %9310 = vmatmul.mubr.msk.bf16.gmra.mxu0 %vm201_vm2, %v5903_v57  ;;  %6118 = vrot.lane.b32.xlu0 %v5849_v28, %s10090_s22  ;;  %v5892_v26 = vmul.f32 %v5849_v28, %v5785_v8  ;;  %v9651_v57 = vld [vmem:[%s12966_s4 + $0x140] sm:$0xff]  }
0x2088   :  { %v9283_v34 = vpop.f32.mrf.mxu1  ;;  %9313 = vmatprep.mubr.msk.bf16.mxu0 %vm10084_vm0, %v12978_v44  ;;  %9334 = vmatpush3.bf16.msra.mxu1 %v9650_v0 }
0x2089   :  { %9335 = vmatprep.subr.bf16.mxu1 %v9651_v57 }
0x208a   :  { %v5852_v58 = vpop.f32.mrf.mxu1 }
0x208b   :  { %v5893_v13 = vmul.f32 %v5852_v58, %v5788_v36  ;;  %6120 = vrot.lane.b32.xlu1 %v5852_v58, %s10090_s22 }
0x208c   :  { %v9284_v29 = vpop.f32.mrf.mxu1  ;;  %9336 = vmatpush3.bf16.msra.mxu1 %v9651_v57 }
0x208d   :  { %v5904_v60 = vpack.c.bf16 %v5893_v13, %v5892_v26 }
0x208e   :  { %v5857_v5 = vpop.f32.mrf.mxu1 }
0x208f   :  { %9314 = vmatmul.mubr.msk.bf16.gmra.mxu0 %vm201_vm2, %v5904_v60  ;;  %v5894_v50 = vmul.f32 %v5857_v5, %v5793_v10 }
0x2090   :  { %v9287_v19 = vpop.f32.mrf.mxu1  ;;  %9317 = vmatprep.mubr.msk.bf16.mxu0 %vm10084_vm0, %v12978_v44 }
0x2092   :  { %v5860_v20 = vpop.f32.mrf.mxu1 }
0x2093   :  { %v5895_v35 = vmul.f32 %v5860_v20, %v5769_v63  ;;  %6124 = vrot.lane.b32.xlu1 %v5860_v20, %s10090_s22 }
0x2094   :  { %v9288_v45 = vpop.f32.mrf.mxu1 }
0x2095   :  { %v5905_v22 = vpack.c.bf16 %v5895_v35, %v5894_v50 }
0x2096   :  { %v5865_v2 = vpop.f32.mrf.mxu1 }
0x2097   :  { %9318 = vmatmul.mubr.msk.bf16.gmra.mxu0 %vm201_vm2, %v5905_v22  ;;  %6126 = vrot.lane.b32.xlu1 %v5865_v2, %s10090_s22  ;;  %v5896_v39 = vmul.f32 %v5865_v2, %v5772_v1 }
0x2098   :  { %v9291_v31 = vpop.f32.mrf.mxu1  ;;  %9321 = vmatprep.mubr.msk.bf16.mxu0 %vm10084_vm0, %v12978_v44 }
0x209a   :  { %v5868_v52 = vpop.f32.mrf.mxu1 }
0x209b   :  { %v5897_v61 = vmul.f32 %v5868_v52, %v5777_v33  ;;  %6128 = vrot.lane.b32.xlu0 %v5868_v52, %s10090_s22 }
0x209c   :  { %v9292_v24 = vpop.f32.mrf.mxu1 }
0x209d   :  { %v5906_v18 = vpack.c.bf16 %v5897_v61, %v5896_v39 }
0x209e   :  { %v5873_v63 = vpop.f32.mrf.mxu1 }
0x209f   :  { %9322 = vmatmul.mubr.msk.bf16.gmra.mxu0 %vm201_vm2, %v5906_v18  ;;  %6130 = vrot.lane.b32.xlu1 %v5873_v63, %s10090_s22  ;;  %v5898_v51 = vmul.f32 %v5873_v63, %v5780_v11 }
0x20a0   :  { %v9295_v46 = vpop.f32.mrf.mxu1  ;;  %9325 = vmatprep.mubr.msk.bf16.mxu0 %vm10084_vm0, %v12978_v44 }
0x20a2   :  { %v5876_v37 = vpop.f32.mrf.mxu1 }
0x20a3   :  { %v5899_v41 = vmul.f32 %v5876_v37, %v5785_v8  ;;  %6132 = vrot.lane.b32.xlu0 %v5876_v37, %s10090_s22 }
0x20a4   :  { %v9296_v1 = vpop.f32.mrf.mxu1 }
0x20a5   :  { %v5907_v49 = vpack.c.bf16 %v5899_v41, %v5898_v51 }
0x20a6   :  { %v5881_v21 = vpop.f32.mrf.mxu1 }
0x20a7   :  { %6122 = vrot.lane.b32.xlu0 %v5857_v5, %s10090_s22  ;;  %9326 = vmatmul.mubr.msk.bf16.gmra.mxu0 %vm201_vm2, %v5907_v49  ;;  %v5900_v12 = vmul.f32 %v5881_v21, %v5788_v36 }
0x20a8   :  { %6134 = vrot.lane.b32.xlu1 %v5881_v21, %s10090_s22  ;;  %v9299_v27 = vpop.f32.mrf.mxu1  ;;  %9329 = vmatprep.mubr.msk.bf16.mxu0 %vm10084_vm0, %v12978_v44 }
0x20aa   :  { %v5884_v33 = vpop.f32.mrf.mxu1 }
0x20ab   :  { %v5901_v3 = vmul.f32 %v5884_v33, %v5793_v10 }
0x20ac   :  { %6136 = vrot.lane.b32.xlu1 %v5884_v33, %s10090_s22  ;;  %v9300_v11 = vpop.f32.mrf.mxu1 }
0x20ad   :  { %v5908_v25 = vpack.c.bf16 %v5901_v3, %v5900_v12 }
0x20af   :  { %9330 = vmatmul.mubr.msk.bf16.gmra.mxu0 %vm201_vm2, %v5908_v25 }
0x213f   :  { %v5964_v16 = vpop.f32.mrf.mxu0 }
0x2140   :  { %v6019_v50 = vmul.f32 0.35355338, %v5964_v16 }
0x2141   :  { %v9307_v28 = vpop.f32.mrf.mxu0 }
0x2142   :  { %v6033_v2 = vsel %vm201_vm2, %v6019_v50, -inf }
0x2143   :  { %v5967_v34 = vpop.f32.mrf.mxu0 }
0x2144   :  { %v6020_v31 = vmul.f32 0.35355338, %v5967_v34 }
0x2145   :  { %v9308_v8 = vpop.f32.mrf.mxu0 }
0x2146   :  { %v6036_v37 = vsel %vm201_vm2, %v6020_v31, -inf }
0x2147   :  { %v5972_v36 = vpop.f32.mrf.mxu0 }
0x2148   :  { %v6021_v51 = vmul.f32 0.35355338, %v5972_v36 }
0x2149   :  { %v9311_v58 = vpop.f32.mrf.mxu0 }
0x214a   :  { %v6039_v25 = vsel %vm201_vm2, %v6021_v51, -inf }
0x214b   :  { %v5975_v26 = vpop.f32.mrf.mxu0 }
0x214c   :  { %v6022_v0 = vmul.f32 0.35355338, %v5975_v26 }
0x214d   :  { %v9312_v13 = vpop.f32.mrf.mxu0 }
0x214f   :  { %v5980_v29 = vpop.f32.mrf.mxu0 }
0x2151   :  { %v9315_v60 = vpop.f32.mrf.mxu0 }
0x2153   :  { %v5983_v5 = vpop.f32.mrf.mxu0 }
0x2155   :  { %v9316_v19 = vpop.f32.mrf.mxu0 }
0x2156   :  { %v6042_v19 = vsel %vm201_vm2, %v6022_v0, -inf }
0x2157   :  { %v12302_v10 = vpop.f32.mrf.mxu0 }
0x2159   :  { %v9319_v20 = vpop.f32.mrf.mxu0 }
0x215a   :  { %v6023_v20 = vmul.f32 0.35355338, %v5980_v29 }
0x215b   :  { %v5991_v35 = vpop.f32.mrf.mxu0 }
0x215c   :  { %v6026_v45 = vmul.f32 0.35355338, %v5991_v35 }
0x215d   :  { %v9320_v22 = vpop.f32.mrf.mxu0 }
0x215e   :  { %v6034_v52 = vsel %vm201_vm2, %v6026_v45, -inf }
0x215f   :  { %v6035_v39 = vmax.f32 %v6033_v2, %v6034_v52  ;;  %v5996_v61 = vpop.f32.mrf.mxu0 }
0x2160   :  { %v6027_v24 = vmul.f32 0.35355338, %v5996_v61 }
0x2161   :  { %v6054_v18 = vsub.f32 %v6019_v50, %v6035_v39  ;;  %v6061_v63 = vsub.f32 %v6026_v45, %v6035_v39  ;;  %v9323_v46 = vpop.f32.mrf.mxu0 }
0x2162   :  { %v6037_v41 = vsel %vm201_vm2, %v6027_v24, -inf }
0x2163   :  { %v6068_v1 = vmul.f32 1.442695, %v6054_v18  ;;  %v6082_v49 = vmul.f32 1.442695, %v6061_v63  ;;  %v6038_v21 = vmax.f32 %v6036_v37, %v6037_v41  ;;  %v5999_v27 = vpop.f32.mrf.mxu0  ;;  %v6024_v18 = vmul.f32 0.35355338, %v5983_v5 }
0x2164   :  { %v6028_v33 = vmul.f32 0.35355338, %v5999_v27 }
0x2165   :  { %9920 = vpow2.f32 %v6068_v1  ;;  %v6055_v12 = vsub.f32 %v6020_v31, %v6038_v21  ;;  %v6062_v3 = vsub.f32 %v6027_v24, %v6038_v21  ;;  %v9324_v11 = vpop.f32.mrf.mxu0  ;;  %v12312_v31 = vpop.permute.xlu1 %6110  ;;  %v6045_v24 = vsel %vm201_vm2, %v6023_v20, -inf }
0x2166   :  { %9922 = vpow2.f32 %v6082_v49  ;;  %v6040_v57 = vsel %vm201_vm2, %v6028_v33, -inf }
0x2167   :  { %v6070_v16 = vmul.f32 1.442695, %v6055_v12  ;;  %v6084_v28 = vmul.f32 1.442695, %v6062_v3  ;;  %v6041_v34 = vmax.f32 %v6039_v25, %v6040_v57  ;;  %v6004_v8 = vpop.f32.mrf.mxu0  ;;  %v6048_v12 = vsel %vm201_vm2, %v6024_v18, -inf }
0x2168   :  { %v6029_v36 = vmul.f32 0.35355338, %v6004_v8  ;;  %v6025_v3 = vmul.f32 0.35355338, %v12302_v10 }
0x2169   :  { %9924 = vpow2.f32 %v6070_v16  ;;  %v6056_v58 = vsub.f32 %v6021_v51, %v6041_v34  ;;  %v6063_v13 = vsub.f32 %v6028_v33, %v6041_v34  ;;  %v9327_v60 = vpop.f32.mrf.mxu0  ;;  %v12316_v1 = vpop.permute.xlu1 %6116 }
0x216a   :  { %9926 = vpow2.f32 %v6084_v28  ;;  %v6043_v50 = vsel %vm201_vm2, %v6029_v36, -inf }
0x216b   :  { %v6072_v35 = vmul.f32 1.442695, %v6056_v58  ;;  %v6086_v26 = vmul.f32 1.442695, %v6063_v13  ;;  %v6044_v45 = vmax.f32 %v6042_v19, %v6043_v50  ;;  %v6007_v22 = vpop.f32.mrf.mxu0 }
0x216c   :  { %v6030_v2 = vmul.f32 0.35355338, %v6007_v22 }
0x216d   :  { %9928 = vpow2.f32 %v6072_v35  ;;  %v6057_v52 = vsub.f32 %v6022_v0, %v6044_v45  ;;  %v6064_v39 = vsub.f32 %v6029_v36, %v6044_v45  ;;  %v9328_v61 = vpop.f32.mrf.mxu0  ;;  %v12323_v36 = vpop.permute.xlu1 %6120  ;;  %v6051_v35 = vsel %vm201_vm2, %v6025_v3, -inf }
0x216e   :  { %9930 = vpow2.f32 %v6086_v26  ;;  %v6046_v29 = vsel %vm201_vm2, %v6030_v2, -inf }
0x216f   :  { %v6074_v63 = vmul.f32 1.442695, %v6057_v52  ;;  %v6088_v46 = vmul.f32 1.442695, %v6064_v39  ;;  %v6047_v37 = vmax.f32 %v6045_v24, %v6046_v29  ;;  %v6012_v51 = vpop.f32.mrf.mxu0  ;;  %v6113_v39 = vpop.permute.xlu0 %6112 }
0x2170   :  { %v6031_v41 = vmul.f32 0.35355338, %v6012_v51 }
0x2171   :  { %9932 = vpow2.f32 %v6074_v63  ;;  %v6058_v49 = vsub.f32 %v6023_v20, %v6047_v37  ;;  %v6065_v21 = vsub.f32 %v6030_v2, %v6047_v37  ;;  %v9331_v27 = vpop.f32.mrf.mxu0  ;;  %v6125_v61 = vpop.permute.xlu1 %6124 }
0x2172   :  { %v9921_v33 = vpop.eup %9920  ;;  %9934 = vpow2.f32 %v6088_v46  ;;  %v6049_v5 = vsel %vm201_vm2, %v6031_v41, -inf }
0x2173   :  { %v9923_v11 = vpop.eup %9922  ;;  %v6187_v25 = vsel %vm201_vm2, %v9921_v33, 0.0  ;;  %v6076_v0 = vmul.f32 1.442695, %v6058_v49  ;;  %v6090_v57 = vmul.f32 1.442695, %v6065_v21  ;;  %v6050_v16 = vmax.f32 %v6048_v12, %v6049_v5  ;;  %v6015_v28 = vpop.f32.mrf.mxu0 }
0x2174   :  { %v6188_v34 = vsel %vm201_vm2, %v9923_v11, 0.0  ;;  %v6032_v8 = vmul.f32 0.35355338, %v6015_v28  ;;  %v6115_v5 = vpop.permute.xlu0 %6114 }
0x2175   :  { %v6189_v58 = vadd.f32 %v6188_v34, %v6187_v25  ;;  %9936 = vpow2.f32 %v6076_v0  ;;  %v6059_v13 = vsub.f32 %v6024_v18, %v6050_v16  ;;  %v6066_v60 = vsub.f32 %v6031_v41, %v6050_v16  ;;  %v9332_v10 = vpop.f32.mrf.mxu0  ;;  %v6127_v25 = vpop.permute.xlu1 %6126 }
0x2176   :  { %v9925_v19 = vpop.eup %9924  ;;  %9938 = vpow2.f32 %v6090_v57  ;;  %v6052_v20 = vsel %vm201_vm2, %v6032_v8, -inf  ;;  %v6152_v57 = vmul.f32 %v9921_v33, %v12312_v31 }
0x2177   :  { %v9927_v50 = vpop.eup %9926  ;;  %v6190_v26 = vsel %vm201_vm2, %v9925_v19, 0.0  ;;  %v6078_v45 = vmul.f32 1.442695, %v6059_v13  ;;  %v6092_v22 = vmul.f32 1.442695, %v6066_v60  ;;  %9940 = vrcp.f32 %v6189_v58 }
0x2178   :  { %v6191_v2 = vsel %vm201_vm2, %v9927_v50, 0.0  ;;  %v6053_v52 = vmax.f32 %v6051_v35, %v6052_v20  ;;  %v6153_v28 = vmul.f32 %v9925_v19, %v6113_v39  ;;  %v6160_v34 = vmul.f32 %v9927_v50, %v6127_v25  ;;  %v6119_v60 = vpop.permute.xlu0 %6118 }
0x2179   :  { %v6192_v24 = vadd.f32 %v6191_v2, %v6190_v26  ;;  %9942 = vpow2.f32 %v6078_v45  ;;  %v6166_v20 = vsel %vm201_vm2, %v6152_v57, 0.0  ;;  %v6131_v2 = vpop.permute.xlu1 %6130 }
0x217a   :  { %v9929_v18 = vpop.eup %9928  ;;  %9944 = vpow2.f32 %v6092_v22  ;;  %v6060_v29 = vsub.f32 %v6025_v3, %v6053_v52  ;;  %v6067_v63 = vsub.f32 %v6032_v8, %v6053_v52  ;;  %v6159_v3 = vmul.f32 %v9923_v11, %v6125_v61 }
0x217b   :  { %v9931_v46 = vpop.eup %9930  ;;  %9946 = vrcp.f32 %v6192_v24  ;;  %v6193_v37 = vsel %vm201_vm2, %v9929_v18, 0.0  ;;  %v6169_v33 = vsel %vm201_vm2, %v6153_v28, 0.0  ;;  %v6170_v11 = vsel %vm201_vm2, %v6160_v34, 0.0 }
0x217c   :  { %v6194_v51 = vsel %vm201_vm2, %v9931_v46, 0.0  ;;  %v6080_v41 = vmul.f32 1.442695, %v6060_v29  ;;  %v6094_v49 = vmul.f32 1.442695, %v6067_v63  ;;  %v6167_v31 = vsel %vm201_vm2, %v6159_v3, 0.0  ;;  %v6129_v22 = vpop.permute.xlu0 %6128 }
0x217d   :  { %v6195_v21 = vadd.f32 %v6194_v51, %v6193_v37  ;;  %v6154_v52 = vmul.f32 %v9929_v18, %v6115_v5  ;;  %v6168_v61 = vadd.f32 %v6167_v31, %v6166_v20  ;;  %v6171_v24 = vadd.f32 %v6170_v11, %v6169_v33  ;;  %v6135_v34 = vpop.permute.xlu1 %6134 }
0x217e   :  { %v9933_v27 = vpop.eup %9932  ;;  %9948 = vpow2.f32 %v6080_v41  ;;  %v6161_v63 = vmul.f32 %v9931_v46, %v6129_v22 }
0x217f   :  { %v9935_v12 = vpop.eup %9934  ;;  %v6196_v0 = vsel %vm201_vm2, %v9933_v27, 0.0  ;;  %9950 = vpow2.f32 %v6094_v49  ;;  %v6155_v37 = vmul.f32 %v9933_v27, %v12316_v1  ;;  %v6172_v57 = vsel %vm201_vm2, %v6154_v52, 0.0 }
0x2180   :  { %v6197_v16 = vsel %vm201_vm2, %v9935_v12, 0.0  ;;  %9952 = vrcp.f32 %v6195_v21  ;;  %v6162_v51 = vmul.f32 %v9935_v12, %v6131_v2  ;;  %v6173_v5 = vsel %vm201_vm2, %v6161_v63, 0.0  ;;  %v6133_v28 = vpop.permute.xlu0 %6132 }
0x2181   :  { %v6198_v8 = vadd.f32 %v6197_v16, %v6196_v0  ;;  %v6175_v3 = vsel %vm201_vm2, %v6155_v37, 0.0  ;;  %v6137_v63 = vpop.permute.xlu1 %6136 }
0x2182   :  { %v9937_v58 = vpop.eup %9936  ;;  %v6176_v46 = vsel %vm201_vm2, %v6162_v51, 0.0 }
0x2183   :  { %v9939_v13 = vpop.eup %9938  ;;  %9954 = vrcp.f32 %v6198_v8  ;;  %v6199_v10 = vsel %vm201_vm2, %v9937_v58, 0.0  ;;  %v6174_v8 = vadd.f32 %v6173_v5, %v6172_v57  ;;  %v6156_v31 = vmul.f32 %v9937_v58, %v6119_v60 }
0x2184   :  { %v6200_v35 = vsel %vm201_vm2, %v9939_v13, 0.0  ;;  %v9941_v19 = vpop.eup %9940  ;;  %v6163_v11 = vmul.f32 %v9939_v13, %v6133_v28 }
0x2185   :  { %v6201_v50 = vadd.f32 %v6200_v35, %v6199_v10  ;;  %v6209_v21 = vmul.f32 %v9941_v19, %v6168_v61  ;;  %v6177_v10 = vadd.f32 %v6176_v46, %v6175_v3  ;;  %v6178_v52 = vsel %vm201_vm2, %v6156_v31, 0.0 }
0x2186   :  { %v9943_v26 = vpop.eup %9942 }
0x2187   :  { %v9945_v45 = vpop.eup %9944  ;;  %v6202_v39 = vsel %vm201_vm2, %v9943_v26, 0.0  ;;  %9956 = vrcp.f32 %v6201_v50  ;;  %v6157_v33 = vmul.f32 %v9943_v26, %v12323_v36 }
0x2188   :  { %v9947_v29 = vpop.eup %9946  ;;  %v6203_v41 = vsel %vm201_vm2, %v9945_v45, 0.0  ;;  %v6164_v19 = vmul.f32 %v9945_v45, %v6135_v34 }
0x2189   :  { %v6204_v49 = vadd.f32 %v6203_v41, %v6202_v39  ;;  %v6211_v25 = vmul.f32 %v9947_v29, %v6171_v24  ;;  %v6179_v39 = vsel %vm201_vm2, %v6163_v11, 0.0  ;;  %v6181_v61 = vsel %vm201_vm2, %v6157_v33, 0.0  ;;  %v6123_v29 = vpop.permute.xlu0 %6122 }
0x218a   :  { %v6182_v24 = vsel %vm201_vm2, %v6164_v19, 0.0  ;;  %v6180_v60 = vadd.f32 %v6179_v39, %v6178_v52 }
0x218b   :  { %v9949_v0 = vpop.eup %9948  ;;  %9958 = vrcp.f32 %v6204_v49  ;;  %v6226_v18 = vpack.c.bf16 %v6211_v25, %v6209_v21  ;;  %v6183_v26 = vadd.f32 %v6182_v24, %v6181_v61 }
0x218c   :  { %v6205_v1 = vsel %vm201_vm2, %v9949_v0, 0.0  ;;  %v9951_v27 = vpop.eup %9950  ;;  %v6158_v36 = vmul.f32 %v9949_v0, %v6123_v29 }
0x218d   :  { %9337 = vmatprep.mubr.msk.bf16.mxu1 %vm201_vm2, %v6226_v18  ;;  %v9953_v12 = vpop.eup %9952  ;;  %v6206_v16 = vsel %vm201_vm2, %v9951_v27, 0.0  ;;  %v6165_v13 = vmul.f32 %v9951_v27, %v6137_v63  ;;  %v8300_v27 = vld [vmem:[%s12967_s6 + $0x69] ss:$0 sm:$0xff] }
0x218e   :  { %v6207_v20 = vadd.f32 %v6206_v16, %v6205_v1  ;;  %v6213_v50 = vmul.f32 %v9953_v12, %v6174_v8  ;;  %v6184_v41 = vsel %vm201_vm2, %v6158_v36, 0.0 }
0x218f   :  { %v6185_v49 = vsel %vm201_vm2, %v6165_v13, 0.0 }
0x2190   :  { %v9955_v35 = vpop.eup %9954  ;;  %9960 = vrcp.f32 %v6207_v20  ;;  %v6186_v25 = vadd.f32 %v6185_v49, %v6184_v41 }
0x2191   :  { %v6215_v22 = vmul.f32 %v9955_v35, %v6177_v10 }
0x2193   :  { %v6227_v2 = vpack.c.bf16 %v6215_v22, %v6213_v50 }
0x2194   :  { %v9957_v58 = vpop.eup %9956 }
0x2195   :  { %9338 = vmatmul.mubr.msk.bf16.vlgmr.msra.gmra.mxu1 %vm201_vm2, %v6227_v2  ;;  %v6217_v37 = vmul.f32 %v9957_v58, %v6180_v60 }
0x2198   :  { %v9959_v45 = vpop.eup %9958 }
0x2199   :  { %v6219_v51 = vmul.f32 %v9959_v45, %v6183_v26 }
0x219b   :  { %v6228_v21 = vpack.c.bf16 %v6219_v51, %v6217_v37 }
0x219d   :  { %9341 = vmatprep.mubr.msk.bf16.mxu1 %vm201_vm2, %v6228_v21  ;;  %v9961_v57 = vpop.eup %9960 }
0x219e   :  { %v6221_v18 = vmul.f32 %v9961_v57, %v6186_v25 }
0x21a0   :  { %v6229_v5 = vpack.c.bf16 %v6221_v18, %v6221_v18 }
0x21a2   :  { %9342 = vmatmul.mubr.msk.bf16.gmra.mxu1 %vm201_vm2, %v6229_v5 }
0x2255   :  { %v9339_v0 = vpop.f32.mrf.mxu1 }
0x2256   :  { %v6320_v46 = vadd.f32 %v9339_v0, %v11998_v15 }
0x2257   :  { %v6288_v3 = vpop.f32.mrf.mxu1 }
0x2258   :  { %v6318_v1 = vadd.f32 %v6288_v3, %v11990_v14  ;;  %v12367_v34 = vadd.f32 %v8300_v27, %v6320_v46 }
0x2259   :  { %v9340_v12 = vpop.f32.mrf.mxu1 }
0x225a   :  { %v12365_v16 = vadd.f32 %v8300_v27, %v6318_v1  ;;  %v6321_v8 = vadd.f32 %v9340_v12, %v12051_v9  ;;  %v6345_v35 = vsel %vm201_vm2, %v12367_v34, 0.0 }
0x225b   :  { %v6291_v28 = vpop.f32.mrf.mxu1 }
0x225c   :  { %v6319_v10 = vadd.f32 %v6291_v28, %v12044_v47  ;;  %v6339_v20 = vsel %vm201_vm2, %v12365_v16, 0.0  ;;  %v12375_v14 = vadd.f32 %v8300_v27, %v6321_v8 }
0x225d   :  { %6340 = vadd.xlane.f32.xlu0 %v6339_v20 }
0x225e   :  { %v12373_v15 = vadd.f32 %v8300_v27, %v6319_v10  ;;  %v6348_v47 = vsel %vm201_vm2, %v12375_v14, 0.0 }
0x2260   :  { %v6342_v31 = vsel %vm201_vm2, %v12373_v15, 0.0 }
0x2261   :  { %6346 = vadd.xlane.f32.xlu0 %v6345_v35  ;;  %6343 = vadd.xlane.f32.xlu1 %v6342_v31 }
0x2262   :  { %v9343_v33 = vpop.f32.mrf.mxu1 }
0x2263   :  { %v6324_v11 = vadd.f32 %v9343_v33, %v12019_v30  ;;  %v9652_v30 = vld [vmem:[%s12966_s4 + $0x158] sm:$0xff]  }
0x2264   :  { %v6304_v9 = vpop.f32.mrf.mxu1  ;;  %9345 = vmatprep.subr.bf16.mxu0 %v9652_v30 }
0x2265   :  { %6349 = vadd.xlane.f32.xlu0 %v6348_v47  ;;  %v6322_v19 = vadd.f32 %v6304_v9, %v12011_v32  ;;  %v12387_v52 = vadd.f32 %v8300_v27, %v6324_v11  ;;  %9346 = vmatpush3.bf16.msra.mxu0 %v9652_v30  ;;  %v5473_v9 = vld [vmem:[%s12970_s3 + $0x20] sm:$0xff]  ;;  %v5474_v11 = vld [vmem:[%s12970_s3 + $0x28] sm:$0xff] }
0x2266   :  { %v9344_v50 = vpop.f32.mrf.mxu1 }
0x2267   :  { %v12385_v22 = vadd.f32 %v8300_v27, %v6322_v19  ;;  %v6357_v29 = vsel %vm201_vm2, %v12387_v52, 0.0 }
0x2268   :  { %v6307_v2 = vpop.f32.mrf.mxu1 }
0x2269   :  { %v6323_v39 = vadd.f32 %v6307_v2, %v12059_v56  ;;  %v6351_v61 = vsel %vm201_vm2, %v12385_v22, 0.0  ;;  %v12448_v2 = vadd.f32 %v5473_v9, %v12196_v62  ;;  %v9653_v62 = vld [vmem:[%s12966_s4 + $0x150] sm:$0xff]  }
0x226a   :  { %6352 = vadd.xlane.f32.xlu1 %v6351_v61  ;;  %9347 = vmatprep.subr.bf16.mxu0 %v9653_v62 }
0x226b   :  { %v12392_v24 = vadd.f32 %v8300_v27, %v6323_v39  ;;  %v12451_v39 = vadd.f32 %v5474_v11, %v12199_v55  ;;  %v6778_v30 = vsel %vm201_vm2, %v12448_v2, 0.0  ;;  %9348 = vmatpush3.bf16.msra.mxu0 %v9653_v62 }
0x226c   :  { %9369 = vmatprep.subr.bf16.mxu0 %v9658_v4 }
0x226d   :  { %v6354_v32 = vsel %vm201_vm2, %v12392_v24, 0.0 }
0x226e   :  { %6358 = vadd.xlane.f32.xlu1 %v6357_v29  ;;  %6355 = vadd.xlane.f32.xlu0 %v6354_v32  ;;  %v6781_v32 = vsel %vm201_vm2, %v12451_v39, 0.0 }
0x22e6   :  { %v6341_v56 = vpop.xlane.xlu0 %6340 }
0x22e7   :  { %v6360_v63 = vmul.f32 0.03125, %v6341_v56 }
0x22e9   :  { %v12402_v58 = vsub.f32 %v12365_v16, %v6360_v63 }
0x22ea   :  { %v6347_v36 = vpop.xlane.xlu0 %6346  ;;  %v6344_v13 = vpop.xlane.xlu1 %6343 }
0x22eb   :  { %v6362_v60 = vmul.f32 0.03125, %v6347_v36  ;;  %v6361_v26 = vmul.f32 0.03125, %v6344_v13  ;;  %v6374_v45 = vmul.f32 %v12402_v58, %v12402_v58 }
0x22ed   :  { %v12407_v37 = vsub.f32 %v12367_v34, %v6362_v60  ;;  %v12410_v51 = vsub.f32 %v12373_v15, %v6361_v26  ;;  %v6381_v41 = vsel %vm201_vm2, %v6374_v45, 0.0 }
0x22ee   :  { %v6350_v49 = vpop.xlane.xlu0 %6349  ;;  %6382 = vadd.xlane.f32.xlu0 %v6381_v41 }
0x22ef   :  { %v6363_v21 = vmul.f32 0.03125, %v6350_v49  ;;  %v6375_v25 = vmul.f32 %v12410_v51, %v12410_v51  ;;  %v6376_v57 = vmul.f32 %v12407_v37, %v12407_v37 }
0x22f1   :  { %v12418_v18 = vsub.f32 %v12375_v14, %v6363_v21  ;;  %v6384_v5 = vsel %vm201_vm2, %v6375_v25, 0.0  ;;  %v6387_v0 = vsel %vm201_vm2, %v6376_v57, 0.0 }
0x22f2   :  { %6385 = vadd.xlane.f32.xlu1 %v6384_v5  ;;  %6388 = vadd.xlane.f32.xlu0 %v6387_v0 }
0x22f3   :  { %v6377_v3 = vmul.f32 %v12418_v18, %v12418_v18  ;;  %v6353_v46 = vpop.xlane.xlu1 %6352 }
0x22f4   :  { %v6364_v1 = vmul.f32 0.03125, %v6353_v46 }
0x22f5   :  { %v6390_v27 = vsel %vm201_vm2, %v6377_v3, 0.0 }
0x22f6   :  { %6391 = vadd.xlane.f32.xlu1 %v6390_v27  ;;  %v12426_v12 = vsub.f32 %v12385_v22, %v6364_v1  ;;  %v8301_v27 = vld [vmem:[%s12967_s6 + $0x6c] ss:$0 sm:$0xff] }
0x22f7   :  { %v6359_v28 = vpop.xlane.xlu1 %6358  ;;  %v6356_v8 = vpop.xlane.xlu0 %6355 }
0x22f8   :  { %v6366_v10 = vmul.f32 0.03125, %v6359_v28  ;;  %v6365_v20 = vmul.f32 0.03125, %v6356_v8  ;;  %v6378_v35 = vmul.f32 %v12426_v12, %v12426_v12 }
0x22fa   :  { %v12431_v31 = vsub.f32 %v12387_v52, %v6366_v10  ;;  %v12434_v33 = vsub.f32 %v12392_v24, %v6365_v20  ;;  %v6393_v47 = vsel %vm201_vm2, %v6378_v35, 0.0 }
0x22fb   :  { %6394 = vadd.xlane.f32.xlu0 %v6393_v47 }
0x22fc   :  { %v6380_v19 = vmul.f32 %v12431_v31, %v12431_v31  ;;  %v6379_v50 = vmul.f32 %v12434_v33, %v12434_v33 }
0x22fe   :  { %v6399_v61 = vsel %vm201_vm2, %v6380_v19, 0.0  ;;  %v6396_v29 = vsel %vm201_vm2, %v6379_v50, 0.0 }
0x22ff   :  { %6400 = vadd.xlane.f32.xlu0 %v6399_v61  ;;  %6397 = vadd.xlane.f32.xlu1 %v6396_v29  ;;  %v8302_v61 = vld [vmem:[%s12967_s6 + $0x6d] ss:$0 sm:$0xff] }
0x2303   :  { %6782 = vadd.xlane.f32.xlu0 %v6781_v32  ;;  %6779 = vadd.xlane.f32.xlu1 %v6778_v30 }
0x2377   :  { %v6383_v55 = vpop.xlane.xlu0 %6382 }
0x2378   :  { %v6402_v56 = vmul.f32 0.03125, %v6383_v55 }
0x237a   :  { %v6409_v63 = vadd.f32 1e-05, %v6402_v56 }
0x237b   :  { %v6386_v36 = vpop.xlane.xlu1 %6385  ;;  %v6389_v13 = vpop.xlane.xlu0 %6388 }
0x237c   :  { %9962 = vrsqrt.f32 %v6409_v63  ;;  %v6403_v60 = vmul.f32 0.03125, %v6386_v36  ;;  %v6404_v26 = vmul.f32 0.03125, %v6389_v13 }
0x237e   :  { %v6410_v45 = vadd.f32 1e-05, %v6403_v60  ;;  %v6411_v41 = vadd.f32 1e-05, %v6404_v26 }
0x237f   :  { %v6392_v49 = vpop.xlane.xlu1 %6391 }
0x2380   :  { %9964 = vrsqrt.f32 %v6410_v45  ;;  %v6405_v21 = vmul.f32 0.03125, %v6392_v49 }
0x2381   :  { %9966 = vrsqrt.f32 %v6411_v41 }
0x2382   :  { %v6412_v25 = vadd.f32 1e-05, %v6405_v21 }
0x2384   :  { %9968 = vrsqrt.f32 %v6412_v25  ;;  %v6395_v57 = vpop.xlane.xlu0 %6394 }
0x2385   :  { %v6406_v5 = vmul.f32 0.03125, %v6395_v57 }
0x2387   :  { %v6413_v0 = vadd.f32 1e-05, %v6406_v5 }
0x2388   :  { %v6398_v46 = vpop.xlane.xlu1 %6397  ;;  %v6401_v1 = vpop.xlane.xlu0 %6400 }
0x2389   :  { %v9963_v3 = vpop.eup %9962  ;;  %9970 = vrsqrt.f32 %v6413_v0  ;;  %v6407_v28 = vmul.f32 0.03125, %v6398_v46  ;;  %v6408_v8 = vmul.f32 0.03125, %v6401_v1 }
0x238a   :  { %v6423_v10 = vmul.f32 %v9963_v3, %v12402_v58 }
0x238b   :  { %v6414_v20 = vadd.f32 1e-05, %v6407_v28  ;;  %v6415_v35 = vadd.f32 1e-05, %v6408_v8 }
0x238c   :  { %v6780_v9 = vpop.xlane.xlu1 %6779  ;;  %v6783_v11 = vpop.xlane.xlu0 %6782  ;;  %v6434_v19 = vmul.f32 %v8301_v27, %v6423_v10 }
0x238d   :  { %v9965_v47 = vpop.eup %9964  ;;  %9972 = vrsqrt.f32 %v6414_v20  ;;  %v6784_v29 = vmul.f32 0.03125, %v6780_v9  ;;  %v6785_v32 = vmul.f32 0.03125, %v6783_v11 }
0x238e   :  { %v9967_v50 = vpop.eup %9966  ;;  %v6424_v30 = vmul.f32 %v9965_v47, %v12410_v51  ;;  %9974 = vrsqrt.f32 %v6415_v35  ;;  %v6445_v13 = vadd.f32 %v8302_v61, %v6434_v19 }
0x238f   :  { %v6425_v62 = vmul.f32 %v9967_v50, %v12407_v37  ;;  %v12472_v58 = vsub.f32 %v12448_v2, %v6784_v29  ;;  %v12475_v55 = vsub.f32 %v12451_v39, %v6785_v32 }
0x2390   :  { %v6435_v56 = vmul.f32 %v8301_v27, %v6424_v30 }
0x2391   :  { %v9969_v63 = vpop.eup %9968  ;;  %v6436_v36 = vmul.f32 %v8301_v27, %v6425_v62  ;;  %v6788_v26 = vmul.f32 %v12472_v58, %v12472_v58  ;;  %v6789_v51 = vmul.f32 %v12475_v55, %v12475_v55 }
0x2392   :  { %v6426_v60 = vmul.f32 %v9969_v63, %v12418_v18  ;;  %v6446_v37 = vadd.f32 %v8302_v61, %v6435_v56 }
0x2393   :  { %v6790_v41 = vsel %vm201_vm2, %v6788_v26, 0.0  ;;  %v6793_v49 = vsel %vm201_vm2, %v6789_v51, 0.0  ;;  %v6447_v25 = vadd.f32 %v8302_v61, %v6436_v36 }
0x2394   :  { %v6437_v45 = vmul.f32 %v8301_v27, %v6426_v60  ;;  %v6456_v21 = vpack.c.bf16 %v6446_v37, %v6445_v13  ;;  %6791 = vadd.xlane.f32.xlu1 %v6790_v41  ;;  %6794 = vadd.xlane.f32.xlu0 %v6793_v49  ;;  %v9657_v41 = vld [vmem:[%s12965_s5 + $0x50] sm:$0xff]  }
0x2396   :  { %v6448_v57 = vadd.f32 %v8302_v61, %v6437_v45  ;;  %9349 = vmatprep.mubr.msk.bf16.mxu0 %vm201_vm2, %v6456_v21  ;;  %v9971_v18 = vpop.eup %9970 }
0x2397   :  { %v6427_v0 = vmul.f32 %v9971_v18, %v12426_v12  ;;  %v9654_v12 = vld [vmem:[%s12966_s4 + $0x168] sm:$0xff]  }
0x2398   :  { %v6457_v5 = vpack.c.bf16 %v6448_v57, %v6447_v25  ;;  %9357 = vmatprep.subr.bf16.mxu1 %v9654_v12 }
0x2399   :  { %v6438_v28 = vmul.f32 %v8301_v27, %v6427_v0  ;;  %9358 = vmatpush3.bf16.msra.mxu1 %v9654_v12 }
0x239a   :  { %9350 = vmatmul.mubr.msk.bf16.vlgmr.msra.gmra.mxu0 %vm201_vm2, %v6457_v5  ;;  %v9973_v3 = vpop.eup %9972 }
0x239b   :  { %v9975_v46 = vpop.eup %9974  ;;  %v6428_v1 = vmul.f32 %v9973_v3, %v12434_v33  ;;  %v6449_v35 = vadd.f32 %v8302_v61, %v6438_v28  ;;  %v9656_v33 = vld [vmem:[%s12965_s5 + $0x58] sm:$0xff]   ;;  %9370 = vmatpush3.bf16.msra.mxu0 %v9658_v4 }
0x239c   :  { %v6429_v8 = vmul.f32 %v9975_v46, %v12431_v31  ;;  %v9655_v31 = vld [vmem:[%s12966_s4 + $0x160] sm:$0xff]   ;;  %9371 = vmatprep.subr.bf16.mxu0 %v9659_v6 }
0x239d   :  { %v6439_v10 = vmul.f32 %v8301_v27, %v6428_v1  ;;  %9359 = vmatprep.subr.bf16.mxu1 %v9655_v31 }
0x239e   :  { %v6440_v20 = vmul.f32 %v8301_v27, %v6429_v8  ;;  %9360 = vmatpush3.bf16.msra.mxu1 %v9655_v31  ;;  %v6823_v8 = vpack.c.bf16 %v12008_v54, %v12008_v54 }
0x239f   :  { %v6450_v47 = vadd.f32 %v8302_v61, %v6439_v10  ;;  %9381 = vmatprep.subr.bf16.mxu1 %v9656_v33  ;;  %9372 = vmatpush3.bf16.msra.mxu0 %v9659_v6  ;;  %v8310_v10 = vld [vmem:[%s12967_s6 + $0x6f] ss:$0 sm:$0xff] }
0x23a0   :  { %v6451_v9 = vadd.f32 %v8302_v61, %v6440_v20  ;;  %v8303_v61 = vld [vmem:[%s12967_s6 + $0x6e] ss:$0 sm:$0xff]  ;;  %9393 = vmatprep.subr.bf16.mxu0 %v12978_v44 }
0x23a1   :  { %v6458_v11 = vpack.c.bf16 %v6450_v47, %v6449_v35 }
0x23a2   :  { %v6459_v19 = vpack.c.bf16 %v6451_v9, %v6451_v9 }
0x23a3   :  { %9353 = vmatprep.mubr.msk.bf16.mxu0 %vm201_vm2, %v6458_v11 }
0x23a4   :  { %9354 = vmatmul.mubr.msk.bf16.gmra.mxu0 %vm201_vm2, %v6459_v19 }
0x241d   :  { %v6792_v40 = vpop.xlane.xlu1 %6791 }
0x241e   :  { %v6796_v42 = vmul.f32 0.03125, %v6792_v40 }
0x2420   :  { %v6798_v53 = vadd.f32 1e-05, %v6796_v42 }
0x2422   :  { %9976 = vrsqrt.f32 %v6798_v53 }
0x245a   :  { %v9351_v27 = vpop.f32.mrf.mxu0 }
0x245b   :  { %v6532_v62 = vadd.f32 %v9351_v27, %v8303_v61 }
0x245c   :  { %v6523_v50 = vpop.f32.mrf.mxu0 }
0x245d   :  { %v6524_v32 = vadd.f32 %v8303_v61, %v6523_v50  ;;  %v6555_v26 = vmax.f32 %v6532_v62, 0.0  ;;  %v9977_v62 = vpop.eup %9976 }
0x245e   :  { %v9352_v29 = vpop.f32.mrf.mxu0 }
0x245f   :  { %v6535_v30 = vadd.f32 %v9352_v29, %v8303_v61  ;;  %v6553_v13 = vmax.f32 %v6524_v32, 0.0  ;;  %v9660_v29 = vld [vmem:[%s12966_s4 + $0x228] sm:$0xff]  }
0x2460   :  { %v6526_v56 = vpop.f32.mrf.mxu0 }
0x2461   :  { %v6527_v63 = vadd.f32 %v8303_v61, %v6526_v56  ;;  %v6556_v36 = vmax.f32 %v6535_v30, 0.0 }
0x2463   :  { %v6554_v60 = vmax.f32 %v6527_v63, 0.0  ;;  %v6565_v45 = vpack.c.bf16 %v6556_v36, %v6555_v26  ;;  %v9661_v36 = vld [vmem:[%s12966_s4 + $0x220] sm:$0xff]  }
0x2464   :  { %v9355_v37 = vpop.f32.mrf.mxu0 }
0x2465   :  { %v6564_v51 = vpack.c.bf16 %v6554_v60, %v6553_v13  ;;  %v6548_v21 = vadd.f32 %v9355_v37, %v8303_v61  ;;  %v6802_v37 = vmul.f32 %v9977_v62, %v12472_v58 }
0x2466   :  { %v6539_v49 = vpop.f32.mrf.mxu0 }
0x2467   :  { %9361 = vmatprep.mubr.msk.bf16.mxu1 %vm201_vm2, %v6564_v51  ;;  %v6540_v57 = vadd.f32 %v8303_v61, %v6539_v49  ;;  %v6559_v0 = vmax.f32 %v6548_v21, 0.0  ;;  %v8326_v21 = vld [vmem:[%s12967_s6 + $0x8b] ss:$0 sm:$0xff] }
0x2468   :  { %9362 = vmatmul.mubr.msk.bf16.vlgmr.msra.gmra.mxu1 %vm201_vm2, %v6565_v45  ;;  %v9356_v25 = vpop.f32.mrf.mxu0 }
0x2469   :  { %9382 = vmatpush3.bf16.msra.mxu1 %v9656_v33  ;;  %v6557_v3 = vmax.f32 %v6540_v57, 0.0  ;;  %v6567_v28 = vpack.c.bf16 %v6559_v0, %v6559_v0  ;;  %v8324_v25 = vld [vmem:[%s12967_s6 + $0x8e] ss:$0 sm:$0xff] }
0x246a   :  { %9383 = vmatprep.subr.bf16.mxu1 %v9657_v41  ;;  %v6542_v18 = vpop.f32.mrf.mxu0 }
0x246b   :  { %v6543_v5 = vadd.f32 %v8303_v61, %v6542_v18 }
0x246d   :  { %9384 = vmatpush3.bf16.msra.mxu1 %v9657_v41  ;;  %v6558_v46 = vmax.f32 %v6543_v5, 0.0 }
0x246e   :  { %9401 = vmatprep.subr.bf16.mxu1 %v12978_v44 }
0x246f   :  { %v6566_v1 = vpack.c.bf16 %v6558_v46, %v6557_v3  ;;  %v6808_v3 = vmul.f32 %v8324_v25, %v6802_v37  ;;  %v10082_v37 = vld [vmem:[%s12965_s5 + $0xc8] sm:$0xff]  }
0x2471   :  { %9365 = vmatprep.mubr.msk.bf16.mxu1 %vm201_vm2, %v6566_v1 }
0x2472   :  { %9366 = vmatmul.mubr.msk.bf16.gmra.mxu1 %vm201_vm2, %v6567_v28  ;;  %v8325_v28 = vld [vmem:[%s12967_s6 + $0x8f] ss:$0 sm:$0xff] }
0x2473   :  { %9385 = vmatprep.mubr.msk.bf16.mxu1 %vm201_vm2, %v6820_v17 }
0x247a   :  { %9386 = vmatmul.mubr.msk.bf16.vlgmr.msra.gmra.mxu1 %vm201_vm2, %v6821_v59  ;;  %v6795_v59 = vpop.xlane.xlu0 %6794 }
0x247b   :  { %9389 = vmatprep.mubr.msk.bf16.mxu1 %vm201_vm2, %v6822_v23  ;;  %v6797_v17 = vmul.f32 0.03125, %v6795_v59 }
0x247d   :  { %v6799_v7 = vadd.f32 1e-05, %v6797_v17  ;;  %v6814_v17 = vadd.f32 %v8325_v28, %v6808_v3 }
0x247f   :  { %9978 = vrsqrt.f32 %v6799_v7 }
0x2482   :  { %9390 = vmatmul.mubr.msk.bf16.gmra.mxu1 %vm201_vm2, %v6823_v8 }
0x2483   :  { %9409 = vmatprep.mubr.msk.bf16.mxu1 %vm10084_vm0, %v12978_v44 }
0x248c   :  { %v9979_v13 = vpop.eup %9978 }
0x248d   :  { %v6803_v45 = vmul.f32 %v9979_v13, %v12475_v55  ;;  %v10078_v13 = vld [vmem:[%s12965_s5 + $0xa8] sm:$0xff]  }
0x248f   :  { %v6809_v55 = vmul.f32 %v8324_v25, %v6803_v45 }
0x2491   :  { %v6815_v53 = vadd.f32 %v8325_v28, %v6809_v55 }
0x2528   :  { %v9363_v23 = vpop.f32.mrf.mxu1 }
0x2529   :  { %v6640_v9 = vadd.f32 %v9363_v23, %v8310_v10 }
0x252a   :  { %v6631_v54 = vpop.f32.mrf.mxu1 }
0x252b   :  { %v6632_v35 = vadd.f32 %v8310_v10, %v6631_v54  ;;  %v6663_v27 = vmax.f32 %v6640_v9, 0.0 }
0x252c   :  { %v9364_v20 = vpop.f32.mrf.mxu1 }
0x252d   :  { %v6643_v47 = vadd.f32 %v9364_v20, %v8310_v10  ;;  %v6661_v31 = vmax.f32 %v6632_v35, 0.0 }
0x252e   :  { %v6634_v11 = vpop.f32.mrf.mxu1 }
0x252f   :  { %v6635_v19 = vadd.f32 %v8310_v10, %v6634_v11  ;;  %v6664_v12 = vmax.f32 %v6643_v47, 0.0  ;;  %v12983_v11 = vld [vmem:[#allocation2_spill] sm:$0xff] }
0x2531   :  { %v6662_v33 = vmax.f32 %v6635_v19, 0.0  ;;  %v6673_v32 = vpack.c.bf16 %v6664_v12, %v6663_v27 }
0x2532   :  { %v9367_v61 = vpop.f32.mrf.mxu1 }
0x2533   :  { %v6672_v50 = vpack.c.bf16 %v6662_v33, %v6661_v31  ;;  %v6656_v56 = vadd.f32 %v9367_v61, %v8310_v10  ;;  %v12984_v61 = vld [vmem:[#allocation3_spill] sm:$0xff] }
0x2534   :  { %v6647_v30 = vpop.f32.mrf.mxu1 }
0x2535   :  { %9373 = vmatprep.mubr.msk.bf16.mxu0 %vm201_vm2, %v6672_v50  ;;  %v6648_v60 = vadd.f32 %v8310_v10, %v6647_v30  ;;  %v6667_v41 = vmax.f32 %v6656_v56, 0.0  ;;  %v10075_v56 = vld [vmem:[%s12965_s5 + $0xd0] sm:$0xff]  }
0x2536   :  { %9374 = vmatmul.mubr.msk.bf16.vlgmr.msra.gmra.mxu0 %vm201_vm2, %v6673_v32  ;;  %v9368_v63 = vpop.f32.mrf.mxu1  ;;  %v12985_v32 = vld [vmem:[#allocation4_spill] sm:$0xff] }
0x2537   :  { %9394 = vmatpush3.bf16.msra.mxu0 %v9660_v29  ;;  %v6665_v57 = vmax.f32 %v6648_v60, 0.0  ;;  %v6675_v46 = vpack.c.bf16 %v6667_v41, %v6667_v41  ;;  %v10076_v63 = vld [vmem:[%s12965_s5 + $0x98] sm:$0xff]   ;;  %v10079_v60 = vld [vmem:[%s12965_s5 + $0xb0] sm:$0xff]  }
0x2538   :  { %9395 = vmatprep.subr.bf16.mxu0 %v12978_v44  ;;  %v6650_v26 = vpop.f32.mrf.mxu1  ;;  %v12631_v41 = vld [vmem:[%s12967_s6 + $0x70] ss:$0 sm:$0xff] }
0x2539   :  { %v6651_v51 = vadd.f32 %v8310_v10, %v6650_v26  ;;  %v12982_v10 = vld [vmem:[#allocation5_spill] sm:$0xff] }
0x253a   :  { %v9387_v49 = vpop.f32.mrf.mxu1  ;;  %v10080_v26 = vld [vmem:[%s12965_s5 + $0xb8] sm:$0xff]  }
0x253b   :  { %9396 = vmatpush3.bf16.msra.mxu0 %v9661_v36  ;;  %v6666_v18 = vmax.f32 %v6651_v51, 0.0  ;;  %v6896_v58 = vadd.f32 %v9387_v49, %v8326_v21  ;;  %v10077_v36 = vld [vmem:[%s12965_s5 + $0xa0] sm:$0xff]  }
0x253c   :  { %9437 = vmatprep.subr.bf16.mxu0 %v12978_v44  ;;  %v6887_v5 = vpop.f32.mrf.mxu1  ;;  %v10081_v51 = vld [vmem:[%s12965_s5 + $0xc0] sm:$0xff]  }
0x253d   :  { %v6674_v0 = vpack.c.bf16 %v6666_v18, %v6665_v57  ;;  %v6888_v8 = vadd.f32 %v8326_v21, %v6887_v5  ;;  %v6919_v40 = vadd.f32 %v6896_v58, %v10903_v48  ;;  %v6928_v48 = vpack.c.bf16 %v6815_v53, %v6814_v17 }
0x253e   :  { %v9388_v1 = vpop.f32.mrf.mxu1 }
0x253f   :  { %v6899_v4 = vadd.f32 %v9388_v1, %v8326_v21  ;;  %9377 = vmatprep.mubr.msk.bf16.mxu0 %vm201_vm2, %v6674_v0  ;;  %v6917_v23 = vadd.f32 %v6888_v8, %v10915_v43  ;;  %v10074_v43 = vld [vmem:[%s12965_s5 + $0xd8] sm:$0xff]  }
0x2540   :  { %9378 = vmatmul.mubr.msk.bf16.gmra.mxu0 %vm201_vm2, %v6675_v46  ;;  %v6890_v6 = vpop.f32.mrf.mxu1 }
0x2541   :  { %v6920_v59 = vadd.f32 %v6899_v4, %v10905_v38  ;;  %v6891_v42 = vadd.f32 %v8326_v21, %v6890_v6  ;;  %9397 = vmatprep.mubr.msk.bf16.mxu0 %vm10084_vm0, %v12978_v44 }
0x2542   :  { %v9391_v7 = vpop.f32.mrf.mxu1 }
0x2543   :  { %v6991_v54 = vpack.c.bf16 %v6920_v59, %v6919_v40  ;;  %v6918_v20 = vadd.f32 %v6891_v42, %v12982_v10  ;;  %v6912_v35 = vadd.f32 %v9391_v7, %v8326_v21 }
0x2544   :  { %v6903_v47 = vpop.f32.mrf.mxu1 }
0x2545   :  { %v6990_v9 = vpack.c.bf16 %v6918_v20, %v6917_v23  ;;  %v6923_v19 = vadd.f32 %v6912_v35, %v12983_v11  ;;  %v6904_v31 = vadd.f32 %v8326_v21, %v6903_v47  ;;  %v8333_v23 = vld [vmem:[%s12967_s6 + $0x8c] ss:$0 sm:$0xff] }
0x2546   :  { %v9392_v12 = vpop.f32.mrf.mxu1 }
0x2547   :  { %v6993_v38 = vpack.c.bf16 %v6923_v19, %v6923_v19  ;;  %v6921_v29 = vadd.f32 %v6904_v31, %v12984_v61 }
0x2548   :  { %v6906_v33 = vpop.f32.mrf.mxu1  ;;  %9398 = vmatmul.mubr.msk.bf16.vlgmr.msra.gmra.mxu0 %vm201_vm2, %v6928_v48 }
0x2549   :  { %v6907_v27 = vadd.f32 %v8326_v21, %v6906_v33  ;;  %v6995_v50 = vsel %vm2433_vm9, %v6993_v38, 0  ;;  %9438 = vmatpush3.bf16.msra.mxu0 %v10074_v43  ;;  %9441 = vmatprep.mubr.msk.bf16.mxu0 %vm10084_vm0, %v12978_v44 }
0x254a   :  { %9402 = vmatpush3.bf16.msra.mxu1 %v6995_v50  ;;  %9439 = vmatprep.subr.bf16.mxu0 %v12978_v44 }
0x254b   :  { %v6922_v30 = vadd.f32 %v6907_v27, %v12985_v32  ;;  %9403 = vmatprep.subr.bf16.mxu1 %v12978_v44 }
0x254d   :  { %v6992_v62 = vpack.c.bf16 %v6922_v30, %v6921_v29  ;;  %9440 = vmatpush3.bf16.msra.mxu0 %v10075_v56 }
0x254e   :  { %9477 = vmatprep.subr.bf16.mxu0 %v12978_v44 }
0x254f   :  { %9404 = vmatpush3.bf16.msra.mxu1 %v6992_v62 }
0x2550   :  { %9405 = vmatprep.subr.bf16.mxu1 %v12978_v44 }
0x2553   :  { %9406 = vmatpush3.bf16.msra.mxu1 %v6991_v54 }
0x2554   :  { %9407 = vmatprep.subr.bf16.mxu1 %v12978_v44 }
0x2557   :  { %9408 = vmatpush3.bf16.msra.mxu1 %v6990_v9 }
0x2558   :  { %9469 = vmatprep.subr.bf16.mxu1 %v12978_v44 }
0x255a   :  { %9410 = vmatmul.mubr.msk.bf16.vlgmr.msra.gmra.mxu1 %vm2411_vm10, %v10076_v63 }
0x255b   :  { %9413 = vmatprep.mubr.msk.bf16.mxu1 %vm10084_vm0, %v12978_v44 }
0x2562   :  { %9414 = vmatmul.mubr.msk.bf16.gmra.mxu1 %vm2411_vm10, %v10077_v36 }
0x2563   :  { %9417 = vmatprep.mubr.msk.bf16.mxu1 %vm10084_vm0, %v12978_v44 }
0x256a   :  { %9418 = vmatmul.mubr.msk.bf16.gmra.mxu1 %vm2411_vm10, %v10078_v13 }
0x256b   :  { %9421 = vmatprep.mubr.msk.bf16.mxu1 %vm10084_vm0, %v12978_v44 }
0x2572   :  { %9422 = vmatmul.mubr.msk.bf16.gmra.mxu1 %vm2411_vm10, %v10079_v60 }
0x2573   :  { %9425 = vmatprep.mubr.msk.bf16.mxu1 %vm10084_vm0, %v12978_v44 }
0x257a   :  { %9426 = vmatmul.mubr.msk.bf16.gmra.mxu1 %vm2411_vm10, %v10080_v26 }
0x257b   :  { %9429 = vmatprep.mubr.msk.bf16.mxu1 %vm10084_vm0, %v12978_v44 }
0x2582   :  { %9430 = vmatmul.mubr.msk.bf16.gmra.mxu1 %vm2411_vm10, %v10081_v51 }
0x2583   :  { %9433 = vmatprep.mubr.msk.bf16.mxu1 %vm10084_vm0, %v12978_v44 }
0x258a   :  { %9434 = vmatmul.mubr.msk.bf16.gmra.mxu1 %vm2411_vm10, %v10082_v37 }
0x258b   :  { %9473 = vmatprep.mubr.msk.bf16.mxu1 %vm10084_vm0, %v12978_v44 }
0x25f6   :  { %v9375_v45 = vpop.f32.mrf.mxu0 }
0x25f7   :  { %v6748_v21 = vadd.f32 %v9375_v45, %v12631_v41 }
0x25f8   :  { %v6739_v49 = vpop.f32.mrf.mxu0 }
0x25f9   :  { %v6740_v57 = vadd.f32 %v12631_v41, %v6739_v49  ;;  %v12637_v0 = vadd.f32 %v6748_v21, %v12367_v34 }
0x25fa   :  { %v9376_v25 = vpop.f32.mrf.mxu0 }
0x25fb   :  { %v6751_v18 = vadd.f32 %v9376_v25, %v12631_v41  ;;  %v12644_v55 = vadd.f32 %v6740_v57, %v12365_v16 }
0x25fc   :  { %v6742_v5 = vpop.f32.mrf.mxu0 }
0x25fd   :  { %v12640_v58 = vadd.f32 %v6751_v18, %v12375_v14  ;;  %v6743_v3 = vadd.f32 %v12631_v41, %v6742_v5 }
0x25ff   :  { %v7810_v46 = vpack.c.bf16 %v12640_v58, %v12637_v0  ;;  %v12649_v1 = vadd.f32 %v6743_v3, %v12373_v15 }
0x2600   :  { %v12653_v8 = vpop.f32.mrf.mxu0 }
0x2601   :  { %v7809_v28 = vpack.c.bf16 %v12649_v1, %v12644_v55  ;;  %v9672_v1 = vld [vmem:[%s12966_s4 + $0x78] sm:$0xff]  }
0x2602   :  { %v6755_v34 = vpop.f32.mrf.mxu0 }
0x2603   :  { %v6756_v14 = vadd.f32 %v12631_v41, %v6755_v34 }
0x2604   :  { %v9380_v4 = vpop.f32.mrf.mxu0 }
0x2605   :  { %v12658_v59 = vadd.f32 %v6756_v14, %v12385_v22 }
0x2606   :  { %v6758_v6 = vpop.f32.mrf.mxu0 }
0x2607   :  { %v6759_v40 = vadd.f32 %v12631_v41, %v6758_v6 }
0x2608   :  { %v6983_v16 = vpop.f32.mrf.mxu0 }
0x2609   :  { %v12661_v42 = vadd.f32 %v6759_v40, %v12392_v24  ;;  %v12669_v20 = vadd.f32 %v8333_v23, %v6983_v16 }
0x260a   :  { %v9399_v15 = vpop.f32.mrf.mxu0 }
0x260b   :  { %v7811_v17 = vpack.c.bf16 %v12661_v42, %v12658_v59  ;;  %v8373_v42 = vld [vmem:[%s12967_s6 + $0x4f] ss:$0 sm:$0xff] }
0x260c   :  { %v6986_v53 = vpop.f32.mrf.mxu0 }
0x260d   :  { %v12671_v22 = vadd.f32 %v8333_v23, %v6986_v53 }
0x260e   :  { %v9400_v7 = vpop.f32.mrf.mxu0 }
0x261a   :  { %v7031_v54 = vpop.f32.mrf.mxu1 }
0x261b   :  { %7313 = vrot.lane.b32.xlu1 %v7031_v54, %s10090_s22  ;;  %v7086_v35 = vmul.f32 %v7031_v54, %v12669_v20 }
0x261c   :  { %v9411_v10 = vpop.f32.mrf.mxu1 }
0x261e   :  { %v7034_v24 = vpop.f32.mrf.mxu1 }
0x261f   :  { %v7087_v47 = vmul.f32 %v7034_v24, %v12671_v22  ;;  %7315 = vrot.lane.b32.xlu0 %v7034_v24, %s10090_s22  ;;  %v9662_v24 = vld [vmem:[%s12966_s4 + $0x238] sm:$0xff]  }
0x2620   :  { %v9412_v9 = vpop.f32.mrf.mxu1  ;;  %9470 = vmatpush3.bf16.msra.mxu1 %v9662_v24 }
0x2621   :  { %v7100_v11 = vpack.c.bf16 %v7087_v47, %v7086_v35  ;;  %9471 = vmatprep.subr.bf16.mxu1 %v12978_v44 }
0x2622   :  { %v7039_v19 = vpop.f32.mrf.mxu1 }
0x2623   :  { %9442 = vmatmul.mubr.msk.bf16.vlgmr.msra.gmra.mxu0 %vm201_vm2, %v7100_v11  ;;  %7317 = vrot.lane.b32.xlu1 %v7039_v19, %s10090_s22  ;;  %v7088_v38 = vmul.f32 %v7039_v19, %v12669_v20 }
0x2624   :  { %v9415_v48 = vpop.f32.mrf.mxu1  ;;  %9445 = vmatprep.mubr.msk.bf16.mxu0 %vm10084_vm0, %v12978_v44 }
0x2626   :  { %v7042_v12 = vpop.f32.mrf.mxu1 }
0x2627   :  { %v7089_v31 = vmul.f32 %v7042_v12, %v12671_v22  ;;  %7319 = vrot.lane.b32.xlu1 %v7042_v12, %s10090_s22 }
0x2628   :  { %v9416_v33 = vpop.f32.mrf.mxu1 }
0x2629   :  { %v7101_v27 = vpack.c.bf16 %v7089_v31, %v7088_v38 }
0x262a   :  { %v7047_v50 = vpop.f32.mrf.mxu1 }
0x262b   :  { %9446 = vmatmul.mubr.msk.bf16.gmra.mxu0 %vm201_vm2, %v7101_v27  ;;  %7321 = vrot.lane.b32.xlu0 %v7047_v50, %s10090_s22  ;;  %v7090_v29 = vmul.f32 %v7047_v50, %v12669_v20 }
0x262c   :  { %v9419_v43 = vpop.f32.mrf.mxu1  ;;  %9449 = vmatprep.mubr.msk.bf16.mxu0 %vm10084_vm0, %v12978_v44 }
0x262e   :  { %v7050_v61 = vpop.f32.mrf.mxu1 }
0x262f   :  { %v7091_v32 = vmul.f32 %v7050_v61, %v12671_v22  ;;  %7323 = vrot.lane.b32.xlu1 %v7050_v61, %s10090_s22 }
0x2630   :  { %v9420_v30 = vpop.f32.mrf.mxu1 }
0x2631   :  { %v7102_v62 = vpack.c.bf16 %v7091_v32, %v7090_v29 }
0x2632   :  { %v7055_v56 = vpop.f32.mrf.mxu1 }
0x2633   :  { %9450 = vmatmul.mubr.msk.bf16.gmra.mxu0 %vm201_vm2, %v7102_v62  ;;  %7325 = vrot.lane.b32.xlu0 %v7055_v56, %s10090_s22  ;;  %v7092_v13 = vmul.f32 %v7055_v56, %v12669_v20 }
0x2634   :  { %v9423_v63 = vpop.f32.mrf.mxu1  ;;  %9453 = vmatprep.mubr.msk.bf16.mxu0 %vm10084_vm0, %v12978_v44 }
0x2636   :  { %v7058_v36 = vpop.f32.mrf.mxu1 }
0x2637   :  { %v7093_v60 = vmul.f32 %v7058_v36, %v12671_v22  ;;  %7327 = vrot.lane.b32.xlu1 %v7058_v36, %s10090_s22 }
0x2638   :  { %v9424_v26 = vpop.f32.mrf.mxu1 }
0x2639   :  { %v7103_v51 = vpack.c.bf16 %v7093_v60, %v7092_v13 }
0x263a   :  { %v7063_v37 = vpop.f32.mrf.mxu1 }
0x263b   :  { %9454 = vmatmul.mubr.msk.bf16.gmra.mxu0 %vm201_vm2, %v7103_v51  ;;  %7329 = vrot.lane.b32.xlu0 %v7063_v37, %s10090_s22  ;;  %v7094_v21 = vmul.f32 %v7063_v37, %v12669_v20 }
0x263c   :  { %v9427_v45 = vpop.f32.mrf.mxu1  ;;  %9457 = vmatprep.mubr.msk.bf16.mxu0 %vm10084_vm0, %v12978_v44 }
0x263e   :  { %v7066_v49 = vpop.f32.mrf.mxu1 }
0x263f   :  { %v7095_v25 = vmul.f32 %v7066_v49, %v12671_v22  ;;  %7331 = vrot.lane.b32.xlu1 %v7066_v49, %s10090_s22 }
0x2640   :  { %v9428_v57 = vpop.f32.mrf.mxu1 }
0x2641   :  { %v7104_v18 = vpack.c.bf16 %v7095_v25, %v7094_v21 }
0x2642   :  { %v7071_v5 = vpop.f32.mrf.mxu1 }
0x2643   :  { %9458 = vmatmul.mubr.msk.bf16.gmra.mxu0 %vm201_vm2, %v7104_v18  ;;  %7333 = vrot.lane.b32.xlu0 %v7071_v5, %s10090_s22  ;;  %v7096_v4 = vmul.f32 %v7071_v5, %v12669_v20 }
0x2644   :  { %v9431_v3 = vpop.f32.mrf.mxu1  ;;  %9461 = vmatprep.mubr.msk.bf16.mxu0 %vm10084_vm0, %v12978_v44 }
0x2646   :  { %v7074_v34 = vpop.f32.mrf.mxu1 }
0x2647   :  { %v7097_v14 = vmul.f32 %v7074_v34, %v12671_v22  ;;  %7335 = vrot.lane.b32.xlu1 %v7074_v34, %s10090_s22 }
0x2648   :  { %v9432_v6 = vpop.f32.mrf.mxu1 }
0x2649   :  { %v7105_v40 = vpack.c.bf16 %v7097_v14, %v7096_v4 }
0x264a   :  { %v7079_v16 = vpop.f32.mrf.mxu1 }
0x264b   :  { %9462 = vmatmul.mubr.msk.bf16.gmra.mxu0 %vm201_vm2, %v7105_v40  ;;  %7337 = vrot.lane.b32.xlu0 %v7079_v16, %s10090_s22  ;;  %v7098_v7 = vmul.f32 %v7079_v16, %v12669_v20  ;;  %v9663_v20 = vld [vmem:[%s12966_s4 + $0x230] sm:$0xff]  }
0x264c   :  { %v9435_v15 = vpop.f32.mrf.mxu1  ;;  %9465 = vmatprep.mubr.msk.bf16.mxu0 %vm10084_vm0, %v12978_v44  ;;  %9472 = vmatpush3.bf16.msra.mxu1 %v9663_v20 }
0x264d   :  { %9485 = vmatprep.subr.bf16.mxu1 %v12978_v44 }
0x264e   :  { %v7082_v53 = vpop.f32.mrf.mxu1 }
0x264f   :  { %v7099_v23 = vmul.f32 %v7082_v53, %v12671_v22  ;;  %7339 = vrot.lane.b32.xlu1 %v7082_v53, %s10090_s22 }
0x2650   :  { %v9436_v54 = vpop.f32.mrf.mxu1 }
0x2651   :  { %v7106_v10 = vpack.c.bf16 %v7099_v23, %v7098_v7 }
0x2653   :  { %9466 = vmatmul.mubr.msk.bf16.gmra.mxu0 %vm201_vm2, %v7106_v10 }
0x2654   :  { %9481 = vmatprep.mubr.msk.bf16.mxu0 %vm10084_vm0, %v12978_v44 }
0x26e3   :  { %v7162_v22 = vpop.f32.mrf.mxu0 }
0x26e4   :  { %v7217_v60 = vmul.f32 0.35355338, %v7162_v22 }
0x26e5   :  { %v9443_v35 = vpop.f32.mrf.mxu0 }
0x26e6   :  { %v7231_v18 = vsel %vm201_vm2, %v7217_v60, -inf }
0x26e7   :  { %v7165_v47 = vpop.f32.mrf.mxu0 }
0x26e8   :  { %v7218_v5 = vmul.f32 0.35355338, %v7165_v47 }
0x26e9   :  { %v9444_v9 = vpop.f32.mrf.mxu0 }
0x26ea   :  { %v7244_v22 = vsel %vm201_vm2, %v7218_v5, -inf }
0x26eb   :  { %v7170_v11 = vpop.f32.mrf.mxu0 }
0x26ec   :  { %v7219_v45 = vmul.f32 0.35355338, %v7170_v11 }
0x26ed   :  { %v9447_v19 = vpop.f32.mrf.mxu0 }
0x26ee   :  { %v7232_v16 = vsel %vm201_vm2, %v7219_v45, -inf }
0x26ef   :  { %v7173_v48 = vpop.f32.mrf.mxu0 }
0x26f0   :  { %v7220_v15 = vmul.f32 0.35355338, %v7173_v48 }
0x26f1   :  { %v9448_v12 = vpop.f32.mrf.mxu0 }
0x26f3   :  { %v7178_v38 = vpop.f32.mrf.mxu0 }
0x26f4   :  { %v7221_v36 = vmul.f32 0.35355338, %v7178_v38 }
0x26f5   :  { %v9451_v31 = vpop.f32.mrf.mxu0 }
0x26f6   :  { %v7233_v49 = vsel %vm201_vm2, %v7221_v36, -inf  ;;  %v7245_v31 = vsel %vm201_vm2, %v7220_v15, -inf }
0x26f7   :  { %v7181_v33 = vpop.f32.mrf.mxu0  ;;  %v7234_v4 = vmax.f32 %v7231_v18, %v7233_v49 }
0x26f8   :  { %v12730_v25 = vmul.f32 0.35355338, %v7181_v33 }
0x26f9   :  { %v9452_v27 = vpop.f32.mrf.mxu0 }
0x26fa   :  { %v7246_v23 = vsel %vm201_vm2, %v12730_v25, -inf }
0x26fb   :  { %v7186_v50 = vpop.f32.mrf.mxu0  ;;  %v7247_v12 = vmax.f32 %v7244_v22, %v7246_v23 }
0x26fc   :  { %v7223_v26 = vmul.f32 0.35355338, %v7186_v50 }
0x26fd   :  { %v9455_v43 = vpop.f32.mrf.mxu0 }
0x26fe   :  { %v7235_v3 = vsel %vm201_vm2, %v7223_v26, -inf }
0x26ff   :  { %v7189_v61 = vpop.f32.mrf.mxu0  ;;  %v7236_v54 = vmax.f32 %v7232_v16, %v7235_v3 }
0x2700   :  { %v7224_v14 = vmul.f32 0.35355338, %v7189_v61 }
0x2701   :  { %v9456_v29 = vpop.f32.mrf.mxu0 }
0x2702   :  { %v7248_v47 = vsel %vm201_vm2, %v7224_v14, -inf }
0x2703   :  { %v7194_v32 = vpop.f32.mrf.mxu0  ;;  %v7249_v43 = vmax.f32 %v7245_v31, %v7248_v47 }
0x2704   :  { %v7225_v51 = vmul.f32 0.35355338, %v7194_v32 }
0x2705   :  { %v9459_v30 = vpop.f32.mrf.mxu0 }
0x2706   :  { %v7237_v34 = vsel %vm201_vm2, %v7225_v51, -inf }
0x2707   :  { %v7197_v62 = vpop.f32.mrf.mxu0  ;;  %v7238_v10 = vmax.f32 %v7234_v4, %v7237_v34 }
0x2708   :  { %v12735_v6 = vmul.f32 0.35355338, %v7197_v62 }
0x2709   :  { %v9460_v56 = vpop.f32.mrf.mxu0 }
0x270a   :  { %v7250_v9 = vsel %vm201_vm2, %v12735_v6, -inf }
0x270b   :  { %v7202_v63 = vpop.f32.mrf.mxu0  ;;  %v7251_v61 = vmax.f32 %v7247_v12, %v7250_v9 }
0x270c   :  { %v7227_v21 = vmul.f32 0.35355338, %v7202_v63 }
0x270d   :  { %v9463_v13 = vpop.f32.mrf.mxu0 }
0x270e   :  { %v7239_v53 = vsel %vm201_vm2, %v7227_v21, -inf }
0x270f   :  { %v7205_v37 = vpop.f32.mrf.mxu0  ;;  %v7240_v11 = vmax.f32 %v7236_v54, %v7239_v53 }
0x2710   :  { %v7228_v24 = vmul.f32 0.35355338, %v7205_v37 }
0x2711   :  { %v9464_v57 = vpop.f32.mrf.mxu0 }
0x2712   :  { %v7252_v33 = vsel %vm201_vm2, %v7228_v24, -inf }
0x2713   :  { %v7210_v40 = vpop.f32.mrf.mxu0  ;;  %v7253_v63 = vmax.f32 %v7249_v43, %v7252_v33 }
0x2714   :  { %v7229_v7 = vmul.f32 0.35355338, %v7210_v40 }
0x2715   :  { %v9467_v20 = vpop.f32.mrf.mxu0 }
0x2716   :  { %v7241_v35 = vsel %vm201_vm2, %v7229_v7, -inf }
0x2717   :  { %v7242_v19 = vmax.f32 %v7238_v10, %v7241_v35  ;;  %v7213_v48 = vpop.f32.mrf.mxu0 }
0x2718   :  { %v7230_v38 = vmul.f32 0.35355338, %v7213_v48 }
0x2719   :  { %v7243_v27 = vmax.f32 %v7242_v19, %v7240_v11  ;;  %v9468_v50 = vpop.f32.mrf.mxu0 }
0x271a   :  { %v7254_v29 = vsel %vm201_vm2, %v7230_v38, -inf }
0x271b   :  { %v7257_v32 = vsub.f32 %v7217_v60, %v7243_v27  ;;  %v7259_v30 = vsub.f32 %v7219_v45, %v7243_v27  ;;  %v7261_v62 = vsub.f32 %v7221_v36, %v7243_v27  ;;  %v7263_v56 = vsub.f32 %v7223_v26, %v7243_v27 }
0x271c   :  { %v7255_v13 = vmax.f32 %v7251_v61, %v7254_v29  ;;  %v7265_v37 = vsub.f32 %v7225_v51, %v7243_v27  ;;  %v7267_v4 = vsub.f32 %v7227_v21, %v7243_v27  ;;  %v7269_v23 = vsub.f32 %v7229_v7, %v7243_v27  ;;  %v7316_v61 = vpop.permute.xlu0 %7315 }
0x271d   :  { %v7271_v49 = vmul.f32 1.442695, %v7257_v32  ;;  %v7275_v57 = vmul.f32 1.442695, %v7259_v30  ;;  %v7279_v18 = vmul.f32 1.442695, %v7261_v62 }
0x271e   :  { %v7283_v3 = vmul.f32 1.442695, %v7263_v56  ;;  %v7256_v34 = vmax.f32 %v7255_v13, %v7253_v63  ;;  %v7287_v53 = vmul.f32 1.442695, %v7265_v37  ;;  %v7291_v51 = vmul.f32 1.442695, %v7267_v4 }
0x271f   :  { %9980 = vpow2.f32 %v7271_v49 }
0x2720   :  { %9982 = vpow2.f32 %v7275_v57  ;;  %v7258_v40 = vsub.f32 %v7218_v5, %v7256_v34  ;;  %v7260_v16 = vsub.f32 %v7220_v15, %v7256_v34  ;;  %v7262_v60 = vsub.f32 %v12730_v25, %v7256_v34  ;;  %v7314_v25 = vpop.permute.xlu1 %7313 }
0x2721   :  { %9984 = vpow2.f32 %v7279_v18  ;;  %v7264_v26 = vsub.f32 %v7224_v14, %v7256_v34  ;;  %v7266_v54 = vsub.f32 %v12735_v6, %v7256_v34  ;;  %v7268_v20 = vsub.f32 %v7228_v24, %v7256_v34 }
0x2722   :  { %9986 = vpow2.f32 %v7283_v3  ;;  %v7273_v36 = vmul.f32 1.442695, %v7258_v40  ;;  %v7277_v45 = vmul.f32 1.442695, %v7260_v16  ;;  %v7281_v10 = vmul.f32 1.442695, %v7262_v60 }
0x2723   :  { %9988 = vpow2.f32 %v7287_v53  ;;  %v7285_v21 = vmul.f32 1.442695, %v7264_v26  ;;  %v7295_v5 = vmul.f32 1.442695, %v7269_v23  ;;  %v7270_v15 = vsub.f32 %v7230_v38, %v7256_v34  ;;  %v7322_v53 = vpop.permute.xlu0 %7321 }
0x2724   :  { %9990 = vpow2.f32 %v7273_v36  ;;  %v7289_v22 = vmul.f32 1.442695, %v7266_v54  ;;  %v7293_v35 = vmul.f32 1.442695, %v7268_v20  ;;  %v7318_v11 = vpop.permute.xlu1 %7317 }
0x2725   :  { %9992 = vpow2.f32 %v7277_v45  ;;  %v7297_v6 = vmul.f32 1.442695, %v7270_v15 }
0x2726   :  { %9994 = vpow2.f32 %v7291_v51 }
0x2727   :  { %9996 = vpow2.f32 %v7281_v10 }
0x2728   :  { %9998 = vpow2.f32 %v7285_v21  ;;  %v7320_v29 = vpop.permute.xlu1 %7319 }
0x2729   :  { %10000 = vpow2.f32 %v7295_v5 }
0x272a   :  { %10002 = vpow2.f32 %v7289_v22 }
0x272b   :  { %10004 = vpow2.f32 %v7293_v35 }
0x272c   :  { %v9981_v14 = vpop.eup %9980  ;;  %10006 = vpow2.f32 %v7297_v6  ;;  %v7324_v51 = vpop.permute.xlu1 %7323 }
0x272d   :  { %v9983_v7 = vpop.eup %9982  ;;  %v7395_v47 = vsel %vm201_vm2, %v9981_v14, 0.0  ;;  %v7355_v32 = vmul.f32 %v9981_v14, %v7314_v25  ;;  %v7326_v14 = vpop.permute.xlu0 %7325 }
0x272e   :  { %v9985_v9 = vpop.eup %9984  ;;  %v7396_v24 = vsel %vm201_vm2, %v9983_v7, 0.0  ;;  %v7357_v30 = vmul.f32 %v9983_v7, %v7318_v11 }
0x272f   :  { %v9987_v19 = vpop.eup %9986  ;;  %v7397_v48 = vadd.f32 %v7396_v24, %v7395_v47  ;;  %v7398_v12 = vsel %vm201_vm2, %v9985_v9, 0.0  ;;  %v7369_v34 = vsel %vm201_vm2, %v7355_v32, 0.0  ;;  %v7359_v20 = vmul.f32 %v9985_v9, %v7322_v53 }
0x2730   :  { %v9989_v31 = vpop.eup %9988  ;;  %v7400_v33 = vsel %vm201_vm2, %v9987_v19, 0.0  ;;  %v7370_v4 = vsel %vm201_vm2, %v7357_v30, 0.0  ;;  %v7328_v11 = vpop.permute.xlu1 %7327  ;;  %v7361_v24 = vmul.f32 %v9987_v19, %v7326_v14 }
0x2731   :  { %v7399_v38 = vadd.f32 %v7398_v12, %v7397_v48  ;;  %v9991_v27 = vpop.eup %9990  ;;  %v7402_v56 = vsel %vm201_vm2, %v9989_v31, 0.0  ;;  %v7371_v22 = vadd.f32 %v7370_v4, %v7369_v34  ;;  %v7330_v30 = vpop.permute.xlu0 %7329 }
0x2732   :  { %v9993_v43 = vpop.eup %9992  ;;  %v7356_v63 = vmul.f32 %v9991_v27, %v7316_v61  ;;  %v7408_v37 = vsel %vm201_vm2, %v9991_v27, 0.0  ;;  %v7374_v19 = vsel %vm201_vm2, %v7361_v24, 0.0 }
0x2733   :  { %v7401_v50 = vadd.f32 %v7400_v33, %v7399_v38  ;;  %v9995_v62 = vpop.eup %9994  ;;  %v7358_v13 = vmul.f32 %v9993_v43, %v7320_v29  ;;  %v7409_v18 = vsel %vm201_vm2, %v9993_v43, 0.0  ;;  %v7372_v38 = vsel %vm201_vm2, %v7359_v20, 0.0 }
0x2734   :  { %v9997_v49 = vpop.eup %9996  ;;  %v7410_v40 = vadd.f32 %v7409_v18, %v7408_v37  ;;  %v7404_v60 = vsel %vm201_vm2, %v9995_v62, 0.0  ;;  %v7382_v36 = vsel %vm201_vm2, %v7356_v63, 0.0  ;;  %v7332_v32 = vpop.permute.xlu1 %7331  ;;  %v7363_v63 = vmul.f32 %v9989_v31, %v7330_v30 }
0x2735   :  { %v7403_v57 = vadd.f32 %v7402_v56, %v7401_v50  ;;  %v9999_v3 = vpop.eup %9998  ;;  %v7383_v26 = vsel %vm201_vm2, %v7358_v13, 0.0  ;;  %v7411_v45 = vsel %vm201_vm2, %v9997_v49, 0.0  ;;  %v7360_v21 = vmul.f32 %v9997_v49, %v7324_v51 }
0x2736   :  { %v10001_v16 = vpop.eup %10000  ;;  %v7412_v10 = vadd.f32 %v7411_v45, %v7410_v40  ;;  %v7413_v5 = vsel %vm201_vm2, %v9999_v3, 0.0  ;;  %v7384_v25 = vadd.f32 %v7383_v26, %v7382_v36  ;;  %v7362_v9 = vmul.f32 %v9999_v3, %v7328_v11  ;;  %v7334_v3 = vpop.permute.xlu0 %7333 }
0x2737   :  { %v10003_v23 = vpop.eup %10002  ;;  %v7405_v54 = vadd.f32 %v7404_v60, %v7403_v57  ;;  %v7406_v7 = vsel %vm201_vm2, %v10001_v16, 0.0  ;;  %v7385_v33 = vsel %vm201_vm2, %v7360_v21, 0.0  ;;  %v7373_v50 = vadd.f32 %v7372_v38, %v7371_v22 }
0x2738   :  { %v10005_v15 = vpop.eup %10004  ;;  %v7414_v35 = vadd.f32 %v7413_v5, %v7412_v10  ;;  %v7415_v47 = vsel %vm201_vm2, %v10003_v23, 0.0  ;;  %v7386_v43 = vadd.f32 %v7385_v33, %v7384_v25  ;;  %v7364_v13 = vmul.f32 %v10003_v23, %v7332_v32  ;;  %v7336_v18 = vpop.permute.xlu1 %7335 }
0x2739   :  { %v10007_v6 = vpop.eup %10006  ;;  %v7407_v48 = vadd.f32 %v7406_v7, %v7405_v54  ;;  %v7417_v27 = vsel %vm201_vm2, %v10005_v15, 0.0  ;;  %v7387_v37 = vsel %vm201_vm2, %v7362_v9, 0.0  ;;  %v7375_v49 = vadd.f32 %v7374_v19, %v7373_v50 }
0x273a   :  { %v7416_v12 = vadd.f32 %v7415_v47, %v7414_v35  ;;  %v7419_v29 = vsel %vm201_vm2, %v10007_v6, 0.0  ;;  %v7388_v57 = vadd.f32 %v7387_v37, %v7386_v43  ;;  %v7365_v34 = vmul.f32 %v9995_v62, %v7334_v3  ;;  %v7338_v31 = vpop.permute.xlu0 %7337  ;;  %v8354_v47 = vld [vmem:[%s12967_s6 + $0x8d] ss:$0 sm:$0xff] }
0x273b   :  { %10008 = vrcp.f32 %v7407_v48  ;;  %v7376_v4 = vsel %vm201_vm2, %v7363_v63, 0.0  ;;  %v7366_v40 = vmul.f32 %v10005_v15, %v7336_v18  ;;  %v7389_v53 = vsel %vm201_vm2, %v7364_v13, 0.0  ;;  %v9665_v13 = vld [vmem:[%s12966_s4 + $0x240] sm:$0xff]  }
0x273c   :  { %v7418_v61 = vadd.f32 %v7417_v27, %v7416_v12  ;;  %v7377_v60 = vadd.f32 %v7376_v4, %v7375_v49  ;;  %v7390_v36 = vadd.f32 %v7389_v53, %v7388_v57  ;;  %v7340_v26 = vpop.permute.xlu1 %7339  ;;  %v7367_v45 = vmul.f32 %v10001_v16, %v7338_v31  ;;  %v8355_v53 = vld [vmem:[%s12967_s6 + $0x90] ss:$0 sm:$0xff]  ;;  %v8356_v31 = vld [vmem:[%s12967_s6 + $0x91] ss:$0 sm:$0xff] }
0x273d   :  { %v7378_v23 = vsel %vm201_vm2, %v7365_v34, 0.0  ;;  %v7368_v51 = vmul.f32 %v10007_v6, %v7340_v26  ;;  %v7391_v54 = vsel %vm201_vm2, %v7366_v40, 0.0 }
0x273e   :  { %v7420_v56 = vadd.f32 %v7419_v29, %v7418_v61  ;;  %v7379_v10 = vadd.f32 %v7378_v23, %v7377_v60  ;;  %v7392_v20 = vadd.f32 %v7391_v54, %v7390_v36  ;;  %v7380_v62 = vsel %vm201_vm2, %v7367_v45, 0.0 }
0x273f   :  { %v7393_v5 = vsel %vm201_vm2, %v7368_v51, 0.0 }
0x2740   :  { %10010 = vrcp.f32 %v7420_v56  ;;  %v7381_v15 = vadd.f32 %v7380_v62, %v7379_v10  ;;  %v7394_v22 = vadd.f32 %v7393_v5, %v7392_v20  ;;  %v9666_v10 = vld [vmem:[%s12966_s4 + $0x258] sm:$0xff]   ;;  %v9667_v20 = vld [vmem:[%s12966_s4 + $0x250] sm:$0xff]  }
0x2748   :  { %v10009_v21 = vpop.eup %10008 }
0x2749   :  { %v7422_v35 = vmul.f32 %v10009_v21, %v7381_v15  ;;  %v8357_v21 = vld [vmem:[%s12967_s6 + $0x92] ss:$0 sm:$0xff] }
0x274d   :  { %v10011_v25 = vpop.eup %10010 }
0x274e   :  { %v7424_v14 = vmul.f32 %v10011_v25, %v7394_v22 }
0x2750   :  { %v7429_v7 = vpack.c.bf16 %v7424_v14, %v7422_v35 }
0x2752   :  { %9474 = vmatmul.mubr.msk.bf16.vlgmr.msra.gmra.mxu1 %vm201_vm2, %v7429_v7 }
0x2753   :  { %9489 = vmatprep.mubr.msk.bf16.mxu1 %vm10084_vm0, %v12978_v44  ;;  %9486 = vmatpush3.bf16.msra.mxu1 %v9666_v10 }
0x2754   :  { %9487 = vmatprep.subr.bf16.mxu1 %v12978_v44 }
0x2757   :  { %9488 = vmatpush3.bf16.msra.mxu1 %v9667_v20 }
0x2758   :  { %9501 = vmatprep.subr.bf16.mxu1 %v12978_v44 }
0x2812   :  { %v7479_v16 = vpop.f32.mrf.mxu1 }
0x2813   :  { %v7486_v6 = vadd.f32 %v7479_v16, %v12448_v2  ;;  %v9664_v2 = vld [vmem:[%s12966_s4 + $0x248] sm:$0xff]  }
0x2814   :  { %v9475_v11 = vpop.f32.mrf.mxu1  ;;  %9478 = vmatpush3.bf16.msra.mxu0 %v9664_v2 }
0x2815   :  { %v12786_v24 = vadd.f32 %v8354_v47, %v7486_v6  ;;  %9479 = vmatprep.subr.bf16.mxu0 %v12978_v44  ;;  %v9669_v6 = vld [vmem:[%s12966_s4 + $0x260] sm:$0xff]   ;;  %v9670_v11 = vld [vmem:[%s12966_s4 + $0x88] sm:$0xff]  }
0x2816   :  { %v7482_v48 = vpop.f32.mrf.mxu1 }
0x2817   :  { %v7487_v12 = vadd.f32 %v7482_v48, %v12451_v39  ;;  %v7497_v38 = vsel %vm201_vm2, %v12786_v24, 0.0  ;;  %v8361_v48 = vld [vmem:[%s12967_s6 + $0x93] ss:$0 sm:$0xff] }
0x2818   :  { %7498 = vadd.xlane.f32.xlu0 %v7497_v38  ;;  %v9476_v9 = vpop.f32.mrf.mxu1  ;;  %9480 = vmatpush3.bf16.msra.mxu0 %v9665_v13 }
0x2819   :  { %v12791_v33 = vadd.f32 %v8354_v47, %v7487_v12  ;;  %9493 = vmatprep.subr.bf16.mxu0 %v12978_v44  ;;  %v9668_v47 = vld [vmem:[%s12966_s4 + $0x268] sm:$0xff]  }
0x281b   :  { %v7500_v27 = vsel %vm201_vm2, %v12791_v33, 0.0 }
0x281c   :  { %7501 = vadd.xlane.f32.xlu1 %v7500_v27 }
0x28a1   :  { %v7499_v50 = vpop.xlane.xlu0 %7498 }
0x28a2   :  { %v7503_v39 = vmul.f32 0.03125, %v7499_v50 }
0x28a4   :  { %v7505_v43 = vsub.f32 %v12786_v24, %v7503_v39 }
0x28a5   :  { %v7502_v61 = vpop.xlane.xlu1 %7501 }
0x28a6   :  { %v7504_v29 = vmul.f32 0.03125, %v7502_v61  ;;  %v7507_v32 = vmul.f32 %v7505_v43, %v7505_v43 }
0x28a8   :  { %v7506_v30 = vsub.f32 %v12791_v33, %v7504_v29  ;;  %v7509_v56 = vsel %vm201_vm2, %v7507_v32, 0.0  ;;  %v9671_v29 = vld [vmem:[%s12966_s4 + $0x80] sm:$0xff]   ;;  %v6764_v32 = vadd.f32 %v12653_v8, %v12631_v41  ;;  %v9673_v41 = vld [vmem:[%s12966_s4 + $0x70] sm:$0xff]  }
0x28a9   :  { %7510 = vadd.xlane.f32.xlu0 %v7509_v56 }
0x28aa   :  { %v7508_v63 = vmul.f32 %v7506_v30, %v7506_v30 }
0x28ac   :  { %v7512_v19 = vsel %vm201_vm2, %v7508_v63, 0.0 }
0x28ad   :  { %7513 = vadd.xlane.f32.xlu0 %v7512_v19 }
0x2932   :  { %v7511_v37 = vpop.xlane.xlu0 %7510 }
0x2933   :  { %v7515_v49 = vmul.f32 0.03125, %v7511_v37 }
0x2935   :  { %v7517_v57 = vadd.f32 1e-05, %v7515_v49 }
0x2936   :  { %v7514_v18 = vpop.xlane.xlu0 %7513 }
0x2937   :  { %10012 = vrsqrt.f32 %v7517_v57  ;;  %v7516_v3 = vmul.f32 0.03125, %v7514_v18 }
0x2939   :  { %v7518_v34 = vadd.f32 1e-05, %v7516_v3 }
0x293b   :  { %10014 = vrsqrt.f32 %v7518_v34 }
0x2944   :  { %v10013_v4 = vpop.eup %10012 }
0x2945   :  { %v7521_v40 = vmul.f32 %v10013_v4, %v7505_v43 }
0x2947   :  { %v7527_v36 = vmul.f32 %v8355_v53, %v7521_v40 }
0x2948   :  { %v10015_v60 = vpop.eup %10014 }
0x2949   :  { %v7522_v26 = vmul.f32 %v10015_v60, %v7506_v30  ;;  %v7533_v23 = vadd.f32 %v8356_v31, %v7527_v36  ;;  %v6775_v30 = vadd.f32 %v6764_v32, %v12387_v52  ;;  %v8365_v52 = vld [vmem:[%s12967_s6 + $0x94] ss:$0 sm:$0xff] }
0x294b   :  { %v7528_v45 = vmul.f32 %v8355_v53, %v7522_v26  ;;  %v7812_v55 = vpack.c.bf16 %v6775_v30, %v6775_v30 }
0x294d   :  { %v7534_v51 = vadd.f32 %v8356_v31, %v7528_v45 }
0x294f   :  { %v7539_v54 = vpack.c.bf16 %v7534_v51, %v7533_v23 }
0x2951   :  { %9482 = vmatmul.mubr.msk.bf16.vlgmr.msra.gmra.mxu0 %vm201_vm2, %v7539_v54 }
0x2952   :  { %9497 = vmatprep.mubr.msk.bf16.mxu0 %vm10084_vm0, %v12978_v44  ;;  %9494 = vmatpush3.bf16.msra.mxu0 %v9668_v47 }
0x2953   :  { %9495 = vmatprep.subr.bf16.mxu0 %v12978_v44 }
0x2956   :  { %9496 = vmatpush3.bf16.msra.mxu0 %v9669_v6 }
0x2957   :  { %9509 = vmatprep.subr.bf16.mxu0 %v9670_v11 }
0x2a11   :  { %v7594_v62 = vpop.f32.mrf.mxu0 }
0x2a12   :  { %v7595_v15 = vadd.f32 %v8357_v21, %v7594_v62 }
0x2a13   :  { %v9483_v5 = vpop.f32.mrf.mxu0 }
0x2a14   :  { %v7601_v14 = vmax.f32 %v7595_v15, 0.0 }
0x2a15   :  { %v7597_v22 = vpop.f32.mrf.mxu0 }
0x2a16   :  { %v7598_v25 = vadd.f32 %v8357_v21, %v7597_v22 }
0x2a17   :  { %v9484_v35 = vpop.f32.mrf.mxu0 }
0x2a18   :  { %v7602_v7 = vmax.f32 %v7598_v25, 0.0 }
0x2a1a   :  { %v7607_v16 = vpack.c.bf16 %v7602_v7, %v7601_v14 }
0x2a1c   :  { %9490 = vmatmul.mubr.msk.bf16.vlgmr.msra.gmra.mxu1 %vm201_vm2, %v7607_v16 }
0x2a1d   :  { %9505 = vmatprep.mubr.msk.bf16.mxu1 %vm10084_vm0, %v12978_v44  ;;  %9502 = vmatpush3.bf16.msra.mxu1 %v9672_v1 }
0x2a1e   :  { %9503 = vmatprep.subr.bf16.mxu1 %v12978_v44 }
0x2a21   :  { %9504 = vmatpush3.bf16.msra.mxu1 %v9673_v41 }
0x2adc   :  { %v7662_v12 = vpop.f32.mrf.mxu1 }
0x2add   :  { %v7663_v9 = vadd.f32 %v8361_v48, %v7662_v12 }
0x2ade   :  { %v9491_v38 = vpop.f32.mrf.mxu1 }
0x2adf   :  { %v7669_v39 = vmax.f32 %v7663_v9, 0.0 }
0x2ae0   :  { %v7665_v27 = vpop.f32.mrf.mxu1 }
0x2ae1   :  { %v7666_v2 = vadd.f32 %v8361_v48, %v7665_v27 }
0x2ae2   :  { %v9492_v50 = vpop.f32.mrf.mxu1 }
0x2ae3   :  { %v7670_v43 = vmax.f32 %v7666_v2, 0.0 }
0x2ae5   :  { %v7675_v61 = vpack.c.bf16 %v7670_v43, %v7669_v39 }
0x2ae7   :  { %9498 = vmatmul.mubr.msk.bf16.vlgmr.msra.gmra.mxu0 %vm201_vm2, %v7675_v61 }
0x2ae8   :  { %9510 = vmatpush3.bf16.msra.mxu0 %v9670_v11  ;;  %9513 = vmatprep.mubr.msk.bf16.mxu0 %vm201_vm2, %v7809_v28 }
0x2ae9   :  { %9511 = vmatprep.subr.bf16.mxu0 %v9671_v29 }
0x2aec   :  { %9512 = vmatpush3.bf16.msra.mxu0 %v9671_v29 }
0x2aef   :  { %9514 = vmatmul.mubr.msk.bf16.vlgmr.msra.gmra.mxu0 %vm201_vm2, %v7810_v46 }
0x2af0   :  { %9517 = vmatprep.mubr.msk.bf16.mxu0 %vm201_vm2, %v7811_v17 }
0x2af7   :  { %9518 = vmatmul.mubr.msk.bf16.gmra.mxu0 %vm201_vm2, %v7812_v55 }
0x2ba7   :  { %v7730_v0 = vpop.f32.mrf.mxu0 }
0x2ba8   :  { %v7731_v46 = vadd.f32 %v8365_v52, %v7730_v0 }
0x2ba9   :  { %v9499_v58 = vpop.f32.mrf.mxu0 }
0x2baa   :  { %v7737_v17 = vadd.f32 %v7731_v46, %v12786_v24 }
0x2bab   :  { %v7733_v28 = vpop.f32.mrf.mxu0 }
0x2bac   :  { %v7734_v8 = vadd.f32 %v8365_v52, %v7733_v28 }
0x2bad   :  { %v9500_v59 = vpop.f32.mrf.mxu0 }
0x2bae   :  { %v7738_v56 = vadd.f32 %v7734_v8, %v12791_v33 }
0x2baf   :  { %v9515_v63 = vpop.f32.mrf.mxu0 }
0x2bb0   :  { %v7743_v44 = vpack.c.bf16 %v7738_v56, %v7737_v17  ;;  %v7885_v19 = vadd.f32 %v9515_v63, %v8373_v42 }
0x2bb1   :  { %v7876_v13 = vpop.f32.mrf.mxu0 }
0x2bb2   :  { %v7915_v37 = vmin.f32 %v7885_v19, 20.0  ;;  %v12906_v49 = vadd.f32 %v8373_v42, %v7876_v13  ;;  %9506 = vmatmul.mubr.msk.bf16.vlgmr.msra.gmra.mxu1 %vm201_vm2, %v7743_v44  ;;  %vm7908_vm11 = vcmp.gt.f32.partialorder %v7885_v19, 20.0  ;;  %vm8000_vm2 = vcmask 56368  }
0x2bb3   :  { %v9516_v57 = vpop.f32.mrf.mxu0 }
0x2bb4   :  { %v7924_v18 = vmul.f32 1.442695, %v7915_v37  ;;  %v7913_v3 = vmin.f32 %v12906_v49, 20.0  ;;  %v12910_v34 = vadd.f32 %v9516_v57, %v8373_v42  ;;  %vm7906_vm12 = vcmp.gt.f32.partialorder %v12906_v49, 20.0 }
0x2bb5   :  { %v7879_v4 = vpop.f32.mrf.mxu0 }
0x2bb6   :  { %10016 = vpow2.f32 %v7924_v18  ;;  %v7920_v24 = vmul.f32 1.442695, %v7913_v3  ;;  %v7916_v33 = vmin.f32 %v12910_v34, 20.0  ;;  %v12913_v40 = vadd.f32 %v8373_v42, %v7879_v4  ;;  %v8369_v3 = vld [vmem:[%s12967_s6 + $0x4e] ss:$0 sm:$0xff] }
0x2bb7   :  { %v9519_v53 = vpop.f32.mrf.mxu0  ;;  %vm7909_vm14 = vcmp.gt.f32.partialorder %v12910_v34, 20.0 }
0x2bb8   :  { %10018 = vpow2.f32 %v7920_v24  ;;  %v7926_v60 = vmul.f32 1.442695, %v7916_v33  ;;  %v12915_v36 = vadd.f32 %v9519_v53, %v8373_v42  ;;  %v7914_v26 = vmin.f32 %v12913_v40, 20.0 }
0x2bb9   :  { %v7892_v31 = vpop.f32.mrf.mxu0  ;;  %vm7907_vm13 = vcmp.gt.f32.partialorder %v12913_v40, 20.0 }
0x2bba   :  { %10020 = vpow2.f32 %v7926_v60  ;;  %v7919_v45 = vmin.f32 %v12915_v36, 20.0  ;;  %v7893_v23 = vadd.f32 %v8373_v42, %v7892_v31  ;;  %v7922_v51 = vmul.f32 1.442695, %v7914_v26 }
0x2bbb   :  { %v9520_v54 = vpop.f32.mrf.mxu0  ;;  %vm7912_vm1 = vcmp.gt.f32.partialorder %v12915_v36, 20.0 }
0x2bbc   :  { %v7932_v10 = vmul.f32 1.442695, %v7919_v45  ;;  %v7917_v20 = vmin.f32 %v7893_v23, 20.0  ;;  %10022 = vpow2.f32 %v7922_v51  ;;  %vm7910_vm15 = vcmp.gt.f32.partialorder %v7893_v23, 20.0 }
0x2bbd   :  { %v7895_v21 = vpop.f32.mrf.mxu0 }
0x2bbe   :  { %10024 = vpow2.f32 %v7932_v10  ;;  %v7928_v62 = vmul.f32 1.442695, %v7917_v20  ;;  %v7896_v5 = vadd.f32 %v8373_v42, %v7895_v21 }
0x2bc0   :  { %10026 = vpow2.f32 %v7928_v62  ;;  %v7918_v15 = vmin.f32 %v7896_v5, 20.0  ;;  %vm7911_vm0 = vcmp.gt.f32.partialorder %v7896_v5, 20.0 }
0x2bc2   :  { %v7930_v22 = vmul.f32 1.442695, %v7918_v15 }
0x2bc3   :  { %v10017_v25 = vpop.eup %10016 }
0x2bc4   :  { %v7936_v35 = vadd.f32 1.0, %v10017_v25  ;;  %10028 = vpow2.f32 %v7930_v22 }
0x2bc5   :  { %v10019_v14 = vpop.eup %10018 }
0x2bc6   :  { %10030 = vlog2.f32 %v7936_v35  ;;  %v7934_v7 = vadd.f32 1.0, %v10019_v14 }
0x2bc7   :  { %v10021_v16 = vpop.eup %10020 }
0x2bc8   :  { %10032 = vlog2.f32 %v7934_v7  ;;  %v7937_v47 = vadd.f32 1.0, %v10021_v16 }
0x2bc9   :  { %v10023_v6 = vpop.eup %10022 }
0x2bca   :  { %10034 = vlog2.f32 %v7937_v47  ;;  %v7935_v48 = vadd.f32 1.0, %v10023_v6 }
0x2bcb   :  { %v10025_v11 = vpop.eup %10024 }
0x2bcc   :  { %10036 = vlog2.f32 %v7935_v48  ;;  %v7940_v38 = vadd.f32 1.0, %v10025_v11 }
0x2bcd   :  { %v10027_v12 = vpop.eup %10026 }
0x2bce   :  { %v7938_v9 = vadd.f32 1.0, %v10027_v12 }
0x2bd0   :  { %10038 = vlog2.f32 %v7938_v9 }
0x2bd1   :  { %v10029_v27 = vpop.eup %10028  ;;  %10040 = vlog2.f32 %v7940_v38 }
0x2bd2   :  { %v7939_v2 = vadd.f32 1.0, %v10029_v27 }
0x2bd3   :  { %v10031_v50 = vpop.eup %10030 }
0x2bd4   :  { %10042 = vlog2.f32 %v7939_v2  ;;  %v7946_v39 = vmul.f32 0.6931472, %v10031_v50 }
0x2bd5   :  { %v10033_v43 = vpop.eup %10032 }
0x2bd6   :  { %v7957_v61 = vsel %vm7908_vm11, %v7885_v19, %v7946_v39  ;;  %v7942_v29 = vmul.f32 0.6931472, %v10033_v43 }
0x2bd7   :  { %v10035_v32 = vpop.eup %10034  ;;  %7983 = vrot.lane.b32.xlu1 %v7957_v61, %s10091_s29 }
0x2bd8   :  { %v7955_v55 = vsel %vm7906_vm12, %v12906_v49, %v7942_v29  ;;  %v7948_v1 = vmul.f32 0.6931472, %v10035_v32 }
0x2bd9   :  { %v10037_v30 = vpop.eup %10036 }
0x2bda   :  { %v7944_v41 = vmul.f32 0.6931472, %v10037_v30  ;;  %v7958_v46 = vsel %vm7909_vm14, %v12910_v34, %v7948_v1 }
0x2bdb   :  { %7979 = vrot.lane.b32.xlu1 %v7955_v55, %s10091_s29 }
0x2bdc   :  { %v7956_v0 = vsel %vm7907_vm13, %v12913_v40, %v7944_v41 }
0x2bdd   :  { %v10039_v52 = vpop.eup %10038  ;;  %7981 = vrot.lane.b32.xlu0 %v7956_v0, %s10091_s29 }
0x2bde   :  { %v10041_v58 = vpop.eup %10040  ;;  %v7950_v28 = vmul.f32 0.6931472, %v10039_v52 }
0x2bdf   :  { %7985 = vrot.lane.b32.xlu1 %v7958_v46, %s10091_s29  ;;  %v7954_v42 = vmul.f32 0.6931472, %v10041_v58 }
0x2be0   :  { %v7959_v8 = vsel %vm7910_vm15, %v7893_v23, %v7950_v28 }
0x2be1   :  { %v10043_v59 = vpop.eup %10042  ;;  %7987 = vrot.lane.b32.xlu0 %v7959_v8, %s10091_s29  ;;  %v7961_v63 = vsel %vm7912_vm1, %v12915_v36, %v7954_v42 }
0x2be2   :  { %v7952_v17 = vmul.f32 0.6931472, %v10043_v59 }
0x2be4   :  { %v7960_v56 = vsel %vm7911_vm0, %v7896_v5, %v7952_v17 }
0x2be5   :  { %7989 = vrot.lane.b32.xlu1 %v7960_v56, %s10091_s29  ;;  %7991 = vrot.lane.b32.xlu0 %v7961_v63, %s10091_s29 }
0x2c49   :  { %v7984_v44 = vpop.permute.xlu1 %7983 }
0x2c4a   :  { %8003 = vst.msk [vmem:[%s12971_s7 + $0x10] sm:$0xff] %vm8000_vm2, %v7984_v44 }
0x2c4d   :  { %v7980_v19 = vpop.permute.xlu1 %7979 }
0x2c4f   :  { %v7982_v13 = vpop.permute.xlu0 %7981 }
0x2c51   :  { %v7986_v37 = vpop.permute.xlu1 %7985 }
0x2c52   :  { %8004 = vst.msk [vmem:[%s12971_s7 + $0x18] sm:$0xff] %vm8000_vm2, %v7986_v37 }
0x2c53   :  { %v7988_v49 = vpop.permute.xlu0 %7987 }
0x2c54   :  { %8005 = vst.msk [vmem:[%s12971_s7 + $0x20] sm:$0xff] %vm8000_vm2, %v7988_v49 }
0x2c57   :  { %v7990_v57 = vpop.permute.xlu1 %7989  ;;  %v7992_v18 = vpop.permute.xlu0 %7991 }
0x2c58   :  { %8006 = vst.msk [vmem:[%s12971_s7 + $0x28] sm:$0xff] %vm8000_vm2, %v7990_v57  ;;  %8007 = vst.msk [vmem:[%s12971_s7 + $0x30] sm:$0xff] %vm8000_vm2, %v7992_v18 }
0x2c72   :  { %v7798_v34 = vpop.f32.mrf.mxu1 }
0x2c73   :  { %v7799_v4 = vadd.f32 %v8369_v3, %v7798_v34 }
0x2c74   :  { %v9507_v24 = vpop.f32.mrf.mxu1 }
0x2c75   :  { %7970 = vst.msk [vmem:[%s12971_s7] sm:$0xff] %vm7969_vm3, %v7799_v4 }
0x2c76   :  { %8001 = vst.msk [vmem:[%s12971_s7] sm:$0xff] %vm8000_vm2, %v7980_v19  ;;  %v7801_v33 = vpop.f32.mrf.mxu1 }
0x2c77   :  { %v7802_v40 = vadd.f32 %v8369_v3, %v7801_v33 }
0x2c78   :  { %v9508_v53 = vpop.f32.mrf.mxu1 }
0x2c79   :  { %7971 = vst.msk [vmem:[%s12971_s7 + $0x8] sm:$0xff] %vm7969_vm3, %v7802_v40 }
0x2c7a   :  { %8002 = vst.msk [vmem:[%s12971_s7 + $0x8] sm:$0xff] %vm8000_vm2, %v7982_v13 }

</bundles_post_ra>
